<compile_context>
chip_gen: v7x
topology: tpu7x:2x2x1
jax: 0.10.0
libtpu: 0.0.40
codegen_flags: <defaults>
</compile_context>

<pallas_src>
import functools

import jax
import jax.numpy as jnp
from jax.experimental import pallas as pl
from jax.experimental.pallas import tpu as pltpu


# ----------------------------------------------------------------------------
# TPU generation detection (tile heuristics are generation-aware)
# ----------------------------------------------------------------------------
def _tpu_generation():
    try:
        kind = jax.devices()[0].device_kind.lower()
    except Exception:
        return 6
    if "v7" in kind or "7x" in kind:
        return 7
    if "v6" in kind:
        return 6
    if "v5" in kind:
        return 5
    if "v4" in kind:
        return 4
    return 6


_GEN = _tpu_generation()


# ----------------------------------------------------------------------------
# Pallas kernels
# ----------------------------------------------------------------------------
def _conv_kernel(*refs, relu1, relu2, has_aff2, has_res):
    """Fused matmul + BN affine (+ReLU) (+second affine) (+residual) (+ReLU).

    refs layout: a, w, affine, [res], out, acc_scratch.
    K loop accumulates into the f32 VMEM scratch; the bf16 out block is written
    once in the final K step (single store, low vst pressure on v5e).
    """
    a_ref, w_ref, aff_ref = refs[0], refs[1], refs[2]
    idx = 3
    if has_res:
        r_ref = refs[idx]
        idx += 1
    o_ref = refs[idx]
    acc_ref = refs[idx + 1]

    k = pl.program_id(2)

    @pl.when(k == 0)
    def _():
        acc_ref[...] = jnp.zeros_like(acc_ref)

    acc_ref[...] += jnp.dot(a_ref[...], w_ref[...],
                            preferred_element_type=jnp.float32)

    @pl.when(k == pl.num_programs(2) - 1)
    def _():
        aff = aff_ref[...]
        y = acc_ref[...] * aff[0:1, :] + aff[1:2, :]
        if relu1:
            y = jnp.maximum(y, 0.0)
        if has_aff2:
            y = y * aff[2:3, :] + aff[3:4, :]
        if has_res:
            y = y + r_ref[...].astype(jnp.float32)
        if relu2:
            y = jnp.maximum(y, 0.0)
        o_ref[...] = y.astype(o_ref.dtype)


def _maxpool_kernel(x_ref, o_ref):
    """2x2 max-pool; input block (1, th, 2, Wo, 2*C) -> output (1, th, Wo, C)."""
    v = x_ref[...]                             # (1, th, 2, Wo, 2C)
    v = jnp.maximum(v[:, :, 0], v[:, :, 1])    # reduce the H pair
    c = o_ref.shape[-1]
    o_ref[...] = jnp.maximum(v[..., :c], v[..., c:])   # reduce the W pair (lanes)


# ----------------------------------------------------------------------------
# Helpers / wrappers
# ----------------------------------------------------------------------------
def _round_up(x, m):
    return ((x + m - 1) // m) * m


def _im2col(x, kh, kw, stride, pad):
    """x: (B,H,W,C) bf16 -> patches (B*Ho*Wo, kh*kw*C), Ho, Wo."""
    B, H, W, C = x.shape
    if pad:
        x = jnp.pad(x, ((0, 0), (pad, pad), (pad, pad), (0, 0)))
    Hp, Wp = H + 2 * pad, W + 2 * pad
    Ho = (Hp - kh) // stride + 1
    Wo = (Wp - kw) // stride + 1
    cols = []
    for i in range(kh):
        for j in range(kw):
            cols.append(x[:, i:i + stride * Ho:stride,
                          j:j + stride * Wo:stride, :])
    patches = jnp.concatenate(cols, axis=-1) if len(cols) > 1 else cols[0]
    return patches.reshape(B * Ho * Wo, kh * kw * C), Ho, Wo


def conv_apply(x, p, residual=None, relu_post=False, affine2=None, unpad=True):
    """Conv (+ folded BN) with fused epilogue, NHWC input, via Pallas matmul.

    Output is bf16.  If unpad=False the lane-padded (Np-wide) channel dim is
    kept so downstream convs (built at the padded Cin) can consume it directly.
    """
    B = x.shape[0]
    patches, Ho, Wo = _im2col(x.astype(jnp.bfloat16),
                              p["kh"], p["kw"], p["stride"], p["pad"])
    M, K = patches.shape
    Cout = p["w"].shape[1]
    gen = _GEN

    # --- tile choices (generation-aware) ------------------------------------
    tk = 256 if (gen >= 6 and K > 128) else 128      # 256-deep MXU on v6e/v7x
    Kp = _round_up(K, tk)
    tn = 256 if (gen >= 6 and Cout > 128) else 128
    Np = _round_up(Cout, tn)
    if M <= 1024:
        tm = M if M % 16 == 0 else _round_up(M, 16)  # bf16 sublane packing
    else:
        tm = 512
    Mp = _round_up(M, tm)
    # v7x has 2 TensorCores: make sure some 'parallel' axis has >= 2 blocks.
    if gen >= 7 and Mp // tm == 1 and Np // tn == 1 and M >= 64:
        tm = _round_up(-(-M // 2), 16)
        Mp = 2 * tm

    A = jnp.pad(patches, ((0, Mp - M), (0, Kp - K)))
    Wm = jnp.pad(p["w"], ((0, Kp - K), (0, Np - Cout)))

    # Packed affine rows: [scale, shift] (+ [scale2, shift2]) -> one operand.
    has_aff2 = affine2 is not None
    n_aff = 4 if has_aff2 else 2
    aff = jnp.zeros((n_aff, Np), jnp.float32)
    aff = aff.at[0, :Cout].set(p["scale"]).at[1, :Cout].set(p["shift"])
    if has_aff2:
        aff = aff.at[2, :Cout].set(affine2[0]).at[3, :Cout].set(affine2[1])

    inputs = [A, Wm, aff]
    in_specs = [
        pl.BlockSpec((tm, tk), lambda m, n, k: (m, k)),
        pl.BlockSpec((tk, tn), lambda m, n, k: (k, n)),
        pl.BlockSpec((n_aff, tn), lambda m, n, k: (0, n)),
    ]

    has_res = residual is not None
    if has_res:
        r = residual.reshape(-1, residual.shape[-1]).astype(jnp.bfloat16)
        r = jnp.pad(r, ((0, Mp - M), (0, Np - r.shape[-1])))
        inputs.append(r)
        in_specs.append(pl.BlockSpec((tm, tn), lambda m, n, k: (m, n)))

    kernel = functools.partial(_conv_kernel,
                               relu1=bool(p["relu"]), relu2=bool(relu_post),
                               has_aff2=has_aff2, has_res=has_res)

    out = pl.pallas_call(
        kernel,
        out_shape=jax.ShapeDtypeStruct((Mp, Np), jnp.bfloat16),
        grid_spec=pltpu.PrefetchScalarGridSpec(
            num_scalar_prefetch=0,
            grid=(Mp // tm, Np // tn, Kp // tk),
            in_specs=in_specs,
            out_specs=pl.BlockSpec((tm, tn), lambda m, n, k: (m, n)),
            scratch_shapes=[pltpu.VMEM((tm, tn), jnp.float32)],
        ),
        compiler_params=pltpu.CompilerParams(
            dimension_semantics=("parallel", "parallel", "arbitrary")),
    )(*inputs)

    if Mp != M:
        out = out[:M]
    if unpad and Np != Cout:
        out = out[:, :Cout]
    return out.reshape(B, Ho, Wo, out.shape[-1])


def maxpool2x2(x):
    """2x2/stride-2 max pool, single pass over x (NHWC, bf16 in/out)."""
    B, H, W, C = x.shape
    Ho, Wo = H // 2, W // 2
    xc = x[:, :2 * Ho, :2 * Wo, :]
    xr = xc.reshape(B, Ho, 2, Wo, 2 * C)                    # free reshape
    itemsize = jnp.dtype(x.dtype).itemsize
    # bound the double-buffered input block to ~8 MiB of VMEM
    cap = max(1, (8 * 1024 * 1024) // (4 * Wo * C * itemsize * 2))
    th = 1
    for d in range(1, Ho + 1):
        if Ho % d == 0 and d <= cap:
            th = d
    return pl.pallas_call(
        _maxpool_kernel,
        out_shape=jax.ShapeDtypeStruct((B, Ho, Wo, C), x.dtype),
        grid_spec=pltpu.PrefetchScalarGridSpec(
            num_scalar_prefetch=0,
            grid=(B, Ho // th),
            in_specs=[pl.BlockSpec((1, th, 2, Wo, 2 * C),
                                   lambda b, i: (b, i, 0, 0, 0))],
            out_specs=pl.BlockSpec((1, th, Wo, C),
                                   lambda b, i: (b, i, 0, 0)),
        ),
        compiler_params=pltpu.CompilerParams(
            dimension_semantics=("parallel", "parallel")),
    )(xr)


# ----------------------------------------------------------------------------
# Parameter construction (deterministic, BN folded to scale/shift, eval mode)
# ----------------------------------------------------------------------------
def _rand_conv(key, cin, cout, kh, kw, bn=True):
    """Returns raw (cout,cin,kh,kw) weights plus folded BN scale/shift."""
    k1, k2, k3, k4, k5, k6 = jax.random.split(key, 6)
    fan_in = cin * kh * kw
    w = jax.random.normal(k1, (cout, cin, kh, kw), jnp.float32) * (2.0 / fan_in) ** 0.5
    b = jax.random.normal(k2, (cout,), jnp.float32) * 0.01
    if bn:
        gamma = 1.0 + 0.1 * jax.random.normal(k3, (cout,), jnp.float32)
        beta = 0.1 * jax.random.normal(k4, (cout,), jnp.float32)
        mean = 0.1 * jax.random.normal(k5, (cout,), jnp.float32)
        var = 1.0 + 0.1 * jnp.abs(jax.random.normal(k6, (cout,), jnp.float32))
        s = gamma / jnp.sqrt(var + 1e-5)
        return w, s, (b - mean) * s + beta
    return w, jnp.ones((cout,), jnp.float32), b


def _pack_conv(w4d, scale, shift, stride, pad, relu):
    """(Cout,Cin,KH,KW) -> (KH*KW*Cin, Cout) bf16 matrix, matching im2col."""
    cout, cin, kh, kw = w4d.shape
    w_mat = jnp.transpose(w4d, (2, 3, 1, 0)).reshape(kh * kw * cin, cout)
    return dict(w=w_mat.astype(jnp.bfloat16), scale=scale, shift=shift,
                kh=kh, kw=kw, stride=stride, pad=pad, relu=relu)


def make_bn(key, c):
    k1, k2, k3, k4 = jax.random.split(key, 4)
    gamma = 1.0 + 0.1 * jax.random.normal(k1, (c,), jnp.float32)
    beta = 0.1 * jax.random.normal(k2, (c,), jnp.float32)
    mean = 0.1 * jax.random.normal(k3, (c,), jnp.float32)
    var = 1.0 + 0.1 * jnp.abs(jax.random.normal(k4, (c,), jnp.float32))
    s = gamma / jnp.sqrt(var + 1e-5)
    return s, beta - mean * s


def init_params(key, num_classes):
    ks = iter(jax.random.split(key, 80))
    nc = num_classes
    P = {"num_classes": nc}

    def conv(cin, cout, kh, kw, stride=1, pad=0, bn=True, relu=True):
        w, s, t = _rand_conv(next(ks), cin, cout, kh, kw, bn)
        return _pack_conv(w, s, t, stride, pad, relu)

    P["conv1"] = conv(3, 64, 7, 7, stride=2, pad=0)
    P["batch_normal"] = make_bn(next(ks), 64)
    # TODO(synk): reference calls up_channal(x, in_channels=64, out_channels=128)
    # which is invalid; realized here as a dedicated 64->128 1x1 conv.
    P["up_channal_64_128"] = conv(64, 128, 1, 1, bn=False, relu=False)
    P["up_channal"] = conv(128, 256, 1, 1, bn=False, relu=False)
    # TODO(synk): 3x3 convs inside residual blocks use padding=0 in the
    # reference, which breaks the residual adds; padding=1 used so shapes match.
    P["residual_a"] = [conv(64, 32, 1, 1), conv(32, 32, 3, 3, pad=1),
                       conv(32, 128, 1, 1)]
    P["rb1a"] = [conv(128, 64, 1, 1), conv(64, 64, 3, 3, pad=1),
                 conv(64, 128, 1, 1)]
    P["rb1b"] = [conv(128, 64, 1, 1), conv(64, 64, 3, 3, pad=1),
                 conv(64, 256, 1, 1)]
    # TODO(synk): second residual_branch1_b call receives 256-ch input and must
    # produce 512-ch output to match the hourglass branch; separate weights.
    P["rb1b2"] = [conv(256, 64, 1, 1), conv(64, 64, 3, 3, pad=1),
                  conv(64, 512, 1, 1)]
    P["hg1a"] = [conv(256, 256, 3, 3, pad=1), conv(256, 256, 3, 3, pad=1),
                 conv(256, 512, 3, 3, pad=1, bn=False, relu=False)]

    # ---- heads: both tl/bd sides batched into single block-structured convs --
    # conv3_{tl,bd}_{a,b}: 512->512 3x3 BN ReLU, concatenated along Cout.
    raw3 = [_rand_conv(next(ks), 512, 512, 3, 3, True) for _ in range(4)]
    P["head_conv3_ab"] = _pack_conv(
        jnp.concatenate([r[0] for r in raw3], axis=0),
        jnp.concatenate([r[1] for r in raw3]),
        jnp.concatenate([r[2] for r in raw3]), 1, 1, True)
    # TODO(synk): conv3_*_c is 512->512 in the reference but is added to a
    # 128-ch tensor; corrected to 512->128.
    rawc = [_rand_conv(next(ks), 512, 128, 1, 1, True) for _ in range(2)]
    P["head_conv3_c"] = _pack_conv(
        jnp.concatenate([r[0] for r in rawc], axis=0),
        jnp.concatenate([r[1] for r in rawc]),
        jnp.concatenate([r[2] for r in rawc]), 1, 0, False)
    # conv4: the (conv3_a + conv3_b) sum is folded in by tiling the per-side
    # weight twice along Cin (conv is linear); both sides block-diagonal.
    w4tl, s4tl, t4tl = _rand_conv(next(ks), 512, 128, 3, 3, True)
    w4bd, s4bd, t4bd = _rand_conv(next(ks), 512, 128, 3, 3, True)
    w4 = jnp.zeros((256, 2048, 3, 3), jnp.float32)
    w4 = w4.at[:128, :512].set(w4tl).at[:128, 512:1024].set(w4tl)
    w4 = w4.at[128:, 1024:1536].set(w4bd).at[128:, 1536:].set(w4bd)
    P["conv4_both"] = _pack_conv(w4, jnp.concatenate([s4tl, s4bd]),
                                 jnp.concatenate([t4tl, t4bd]), 1, 1, False)
    # conv5: 128->nc per side, block-diagonal over the two sides.
    w5tl, s5tl, t5tl = _rand_conv(next(ks), 128, nc, 3, 3, True)
    w5bd, s5bd, t5bd = _rand_conv(next(ks), 128, nc, 3, 3, True)
    w5 = jnp.zeros((2 * nc, 256, 3, 3), jnp.float32)
    w5 = w5.at[:nc, :128].set(w5tl).at[nc:, 128:].set(w5bd)
    P["conv5_both"] = _pack_conv(w5, jnp.concatenate([s5tl, s5bd]),
                                 jnp.concatenate([t5tl, t5bd]), 1, 1, True)
    # conv6_{a,b,c} per side, built at the lane-padded Cin=128 so the padded
    # conv5 output feeds it directly (extra channels hit zero weight rows).
    # TODO(synk): reference declares conv6_* with 128 input channels but feeds
    # the nc-channel conv5 output; corrected to nc input channels.
    w6 = jnp.zeros((6 * nc, 128, 3, 3), jnp.float32)
    s6, t6 = [], []
    for side in range(2):
        for j in range(3):
            w, s, t = _rand_conv(next(ks), nc, nc, 3, 3, True)
            o = (side * 3 + j) * nc
            w6 = w6.at[o:o + nc, side * nc:(side + 1) * nc].set(w)
            s6.append(s)
            t6.append(t)
    P["conv6_both"] = _pack_conv(w6, jnp.concatenate(s6), jnp.concatenate(t6),
                                 1, 1, False)
    # conv7_*_{a,b,c}: nc->nc 1x1 (bias only), block-diagonal over all six heads,
    # built at the lane-padded Cin=128.
    w7 = jnp.zeros((6 * nc, 128, 1, 1), jnp.float32)
    s7, t7 = [], []
    for i in range(6):
        w, s, t = _rand_conv(next(ks), nc, nc, 1, 1, False)
        w7 = w7.at[i * nc:(i + 1) * nc, i * nc:(i + 1) * nc].set(w)
        s7.append(s)
        t7.append(t)
    P["conv7_both"] = _pack_conv(w7, jnp.concatenate(s7), jnp.concatenate(t7),
                                 1, 0, False)
    return P


# ----------------------------------------------------------------------------
# Forward pass (mirrors the reference forward(); corner_pooling == identity)
# ----------------------------------------------------------------------------
def forward(P, x_nchw):
    nc = P["num_classes"]
    x = jnp.transpose(x_nchw, (0, 2, 3, 1)).astype(jnp.bfloat16)  # NCHW -> NHWC

    # conv1 + BN + ReLU, standalone batch_normal fused as a post-ReLU affine.
    x = conv_apply(x, P["conv1"], affine2=P["batch_normal"])
    residual = conv_apply(x, P["up_channal_64_128"])
    x = conv_apply(x, P["residual_a"][0])
    x = conv_apply(x, P["residual_a"][1])
    x = conv_apply(x, P["residual_a"][2], residual=residual)      # fused add
    x = maxpool2x2(x)

    residual = x
    x2 = conv_apply(x, P["rb1a"][0])
    x2 = conv_apply(x2, P["rb1a"][1])
    x = conv_apply(x2, P["rb1a"][2], residual=residual)
    residual = x
    x2 = conv_apply(x, P["rb1a"][0])
    x2 = conv_apply(x2, P["rb1a"][1])
    x = conv_apply(x2, P["rb1a"][2], residual=residual)

    residual = conv_apply(x, P["up_channal"])
    x2 = conv_apply(x, P["rb1b"][0])
    x2 = conv_apply(x2, P["rb1b"][1])
    x = conv_apply(x2, P["rb1b"][2], residual=residual)

    residual = x
    for p in P["hg1a"]:
        residual = conv_apply(residual, p)
    x2 = conv_apply(x, P["rb1b2"][0])
    x2 = conv_apply(x2, P["rb1b2"][1])
    backbone_out = conv_apply(x2, P["rb1b2"][2], residual=residual)

    # Heads: both tl/bd sides batched along output channels per layer.
    out3 = conv_apply(backbone_out, P["head_conv3_ab"])    # (B,H,W,2048)
    out3c = conv_apply(backbone_out, P["head_conv3_c"])    # (B,H,W,256)
    # conv4 (consumes conv3_a|conv3_b directly; +conv3_c; ReLU) for both sides.
    xx = conv_apply(out3, P["conv4_both"], residual=out3c, relu_post=True)
    # conv5 -> conv6 -> conv7 stay lane-padded to 128 channels.
    xx = conv_apply(xx, P["conv5_both"], unpad=False)      # (B,H,W,128)
    xx = conv_apply(xx, P["conv6_both"], unpad=False)      # (B,H,W,128)
    x7 = conv_apply(xx, P["conv7_both"], unpad=False)      # (B,H,W,128)

    # Slice once at the very end: [heat_tl, emb_tl, off_tl, heat_bd, emb_bd, off_bd]
    outs = [x7[..., i * nc:(i + 1) * nc].astype(jnp.float32) for i in range(6)]
    return [jnp.transpose(o, (0, 3, 1, 2)) for o in outs]   # back to NCHW


# ----------------------------------------------------------------------------
if __name__ == "__main__":
    num_classes = 4
    key = jax.random.PRNGKey(0)
    k_param, k_x = jax.random.split(key)
    params = init_params(k_param, num_classes)

    # Small input: B=2, 3 channels, 23x23 -> conv1 gives 9x9 -> pool gives 4x4.
    x = jax.random.normal(k_x, (2, 3, 23, 23), jnp.float32)

    fwd = jax.jit(functools.partial(forward, params))
    outs = fwd(x)
    outs = [jax.block_until_ready(o) for o in outs]

    expected = (2, num_classes, 4, 4)
    assert len(outs) == 6
    for o in outs:
        assert o.shape == expected, o.shape
        assert bool(jnp.all(jnp.isfinite(o)))
    print("KERNEL_OK")
</pallas_src>

<mosaic_0001>
module attributes {stable_mosaic.version = 11 : i64} {
  func.func @_conv_kernel(%arg0: i32, %arg1: i32, %arg2: i32, %arg3: memref<176x256xbf16, #tpu.memory_space<vmem>>, %arg4: memref<256x128xbf16, #tpu.memory_space<vmem>>, %arg5: memref<4x128xf32, #tpu.memory_space<vmem>>, %arg6: memref<176x128xbf16, #tpu.memory_space<vmem>>, %arg7: memref<176x128xf32, #tpu.memory_space<vmem>>) attributes {dimension_semantics = [#tpu.dimension_semantics<parallel>, #tpu.dimension_semantics<parallel>, #tpu.dimension_semantics<arbitrary>], iteration_bounds = array<i64: 1, 1, 1>, scalar_prefetch = 0 : i64, scratch_operands = 1 : i64, tpu.core_type = #tpu.core_type<tc>, window_params = [{transform_indices = @transform_0, window_bounds = array<i64: 176, 256>}, {transform_indices = @transform_1, window_bounds = array<i64: 256, 128>}, {transform_indices = @transform_2, window_bounds = array<i64: 4, 128>}, {transform_indices = @transform_3, window_bounds = array<i64: 176, 128>}]} {
    %c0_i32 = arith.constant 0 : i32
    %0 = arith.cmpi eq, %arg2, %c0_i32 : i32
    %1 = arith.extui %0 : i1 to i32
    %c0_i32_0 = arith.constant 0 : i32
    %2 = arith.cmpi ne, %1, %c0_i32_0 : i32
    scf.if %2 {
      %cst_10 = arith.constant 0.000000e+00 : f32
      %12 = vector.broadcast %cst_10 : f32 to vector<176x128xf32>
      %c0_11 = arith.constant 0 : index
      %c0_12 = arith.constant 0 : index
      %13 = vector.load %arg7[%c0_11, %c0_12] : memref<176x128xf32, #tpu.memory_space<vmem>>, vector<176x128xf32>
      tpu.vector_store %arg7[%c0_11, %c0_12], %12 {strides = array<i32>} : memref<176x128xf32, #tpu.memory_space<vmem>>, vector<176x128xf32>,
    } else {
    }
    %c0 = arith.constant 0 : index
    %c0_1 = arith.constant 0 : index
    %3 = vector.load %arg7[%c0, %c0_1] : memref<176x128xf32, #tpu.memory_space<vmem>>, vector<176x128xf32>
    %c0_2 = arith.constant 0 : index
    %c0_3 = arith.constant 0 : index
    %4 = vector.load %arg3[%c0_2, %c0_3] : memref<176x256xbf16, #tpu.memory_space<vmem>>, vector<176x256xbf16>
    %c0_4 = arith.constant 0 : index
    %c0_5 = arith.constant 0 : index
    %5 = vector.load %arg4[%c0_4, %c0_5] : memref<256x128xbf16, #tpu.memory_space<vmem>>, vector<256x128xbf16>
    %cst = arith.constant dense<0.000000e+00> : vector<176x128xf32>
    %6 = tpu.matmul %4, %5, %cst {dimension_numbers = #tpu.dot_dimension_numbers<[1], [0], [0], [1], [0, 0, 1, 1], [], []>} : vector<176x256xbf16>, vector<256x128xbf16>, vector<176x128xf32> -> vector<176x128xf32>
    %7 = arith.addf %3, %6 : vector<176x128xf32>
    %c0_6 = arith.constant 0 : index
    %c0_7 = arith.constant 0 : index
    %8 = vector.load %arg7[%c0_6, %c0_7] : memref<176x128xf32, #tpu.memory_space<vmem>>, vector<176x128xf32>
    tpu.vector_store %arg7[%c0_6, %c0_7], %7 {strides = array<i32>} : memref<176x128xf32, #tpu.memory_space<vmem>>, vector<176x128xf32>,
    %c0_i32_8 = arith.constant 0 : i32
    %9 = arith.cmpi eq, %arg2, %c0_i32_8 : i32
    %10 = arith.extui %9 : i1 to i32
    %c0_i32_9 = arith.constant 0 : i32
    %11 = arith.cmpi ne, %10, %c0_i32_9 : i32
    scf.if %11 {
      %c0_10 = arith.constant 0 : index
      %c0_11 = arith.constant 0 : index
      %12 = vector.load %arg5[%c0_10, %c0_11] : memref<4x128xf32, #tpu.memory_space<vmem>>, vector<4x128xf32>
      %c0_12 = arith.constant 0 : index
      %c0_13 = arith.constant 0 : index
      %13 = vector.load %arg7[%c0_12, %c0_13] : memref<176x128xf32, #tpu.memory_space<vmem>>, vector<176x128xf32>
      %14 = vector.extract_strided_slice %12 {offsets = [0, 0], sizes = [1, 128], strides = [1, 1]} : vector<4x128xf32> to vector<1x128xf32>
      %15 = vector.broadcast %14 : vector<1x128xf32> to vector<176x128xf32>
      %16 = arith.mulf %13, %15 : vector<176x128xf32>
      %17 = vector.extract_strided_slice %12 {offsets = [1, 0], sizes = [1, 128], strides = [1, 1]} : vector<4x128xf32> to vector<1x128xf32>
      %18 = vector.broadcast %17 : vector<1x128xf32> to vector<176x128xf32>
      %19 = arith.addf %16, %18 : vector<176x128xf32>
      %cst_14 = arith.constant 0.000000e+00 : f32
      %20 = vector.broadcast %cst_14 : f32 to vector<176x128xf32>
      %21 = arith.maximumf %19, %20 : vector<176x128xf32>
      %22 = vector.extract_strided_slice %12 {offsets = [2, 0], sizes = [1, 128], strides = [1, 1]} : vector<4x128xf32> to vector<1x128xf32>
      %23 = vector.broadcast %22 : vector<1x128xf32> to vector<176x128xf32>
      %24 = arith.mulf %21, %23 : vector<176x128xf32>
      %25 = vector.extract_strided_slice %12 {offsets = [3, 0], sizes = [1, 128], strides = [1, 1]} : vector<4x128xf32> to vector<1x128xf32>
      %26 = vector.broadcast %25 : vector<1x128xf32> to vector<176x128xf32>
      %27 = arith.addf %24, %26 : vector<176x128xf32>
      %28 = arith.truncf %27 : vector<176x128xf32> to vector<176x128xbf16>
      %c0_15 = arith.constant 0 : index
      %c0_16 = arith.constant 0 : index
      %29 = vector.load %arg6[%c0_15, %c0_16] : memref<176x128xbf16, #tpu.memory_space<vmem>>, vector<176x128xbf16>
      tpu.vector_store %arg6[%c0_15, %c0_16], %28 {strides = array<i32>} : memref<176x128xbf16, #tpu.memory_space<vmem>>, vector<176x128xbf16>,
    } else {
    }
    return
  }
  func.func @transform_0(%arg0: i32, %arg1: i32, %arg2: i32) -> (i32, i32) {
    %c0_i32 = arith.constant 0 : i32
    return %arg0, %arg2 : i32, i32
  }
  func.func @transform_1(%arg0: i32, %arg1: i32, %arg2: i32) -> (i32, i32) {
    %c0_i32 = arith.constant 0 : i32
    return %arg2, %arg1 : i32, i32
  }
  func.func @transform_2(%arg0: i32, %arg1: i32, %arg2: i32) -> (i32, i32) {
    %c0_i32 = arith.constant 0 : i32
    %c0_i32_0 = arith.constant 0 : i32
    return %c0_i32, %arg1 : i32, i32
  }
  func.func @transform_3(%arg0: i32, %arg1: i32, %arg2: i32) -> (i32, i32) {
    %c0_i32 = arith.constant 0 : i32
    return %arg0, %arg1 : i32, i32
  }
}

module attributes {stable_mosaic.version = 11 : i64} {
  func.func @_conv_kernel(%arg0: i32, %arg1: i32, %arg2: i32, %arg3: memref<176x128xbf16, #tpu.memory_space<vmem>>, %arg4: memref<128x128xbf16, #tpu.memory_space<vmem>>, %arg5: memref<2x128xf32, #tpu.memory_space<vmem>>, %arg6: memref<176x128xbf16, #tpu.memory_space<vmem>>, %arg7: memref<176x128xf32, #tpu.memory_space<vmem>>) attributes {dimension_semantics = [#tpu.dimension_semantics<parallel>, #tpu.dimension_semantics<parallel>, #tpu.dimension_semantics<arbitrary>], iteration_bounds = array<i64: 1, 1, 1>, scalar_prefetch = 0 : i64, scratch_operands = 1 : i64, tpu.core_type = #tpu.core_type<tc>, window_params = [{transform_indices = @transform_0, window_bounds = array<i64: 176, 128>}, {transform_indices = @transform_1, window_bounds = array<i64: 128, 128>}, {transform_indices = @transform_2, window_bounds = array<i64: 2, 128>}, {transform_indices = @transform_3, window_bounds = array<i64: 176, 128>}]} {
    %c0_i32 = arith.constant 0 : i32
    %0 = arith.cmpi eq, %arg2, %c0_i32 : i32
    %1 = arith.extui %0 : i1 to i32
    %c0_i32_0 = arith.constant 0 : i32
    %2 = arith.cmpi ne, %1, %c0_i32_0 : i32
    scf.if %2 {
      %cst_10 = arith.constant 0.000000e+00 : f32
      %12 = vector.broadcast %cst_10 : f32 to vector<176x128xf32>
      %c0_11 = arith.constant 0 : index
      %c0_12 = arith.constant 0 : index
      %13 = vector.load %arg7[%c0_11, %c0_12] : memref<176x128xf32, #tpu.memory_space<vmem>>, vector<176x128xf32>
      tpu.vector_store %arg7[%c0_11, %c0_12], %12 {strides = array<i32>} : memref<176x128xf32, #tpu.memory_space<vmem>>, vector<176x128xf32>,
    } else {
    }
    %c0 = arith.constant 0 : index
    %c0_1 = arith.constant 0 : index
    %3 = vector.load %arg7[%c0, %c0_1] : memref<176x128xf32, #tpu.memory_space<vmem>>, vector<176x128xf32>
    %c0_2 = arith.constant 0 : index
    %c0_3 = arith.constant 0 : index
    %4 = vector.load %arg3[%c0_2, %c0_3] : memref<176x128xbf16, #tpu.memory_space<vmem>>, vector<176x128xbf16>
    %c0_4 = arith.constant 0 : index
    %c0_5 = arith.constant 0 : index
    %5 = vector.load %arg4[%c0_4, %c0_5] : memref<128x128xbf16, #tpu.memory_space<vmem>>, vector<128x128xbf16>
    %cst = arith.constant dense<0.000000e+00> : vector<176x128xf32>
    %6 = tpu.matmul %4, %5, %cst {dimension_numbers = #tpu.dot_dimension_numbers<[1], [0], [0], [1], [0, 0, 1, 1], [], []>} : vector<176x128xbf16>, vector<128x128xbf16>, vector<176x128xf32> -> vector<176x128xf32>
    %7 = arith.addf %3, %6 : vector<176x128xf32>
    %c0_6 = arith.constant 0 : index
    %c0_7 = arith.constant 0 : index
    %8 = vector.load %arg7[%c0_6, %c0_7] : memref<176x128xf32, #tpu.memory_space<vmem>>, vector<176x128xf32>
    tpu.vector_store %arg7[%c0_6, %c0_7], %7 {strides = array<i32>} : memref<176x128xf32, #tpu.memory_space<vmem>>, vector<176x128xf32>,
    %c0_i32_8 = arith.constant 0 : i32
    %9 = arith.cmpi eq, %arg2, %c0_i32_8 : i32
    %10 = arith.extui %9 : i1 to i32
    %c0_i32_9 = arith.constant 0 : i32
    %11 = arith.cmpi ne, %10, %c0_i32_9 : i32
    scf.if %11 {
      %c0_10 = arith.constant 0 : index
      %c0_11 = arith.constant 0 : index
      %12 = vector.load %arg5[%c0_10, %c0_11] : memref<2x128xf32, #tpu.memory_space<vmem>>, vector<2x128xf32>
      %c0_12 = arith.constant 0 : index
      %c0_13 = arith.constant 0 : index
      %13 = vector.load %arg7[%c0_12, %c0_13] : memref<176x128xf32, #tpu.memory_space<vmem>>, vector<176x128xf32>
      %14 = vector.extract_strided_slice %12 {offsets = [0, 0], sizes = [1, 128], strides = [1, 1]} : vector<2x128xf32> to vector<1x128xf32>
      %15 = vector.broadcast %14 : vector<1x128xf32> to vector<176x128xf32>
      %16 = arith.mulf %13, %15 : vector<176x128xf32>
      %17 = vector.extract_strided_slice %12 {offsets = [1, 0], sizes = [1, 128], strides = [1, 1]} : vector<2x128xf32> to vector<1x128xf32>
      %18 = vector.broadcast %17 : vector<1x128xf32> to vector<176x128xf32>
      %19 = arith.addf %16, %18 : vector<176x128xf32>
      %cst_14 = arith.constant 0.000000e+00 : f32
      %20 = vector.broadcast %cst_14 : f32 to vector<176x128xf32>
      %21 = arith.maximumf %19, %20 : vector<176x128xf32>
      %22 = arith.truncf %21 : vector<176x128xf32> to vector<176x128xbf16>
      %c0_15 = arith.constant 0 : index
      %c0_16 = arith.constant 0 : index
      %23 = vector.load %arg6[%c0_15, %c0_16] : memref<176x128xbf16, #tpu.memory_space<vmem>>, vector<176x128xbf16>
      tpu.vector_store %arg6[%c0_15, %c0_16], %22 {strides = array<i32>} : memref<176x128xbf16, #tpu.memory_space<vmem>>, vector<176x128xbf16>,
    } else {
    }
    return
  }
  func.func @transform_0(%arg0: i32, %arg1: i32, %arg2: i32) -> (i32, i32) {
    %c0_i32 = arith.constant 0 : i32
    return %arg0, %arg2 : i32, i32
  }
  func.func @transform_1(%arg0: i32, %arg1: i32, %arg2: i32) -> (i32, i32) {
    %c0_i32 = arith.constant 0 : i32
    return %arg2, %arg1 : i32, i32
  }
  func.func @transform_2(%arg0: i32, %arg1: i32, %arg2: i32) -> (i32, i32) {
    %c0_i32 = arith.constant 0 : i32
    %c0_i32_0 = arith.constant 0 : i32
    return %c0_i32, %arg1 : i32, i32
  }
  func.func @transform_3(%arg0: i32, %arg1: i32, %arg2: i32) -> (i32, i32) {
    %c0_i32 = arith.constant 0 : i32
    return %arg0, %arg1 : i32, i32
  }
}

module attributes {stable_mosaic.version = 11 : i64} {
  func.func @_conv_kernel(%arg0: i32, %arg1: i32, %arg2: i32, %arg3: memref<176x128xbf16, #tpu.memory_space<vmem>>, %arg4: memref<128x128xbf16, #tpu.memory_space<vmem>>, %arg5: memref<2x128xf32, #tpu.memory_space<vmem>>, %arg6: memref<176x128xbf16, #tpu.memory_space<vmem>>, %arg7: memref<176x128xf32, #tpu.memory_space<vmem>>) attributes {dimension_semantics = [#tpu.dimension_semantics<parallel>, #tpu.dimension_semantics<parallel>, #tpu.dimension_semantics<arbitrary>], iteration_bounds = array<i64: 1, 1, 1>, scalar_prefetch = 0 : i64, scratch_operands = 1 : i64, tpu.core_type = #tpu.core_type<tc>, window_params = [{transform_indices = @transform_0, window_bounds = array<i64: 176, 128>}, {transform_indices = @transform_1, window_bounds = array<i64: 128, 128>}, {transform_indices = @transform_2, window_bounds = array<i64: 2, 128>}, {transform_indices = @transform_3, window_bounds = array<i64: 176, 128>}]} {
    %c0_i32 = arith.constant 0 : i32
    %0 = arith.cmpi eq, %arg2, %c0_i32 : i32
    %1 = arith.extui %0 : i1 to i32
    %c0_i32_0 = arith.constant 0 : i32
    %2 = arith.cmpi ne, %1, %c0_i32_0 : i32
    scf.if %2 {
      %cst_10 = arith.constant 0.000000e+00 : f32
      %12 = vector.broadcast %cst_10 : f32 to vector<176x128xf32>
      %c0_11 = arith.constant 0 : index
      %c0_12 = arith.constant 0 : index
      %13 = vector.load %arg7[%c0_11, %c0_12] : memref<176x128xf32, #tpu.memory_space<vmem>>, vector<176x128xf32>
      tpu.vector_store %arg7[%c0_11, %c0_12], %12 {strides = array<i32>} : memref<176x128xf32, #tpu.memory_space<vmem>>, vector<176x128xf32>,
    } else {
    }
    %c0 = arith.constant 0 : index
    %c0_1 = arith.constant 0 : index
    %3 = vector.load %arg7[%c0, %c0_1] : memref<176x128xf32, #tpu.memory_space<vmem>>, vector<176x128xf32>
    %c0_2 = arith.constant 0 : index
    %c0_3 = arith.constant 0 : index
    %4 = vector.load %arg3[%c0_2, %c0_3] : memref<176x128xbf16, #tpu.memory_space<vmem>>, vector<176x128xbf16>
    %c0_4 = arith.constant 0 : index
    %c0_5 = arith.constant 0 : index
    %5 = vector.load %arg4[%c0_4, %c0_5] : memref<128x128xbf16, #tpu.memory_space<vmem>>, vector<128x128xbf16>
    %cst = arith.constant dense<0.000000e+00> : vector<176x128xf32>
    %6 = tpu.matmul %4, %5, %cst {dimension_numbers = #tpu.dot_dimension_numbers<[1], [0], [0], [1], [0, 0, 1, 1], [], []>} : vector<176x128xbf16>, vector<128x128xbf16>, vector<176x128xf32> -> vector<176x128xf32>
    %7 = arith.addf %3, %6 : vector<176x128xf32>
    %c0_6 = arith.constant 0 : index
    %c0_7 = arith.constant 0 : index
    %8 = vector.load %arg7[%c0_6, %c0_7] : memref<176x128xf32, #tpu.memory_space<vmem>>, vector<176x128xf32>
    tpu.vector_store %arg7[%c0_6, %c0_7], %7 {strides = array<i32>} : memref<176x128xf32, #tpu.memory_space<vmem>>, vector<176x128xf32>,
    %c0_i32_8 = arith.constant 0 : i32
    %9 = arith.cmpi eq, %arg2, %c0_i32_8 : i32
    %10 = arith.extui %9 : i1 to i32
    %c0_i32_9 = arith.constant 0 : i32
    %11 = arith.cmpi ne, %10, %c0_i32_9 : i32
    scf.if %11 {
      %c0_10 = arith.constant 0 : index
      %c0_11 = arith.constant 0 : index
      %12 = vector.load %arg5[%c0_10, %c0_11] : memref<2x128xf32, #tpu.memory_space<vmem>>, vector<2x128xf32>
      %c0_12 = arith.constant 0 : index
      %c0_13 = arith.constant 0 : index
      %13 = vector.load %arg7[%c0_12, %c0_13] : memref<176x128xf32, #tpu.memory_space<vmem>>, vector<176x128xf32>
      %14 = vector.extract_strided_slice %12 {offsets = [0, 0], sizes = [1, 128], strides = [1, 1]} : vector<2x128xf32> to vector<1x128xf32>
      %15 = vector.broadcast %14 : vector<1x128xf32> to vector<176x128xf32>
      %16 = arith.mulf %13, %15 : vector<176x128xf32>
      %17 = vector.extract_strided_slice %12 {offsets = [1, 0], sizes = [1, 128], strides = [1, 1]} : vector<2x128xf32> to vector<1x128xf32>
      %18 = vector.broadcast %17 : vector<1x128xf32> to vector<176x128xf32>
      %19 = arith.addf %16, %18 : vector<176x128xf32>
      %20 = arith.truncf %19 : vector<176x128xf32> to vector<176x128xbf16>
      %c0_14 = arith.constant 0 : index
      %c0_15 = arith.constant 0 : index
      %21 = vector.load %arg6[%c0_14, %c0_15] : memref<176x128xbf16, #tpu.memory_space<vmem>>, vector<176x128xbf16>
      tpu.vector_store %arg6[%c0_14, %c0_15], %20 {strides = array<i32>} : memref<176x128xbf16, #tpu.memory_space<vmem>>, vector<176x128xbf16>,
    } else {
    }
    return
  }
  func.func @transform_0(%arg0: i32, %arg1: i32, %arg2: i32) -> (i32, i32) {
    %c0_i32 = arith.constant 0 : i32
    return %arg0, %arg2 : i32, i32
  }
  func.func @transform_1(%arg0: i32, %arg1: i32, %arg2: i32) -> (i32, i32) {
    %c0_i32 = arith.constant 0 : i32
    return %arg2, %arg1 : i32, i32
  }
  func.func @transform_2(%arg0: i32, %arg1: i32, %arg2: i32) -> (i32, i32) {
    %c0_i32 = arith.constant 0 : i32
    %c0_i32_0 = arith.constant 0 : i32
    return %c0_i32, %arg1 : i32, i32
  }
  func.func @transform_3(%arg0: i32, %arg1: i32, %arg2: i32) -> (i32, i32) {
    %c0_i32 = arith.constant 0 : i32
    return %arg0, %arg1 : i32, i32
  }
}

module attributes {stable_mosaic.version = 11 : i64} {
  func.func @_conv_kernel(%arg0: i32, %arg1: i32, %arg2: i32, %arg3: memref<176x256xbf16, #tpu.memory_space<vmem>>, %arg4: memref<256x128xbf16, #tpu.memory_space<vmem>>, %arg5: memref<2x128xf32, #tpu.memory_space<vmem>>, %arg6: memref<176x128xbf16, #tpu.memory_space<vmem>>, %arg7: memref<176x128xf32, #tpu.memory_space<vmem>>) attributes {dimension_semantics = [#tpu.dimension_semantics<parallel>, #tpu.dimension_semantics<parallel>, #tpu.dimension_semantics<arbitrary>], iteration_bounds = array<i64: 1, 1, 2>, scalar_prefetch = 0 : i64, scratch_operands = 1 : i64, tpu.core_type = #tpu.core_type<tc>, window_params = [{transform_indices = @transform_0, window_bounds = array<i64: 176, 256>}, {transform_indices = @transform_1, window_bounds = array<i64: 256, 128>}, {transform_indices = @transform_2, window_bounds = array<i64: 2, 128>}, {transform_indices = @transform_3, window_bounds = array<i64: 176, 128>}]} {
    %c0_i32 = arith.constant 0 : i32
    %0 = arith.cmpi eq, %arg2, %c0_i32 : i32
    %1 = arith.extui %0 : i1 to i32
    %c0_i32_0 = arith.constant 0 : i32
    %2 = arith.cmpi ne, %1, %c0_i32_0 : i32
    scf.if %2 {
      %cst_9 = arith.constant 0.000000e+00 : f32
      %12 = vector.broadcast %cst_9 : f32 to vector<176x128xf32>
      %c0_10 = arith.constant 0 : index
      %c0_11 = arith.constant 0 : index
      %13 = vector.load %arg7[%c0_10, %c0_11] : memref<176x128xf32, #tpu.memory_space<vmem>>, vector<176x128xf32>
      tpu.vector_store %arg7[%c0_10, %c0_11], %12 {strides = array<i32>} : memref<176x128xf32, #tpu.memory_space<vmem>>, vector<176x128xf32>,
    } else {
    }
    %c0 = arith.constant 0 : index
    %c0_1 = arith.constant 0 : index
    %3 = vector.load %arg7[%c0, %c0_1] : memref<176x128xf32, #tpu.memory_space<vmem>>, vector<176x128xf32>
    %c0_2 = arith.constant 0 : index
    %c0_3 = arith.constant 0 : index
    %4 = vector.load %arg3[%c0_2, %c0_3] : memref<176x256xbf16, #tpu.memory_space<vmem>>, vector<176x256xbf16>
    %c0_4 = arith.constant 0 : index
    %c0_5 = arith.constant 0 : index
    %5 = vector.load %arg4[%c0_4, %c0_5] : memref<256x128xbf16, #tpu.memory_space<vmem>>, vector<256x128xbf16>
    %cst = arith.constant dense<0.000000e+00> : vector<176x128xf32>
    %6 = tpu.matmul %4, %5, %cst {dimension_numbers = #tpu.dot_dimension_numbers<[1], [0], [0], [1], [0, 0, 1, 1], [], []>} : vector<176x256xbf16>, vector<256x128xbf16>, vector<176x128xf32> -> vector<176x128xf32>
    %7 = arith.addf %3, %6 : vector<176x128xf32>
    %c0_6 = arith.constant 0 : index
    %c0_7 = arith.constant 0 : index
    %8 = vector.load %arg7[%c0_6, %c0_7] : memref<176x128xf32, #tpu.memory_space<vmem>>, vector<176x128xf32>
    tpu.vector_store %arg7[%c0_6, %c0_7], %7 {strides = array<i32>} : memref<176x128xf32, #tpu.memory_space<vmem>>, vector<176x128xf32>,
    %c1_i32 = arith.constant 1 : i32
    %9 = arith.cmpi eq, %arg2, %c1_i32 : i32
    %10 = arith.extui %9 : i1 to i32
    %c0_i32_8 = arith.constant 0 : i32
    %11 = arith.cmpi ne, %10, %c0_i32_8 : i32
    scf.if %11 {
      %c0_9 = arith.constant 0 : index
      %c0_10 = arith.constant 0 : index
      %12 = vector.load %arg5[%c0_9, %c0_10] : memref<2x128xf32, #tpu.memory_space<vmem>>, vector<2x128xf32>
      %c0_11 = arith.constant 0 : index
      %c0_12 = arith.constant 0 : index
      %13 = vector.load %arg7[%c0_11, %c0_12] : memref<176x128xf32, #tpu.memory_space<vmem>>, vector<176x128xf32>
      %14 = vector.extract_strided_slice %12 {offsets = [0, 0], sizes = [1, 128], strides = [1, 1]} : vector<2x128xf32> to vector<1x128xf32>
      %15 = vector.broadcast %14 : vector<1x128xf32> to vector<176x128xf32>
      %16 = arith.mulf %13, %15 : vector<176x128xf32>
      %17 = vector.extract_strided_slice %12 {offsets = [1, 0], sizes = [1, 128], strides = [1, 1]} : vector<2x128xf32> to vector<1x128xf32>
      %18 = vector.broadcast %17 : vector<1x128xf32> to vector<176x128xf32>
      %19 = arith.addf %16, %18 : vector<176x128xf32>
      %cst_13 = arith.constant 0.000000e+00 : f32
      %20 = vector.broadcast %cst_13 : f32 to vector<176x128xf32>
      %21 = arith.maximumf %19, %20 : vector<176x128xf32>
      %22 = arith.truncf %21 : vector<176x128xf32> to vector<176x128xbf16>
      %c0_14 = arith.constant 0 : index
      %c0_15 = arith.constant 0 : index
      %23 = vector.load %arg6[%c0_14, %c0_15] : memref<176x128xbf16, #tpu.memory_space<vmem>>, vector<176x128xbf16>
      tpu.vector_store %arg6[%c0_14, %c0_15], %22 {strides = array<i32>} : memref<176x128xbf16, #tpu.memory_space<vmem>>, vector<176x128xbf16>,
    } else {
    }
    return
  }
  func.func @transform_0(%arg0: i32, %arg1: i32, %arg2: i32) -> (i32, i32) {
    %c0_i32 = arith.constant 0 : i32
    return %arg0, %arg2 : i32, i32
  }
  func.func @transform_1(%arg0: i32, %arg1: i32, %arg2: i32) -> (i32, i32) {
    %c0_i32 = arith.constant 0 : i32
    return %arg2, %arg1 : i32, i32
  }
  func.func @transform_2(%arg0: i32, %arg1: i32, %arg2: i32) -> (i32, i32) {
    %c0_i32 = arith.constant 0 : i32
    %c0_i32_0 = arith.constant 0 : i32
    return %c0_i32, %arg1 : i32, i32
  }
  func.func @transform_3(%arg0: i32, %arg1: i32, %arg2: i32) -> (i32, i32) {
    %c0_i32 = arith.constant 0 : i32
    return %arg0, %arg1 : i32, i32
  }
}

module attributes {stable_mosaic.version = 11 : i64} {
  func.func @_conv_kernel(%arg0: i32, %arg1: i32, %arg2: i32, %arg3: memref<176x128xbf16, #tpu.memory_space<vmem>>, %arg4: memref<128x128xbf16, #tpu.memory_space<vmem>>, %arg5: memref<2x128xf32, #tpu.memory_space<vmem>>, %arg6: memref<176x128xbf16, #tpu.memory_space<vmem>>, %arg7: memref<176x128xbf16, #tpu.memory_space<vmem>>, %arg8: memref<176x128xf32, #tpu.memory_space<vmem>>) attributes {dimension_semantics = [#tpu.dimension_semantics<parallel>, #tpu.dimension_semantics<parallel>, #tpu.dimension_semantics<arbitrary>], iteration_bounds = array<i64: 1, 1, 1>, scalar_prefetch = 0 : i64, scratch_operands = 1 : i64, tpu.core_type = #tpu.core_type<tc>, window_params = [{transform_indices = @transform_0, window_bounds = array<i64: 176, 128>}, {transform_indices = @transform_1, window_bounds = array<i64: 128, 128>}, {transform_indices = @transform_2, window_bounds = array<i64: 2, 128>}, {transform_indices = @transform_3, window_bounds = array<i64: 176, 128>}, {transform_indices = @transform_4, window_bounds = array<i64: 176, 128>}]} {
    %c0_i32 = arith.constant 0 : i32
    %0 = arith.cmpi eq, %arg2, %c0_i32 : i32
    %1 = arith.extui %0 : i1 to i32
    %c0_i32_0 = arith.constant 0 : i32
    %2 = arith.cmpi ne, %1, %c0_i32_0 : i32
    scf.if %2 {
      %cst_10 = arith.constant 0.000000e+00 : f32
      %12 = vector.broadcast %cst_10 : f32 to vector<176x128xf32>
      %c0_11 = arith.constant 0 : index
      %c0_12 = arith.constant 0 : index
      %13 = vector.load %arg8[%c0_11, %c0_12] : memref<176x128xf32, #tpu.memory_space<vmem>>, vector<176x128xf32>
      tpu.vector_store %arg8[%c0_11, %c0_12], %12 {strides = array<i32>} : memref<176x128xf32, #tpu.memory_space<vmem>>, vector<176x128xf32>,
    } else {
    }
    %c0 = arith.constant 0 : index
    %c0_1 = arith.constant 0 : index
    %3 = vector.load %arg8[%c0, %c0_1] : memref<176x128xf32, #tpu.memory_space<vmem>>, vector<176x128xf32>
    %c0_2 = arith.constant 0 : index
    %c0_3 = arith.constant 0 : index
    %4 = vector.load %arg3[%c0_2, %c0_3] : memref<176x128xbf16, #tpu.memory_space<vmem>>, vector<176x128xbf16>
    %c0_4 = arith.constant 0 : index
    %c0_5 = arith.constant 0 : index
    %5 = vector.load %arg4[%c0_4, %c0_5] : memref<128x128xbf16, #tpu.memory_space<vmem>>, vector<128x128xbf16>
    %cst = arith.constant dense<0.000000e+00> : vector<176x128xf32>
    %6 = tpu.matmul %4, %5, %cst {dimension_numbers = #tpu.dot_dimension_numbers<[1], [0], [0], [1], [0, 0, 1, 1], [], []>} : vector<176x128xbf16>, vector<128x128xbf16>, vector<176x128xf32> -> vector<176x128xf32>
    %7 = arith.addf %3, %6 : vector<176x128xf32>
    %c0_6 = arith.constant 0 : index
    %c0_7 = arith.constant 0 : index
    %8 = vector.load %arg8[%c0_6, %c0_7] : memref<176x128xf32, #tpu.memory_space<vmem>>, vector<176x128xf32>
    tpu.vector_store %arg8[%c0_6, %c0_7], %7 {strides = array<i32>} : memref<176x128xf32, #tpu.memory_space<vmem>>, vector<176x128xf32>,
    %c0_i32_8 = arith.constant 0 : i32
    %9 = arith.cmpi eq, %arg2, %c0_i32_8 : i32
    %10 = arith.extui %9 : i1 to i32
    %c0_i32_9 = arith.constant 0 : i32
    %11 = arith.cmpi ne, %10, %c0_i32_9 : i32
    scf.if %11 {
      %c0_10 = arith.constant 0 : index
      %c0_11 = arith.constant 0 : index
      %12 = vector.load %arg5[%c0_10, %c0_11] : memref<2x128xf32, #tpu.memory_space<vmem>>, vector<2x128xf32>
      %c0_12 = arith.constant 0 : index
      %c0_13 = arith.constant 0 : index
      %13 = vector.load %arg8[%c0_12, %c0_13] : memref<176x128xf32, #tpu.memory_space<vmem>>, vector<176x128xf32>
      %14 = vector.extract_strided_slice %12 {offsets = [0, 0], sizes = [1, 128], strides = [1, 1]} : vector<2x128xf32> to vector<1x128xf32>
      %15 = vector.broadcast %14 : vector<1x128xf32> to vector<176x128xf32>
      %16 = arith.mulf %13, %15 : vector<176x128xf32>
      %17 = vector.extract_strided_slice %12 {offsets = [1, 0], sizes = [1, 128], strides = [1, 1]} : vector<2x128xf32> to vector<1x128xf32>
      %18 = vector.broadcast %17 : vector<1x128xf32> to vector<176x128xf32>
      %19 = arith.addf %16, %18 : vector<176x128xf32>
      %cst_14 = arith.constant 0.000000e+00 : f32
      %20 = vector.broadcast %cst_14 : f32 to vector<176x128xf32>
      %21 = arith.maximumf %19, %20 : vector<176x128xf32>
      %c0_15 = arith.constant 0 : index
      %c0_16 = arith.constant 0 : index
      %22 = vector.load %arg6[%c0_15, %c0_16] : memref<176x128xbf16, #tpu.memory_space<vmem>>, vector<176x128xbf16>
      %23 = arith.extf %22 : vector<176x128xbf16> to vector<176x128xf32>
      %24 = arith.addf %21, %23 : vector<176x128xf32>
      %25 = arith.truncf %24 : vector<176x128xf32> to vector<176x128xbf16>
      %c0_17 = arith.constant 0 : index
      %c0_18 = arith.constant 0 : index
      %26 = vector.load %arg7[%c0_17, %c0_18] : memref<176x128xbf16, #tpu.memory_space<vmem>>, vector<176x128xbf16>
      tpu.vector_store %arg7[%c0_17, %c0_18], %25 {strides = array<i32>} : memref<176x128xbf16, #tpu.memory_space<vmem>>, vector<176x128xbf16>,
    } else {
    }
    return
  }
  func.func @transform_0(%arg0: i32, %arg1: i32, %arg2: i32) -> (i32, i32) {
    %c0_i32 = arith.constant 0 : i32
    return %arg0, %arg2 : i32, i32
  }
  func.func @transform_1(%arg0: i32, %arg1: i32, %arg2: i32) -> (i32, i32) {
    %c0_i32 = arith.constant 0 : i32
    return %arg2, %arg1 : i32, i32
  }
  func.func @transform_2(%arg0: i32, %arg1: i32, %arg2: i32) -> (i32, i32) {
    %c0_i32 = arith.constant 0 : i32
    %c0_i32_0 = arith.constant 0 : i32
    return %c0_i32, %arg1 : i32, i32
  }
  func.func @transform_3(%arg0: i32, %arg1: i32, %arg2: i32) -> (i32, i32) {
    %c0_i32 = arith.constant 0 : i32
    return %arg0, %arg1 : i32, i32
  }
  func.func @transform_4(%arg0: i32, %arg1: i32, %arg2: i32) -> (i32, i32) {
    %c0_i32 = arith.constant 0 : i32
    return %arg0, %arg1 : i32, i32
  }
}

module attributes {stable_mosaic.version = 11 : i64} {
  func.func @_maxpool_kernel(%arg0: i32, %arg1: i32, %arg2: memref<1x4x2x4x256xbf16, #tpu.memory_space<vmem>>, %arg3: memref<1x4x4x128xbf16, #tpu.memory_space<vmem>>) attributes {dimension_semantics = [#tpu.dimension_semantics<parallel>, #tpu.dimension_semantics<parallel>], iteration_bounds = array<i64: 2, 1>, scalar_prefetch = 0 : i64, scratch_operands = 0 : i64, tpu.core_type = #tpu.core_type<tc>, window_params = [{transform_indices = @transform_0, window_bounds = array<i64: 1, 4, 2, 4, 256>}, {transform_indices = @transform_1, window_bounds = array<i64: 1, 4, 4, 128>}]} {
    %c0 = arith.constant 0 : index
    %c0_0 = arith.constant 0 : index
    %c0_1 = arith.constant 0 : index
    %c0_2 = arith.constant 0 : index
    %c0_3 = arith.constant 0 : index
    %0 = vector.load %arg2[%c0, %c0_0, %c0_1, %c0_2, %c0_3] : memref<1x4x2x4x256xbf16, #tpu.memory_space<vmem>>, vector<1x4x2x4x256xbf16>
    %1 = vector.extract_strided_slice %0 {offsets = [0, 0, 0, 0, 0], sizes = [1, 4, 1, 4, 256], strides = [1, 1, 1, 1, 1]} : vector<1x4x2x4x256xbf16> to vector<1x4x1x4x256xbf16>
    %2 = vector.shape_cast %1 : vector<1x4x1x4x256xbf16> to vector<1x4x4x256xbf16>
    %3 = vector.extract_strided_slice %0 {offsets = [0, 0, 1, 0, 0], sizes = [1, 4, 1, 4, 256], strides = [1, 1, 1, 1, 1]} : vector<1x4x2x4x256xbf16> to vector<1x4x1x4x256xbf16>
    %4 = vector.shape_cast %3 : vector<1x4x1x4x256xbf16> to vector<1x4x4x256xbf16>
    %5 = arith.maximumf %2, %4 : vector<1x4x4x256xbf16>
    %6 = vector.extract_strided_slice %5 {offsets = [0, 0, 0, 0], sizes = [1, 4, 4, 128], strides = [1, 1, 1, 1]} : vector<1x4x4x256xbf16> to vector<1x4x4x128xbf16>
    %7 = vector.extract_strided_slice %5 {offsets = [0, 0, 0, 128], sizes = [1, 4, 4, 128], strides = [1, 1, 1, 1]} : vector<1x4x4x256xbf16> to vector<1x4x4x128xbf16>
    %8 = arith.maximumf %6, %7 : vector<1x4x4x128xbf16>
    %c0_4 = arith.constant 0 : index
    %c0_5 = arith.constant 0 : index
    %c0_6 = arith.constant 0 : index
    %c0_7 = arith.constant 0 : index
    %9 = vector.load %arg3[%c0_4, %c0_5, %c0_6, %c0_7] : memref<1x4x4x128xbf16, #tpu.memory_space<vmem>>, vector<1x4x4x128xbf16>
    tpu.vector_store %arg3[%c0_4, %c0_5, %c0_6, %c0_7], %8 {strides = array<i32>} : memref<1x4x4x128xbf16, #tpu.memory_space<vmem>>, vector<1x4x4x128xbf16>,
    return
  }
  func.func @transform_0(%arg0: i32, %arg1: i32) -> (i32, i32, i32, i32, i32) {
    %c0_i32 = arith.constant 0 : i32
    %c0_i32_0 = arith.constant 0 : i32
    %c0_i32_1 = arith.constant 0 : i32
    %c0_i32_2 = arith.constant 0 : i32
    return %arg0, %arg1, %c0_i32, %c0_i32_0, %c0_i32_1 : i32, i32, i32, i32, i32
  }
  func.func @transform_1(%arg0: i32, %arg1: i32) -> (i32, i32, i32, i32) {
    %c0_i32 = arith.constant 0 : i32
    %c0_i32_0 = arith.constant 0 : i32
    %c0_i32_1 = arith.constant 0 : i32
    return %arg0, %arg1, %c0_i32, %c0_i32_0 : i32, i32, i32, i32
  }
}

module attributes {stable_mosaic.version = 11 : i64} {
  func.func @_conv_kernel(%arg0: i32, %arg1: i32, %arg2: i32, %arg3: memref<32x128xbf16, #tpu.memory_space<vmem>>, %arg4: memref<128x128xbf16, #tpu.memory_space<vmem>>, %arg5: memref<2x128xf32, #tpu.memory_space<vmem>>, %arg6: memref<32x128xbf16, #tpu.memory_space<vmem>>, %arg7: memref<32x128xf32, #tpu.memory_space<vmem>>) attributes {dimension_semantics = [#tpu.dimension_semantics<parallel>, #tpu.dimension_semantics<parallel>, #tpu.dimension_semantics<arbitrary>], iteration_bounds = array<i64: 1, 1, 1>, scalar_prefetch = 0 : i64, scratch_operands = 1 : i64, tpu.core_type = #tpu.core_type<tc>, window_params = [{transform_indices = @transform_0, window_bounds = array<i64: 32, 128>}, {transform_indices = @transform_1, window_bounds = array<i64: 128, 128>}, {transform_indices = @transform_2, window_bounds = array<i64: 2, 128>}, {transform_indices = @transform_3, window_bounds = array<i64: 32, 128>}]} {
    %c0_i32 = arith.constant 0 : i32
    %0 = arith.cmpi eq, %arg2, %c0_i32 : i32
    %1 = arith.extui %0 : i1 to i32
    %c0_i32_0 = arith.constant 0 : i32
    %2 = arith.cmpi ne, %1, %c0_i32_0 : i32
    scf.if %2 {
      %cst_10 = arith.constant 0.000000e+00 : f32
      %12 = vector.broadcast %cst_10 : f32 to vector<32x128xf32>
      %c0_11 = arith.constant 0 : index
      %c0_12 = arith.constant 0 : index
      %13 = vector.load %arg7[%c0_11, %c0_12] : memref<32x128xf32, #tpu.memory_space<vmem>>, vector<32x128xf32>
      tpu.vector_store %arg7[%c0_11, %c0_12], %12 {strides = array<i32>} : memref<32x128xf32, #tpu.memory_space<vmem>>, vector<32x128xf32>,
    } else {
    }
    %c0 = arith.constant 0 : index
    %c0_1 = arith.constant 0 : index
    %3 = vector.load %arg7[%c0, %c0_1] : memref<32x128xf32, #tpu.memory_space<vmem>>, vector<32x128xf32>
    %c0_2 = arith.constant 0 : index
    %c0_3 = arith.constant 0 : index
    %4 = vector.load %arg3[%c0_2, %c0_3] : memref<32x128xbf16, #tpu.memory_space<vmem>>, vector<32x128xbf16>
    %c0_4 = arith.constant 0 : index
    %c0_5 = arith.constant 0 : index
    %5 = vector.load %arg4[%c0_4, %c0_5] : memref<128x128xbf16, #tpu.memory_space<vmem>>, vector<128x128xbf16>
    %cst = arith.constant dense<0.000000e+00> : vector<32x128xf32>
    %6 = tpu.matmul %4, %5, %cst {dimension_numbers = #tpu.dot_dimension_numbers<[1], [0], [0], [1], [0, 0, 1, 1], [], []>} : vector<32x128xbf16>, vector<128x128xbf16>, vector<32x128xf32> -> vector<32x128xf32>
    %7 = arith.addf %3, %6 : vector<32x128xf32>
    %c0_6 = arith.constant 0 : index
    %c0_7 = arith.constant 0 : index
    %8 = vector.load %arg7[%c0_6, %c0_7] : memref<32x128xf32, #tpu.memory_space<vmem>>, vector<32x128xf32>
    tpu.vector_store %arg7[%c0_6, %c0_7], %7 {strides = array<i32>} : memref<32x128xf32, #tpu.memory_space<vmem>>, vector<32x128xf32>,
    %c0_i32_8 = arith.constant 0 : i32
    %9 = arith.cmpi eq, %arg2, %c0_i32_8 : i32
    %10 = arith.extui %9 : i1 to i32
    %c0_i32_9 = arith.constant 0 : i32
    %11 = arith.cmpi ne, %10, %c0_i32_9 : i32
    scf.if %11 {
      %c0_10 = arith.constant 0 : index
      %c0_11 = arith.constant 0 : index
      %12 = vector.load %arg5[%c0_10, %c0_11] : memref<2x128xf32, #tpu.memory_space<vmem>>, vector<2x128xf32>
      %c0_12 = arith.constant 0 : index
      %c0_13 = arith.constant 0 : index
      %13 = vector.load %arg7[%c0_12, %c0_13] : memref<32x128xf32, #tpu.memory_space<vmem>>, vector<32x128xf32>
      %14 = vector.extract_strided_slice %12 {offsets = [0, 0], sizes = [1, 128], strides = [1, 1]} : vector<2x128xf32> to vector<1x128xf32>
      %15 = vector.broadcast %14 : vector<1x128xf32> to vector<32x128xf32>
      %16 = arith.mulf %13, %15 : vector<32x128xf32>
      %17 = vector.extract_strided_slice %12 {offsets = [1, 0], sizes = [1, 128], strides = [1, 1]} : vector<2x128xf32> to vector<1x128xf32>
      %18 = vector.broadcast %17 : vector<1x128xf32> to vector<32x128xf32>
      %19 = arith.addf %16, %18 : vector<32x128xf32>
      %cst_14 = arith.constant 0.000000e+00 : f32
      %20 = vector.broadcast %cst_14 : f32 to vector<32x128xf32>
      %21 = arith.maximumf %19, %20 : vector<32x128xf32>
      %22 = arith.truncf %21 : vector<32x128xf32> to vector<32x128xbf16>
      %c0_15 = arith.constant 0 : index
      %c0_16 = arith.constant 0 : index
      %23 = vector.load %arg6[%c0_15, %c0_16] : memref<32x128xbf16, #tpu.memory_space<vmem>>, vector<32x128xbf16>
      tpu.vector_store %arg6[%c0_15, %c0_16], %22 {strides = array<i32>} : memref<32x128xbf16, #tpu.memory_space<vmem>>, vector<32x128xbf16>,
    } else {
    }
    return
  }
  func.func @transform_0(%arg0: i32, %arg1: i32, %arg2: i32) -> (i32, i32) {
    %c0_i32 = arith.constant 0 : i32
    return %arg0, %arg2 : i32, i32
  }
  func.func @transform_1(%arg0: i32, %arg1: i32, %arg2: i32) -> (i32, i32) {
    %c0_i32 = arith.constant 0 : i32
    return %arg2, %arg1 : i32, i32
  }
  func.func @transform_2(%arg0: i32, %arg1: i32, %arg2: i32) -> (i32, i32) {
    %c0_i32 = arith.constant 0 : i32
    %c0_i32_0 = arith.constant 0 : i32
    return %c0_i32, %arg1 : i32, i32
  }
  func.func @transform_3(%arg0: i32, %arg1: i32, %arg2: i32) -> (i32, i32) {
    %c0_i32 = arith.constant 0 : i32
    return %arg0, %arg1 : i32, i32
  }
}

module attributes {stable_mosaic.version = 11 : i64} {
  func.func @_conv_kernel(%arg0: i32, %arg1: i32, %arg2: i32, %arg3: memref<32x256xbf16, #tpu.memory_space<vmem>>, %arg4: memref<256x128xbf16, #tpu.memory_space<vmem>>, %arg5: memref<2x128xf32, #tpu.memory_space<vmem>>, %arg6: memref<32x128xbf16, #tpu.memory_space<vmem>>, %arg7: memref<32x128xf32, #tpu.memory_space<vmem>>) attributes {dimension_semantics = [#tpu.dimension_semantics<parallel>, #tpu.dimension_semantics<parallel>, #tpu.dimension_semantics<arbitrary>], iteration_bounds = array<i64: 1, 1, 3>, scalar_prefetch = 0 : i64, scratch_operands = 1 : i64, tpu.core_type = #tpu.core_type<tc>, window_params = [{transform_indices = @transform_0, window_bounds = array<i64: 32, 256>}, {transform_indices = @transform_1, window_bounds = array<i64: 256, 128>}, {transform_indices = @transform_2, window_bounds = array<i64: 2, 128>}, {transform_indices = @transform_3, window_bounds = array<i64: 32, 128>}]} {
    %c0_i32 = arith.constant 0 : i32
    %0 = arith.cmpi eq, %arg2, %c0_i32 : i32
    %1 = arith.extui %0 : i1 to i32
    %c0_i32_0 = arith.constant 0 : i32
    %2 = arith.cmpi ne, %1, %c0_i32_0 : i32
    scf.if %2 {
      %cst_9 = arith.constant 0.000000e+00 : f32
      %12 = vector.broadcast %cst_9 : f32 to vector<32x128xf32>
      %c0_10 = arith.constant 0 : index
      %c0_11 = arith.constant 0 : index
      %13 = vector.load %arg7[%c0_10, %c0_11] : memref<32x128xf32, #tpu.memory_space<vmem>>, vector<32x128xf32>
      tpu.vector_store %arg7[%c0_10, %c0_11], %12 {strides = array<i32>} : memref<32x128xf32, #tpu.memory_space<vmem>>, vector<32x128xf32>,
    } else {
    }
    %c0 = arith.constant 0 : index
    %c0_1 = arith.constant 0 : index
    %3 = vector.load %arg7[%c0, %c0_1] : memref<32x128xf32, #tpu.memory_space<vmem>>, vector<32x128xf32>
    %c0_2 = arith.constant 0 : index
    %c0_3 = arith.constant 0 : index
    %4 = vector.load %arg3[%c0_2, %c0_3] : memref<32x256xbf16, #tpu.memory_space<vmem>>, vector<32x256xbf16>
    %c0_4 = arith.constant 0 : index
    %c0_5 = arith.constant 0 : index
    %5 = vector.load %arg4[%c0_4, %c0_5] : memref<256x128xbf16, #tpu.memory_space<vmem>>, vector<256x128xbf16>
    %cst = arith.constant dense<0.000000e+00> : vector<32x128xf32>
    %6 = tpu.matmul %4, %5, %cst {dimension_numbers = #tpu.dot_dimension_numbers<[1], [0], [0], [1], [0, 0, 1, 1], [], []>} : vector<32x256xbf16>, vector<256x128xbf16>, vector<32x128xf32> -> vector<32x128xf32>
    %7 = arith.addf %3, %6 : vector<32x128xf32>
    %c0_6 = arith.constant 0 : index
    %c0_7 = arith.constant 0 : index
    %8 = vector.load %arg7[%c0_6, %c0_7] : memref<32x128xf32, #tpu.memory_space<vmem>>, vector<32x128xf32>
    tpu.vector_store %arg7[%c0_6, %c0_7], %7 {strides = array<i32>} : memref<32x128xf32, #tpu.memory_space<vmem>>, vector<32x128xf32>,
    %c2_i32 = arith.constant 2 : i32
    %9 = arith.cmpi eq, %arg2, %c2_i32 : i32
    %10 = arith.extui %9 : i1 to i32
    %c0_i32_8 = arith.constant 0 : i32
    %11 = arith.cmpi ne, %10, %c0_i32_8 : i32
    scf.if %11 {
      %c0_9 = arith.constant 0 : index
      %c0_10 = arith.constant 0 : index
      %12 = vector.load %arg5[%c0_9, %c0_10] : memref<2x128xf32, #tpu.memory_space<vmem>>, vector<2x128xf32>
      %c0_11 = arith.constant 0 : index
      %c0_12 = arith.constant 0 : index
      %13 = vector.load %arg7[%c0_11, %c0_12] : memref<32x128xf32, #tpu.memory_space<vmem>>, vector<32x128xf32>
      %14 = vector.extract_strided_slice %12 {offsets = [0, 0], sizes = [1, 128], strides = [1, 1]} : vector<2x128xf32> to vector<1x128xf32>
      %15 = vector.broadcast %14 : vector<1x128xf32> to vector<32x128xf32>
      %16 = arith.mulf %13, %15 : vector<32x128xf32>
      %17 = vector.extract_strided_slice %12 {offsets = [1, 0], sizes = [1, 128], strides = [1, 1]} : vector<2x128xf32> to vector<1x128xf32>
      %18 = vector.broadcast %17 : vector<1x128xf32> to vector<32x128xf32>
      %19 = arith.addf %16, %18 : vector<32x128xf32>
      %cst_13 = arith.constant 0.000000e+00 : f32
      %20 = vector.broadcast %cst_13 : f32 to vector<32x128xf32>
      %21 = arith.maximumf %19, %20 : vector<32x128xf32>
      %22 = arith.truncf %21 : vector<32x128xf32> to vector<32x128xbf16>
      %c0_14 = arith.constant 0 : index
      %c0_15 = arith.constant 0 : index
      %23 = vector.load %arg6[%c0_14, %c0_15] : memref<32x128xbf16, #tpu.memory_space<vmem>>, vector<32x128xbf16>
      tpu.vector_store %arg6[%c0_14, %c0_15], %22 {strides = array<i32>} : memref<32x128xbf16, #tpu.memory_space<vmem>>, vector<32x128xbf16>,
    } else {
    }
    return
  }
  func.func @transform_0(%arg0: i32, %arg1: i32, %arg2: i32) -> (i32, i32) {
    %c0_i32 = arith.constant 0 : i32
    return %arg0, %arg2 : i32, i32
  }
  func.func @transform_1(%arg0: i32, %arg1: i32, %arg2: i32) -> (i32, i32) {
    %c0_i32 = arith.constant 0 : i32
    return %arg2, %arg1 : i32, i32
  }
  func.func @transform_2(%arg0: i32, %arg1: i32, %arg2: i32) -> (i32, i32) {
    %c0_i32 = arith.constant 0 : i32
    %c0_i32_0 = arith.constant 0 : i32
    return %c0_i32, %arg1 : i32, i32
  }
  func.func @transform_3(%arg0: i32, %arg1: i32, %arg2: i32) -> (i32, i32) {
    %c0_i32 = arith.constant 0 : i32
    return %arg0, %arg1 : i32, i32
  }
}

module attributes {stable_mosaic.version = 11 : i64} {
  func.func @_conv_kernel(%arg0: i32, %arg1: i32, %arg2: i32, %arg3: memref<32x128xbf16, #tpu.memory_space<vmem>>, %arg4: memref<128x128xbf16, #tpu.memory_space<vmem>>, %arg5: memref<2x128xf32, #tpu.memory_space<vmem>>, %arg6: memref<32x128xbf16, #tpu.memory_space<vmem>>, %arg7: memref<32x128xbf16, #tpu.memory_space<vmem>>, %arg8: memref<32x128xf32, #tpu.memory_space<vmem>>) attributes {dimension_semantics = [#tpu.dimension_semantics<parallel>, #tpu.dimension_semantics<parallel>, #tpu.dimension_semantics<arbitrary>], iteration_bounds = array<i64: 1, 1, 1>, scalar_prefetch = 0 : i64, scratch_operands = 1 : i64, tpu.core_type = #tpu.core_type<tc>, window_params = [{transform_indices = @transform_0, window_bounds = array<i64: 32, 128>}, {transform_indices = @transform_1, window_bounds = array<i64: 128, 128>}, {transform_indices = @transform_2, window_bounds = array<i64: 2, 128>}, {transform_indices = @transform_3, window_bounds = array<i64: 32, 128>}, {transform_indices = @transform_4, window_bounds = array<i64: 32, 128>}]} {
    %c0_i32 = arith.constant 0 : i32
    %0 = arith.cmpi eq, %arg2, %c0_i32 : i32
    %1 = arith.extui %0 : i1 to i32
    %c0_i32_0 = arith.constant 0 : i32
    %2 = arith.cmpi ne, %1, %c0_i32_0 : i32
    scf.if %2 {
      %cst_10 = arith.constant 0.000000e+00 : f32
      %12 = vector.broadcast %cst_10 : f32 to vector<32x128xf32>
      %c0_11 = arith.constant 0 : index
      %c0_12 = arith.constant 0 : index
      %13 = vector.load %arg8[%c0_11, %c0_12] : memref<32x128xf32, #tpu.memory_space<vmem>>, vector<32x128xf32>
      tpu.vector_store %arg8[%c0_11, %c0_12], %12 {strides = array<i32>} : memref<32x128xf32, #tpu.memory_space<vmem>>, vector<32x128xf32>,
    } else {
    }
    %c0 = arith.constant 0 : index
    %c0_1 = arith.constant 0 : index
    %3 = vector.load %arg8[%c0, %c0_1] : memref<32x128xf32, #tpu.memory_space<vmem>>, vector<32x128xf32>
    %c0_2 = arith.constant 0 : index
    %c0_3 = arith.constant 0 : index
    %4 = vector.load %arg3[%c0_2, %c0_3] : memref<32x128xbf16, #tpu.memory_space<vmem>>, vector<32x128xbf16>
    %c0_4 = arith.constant 0 : index
    %c0_5 = arith.constant 0 : index
    %5 = vector.load %arg4[%c0_4, %c0_5] : memref<128x128xbf16, #tpu.memory_space<vmem>>, vector<128x128xbf16>
    %cst = arith.constant dense<0.000000e+00> : vector<32x128xf32>
    %6 = tpu.matmul %4, %5, %cst {dimension_numbers = #tpu.dot_dimension_numbers<[1], [0], [0], [1], [0, 0, 1, 1], [], []>} : vector<32x128xbf16>, vector<128x128xbf16>, vector<32x128xf32> -> vector<32x128xf32>
    %7 = arith.addf %3, %6 : vector<32x128xf32>
    %c0_6 = arith.constant 0 : index
    %c0_7 = arith.constant 0 : index
    %8 = vector.load %arg8[%c0_6, %c0_7] : memref<32x128xf32, #tpu.memory_space<vmem>>, vector<32x128xf32>
    tpu.vector_store %arg8[%c0_6, %c0_7], %7 {strides = array<i32>} : memref<32x128xf32, #tpu.memory_space<vmem>>, vector<32x128xf32>,
    %c0_i32_8 = arith.constant 0 : i32
    %9 = arith.cmpi eq, %arg2, %c0_i32_8 : i32
    %10 = arith.extui %9 : i1 to i32
    %c0_i32_9 = arith.constant 0 : i32
    %11 = arith.cmpi ne, %10, %c0_i32_9 : i32
    scf.if %11 {
      %c0_10 = arith.constant 0 : index
      %c0_11 = arith.constant 0 : index
      %12 = vector.load %arg5[%c0_10, %c0_11] : memref<2x128xf32, #tpu.memory_space<vmem>>, vector<2x128xf32>
      %c0_12 = arith.constant 0 : index
      %c0_13 = arith.constant 0 : index
      %13 = vector.load %arg8[%c0_12, %c0_13] : memref<32x128xf32, #tpu.memory_space<vmem>>, vector<32x128xf32>
      %14 = vector.extract_strided_slice %12 {offsets = [0, 0], sizes = [1, 128], strides = [1, 1]} : vector<2x128xf32> to vector<1x128xf32>
      %15 = vector.broadcast %14 : vector<1x128xf32> to vector<32x128xf32>
      %16 = arith.mulf %13, %15 : vector<32x128xf32>
      %17 = vector.extract_strided_slice %12 {offsets = [1, 0], sizes = [1, 128], strides = [1, 1]} : vector<2x128xf32> to vector<1x128xf32>
      %18 = vector.broadcast %17 : vector<1x128xf32> to vector<32x128xf32>
      %19 = arith.addf %16, %18 : vector<32x128xf32>
      %cst_14 = arith.constant 0.000000e+00 : f32
      %20 = vector.broadcast %cst_14 : f32 to vector<32x128xf32>
      %21 = arith.maximumf %19, %20 : vector<32x128xf32>
      %c0_15 = arith.constant 0 : index
      %c0_16 = arith.constant 0 : index
      %22 = vector.load %arg6[%c0_15, %c0_16] : memref<32x128xbf16, #tpu.memory_space<vmem>>, vector<32x128xbf16>
      %23 = arith.extf %22 : vector<32x128xbf16> to vector<32x128xf32>
      %24 = arith.addf %21, %23 : vector<32x128xf32>
      %25 = arith.truncf %24 : vector<32x128xf32> to vector<32x128xbf16>
      %c0_17 = arith.constant 0 : index
      %c0_18 = arith.constant 0 : index
      %26 = vector.load %arg7[%c0_17, %c0_18] : memref<32x128xbf16, #tpu.memory_space<vmem>>, vector<32x128xbf16>
      tpu.vector_store %arg7[%c0_17, %c0_18], %25 {strides = array<i32>} : memref<32x128xbf16, #tpu.memory_space<vmem>>, vector<32x128xbf16>,
    } else {
    }
    return
  }
  func.func @transform_0(%arg0: i32, %arg1: i32, %arg2: i32) -> (i32, i32) {
    %c0_i32 = arith.constant 0 : i32
    return %arg0, %arg2 : i32, i32
  }
  func.func @transform_1(%arg0: i32, %arg1: i32, %arg2: i32) -> (i32, i32) {
    %c0_i32 = arith.constant 0 : i32
    return %arg2, %arg1 : i32, i32
  }
  func.func @transform_2(%arg0: i32, %arg1: i32, %arg2: i32) -> (i32, i32) {
    %c0_i32 = arith.constant 0 : i32
    %c0_i32_0 = arith.constant 0 : i32
    return %c0_i32, %arg1 : i32, i32
  }
  func.func @transform_3(%arg0: i32, %arg1: i32, %arg2: i32) -> (i32, i32) {
    %c0_i32 = arith.constant 0 : i32
    return %arg0, %arg1 : i32, i32
  }
  func.func @transform_4(%arg0: i32, %arg1: i32, %arg2: i32) -> (i32, i32) {
    %c0_i32 = arith.constant 0 : i32
    return %arg0, %arg1 : i32, i32
  }
}

module attributes {stable_mosaic.version = 11 : i64} {
  func.func @_conv_kernel(%arg0: i32, %arg1: i32, %arg2: i32, %arg3: memref<32x128xbf16, #tpu.memory_space<vmem>>, %arg4: memref<128x256xbf16, #tpu.memory_space<vmem>>, %arg5: memref<2x256xf32, #tpu.memory_space<vmem>>, %arg6: memref<32x256xbf16, #tpu.memory_space<vmem>>, %arg7: memref<32x256xf32, #tpu.memory_space<vmem>>) attributes {dimension_semantics = [#tpu.dimension_semantics<parallel>, #tpu.dimension_semantics<parallel>, #tpu.dimension_semantics<arbitrary>], iteration_bounds = array<i64: 1, 1, 1>, scalar_prefetch = 0 : i64, scratch_operands = 1 : i64, tpu.core_type = #tpu.core_type<tc>, window_params = [{transform_indices = @transform_0, window_bounds = array<i64: 32, 128>}, {transform_indices = @transform_1, window_bounds = array<i64: 128, 256>}, {transform_indices = @transform_2, window_bounds = array<i64: 2, 256>}, {transform_indices = @transform_3, window_bounds = array<i64: 32, 256>}]} {
    %c0_i32 = arith.constant 0 : i32
    %0 = arith.cmpi eq, %arg2, %c0_i32 : i32
    %1 = arith.extui %0 : i1 to i32
    %c0_i32_0 = arith.constant 0 : i32
    %2 = arith.cmpi ne, %1, %c0_i32_0 : i32
    scf.if %2 {
      %cst_10 = arith.constant 0.000000e+00 : f32
      %12 = vector.broadcast %cst_10 : f32 to vector<32x256xf32>
      %c0_11 = arith.constant 0 : index
      %c0_12 = arith.constant 0 : index
      %13 = vector.load %arg7[%c0_11, %c0_12] : memref<32x256xf32, #tpu.memory_space<vmem>>, vector<32x256xf32>
      tpu.vector_store %arg7[%c0_11, %c0_12], %12 {strides = array<i32>} : memref<32x256xf32, #tpu.memory_space<vmem>>, vector<32x256xf32>,
    } else {
    }
    %c0 = arith.constant 0 : index
    %c0_1 = arith.constant 0 : index
    %3 = vector.load %arg7[%c0, %c0_1] : memref<32x256xf32, #tpu.memory_space<vmem>>, vector<32x256xf32>
    %c0_2 = arith.constant 0 : index
    %c0_3 = arith.constant 0 : index
    %4 = vector.load %arg3[%c0_2, %c0_3] : memref<32x128xbf16, #tpu.memory_space<vmem>>, vector<32x128xbf16>
    %c0_4 = arith.constant 0 : index
    %c0_5 = arith.constant 0 : index
    %5 = vector.load %arg4[%c0_4, %c0_5] : memref<128x256xbf16, #tpu.memory_space<vmem>>, vector<128x256xbf16>
    %cst = arith.constant dense<0.000000e+00> : vector<32x256xf32>
    %6 = tpu.matmul %4, %5, %cst {dimension_numbers = #tpu.dot_dimension_numbers<[1], [0], [0], [1], [0, 0, 1, 1], [], []>} : vector<32x128xbf16>, vector<128x256xbf16>, vector<32x256xf32> -> vector<32x256xf32>
    %7 = arith.addf %3, %6 : vector<32x256xf32>
    %c0_6 = arith.constant 0 : index
    %c0_7 = arith.constant 0 : index
    %8 = vector.load %arg7[%c0_6, %c0_7] : memref<32x256xf32, #tpu.memory_space<vmem>>, vector<32x256xf32>
    tpu.vector_store %arg7[%c0_6, %c0_7], %7 {strides = array<i32>} : memref<32x256xf32, #tpu.memory_space<vmem>>, vector<32x256xf32>,
    %c0_i32_8 = arith.constant 0 : i32
    %9 = arith.cmpi eq, %arg2, %c0_i32_8 : i32
    %10 = arith.extui %9 : i1 to i32
    %c0_i32_9 = arith.constant 0 : i32
    %11 = arith.cmpi ne, %10, %c0_i32_9 : i32
    scf.if %11 {
      %c0_10 = arith.constant 0 : index
      %c0_11 = arith.constant 0 : index
      %12 = vector.load %arg5[%c0_10, %c0_11] : memref<2x256xf32, #tpu.memory_space<vmem>>, vector<2x256xf32>
      %c0_12 = arith.constant 0 : index
      %c0_13 = arith.constant 0 : index
      %13 = vector.load %arg7[%c0_12, %c0_13] : memref<32x256xf32, #tpu.memory_space<vmem>>, vector<32x256xf32>
      %14 = vector.extract_strided_slice %12 {offsets = [0, 0], sizes = [1, 256], strides = [1, 1]} : vector<2x256xf32> to vector<1x256xf32>
      %15 = vector.broadcast %14 : vector<1x256xf32> to vector<32x256xf32>
      %16 = arith.mulf %13, %15 : vector<32x256xf32>
      %17 = vector.extract_strided_slice %12 {offsets = [1, 0], sizes = [1, 256], strides = [1, 1]} : vector<2x256xf32> to vector<1x256xf32>
      %18 = vector.broadcast %17 : vector<1x256xf32> to vector<32x256xf32>
      %19 = arith.addf %16, %18 : vector<32x256xf32>
      %20 = arith.truncf %19 : vector<32x256xf32> to vector<32x256xbf16>
      %c0_14 = arith.constant 0 : index
      %c0_15 = arith.constant 0 : index
      %21 = vector.load %arg6[%c0_14, %c0_15] : memref<32x256xbf16, #tpu.memory_space<vmem>>, vector<32x256xbf16>
      tpu.vector_store %arg6[%c0_14, %c0_15], %20 {strides = array<i32>} : memref<32x256xbf16, #tpu.memory_space<vmem>>, vector<32x256xbf16>,
    } else {
    }
    return
  }
  func.func @transform_0(%arg0: i32, %arg1: i32, %arg2: i32) -> (i32, i32) {
    %c0_i32 = arith.constant 0 : i32
    return %arg0, %arg2 : i32, i32
  }
  func.func @transform_1(%arg0: i32, %arg1: i32, %arg2: i32) -> (i32, i32) {
    %c0_i32 = arith.constant 0 : i32
    return %arg2, %arg1 : i32, i32
  }
  func.func @transform_2(%arg0: i32, %arg1: i32, %arg2: i32) -> (i32, i32) {
    %c0_i32 = arith.constant 0 : i32
    %c0_i32_0 = arith.constant 0 : i32
    return %c0_i32, %arg1 : i32, i32
  }
  func.func @transform_3(%arg0: i32, %arg1: i32, %arg2: i32) -> (i32, i32) {
    %c0_i32 = arith.constant 0 : i32
    return %arg0, %arg1 : i32, i32
  }
}

module attributes {stable_mosaic.version = 11 : i64} {
  func.func @_conv_kernel(%arg0: i32, %arg1: i32, %arg2: i32, %arg3: memref<32x128xbf16, #tpu.memory_space<vmem>>, %arg4: memref<128x256xbf16, #tpu.memory_space<vmem>>, %arg5: memref<2x256xf32, #tpu.memory_space<vmem>>, %arg6: memref<32x256xbf16, #tpu.memory_space<vmem>>, %arg7: memref<32x256xbf16, #tpu.memory_space<vmem>>, %arg8: memref<32x256xf32, #tpu.memory_space<vmem>>) attributes {dimension_semantics = [#tpu.dimension_semantics<parallel>, #tpu.dimension_semantics<parallel>, #tpu.dimension_semantics<arbitrary>], iteration_bounds = array<i64: 1, 1, 1>, scalar_prefetch = 0 : i64, scratch_operands = 1 : i64, tpu.core_type = #tpu.core_type<tc>, window_params = [{transform_indices = @transform_0, window_bounds = array<i64: 32, 128>}, {transform_indices = @transform_1, window_bounds = array<i64: 128, 256>}, {transform_indices = @transform_2, window_bounds = array<i64: 2, 256>}, {transform_indices = @transform_3, window_bounds = array<i64: 32, 256>}, {transform_indices = @transform_4, window_bounds = array<i64: 32, 256>}]} {
    %c0_i32 = arith.constant 0 : i32
    %0 = arith.cmpi eq, %arg2, %c0_i32 : i32
    %1 = arith.extui %0 : i1 to i32
    %c0_i32_0 = arith.constant 0 : i32
    %2 = arith.cmpi ne, %1, %c0_i32_0 : i32
    scf.if %2 {
      %cst_10 = arith.constant 0.000000e+00 : f32
      %12 = vector.broadcast %cst_10 : f32 to vector<32x256xf32>
      %c0_11 = arith.constant 0 : index
      %c0_12 = arith.constant 0 : index
      %13 = vector.load %arg8[%c0_11, %c0_12] : memref<32x256xf32, #tpu.memory_space<vmem>>, vector<32x256xf32>
      tpu.vector_store %arg8[%c0_11, %c0_12], %12 {strides = array<i32>} : memref<32x256xf32, #tpu.memory_space<vmem>>, vector<32x256xf32>,
    } else {
    }
    %c0 = arith.constant 0 : index
    %c0_1 = arith.constant 0 : index
    %3 = vector.load %arg8[%c0, %c0_1] : memref<32x256xf32, #tpu.memory_space<vmem>>, vector<32x256xf32>
    %c0_2 = arith.constant 0 : index
    %c0_3 = arith.constant 0 : index
    %4 = vector.load %arg3[%c0_2, %c0_3] : memref<32x128xbf16, #tpu.memory_space<vmem>>, vector<32x128xbf16>
    %c0_4 = arith.constant 0 : index
    %c0_5 = arith.constant 0 : index
    %5 = vector.load %arg4[%c0_4, %c0_5] : memref<128x256xbf16, #tpu.memory_space<vmem>>, vector<128x256xbf16>
    %cst = arith.constant dense<0.000000e+00> : vector<32x256xf32>
    %6 = tpu.matmul %4, %5, %cst {dimension_numbers = #tpu.dot_dimension_numbers<[1], [0], [0], [1], [0, 0, 1, 1], [], []>} : vector<32x128xbf16>, vector<128x256xbf16>, vector<32x256xf32> -> vector<32x256xf32>
    %7 = arith.addf %3, %6 : vector<32x256xf32>
    %c0_6 = arith.constant 0 : index
    %c0_7 = arith.constant 0 : index
    %8 = vector.load %arg8[%c0_6, %c0_7] : memref<32x256xf32, #tpu.memory_space<vmem>>, vector<32x256xf32>
    tpu.vector_store %arg8[%c0_6, %c0_7], %7 {strides = array<i32>} : memref<32x256xf32, #tpu.memory_space<vmem>>, vector<32x256xf32>,
    %c0_i32_8 = arith.constant 0 : i32
    %9 = arith.cmpi eq, %arg2, %c0_i32_8 : i32
    %10 = arith.extui %9 : i1 to i32
    %c0_i32_9 = arith.constant 0 : i32
    %11 = arith.cmpi ne, %10, %c0_i32_9 : i32
    scf.if %11 {
      %c0_10 = arith.constant 0 : index
      %c0_11 = arith.constant 0 : index
      %12 = vector.load %arg5[%c0_10, %c0_11] : memref<2x256xf32, #tpu.memory_space<vmem>>, vector<2x256xf32>
      %c0_12 = arith.constant 0 : index
      %c0_13 = arith.constant 0 : index
      %13 = vector.load %arg8[%c0_12, %c0_13] : memref<32x256xf32, #tpu.memory_space<vmem>>, vector<32x256xf32>
      %14 = vector.extract_strided_slice %12 {offsets = [0, 0], sizes = [1, 256], strides = [1, 1]} : vector<2x256xf32> to vector<1x256xf32>
      %15 = vector.broadcast %14 : vector<1x256xf32> to vector<32x256xf32>
      %16 = arith.mulf %13, %15 : vector<32x256xf32>
      %17 = vector.extract_strided_slice %12 {offsets = [1, 0], sizes = [1, 256], strides = [1, 1]} : vector<2x256xf32> to vector<1x256xf32>
      %18 = vector.broadcast %17 : vector<1x256xf32> to vector<32x256xf32>
      %19 = arith.addf %16, %18 : vector<32x256xf32>
      %cst_14 = arith.constant 0.000000e+00 : f32
      %20 = vector.broadcast %cst_14 : f32 to vector<32x256xf32>
      %21 = arith.maximumf %19, %20 : vector<32x256xf32>
      %c0_15 = arith.constant 0 : index
      %c0_16 = arith.constant 0 : index
      %22 = vector.load %arg6[%c0_15, %c0_16] : memref<32x256xbf16, #tpu.memory_space<vmem>>, vector<32x256xbf16>
      %23 = arith.extf %22 : vector<32x256xbf16> to vector<32x256xf32>
      %24 = arith.addf %21, %23 : vector<32x256xf32>
      %25 = arith.truncf %24 : vector<32x256xf32> to vector<32x256xbf16>
      %c0_17 = arith.constant 0 : index
      %c0_18 = arith.constant 0 : index
      %26 = vector.load %arg7[%c0_17, %c0_18] : memref<32x256xbf16, #tpu.memory_space<vmem>>, vector<32x256xbf16>
      tpu.vector_store %arg7[%c0_17, %c0_18], %25 {strides = array<i32>} : memref<32x256xbf16, #tpu.memory_space<vmem>>, vector<32x256xbf16>,
    } else {
    }
    return
  }
  func.func @transform_0(%arg0: i32, %arg1: i32, %arg2: i32) -> (i32, i32) {
    %c0_i32 = arith.constant 0 : i32
    return %arg0, %arg2 : i32, i32
  }
  func.func @transform_1(%arg0: i32, %arg1: i32, %arg2: i32) -> (i32, i32) {
    %c0_i32 = arith.constant 0 : i32
    return %arg2, %arg1 : i32, i32
  }
  func.func @transform_2(%arg0: i32, %arg1: i32, %arg2: i32) -> (i32, i32) {
    %c0_i32 = arith.constant 0 : i32
    %c0_i32_0 = arith.constant 0 : i32
    return %c0_i32, %arg1 : i32, i32
  }
  func.func @transform_3(%arg0: i32, %arg1: i32, %arg2: i32) -> (i32, i32) {
    %c0_i32 = arith.constant 0 : i32
    return %arg0, %arg1 : i32, i32
  }
  func.func @transform_4(%arg0: i32, %arg1: i32, %arg2: i32) -> (i32, i32) {
    %c0_i32 = arith.constant 0 : i32
    return %arg0, %arg1 : i32, i32
  }
}

module attributes {stable_mosaic.version = 11 : i64} {
  func.func @_conv_kernel(%arg0: i32, %arg1: i32, %arg2: i32, %arg3: memref<32x256xbf16, #tpu.memory_space<vmem>>, %arg4: memref<256x256xbf16, #tpu.memory_space<vmem>>, %arg5: memref<2x256xf32, #tpu.memory_space<vmem>>, %arg6: memref<32x256xbf16, #tpu.memory_space<vmem>>, %arg7: memref<32x256xf32, #tpu.memory_space<vmem>>) attributes {dimension_semantics = [#tpu.dimension_semantics<parallel>, #tpu.dimension_semantics<parallel>, #tpu.dimension_semantics<arbitrary>], iteration_bounds = array<i64: 1, 1, 9>, scalar_prefetch = 0 : i64, scratch_operands = 1 : i64, tpu.core_type = #tpu.core_type<tc>, window_params = [{transform_indices = @transform_0, window_bounds = array<i64: 32, 256>}, {transform_indices = @transform_1, window_bounds = array<i64: 256, 256>}, {transform_indices = @transform_2, window_bounds = array<i64: 2, 256>}, {transform_indices = @transform_3, window_bounds = array<i64: 32, 256>}]} {
    %c0_i32 = arith.constant 0 : i32
    %0 = arith.cmpi eq, %arg2, %c0_i32 : i32
    %1 = arith.extui %0 : i1 to i32
    %c0_i32_0 = arith.constant 0 : i32
    %2 = arith.cmpi ne, %1, %c0_i32_0 : i32
    scf.if %2 {
      %cst_9 = arith.constant 0.000000e+00 : f32
      %12 = vector.broadcast %cst_9 : f32 to vector<32x256xf32>
      %c0_10 = arith.constant 0 : index
      %c0_11 = arith.constant 0 : index
      %13 = vector.load %arg7[%c0_10, %c0_11] : memref<32x256xf32, #tpu.memory_space<vmem>>, vector<32x256xf32>
      tpu.vector_store %arg7[%c0_10, %c0_11], %12 {strides = array<i32>} : memref<32x256xf32, #tpu.memory_space<vmem>>, vector<32x256xf32>,
    } else {
    }
    %c0 = arith.constant 0 : index
    %c0_1 = arith.constant 0 : index
    %3 = vector.load %arg7[%c0, %c0_1] : memref<32x256xf32, #tpu.memory_space<vmem>>, vector<32x256xf32>
    %c0_2 = arith.constant 0 : index
    %c0_3 = arith.constant 0 : index
    %4 = vector.load %arg3[%c0_2, %c0_3] : memref<32x256xbf16, #tpu.memory_space<vmem>>, vector<32x256xbf16>
    %c0_4 = arith.constant 0 : index
    %c0_5 = arith.constant 0 : index
    %5 = vector.load %arg4[%c0_4, %c0_5] : memref<256x256xbf16, #tpu.memory_space<vmem>>, vector<256x256xbf16>
    %cst = arith.constant dense<0.000000e+00> : vector<32x256xf32>
    %6 = tpu.matmul %4, %5, %cst {dimension_numbers = #tpu.dot_dimension_numbers<[1], [0], [0], [1], [0, 0, 1, 1], [], []>} : vector<32x256xbf16>, vector<256x256xbf16>, vector<32x256xf32> -> vector<32x256xf32>
    %7 = arith.addf %3, %6 : vector<32x256xf32>
    %c0_6 = arith.constant 0 : index
    %c0_7 = arith.constant 0 : index
    %8 = vector.load %arg7[%c0_6, %c0_7] : memref<32x256xf32, #tpu.memory_space<vmem>>, vector<32x256xf32>
    tpu.vector_store %arg7[%c0_6, %c0_7], %7 {strides = array<i32>} : memref<32x256xf32, #tpu.memory_space<vmem>>, vector<32x256xf32>,
    %c8_i32 = arith.constant 8 : i32
    %9 = arith.cmpi eq, %arg2, %c8_i32 : i32
    %10 = arith.extui %9 : i1 to i32
    %c0_i32_8 = arith.constant 0 : i32
    %11 = arith.cmpi ne, %10, %c0_i32_8 : i32
    scf.if %11 {
      %c0_9 = arith.constant 0 : index
      %c0_10 = arith.constant 0 : index
      %12 = vector.load %arg5[%c0_9, %c0_10] : memref<2x256xf32, #tpu.memory_space<vmem>>, vector<2x256xf32>
      %c0_11 = arith.constant 0 : index
      %c0_12 = arith.constant 0 : index
      %13 = vector.load %arg7[%c0_11, %c0_12] : memref<32x256xf32, #tpu.memory_space<vmem>>, vector<32x256xf32>
      %14 = vector.extract_strided_slice %12 {offsets = [0, 0], sizes = [1, 256], strides = [1, 1]} : vector<2x256xf32> to vector<1x256xf32>
      %15 = vector.broadcast %14 : vector<1x256xf32> to vector<32x256xf32>
      %16 = arith.mulf %13, %15 : vector<32x256xf32>
      %17 = vector.extract_strided_slice %12 {offsets = [1, 0], sizes = [1, 256], strides = [1, 1]} : vector<2x256xf32> to vector<1x256xf32>
      %18 = vector.broadcast %17 : vector<1x256xf32> to vector<32x256xf32>
      %19 = arith.addf %16, %18 : vector<32x256xf32>
      %cst_13 = arith.constant 0.000000e+00 : f32
      %20 = vector.broadcast %cst_13 : f32 to vector<32x256xf32>
      %21 = arith.maximumf %19, %20 : vector<32x256xf32>
      %22 = arith.truncf %21 : vector<32x256xf32> to vector<32x256xbf16>
      %c0_14 = arith.constant 0 : index
      %c0_15 = arith.constant 0 : index
      %23 = vector.load %arg6[%c0_14, %c0_15] : memref<32x256xbf16, #tpu.memory_space<vmem>>, vector<32x256xbf16>
      tpu.vector_store %arg6[%c0_14, %c0_15], %22 {strides = array<i32>} : memref<32x256xbf16, #tpu.memory_space<vmem>>, vector<32x256xbf16>,
    } else {
    }
    return
  }
  func.func @transform_0(%arg0: i32, %arg1: i32, %arg2: i32) -> (i32, i32) {
    %c0_i32 = arith.constant 0 : i32
    return %arg0, %arg2 : i32, i32
  }
  func.func @transform_1(%arg0: i32, %arg1: i32, %arg2: i32) -> (i32, i32) {
    %c0_i32 = arith.constant 0 : i32
    return %arg2, %arg1 : i32, i32
  }
  func.func @transform_2(%arg0: i32, %arg1: i32, %arg2: i32) -> (i32, i32) {
    %c0_i32 = arith.constant 0 : i32
    %c0_i32_0 = arith.constant 0 : i32
    return %c0_i32, %arg1 : i32, i32
  }
  func.func @transform_3(%arg0: i32, %arg1: i32, %arg2: i32) -> (i32, i32) {
    %c0_i32 = arith.constant 0 : i32
    return %arg0, %arg1 : i32, i32
  }
}

module attributes {stable_mosaic.version = 11 : i64} {
  func.func @_conv_kernel(%arg0: i32, %arg1: i32, %arg2: i32, %arg3: memref<32x256xbf16, #tpu.memory_space<vmem>>, %arg4: memref<256x256xbf16, #tpu.memory_space<vmem>>, %arg5: memref<2x256xf32, #tpu.memory_space<vmem>>, %arg6: memref<32x256xbf16, #tpu.memory_space<vmem>>, %arg7: memref<32x256xf32, #tpu.memory_space<vmem>>) attributes {dimension_semantics = [#tpu.dimension_semantics<parallel>, #tpu.dimension_semantics<parallel>, #tpu.dimension_semantics<arbitrary>], iteration_bounds = array<i64: 1, 2, 9>, scalar_prefetch = 0 : i64, scratch_operands = 1 : i64, tpu.core_type = #tpu.core_type<tc>, window_params = [{transform_indices = @transform_0, window_bounds = array<i64: 32, 256>}, {transform_indices = @transform_1, window_bounds = array<i64: 256, 256>}, {transform_indices = @transform_2, window_bounds = array<i64: 2, 256>}, {transform_indices = @transform_3, window_bounds = array<i64: 32, 256>}]} {
    %c0_i32 = arith.constant 0 : i32
    %0 = arith.cmpi eq, %arg2, %c0_i32 : i32
    %1 = arith.extui %0 : i1 to i32
    %c0_i32_0 = arith.constant 0 : i32
    %2 = arith.cmpi ne, %1, %c0_i32_0 : i32
    scf.if %2 {
      %cst_9 = arith.constant 0.000000e+00 : f32
      %12 = vector.broadcast %cst_9 : f32 to vector<32x256xf32>
      %c0_10 = arith.constant 0 : index
      %c0_11 = arith.constant 0 : index
      %13 = vector.load %arg7[%c0_10, %c0_11] : memref<32x256xf32, #tpu.memory_space<vmem>>, vector<32x256xf32>
      tpu.vector_store %arg7[%c0_10, %c0_11], %12 {strides = array<i32>} : memref<32x256xf32, #tpu.memory_space<vmem>>, vector<32x256xf32>,
    } else {
    }
    %c0 = arith.constant 0 : index
    %c0_1 = arith.constant 0 : index
    %3 = vector.load %arg7[%c0, %c0_1] : memref<32x256xf32, #tpu.memory_space<vmem>>, vector<32x256xf32>
    %c0_2 = arith.constant 0 : index
    %c0_3 = arith.constant 0 : index
    %4 = vector.load %arg3[%c0_2, %c0_3] : memref<32x256xbf16, #tpu.memory_space<vmem>>, vector<32x256xbf16>
    %c0_4 = arith.constant 0 : index
    %c0_5 = arith.constant 0 : index
    %5 = vector.load %arg4[%c0_4, %c0_5] : memref<256x256xbf16, #tpu.memory_space<vmem>>, vector<256x256xbf16>
    %cst = arith.constant dense<0.000000e+00> : vector<32x256xf32>
    %6 = tpu.matmul %4, %5, %cst {dimension_numbers = #tpu.dot_dimension_numbers<[1], [0], [0], [1], [0, 0, 1, 1], [], []>} : vector<32x256xbf16>, vector<256x256xbf16>, vector<32x256xf32> -> vector<32x256xf32>
    %7 = arith.addf %3, %6 : vector<32x256xf32>
    %c0_6 = arith.constant 0 : index
    %c0_7 = arith.constant 0 : index
    %8 = vector.load %arg7[%c0_6, %c0_7] : memref<32x256xf32, #tpu.memory_space<vmem>>, vector<32x256xf32>
    tpu.vector_store %arg7[%c0_6, %c0_7], %7 {strides = array<i32>} : memref<32x256xf32, #tpu.memory_space<vmem>>, vector<32x256xf32>,
    %c8_i32 = arith.constant 8 : i32
    %9 = arith.cmpi eq, %arg2, %c8_i32 : i32
    %10 = arith.extui %9 : i1 to i32
    %c0_i32_8 = arith.constant 0 : i32
    %11 = arith.cmpi ne, %10, %c0_i32_8 : i32
    scf.if %11 {
      %c0_9 = arith.constant 0 : index
      %c0_10 = arith.constant 0 : index
      %12 = vector.load %arg5[%c0_9, %c0_10] : memref<2x256xf32, #tpu.memory_space<vmem>>, vector<2x256xf32>
      %c0_11 = arith.constant 0 : index
      %c0_12 = arith.constant 0 : index
      %13 = vector.load %arg7[%c0_11, %c0_12] : memref<32x256xf32, #tpu.memory_space<vmem>>, vector<32x256xf32>
      %14 = vector.extract_strided_slice %12 {offsets = [0, 0], sizes = [1, 256], strides = [1, 1]} : vector<2x256xf32> to vector<1x256xf32>
      %15 = vector.broadcast %14 : vector<1x256xf32> to vector<32x256xf32>
      %16 = arith.mulf %13, %15 : vector<32x256xf32>
      %17 = vector.extract_strided_slice %12 {offsets = [1, 0], sizes = [1, 256], strides = [1, 1]} : vector<2x256xf32> to vector<1x256xf32>
      %18 = vector.broadcast %17 : vector<1x256xf32> to vector<32x256xf32>
      %19 = arith.addf %16, %18 : vector<32x256xf32>
      %20 = arith.truncf %19 : vector<32x256xf32> to vector<32x256xbf16>
      %c0_13 = arith.constant 0 : index
      %c0_14 = arith.constant 0 : index
      %21 = vector.load %arg6[%c0_13, %c0_14] : memref<32x256xbf16, #tpu.memory_space<vmem>>, vector<32x256xbf16>
      tpu.vector_store %arg6[%c0_13, %c0_14], %20 {strides = array<i32>} : memref<32x256xbf16, #tpu.memory_space<vmem>>, vector<32x256xbf16>,
    } else {
    }
    return
  }
  func.func @transform_0(%arg0: i32, %arg1: i32, %arg2: i32) -> (i32, i32) {
    %c0_i32 = arith.constant 0 : i32
    return %arg0, %arg2 : i32, i32
  }
  func.func @transform_1(%arg0: i32, %arg1: i32, %arg2: i32) -> (i32, i32) {
    %c0_i32 = arith.constant 0 : i32
    return %arg2, %arg1 : i32, i32
  }
  func.func @transform_2(%arg0: i32, %arg1: i32, %arg2: i32) -> (i32, i32) {
    %c0_i32 = arith.constant 0 : i32
    %c0_i32_0 = arith.constant 0 : i32
    return %c0_i32, %arg1 : i32, i32
  }
  func.func @transform_3(%arg0: i32, %arg1: i32, %arg2: i32) -> (i32, i32) {
    %c0_i32 = arith.constant 0 : i32
    return %arg0, %arg1 : i32, i32
  }
}

module attributes {stable_mosaic.version = 11 : i64} {
  func.func @_conv_kernel(%arg0: i32, %arg1: i32, %arg2: i32, %arg3: memref<32x256xbf16, #tpu.memory_space<vmem>>, %arg4: memref<256x128xbf16, #tpu.memory_space<vmem>>, %arg5: memref<2x128xf32, #tpu.memory_space<vmem>>, %arg6: memref<32x128xbf16, #tpu.memory_space<vmem>>, %arg7: memref<32x128xf32, #tpu.memory_space<vmem>>) attributes {dimension_semantics = [#tpu.dimension_semantics<parallel>, #tpu.dimension_semantics<parallel>, #tpu.dimension_semantics<arbitrary>], iteration_bounds = array<i64: 1, 1, 1>, scalar_prefetch = 0 : i64, scratch_operands = 1 : i64, tpu.core_type = #tpu.core_type<tc>, window_params = [{transform_indices = @transform_0, window_bounds = array<i64: 32, 256>}, {transform_indices = @transform_1, window_bounds = array<i64: 256, 128>}, {transform_indices = @transform_2, window_bounds = array<i64: 2, 128>}, {transform_indices = @transform_3, window_bounds = array<i64: 32, 128>}]} {
    %c0_i32 = arith.constant 0 : i32
    %0 = arith.cmpi eq, %arg2, %c0_i32 : i32
    %1 = arith.extui %0 : i1 to i32
    %c0_i32_0 = arith.constant 0 : i32
    %2 = arith.cmpi ne, %1, %c0_i32_0 : i32
    scf.if %2 {
      %cst_10 = arith.constant 0.000000e+00 : f32
      %12 = vector.broadcast %cst_10 : f32 to vector<32x128xf32>
      %c0_11 = arith.constant 0 : index
      %c0_12 = arith.constant 0 : index
      %13 = vector.load %arg7[%c0_11, %c0_12] : memref<32x128xf32, #tpu.memory_space<vmem>>, vector<32x128xf32>
      tpu.vector_store %arg7[%c0_11, %c0_12], %12 {strides = array<i32>} : memref<32x128xf32, #tpu.memory_space<vmem>>, vector<32x128xf32>,
    } else {
    }
    %c0 = arith.constant 0 : index
    %c0_1 = arith.constant 0 : index
    %3 = vector.load %arg7[%c0, %c0_1] : memref<32x128xf32, #tpu.memory_space<vmem>>, vector<32x128xf32>
    %c0_2 = arith.constant 0 : index
    %c0_3 = arith.constant 0 : index
    %4 = vector.load %arg3[%c0_2, %c0_3] : memref<32x256xbf16, #tpu.memory_space<vmem>>, vector<32x256xbf16>
    %c0_4 = arith.constant 0 : index
    %c0_5 = arith.constant 0 : index
    %5 = vector.load %arg4[%c0_4, %c0_5] : memref<256x128xbf16, #tpu.memory_space<vmem>>, vector<256x128xbf16>
    %cst = arith.constant dense<0.000000e+00> : vector<32x128xf32>
    %6 = tpu.matmul %4, %5, %cst {dimension_numbers = #tpu.dot_dimension_numbers<[1], [0], [0], [1], [0, 0, 1, 1], [], []>} : vector<32x256xbf16>, vector<256x128xbf16>, vector<32x128xf32> -> vector<32x128xf32>
    %7 = arith.addf %3, %6 : vector<32x128xf32>
    %c0_6 = arith.constant 0 : index
    %c0_7 = arith.constant 0 : index
    %8 = vector.load %arg7[%c0_6, %c0_7] : memref<32x128xf32, #tpu.memory_space<vmem>>, vector<32x128xf32>
    tpu.vector_store %arg7[%c0_6, %c0_7], %7 {strides = array<i32>} : memref<32x128xf32, #tpu.memory_space<vmem>>, vector<32x128xf32>,
    %c0_i32_8 = arith.constant 0 : i32
    %9 = arith.cmpi eq, %arg2, %c0_i32_8 : i32
    %10 = arith.extui %9 : i1 to i32
    %c0_i32_9 = arith.constant 0 : i32
    %11 = arith.cmpi ne, %10, %c0_i32_9 : i32
    scf.if %11 {
      %c0_10 = arith.constant 0 : index
      %c0_11 = arith.constant 0 : index
      %12 = vector.load %arg5[%c0_10, %c0_11] : memref<2x128xf32, #tpu.memory_space<vmem>>, vector<2x128xf32>
      %c0_12 = arith.constant 0 : index
      %c0_13 = arith.constant 0 : index
      %13 = vector.load %arg7[%c0_12, %c0_13] : memref<32x128xf32, #tpu.memory_space<vmem>>, vector<32x128xf32>
      %14 = vector.extract_strided_slice %12 {offsets = [0, 0], sizes = [1, 128], strides = [1, 1]} : vector<2x128xf32> to vector<1x128xf32>
      %15 = vector.broadcast %14 : vector<1x128xf32> to vector<32x128xf32>
      %16 = arith.mulf %13, %15 : vector<32x128xf32>
      %17 = vector.extract_strided_slice %12 {offsets = [1, 0], sizes = [1, 128], strides = [1, 1]} : vector<2x128xf32> to vector<1x128xf32>
      %18 = vector.broadcast %17 : vector<1x128xf32> to vector<32x128xf32>
      %19 = arith.addf %16, %18 : vector<32x128xf32>
      %cst_14 = arith.constant 0.000000e+00 : f32
      %20 = vector.broadcast %cst_14 : f32 to vector<32x128xf32>
      %21 = arith.maximumf %19, %20 : vector<32x128xf32>
      %22 = arith.truncf %21 : vector<32x128xf32> to vector<32x128xbf16>
      %c0_15 = arith.constant 0 : index
      %c0_16 = arith.constant 0 : index
      %23 = vector.load %arg6[%c0_15, %c0_16] : memref<32x128xbf16, #tpu.memory_space<vmem>>, vector<32x128xbf16>
      tpu.vector_store %arg6[%c0_15, %c0_16], %22 {strides = array<i32>} : memref<32x128xbf16, #tpu.memory_space<vmem>>, vector<32x128xbf16>,
    } else {
    }
    return
  }
  func.func @transform_0(%arg0: i32, %arg1: i32, %arg2: i32) -> (i32, i32) {
    %c0_i32 = arith.constant 0 : i32
    return %arg0, %arg2 : i32, i32
  }
  func.func @transform_1(%arg0: i32, %arg1: i32, %arg2: i32) -> (i32, i32) {
    %c0_i32 = arith.constant 0 : i32
    return %arg2, %arg1 : i32, i32
  }
  func.func @transform_2(%arg0: i32, %arg1: i32, %arg2: i32) -> (i32, i32) {
    %c0_i32 = arith.constant 0 : i32
    %c0_i32_0 = arith.constant 0 : i32
    return %c0_i32, %arg1 : i32, i32
  }
  func.func @transform_3(%arg0: i32, %arg1: i32, %arg2: i32) -> (i32, i32) {
    %c0_i32 = arith.constant 0 : i32
    return %arg0, %arg1 : i32, i32
  }
}

module attributes {stable_mosaic.version = 11 : i64} {
  func.func @_conv_kernel(%arg0: i32, %arg1: i32, %arg2: i32, %arg3: memref<32x128xbf16, #tpu.memory_space<vmem>>, %arg4: memref<128x256xbf16, #tpu.memory_space<vmem>>, %arg5: memref<2x256xf32, #tpu.memory_space<vmem>>, %arg6: memref<32x256xbf16, #tpu.memory_space<vmem>>, %arg7: memref<32x256xbf16, #tpu.memory_space<vmem>>, %arg8: memref<32x256xf32, #tpu.memory_space<vmem>>) attributes {dimension_semantics = [#tpu.dimension_semantics<parallel>, #tpu.dimension_semantics<parallel>, #tpu.dimension_semantics<arbitrary>], iteration_bounds = array<i64: 1, 2, 1>, scalar_prefetch = 0 : i64, scratch_operands = 1 : i64, tpu.core_type = #tpu.core_type<tc>, window_params = [{transform_indices = @transform_0, window_bounds = array<i64: 32, 128>}, {transform_indices = @transform_1, window_bounds = array<i64: 128, 256>}, {transform_indices = @transform_2, window_bounds = array<i64: 2, 256>}, {transform_indices = @transform_3, window_bounds = array<i64: 32, 256>}, {transform_indices = @transform_4, window_bounds = array<i64: 32, 256>}]} {
    %c0_i32 = arith.constant 0 : i32
    %0 = arith.cmpi eq, %arg2, %c0_i32 : i32
    %1 = arith.extui %0 : i1 to i32
    %c0_i32_0 = arith.constant 0 : i32
    %2 = arith.cmpi ne, %1, %c0_i32_0 : i32
    scf.if %2 {
      %cst_10 = arith.constant 0.000000e+00 : f32
      %12 = vector.broadcast %cst_10 : f32 to vector<32x256xf32>
      %c0_11 = arith.constant 0 : index
      %c0_12 = arith.constant 0 : index
      %13 = vector.load %arg8[%c0_11, %c0_12] : memref<32x256xf32, #tpu.memory_space<vmem>>, vector<32x256xf32>
      tpu.vector_store %arg8[%c0_11, %c0_12], %12 {strides = array<i32>} : memref<32x256xf32, #tpu.memory_space<vmem>>, vector<32x256xf32>,
    } else {
    }
    %c0 = arith.constant 0 : index
    %c0_1 = arith.constant 0 : index
    %3 = vector.load %arg8[%c0, %c0_1] : memref<32x256xf32, #tpu.memory_space<vmem>>, vector<32x256xf32>
    %c0_2 = arith.constant 0 : index
    %c0_3 = arith.constant 0 : index
    %4 = vector.load %arg3[%c0_2, %c0_3] : memref<32x128xbf16, #tpu.memory_space<vmem>>, vector<32x128xbf16>
    %c0_4 = arith.constant 0 : index
    %c0_5 = arith.constant 0 : index
    %5 = vector.load %arg4[%c0_4, %c0_5] : memref<128x256xbf16, #tpu.memory_space<vmem>>, vector<128x256xbf16>
    %cst = arith.constant dense<0.000000e+00> : vector<32x256xf32>
    %6 = tpu.matmul %4, %5, %cst {dimension_numbers = #tpu.dot_dimension_numbers<[1], [0], [0], [1], [0, 0, 1, 1], [], []>} : vector<32x128xbf16>, vector<128x256xbf16>, vector<32x256xf32> -> vector<32x256xf32>
    %7 = arith.addf %3, %6 : vector<32x256xf32>
    %c0_6 = arith.constant 0 : index
    %c0_7 = arith.constant 0 : index
    %8 = vector.load %arg8[%c0_6, %c0_7] : memref<32x256xf32, #tpu.memory_space<vmem>>, vector<32x256xf32>
    tpu.vector_store %arg8[%c0_6, %c0_7], %7 {strides = array<i32>} : memref<32x256xf32, #tpu.memory_space<vmem>>, vector<32x256xf32>,
    %c0_i32_8 = arith.constant 0 : i32
    %9 = arith.cmpi eq, %arg2, %c0_i32_8 : i32
    %10 = arith.extui %9 : i1 to i32
    %c0_i32_9 = arith.constant 0 : i32
    %11 = arith.cmpi ne, %10, %c0_i32_9 : i32
    scf.if %11 {
      %c0_10 = arith.constant 0 : index
      %c0_11 = arith.constant 0 : index
      %12 = vector.load %arg5[%c0_10, %c0_11] : memref<2x256xf32, #tpu.memory_space<vmem>>, vector<2x256xf32>
      %c0_12 = arith.constant 0 : index
      %c0_13 = arith.constant 0 : index
      %13 = vector.load %arg8[%c0_12, %c0_13] : memref<32x256xf32, #tpu.memory_space<vmem>>, vector<32x256xf32>
      %14 = vector.extract_strided_slice %12 {offsets = [0, 0], sizes = [1, 256], strides = [1, 1]} : vector<2x256xf32> to vector<1x256xf32>
      %15 = vector.broadcast %14 : vector<1x256xf32> to vector<32x256xf32>
      %16 = arith.mulf %13, %15 : vector<32x256xf32>
      %17 = vector.extract_strided_slice %12 {offsets = [1, 0], sizes = [1, 256], strides = [1, 1]} : vector<2x256xf32> to vector<1x256xf32>
      %18 = vector.broadcast %17 : vector<1x256xf32> to vector<32x256xf32>
      %19 = arith.addf %16, %18 : vector<32x256xf32>
      %cst_14 = arith.constant 0.000000e+00 : f32
      %20 = vector.broadcast %cst_14 : f32 to vector<32x256xf32>
      %21 = arith.maximumf %19, %20 : vector<32x256xf32>
      %c0_15 = arith.constant 0 : index
      %c0_16 = arith.constant 0 : index
      %22 = vector.load %arg6[%c0_15, %c0_16] : memref<32x256xbf16, #tpu.memory_space<vmem>>, vector<32x256xbf16>
      %23 = arith.extf %22 : vector<32x256xbf16> to vector<32x256xf32>
      %24 = arith.addf %21, %23 : vector<32x256xf32>
      %25 = arith.truncf %24 : vector<32x256xf32> to vector<32x256xbf16>
      %c0_17 = arith.constant 0 : index
      %c0_18 = arith.constant 0 : index
      %26 = vector.load %arg7[%c0_17, %c0_18] : memref<32x256xbf16, #tpu.memory_space<vmem>>, vector<32x256xbf16>
      tpu.vector_store %arg7[%c0_17, %c0_18], %25 {strides = array<i32>} : memref<32x256xbf16, #tpu.memory_space<vmem>>, vector<32x256xbf16>,
    } else {
    }
    return
  }
  func.func @transform_0(%arg0: i32, %arg1: i32, %arg2: i32) -> (i32, i32) {
    %c0_i32 = arith.constant 0 : i32
    return %arg0, %arg2 : i32, i32
  }
  func.func @transform_1(%arg0: i32, %arg1: i32, %arg2: i32) -> (i32, i32) {
    %c0_i32 = arith.constant 0 : i32
    return %arg2, %arg1 : i32, i32
  }
  func.func @transform_2(%arg0: i32, %arg1: i32, %arg2: i32) -> (i32, i32) {
    %c0_i32 = arith.constant 0 : i32
    %c0_i32_0 = arith.constant 0 : i32
    return %c0_i32, %arg1 : i32, i32
  }
  func.func @transform_3(%arg0: i32, %arg1: i32, %arg2: i32) -> (i32, i32) {
    %c0_i32 = arith.constant 0 : i32
    return %arg0, %arg1 : i32, i32
  }
  func.func @transform_4(%arg0: i32, %arg1: i32, %arg2: i32) -> (i32, i32) {
    %c0_i32 = arith.constant 0 : i32
    return %arg0, %arg1 : i32, i32
  }
}

module attributes {stable_mosaic.version = 11 : i64} {
  func.func @_conv_kernel(%arg0: i32, %arg1: i32, %arg2: i32, %arg3: memref<32x256xbf16, #tpu.memory_space<vmem>>, %arg4: memref<256x256xbf16, #tpu.memory_space<vmem>>, %arg5: memref<2x256xf32, #tpu.memory_space<vmem>>, %arg6: memref<32x256xbf16, #tpu.memory_space<vmem>>, %arg7: memref<32x256xf32, #tpu.memory_space<vmem>>) attributes {dimension_semantics = [#tpu.dimension_semantics<parallel>, #tpu.dimension_semantics<parallel>, #tpu.dimension_semantics<arbitrary>], iteration_bounds = array<i64: 1, 8, 18>, scalar_prefetch = 0 : i64, scratch_operands = 1 : i64, tpu.core_type = #tpu.core_type<tc>, window_params = [{transform_indices = @transform_0, window_bounds = array<i64: 32, 256>}, {transform_indices = @transform_1, window_bounds = array<i64: 256, 256>}, {transform_indices = @transform_2, window_bounds = array<i64: 2, 256>}, {transform_indices = @transform_3, window_bounds = array<i64: 32, 256>}]} {
    %c0_i32 = arith.constant 0 : i32
    %0 = arith.cmpi eq, %arg2, %c0_i32 : i32
    %1 = arith.extui %0 : i1 to i32
    %c0_i32_0 = arith.constant 0 : i32
    %2 = arith.cmpi ne, %1, %c0_i32_0 : i32
    scf.if %2 {
      %cst_9 = arith.constant 0.000000e+00 : f32
      %12 = vector.broadcast %cst_9 : f32 to vector<32x256xf32>
      %c0_10 = arith.constant 0 : index
      %c0_11 = arith.constant 0 : index
      %13 = vector.load %arg7[%c0_10, %c0_11] : memref<32x256xf32, #tpu.memory_space<vmem>>, vector<32x256xf32>
      tpu.vector_store %arg7[%c0_10, %c0_11], %12 {strides = array<i32>} : memref<32x256xf32, #tpu.memory_space<vmem>>, vector<32x256xf32>,
    } else {
    }
    %c0 = arith.constant 0 : index
    %c0_1 = arith.constant 0 : index
    %3 = vector.load %arg7[%c0, %c0_1] : memref<32x256xf32, #tpu.memory_space<vmem>>, vector<32x256xf32>
    %c0_2 = arith.constant 0 : index
    %c0_3 = arith.constant 0 : index
    %4 = vector.load %arg3[%c0_2, %c0_3] : memref<32x256xbf16, #tpu.memory_space<vmem>>, vector<32x256xbf16>
    %c0_4 = arith.constant 0 : index
    %c0_5 = arith.constant 0 : index
    %5 = vector.load %arg4[%c0_4, %c0_5] : memref<256x256xbf16, #tpu.memory_space<vmem>>, vector<256x256xbf16>
    %cst = arith.constant dense<0.000000e+00> : vector<32x256xf32>
    %6 = tpu.matmul %4, %5, %cst {dimension_numbers = #tpu.dot_dimension_numbers<[1], [0], [0], [1], [0, 0, 1, 1], [], []>} : vector<32x256xbf16>, vector<256x256xbf16>, vector<32x256xf32> -> vector<32x256xf32>
    %7 = arith.addf %3, %6 : vector<32x256xf32>
    %c0_6 = arith.constant 0 : index
    %c0_7 = arith.constant 0 : index
    %8 = vector.load %arg7[%c0_6, %c0_7] : memref<32x256xf32, #tpu.memory_space<vmem>>, vector<32x256xf32>
    tpu.vector_store %arg7[%c0_6, %c0_7], %7 {strides = array<i32>} : memref<32x256xf32, #tpu.memory_space<vmem>>, vector<32x256xf32>,
    %c17_i32 = arith.constant 17 : i32
    %9 = arith.cmpi eq, %arg2, %c17_i32 : i32
    %10 = arith.extui %9 : i1 to i32
    %c0_i32_8 = arith.constant 0 : i32
    %11 = arith.cmpi ne, %10, %c0_i32_8 : i32
    scf.if %11 {
      %c0_9 = arith.constant 0 : index
      %c0_10 = arith.constant 0 : index
      %12 = vector.load %arg5[%c0_9, %c0_10] : memref<2x256xf32, #tpu.memory_space<vmem>>, vector<2x256xf32>
      %c0_11 = arith.constant 0 : index
      %c0_12 = arith.constant 0 : index
      %13 = vector.load %arg7[%c0_11, %c0_12] : memref<32x256xf32, #tpu.memory_space<vmem>>, vector<32x256xf32>
      %14 = vector.extract_strided_slice %12 {offsets = [0, 0], sizes = [1, 256], strides = [1, 1]} : vector<2x256xf32> to vector<1x256xf32>
      %15 = vector.broadcast %14 : vector<1x256xf32> to vector<32x256xf32>
      %16 = arith.mulf %13, %15 : vector<32x256xf32>
      %17 = vector.extract_strided_slice %12 {offsets = [1, 0], sizes = [1, 256], strides = [1, 1]} : vector<2x256xf32> to vector<1x256xf32>
      %18 = vector.broadcast %17 : vector<1x256xf32> to vector<32x256xf32>
      %19 = arith.addf %16, %18 : vector<32x256xf32>
      %cst_13 = arith.constant 0.000000e+00 : f32
      %20 = vector.broadcast %cst_13 : f32 to vector<32x256xf32>
      %21 = arith.maximumf %19, %20 : vector<32x256xf32>
      %22 = arith.truncf %21 : vector<32x256xf32> to vector<32x256xbf16>
      %c0_14 = arith.constant 0 : index
      %c0_15 = arith.constant 0 : index
      %23 = vector.load %arg6[%c0_14, %c0_15] : memref<32x256xbf16, #tpu.memory_space<vmem>>, vector<32x256xbf16>
      tpu.vector_store %arg6[%c0_14, %c0_15], %22 {strides = array<i32>} : memref<32x256xbf16, #tpu.memory_space<vmem>>, vector<32x256xbf16>,
    } else {
    }
    return
  }
  func.func @transform_0(%arg0: i32, %arg1: i32, %arg2: i32) -> (i32, i32) {
    %c0_i32 = arith.constant 0 : i32
    return %arg0, %arg2 : i32, i32
  }
  func.func @transform_1(%arg0: i32, %arg1: i32, %arg2: i32) -> (i32, i32) {
    %c0_i32 = arith.constant 0 : i32
    return %arg2, %arg1 : i32, i32
  }
  func.func @transform_2(%arg0: i32, %arg1: i32, %arg2: i32) -> (i32, i32) {
    %c0_i32 = arith.constant 0 : i32
    %c0_i32_0 = arith.constant 0 : i32
    return %c0_i32, %arg1 : i32, i32
  }
  func.func @transform_3(%arg0: i32, %arg1: i32, %arg2: i32) -> (i32, i32) {
    %c0_i32 = arith.constant 0 : i32
    return %arg0, %arg1 : i32, i32
  }
}

module attributes {stable_mosaic.version = 11 : i64} {
  func.func @_conv_kernel(%arg0: i32, %arg1: i32, %arg2: i32, %arg3: memref<32x256xbf16, #tpu.memory_space<vmem>>, %arg4: memref<256x256xbf16, #tpu.memory_space<vmem>>, %arg5: memref<2x256xf32, #tpu.memory_space<vmem>>, %arg6: memref<32x256xbf16, #tpu.memory_space<vmem>>, %arg7: memref<32x256xf32, #tpu.memory_space<vmem>>) attributes {dimension_semantics = [#tpu.dimension_semantics<parallel>, #tpu.dimension_semantics<parallel>, #tpu.dimension_semantics<arbitrary>], iteration_bounds = array<i64: 1, 1, 2>, scalar_prefetch = 0 : i64, scratch_operands = 1 : i64, tpu.core_type = #tpu.core_type<tc>, window_params = [{transform_indices = @transform_0, window_bounds = array<i64: 32, 256>}, {transform_indices = @transform_1, window_bounds = array<i64: 256, 256>}, {transform_indices = @transform_2, window_bounds = array<i64: 2, 256>}, {transform_indices = @transform_3, window_bounds = array<i64: 32, 256>}]} {
    %c0_i32 = arith.constant 0 : i32
    %0 = arith.cmpi eq, %arg2, %c0_i32 : i32
    %1 = arith.extui %0 : i1 to i32
    %c0_i32_0 = arith.constant 0 : i32
    %2 = arith.cmpi ne, %1, %c0_i32_0 : i32
    scf.if %2 {
      %cst_9 = arith.constant 0.000000e+00 : f32
      %12 = vector.broadcast %cst_9 : f32 to vector<32x256xf32>
      %c0_10 = arith.constant 0 : index
      %c0_11 = arith.constant 0 : index
      %13 = vector.load %arg7[%c0_10, %c0_11] : memref<32x256xf32, #tpu.memory_space<vmem>>, vector<32x256xf32>
      tpu.vector_store %arg7[%c0_10, %c0_11], %12 {strides = array<i32>} : memref<32x256xf32, #tpu.memory_space<vmem>>, vector<32x256xf32>,
    } else {
    }
    %c0 = arith.constant 0 : index
    %c0_1 = arith.constant 0 : index
    %3 = vector.load %arg7[%c0, %c0_1] : memref<32x256xf32, #tpu.memory_space<vmem>>, vector<32x256xf32>
    %c0_2 = arith.constant 0 : index
    %c0_3 = arith.constant 0 : index
    %4 = vector.load %arg3[%c0_2, %c0_3] : memref<32x256xbf16, #tpu.memory_space<vmem>>, vector<32x256xbf16>
    %c0_4 = arith.constant 0 : index
    %c0_5 = arith.constant 0 : index
    %5 = vector.load %arg4[%c0_4, %c0_5] : memref<256x256xbf16, #tpu.memory_space<vmem>>, vector<256x256xbf16>
    %cst = arith.constant dense<0.000000e+00> : vector<32x256xf32>
    %6 = tpu.matmul %4, %5, %cst {dimension_numbers = #tpu.dot_dimension_numbers<[1], [0], [0], [1], [0, 0, 1, 1], [], []>} : vector<32x256xbf16>, vector<256x256xbf16>, vector<32x256xf32> -> vector<32x256xf32>
    %7 = arith.addf %3, %6 : vector<32x256xf32>
    %c0_6 = arith.constant 0 : index
    %c0_7 = arith.constant 0 : index
    %8 = vector.load %arg7[%c0_6, %c0_7] : memref<32x256xf32, #tpu.memory_space<vmem>>, vector<32x256xf32>
    tpu.vector_store %arg7[%c0_6, %c0_7], %7 {strides = array<i32>} : memref<32x256xf32, #tpu.memory_space<vmem>>, vector<32x256xf32>,
    %c1_i32 = arith.constant 1 : i32
    %9 = arith.cmpi eq, %arg2, %c1_i32 : i32
    %10 = arith.extui %9 : i1 to i32
    %c0_i32_8 = arith.constant 0 : i32
    %11 = arith.cmpi ne, %10, %c0_i32_8 : i32
    scf.if %11 {
      %c0_9 = arith.constant 0 : index
      %c0_10 = arith.constant 0 : index
      %12 = vector.load %arg5[%c0_9, %c0_10] : memref<2x256xf32, #tpu.memory_space<vmem>>, vector<2x256xf32>
      %c0_11 = arith.constant 0 : index
      %c0_12 = arith.constant 0 : index
      %13 = vector.load %arg7[%c0_11, %c0_12] : memref<32x256xf32, #tpu.memory_space<vmem>>, vector<32x256xf32>
      %14 = vector.extract_strided_slice %12 {offsets = [0, 0], sizes = [1, 256], strides = [1, 1]} : vector<2x256xf32> to vector<1x256xf32>
      %15 = vector.broadcast %14 : vector<1x256xf32> to vector<32x256xf32>
      %16 = arith.mulf %13, %15 : vector<32x256xf32>
      %17 = vector.extract_strided_slice %12 {offsets = [1, 0], sizes = [1, 256], strides = [1, 1]} : vector<2x256xf32> to vector<1x256xf32>
      %18 = vector.broadcast %17 : vector<1x256xf32> to vector<32x256xf32>
      %19 = arith.addf %16, %18 : vector<32x256xf32>
      %20 = arith.truncf %19 : vector<32x256xf32> to vector<32x256xbf16>
      %c0_13 = arith.constant 0 : index
      %c0_14 = arith.constant 0 : index
      %21 = vector.load %arg6[%c0_13, %c0_14] : memref<32x256xbf16, #tpu.memory_space<vmem>>, vector<32x256xbf16>
      tpu.vector_store %arg6[%c0_13, %c0_14], %20 {strides = array<i32>} : memref<32x256xbf16, #tpu.memory_space<vmem>>, vector<32x256xbf16>,
    } else {
    }
    return
  }
  func.func @transform_0(%arg0: i32, %arg1: i32, %arg2: i32) -> (i32, i32) {
    %c0_i32 = arith.constant 0 : i32
    return %arg0, %arg2 : i32, i32
  }
  func.func @transform_1(%arg0: i32, %arg1: i32, %arg2: i32) -> (i32, i32) {
    %c0_i32 = arith.constant 0 : i32
    return %arg2, %arg1 : i32, i32
  }
  func.func @transform_2(%arg0: i32, %arg1: i32, %arg2: i32) -> (i32, i32) {
    %c0_i32 = arith.constant 0 : i32
    %c0_i32_0 = arith.constant 0 : i32
    return %c0_i32, %arg1 : i32, i32
  }
  func.func @transform_3(%arg0: i32, %arg1: i32, %arg2: i32) -> (i32, i32) {
    %c0_i32 = arith.constant 0 : i32
    return %arg0, %arg1 : i32, i32
  }
}

module attributes {stable_mosaic.version = 11 : i64} {
  func.func @_conv_kernel(%arg0: i32, %arg1: i32, %arg2: i32, %arg3: memref<32x256xbf16, #tpu.memory_space<vmem>>, %arg4: memref<256x256xbf16, #tpu.memory_space<vmem>>, %arg5: memref<2x256xf32, #tpu.memory_space<vmem>>, %arg6: memref<32x256xbf16, #tpu.memory_space<vmem>>, %arg7: memref<32x256xbf16, #tpu.memory_space<vmem>>, %arg8: memref<32x256xf32, #tpu.memory_space<vmem>>) attributes {dimension_semantics = [#tpu.dimension_semantics<parallel>, #tpu.dimension_semantics<parallel>, #tpu.dimension_semantics<arbitrary>], iteration_bounds = array<i64: 1, 1, 72>, scalar_prefetch = 0 : i64, scratch_operands = 1 : i64, tpu.core_type = #tpu.core_type<tc>, window_params = [{transform_indices = @transform_0, window_bounds = array<i64: 32, 256>}, {transform_indices = @transform_1, window_bounds = array<i64: 256, 256>}, {transform_indices = @transform_2, window_bounds = array<i64: 2, 256>}, {transform_indices = @transform_3, window_bounds = array<i64: 32, 256>}, {transform_indices = @transform_4, window_bounds = array<i64: 32, 256>}]} {
    %c0_i32 = arith.constant 0 : i32
    %0 = arith.cmpi eq, %arg2, %c0_i32 : i32
    %1 = arith.extui %0 : i1 to i32
    %c0_i32_0 = arith.constant 0 : i32
    %2 = arith.cmpi ne, %1, %c0_i32_0 : i32
    scf.if %2 {
      %cst_9 = arith.constant 0.000000e+00 : f32
      %12 = vector.broadcast %cst_9 : f32 to vector<32x256xf32>
      %c0_10 = arith.constant 0 : index
      %c0_11 = arith.constant 0 : index
      %13 = vector.load %arg8[%c0_10, %c0_11] : memref<32x256xf32, #tpu.memory_space<vmem>>, vector<32x256xf32>
      tpu.vector_store %arg8[%c0_10, %c0_11], %12 {strides = array<i32>} : memref<32x256xf32, #tpu.memory_space<vmem>>, vector<32x256xf32>,
    } else {
    }
    %c0 = arith.constant 0 : index
    %c0_1 = arith.constant 0 : index
    %3 = vector.load %arg8[%c0, %c0_1] : memref<32x256xf32, #tpu.memory_space<vmem>>, vector<32x256xf32>
    %c0_2 = arith.constant 0 : index
    %c0_3 = arith.constant 0 : index
    %4 = vector.load %arg3[%c0_2, %c0_3] : memref<32x256xbf16, #tpu.memory_space<vmem>>, vector<32x256xbf16>
    %c0_4 = arith.constant 0 : index
    %c0_5 = arith.constant 0 : index
    %5 = vector.load %arg4[%c0_4, %c0_5] : memref<256x256xbf16, #tpu.memory_space<vmem>>, vector<256x256xbf16>
    %cst = arith.constant dense<0.000000e+00> : vector<32x256xf32>
    %6 = tpu.matmul %4, %5, %cst {dimension_numbers = #tpu.dot_dimension_numbers<[1], [0], [0], [1], [0, 0, 1, 1], [], []>} : vector<32x256xbf16>, vector<256x256xbf16>, vector<32x256xf32> -> vector<32x256xf32>
    %7 = arith.addf %3, %6 : vector<32x256xf32>
    %c0_6 = arith.constant 0 : index
    %c0_7 = arith.constant 0 : index
    %8 = vector.load %arg8[%c0_6, %c0_7] : memref<32x256xf32, #tpu.memory_space<vmem>>, vector<32x256xf32>
    tpu.vector_store %arg8[%c0_6, %c0_7], %7 {strides = array<i32>} : memref<32x256xf32, #tpu.memory_space<vmem>>, vector<32x256xf32>,
    %c71_i32 = arith.constant 71 : i32
    %9 = arith.cmpi eq, %arg2, %c71_i32 : i32
    %10 = arith.extui %9 : i1 to i32
    %c0_i32_8 = arith.constant 0 : i32
    %11 = arith.cmpi ne, %10, %c0_i32_8 : i32
    scf.if %11 {
      %c0_9 = arith.constant 0 : index
      %c0_10 = arith.constant 0 : index
      %12 = vector.load %arg5[%c0_9, %c0_10] : memref<2x256xf32, #tpu.memory_space<vmem>>, vector<2x256xf32>
      %c0_11 = arith.constant 0 : index
      %c0_12 = arith.constant 0 : index
      %13 = vector.load %arg8[%c0_11, %c0_12] : memref<32x256xf32, #tpu.memory_space<vmem>>, vector<32x256xf32>
      %14 = vector.extract_strided_slice %12 {offsets = [0, 0], sizes = [1, 256], strides = [1, 1]} : vector<2x256xf32> to vector<1x256xf32>
      %15 = vector.broadcast %14 : vector<1x256xf32> to vector<32x256xf32>
      %16 = arith.mulf %13, %15 : vector<32x256xf32>
      %17 = vector.extract_strided_slice %12 {offsets = [1, 0], sizes = [1, 256], strides = [1, 1]} : vector<2x256xf32> to vector<1x256xf32>
      %18 = vector.broadcast %17 : vector<1x256xf32> to vector<32x256xf32>
      %19 = arith.addf %16, %18 : vector<32x256xf32>
      %c0_13 = arith.constant 0 : index
      %c0_14 = arith.constant 0 : index
      %20 = vector.load %arg6[%c0_13, %c0_14] : memref<32x256xbf16, #tpu.memory_space<vmem>>, vector<32x256xbf16>
      %21 = arith.extf %20 : vector<32x256xbf16> to vector<32x256xf32>
      %22 = arith.addf %19, %21 : vector<32x256xf32>
      %cst_15 = arith.constant 0.000000e+00 : f32
      %23 = vector.broadcast %cst_15 : f32 to vector<32x256xf32>
      %24 = arith.maximumf %22, %23 : vector<32x256xf32>
      %25 = arith.truncf %24 : vector<32x256xf32> to vector<32x256xbf16>
      %c0_16 = arith.constant 0 : index
      %c0_17 = arith.constant 0 : index
      %26 = vector.load %arg7[%c0_16, %c0_17] : memref<32x256xbf16, #tpu.memory_space<vmem>>, vector<32x256xbf16>
      tpu.vector_store %arg7[%c0_16, %c0_17], %25 {strides = array<i32>} : memref<32x256xbf16, #tpu.memory_space<vmem>>, vector<32x256xbf16>,
    } else {
    }
    return
  }
  func.func @transform_0(%arg0: i32, %arg1: i32, %arg2: i32) -> (i32, i32) {
    %c0_i32 = arith.constant 0 : i32
    return %arg0, %arg2 : i32, i32
  }
  func.func @transform_1(%arg0: i32, %arg1: i32, %arg2: i32) -> (i32, i32) {
    %c0_i32 = arith.constant 0 : i32
    return %arg2, %arg1 : i32, i32
  }
  func.func @transform_2(%arg0: i32, %arg1: i32, %arg2: i32) -> (i32, i32) {
    %c0_i32 = arith.constant 0 : i32
    %c0_i32_0 = arith.constant 0 : i32
    return %c0_i32, %arg1 : i32, i32
  }
  func.func @transform_3(%arg0: i32, %arg1: i32, %arg2: i32) -> (i32, i32) {
    %c0_i32 = arith.constant 0 : i32
    return %arg0, %arg1 : i32, i32
  }
  func.func @transform_4(%arg0: i32, %arg1: i32, %arg2: i32) -> (i32, i32) {
    %c0_i32 = arith.constant 0 : i32
    return %arg0, %arg1 : i32, i32
  }
}

module attributes {stable_mosaic.version = 11 : i64} {
  func.func @_conv_kernel(%arg0: i32, %arg1: i32, %arg2: i32, %arg3: memref<32x256xbf16, #tpu.memory_space<vmem>>, %arg4: memref<256x128xbf16, #tpu.memory_space<vmem>>, %arg5: memref<2x128xf32, #tpu.memory_space<vmem>>, %arg6: memref<32x128xbf16, #tpu.memory_space<vmem>>, %arg7: memref<32x128xf32, #tpu.memory_space<vmem>>) attributes {dimension_semantics = [#tpu.dimension_semantics<parallel>, #tpu.dimension_semantics<parallel>, #tpu.dimension_semantics<arbitrary>], iteration_bounds = array<i64: 1, 1, 9>, scalar_prefetch = 0 : i64, scratch_operands = 1 : i64, tpu.core_type = #tpu.core_type<tc>, window_params = [{transform_indices = @transform_0, window_bounds = array<i64: 32, 256>}, {transform_indices = @transform_1, window_bounds = array<i64: 256, 128>}, {transform_indices = @transform_2, window_bounds = array<i64: 2, 128>}, {transform_indices = @transform_3, window_bounds = array<i64: 32, 128>}]} {
    %c0_i32 = arith.constant 0 : i32
    %0 = arith.cmpi eq, %arg2, %c0_i32 : i32
    %1 = arith.extui %0 : i1 to i32
    %c0_i32_0 = arith.constant 0 : i32
    %2 = arith.cmpi ne, %1, %c0_i32_0 : i32
    scf.if %2 {
      %cst_9 = arith.constant 0.000000e+00 : f32
      %12 = vector.broadcast %cst_9 : f32 to vector<32x128xf32>
      %c0_10 = arith.constant 0 : index
      %c0_11 = arith.constant 0 : index
      %13 = vector.load %arg7[%c0_10, %c0_11] : memref<32x128xf32, #tpu.memory_space<vmem>>, vector<32x128xf32>
      tpu.vector_store %arg7[%c0_10, %c0_11], %12 {strides = array<i32>} : memref<32x128xf32, #tpu.memory_space<vmem>>, vector<32x128xf32>,
    } else {
    }
    %c0 = arith.constant 0 : index
    %c0_1 = arith.constant 0 : index
    %3 = vector.load %arg7[%c0, %c0_1] : memref<32x128xf32, #tpu.memory_space<vmem>>, vector<32x128xf32>
    %c0_2 = arith.constant 0 : index
    %c0_3 = arith.constant 0 : index
    %4 = vector.load %arg3[%c0_2, %c0_3] : memref<32x256xbf16, #tpu.memory_space<vmem>>, vector<32x256xbf16>
    %c0_4 = arith.constant 0 : index
    %c0_5 = arith.constant 0 : index
    %5 = vector.load %arg4[%c0_4, %c0_5] : memref<256x128xbf16, #tpu.memory_space<vmem>>, vector<256x128xbf16>
    %cst = arith.constant dense<0.000000e+00> : vector<32x128xf32>
    %6 = tpu.matmul %4, %5, %cst {dimension_numbers = #tpu.dot_dimension_numbers<[1], [0], [0], [1], [0, 0, 1, 1], [], []>} : vector<32x256xbf16>, vector<256x128xbf16>, vector<32x128xf32> -> vector<32x128xf32>
    %7 = arith.addf %3, %6 : vector<32x128xf32>
    %c0_6 = arith.constant 0 : index
    %c0_7 = arith.constant 0 : index
    %8 = vector.load %arg7[%c0_6, %c0_7] : memref<32x128xf32, #tpu.memory_space<vmem>>, vector<32x128xf32>
    tpu.vector_store %arg7[%c0_6, %c0_7], %7 {strides = array<i32>} : memref<32x128xf32, #tpu.memory_space<vmem>>, vector<32x128xf32>,
    %c8_i32 = arith.constant 8 : i32
    %9 = arith.cmpi eq, %arg2, %c8_i32 : i32
    %10 = arith.extui %9 : i1 to i32
    %c0_i32_8 = arith.constant 0 : i32
    %11 = arith.cmpi ne, %10, %c0_i32_8 : i32
    scf.if %11 {
      %c0_9 = arith.constant 0 : index
      %c0_10 = arith.constant 0 : index
      %12 = vector.load %arg5[%c0_9, %c0_10] : memref<2x128xf32, #tpu.memory_space<vmem>>, vector<2x128xf32>
      %c0_11 = arith.constant 0 : index
      %c0_12 = arith.constant 0 : index
      %13 = vector.load %arg7[%c0_11, %c0_12] : memref<32x128xf32, #tpu.memory_space<vmem>>, vector<32x128xf32>
      %14 = vector.extract_strided_slice %12 {offsets = [0, 0], sizes = [1, 128], strides = [1, 1]} : vector<2x128xf32> to vector<1x128xf32>
      %15 = vector.broadcast %14 : vector<1x128xf32> to vector<32x128xf32>
      %16 = arith.mulf %13, %15 : vector<32x128xf32>
      %17 = vector.extract_strided_slice %12 {offsets = [1, 0], sizes = [1, 128], strides = [1, 1]} : vector<2x128xf32> to vector<1x128xf32>
      %18 = vector.broadcast %17 : vector<1x128xf32> to vector<32x128xf32>
      %19 = arith.addf %16, %18 : vector<32x128xf32>
      %cst_13 = arith.constant 0.000000e+00 : f32
      %20 = vector.broadcast %cst_13 : f32 to vector<32x128xf32>
      %21 = arith.maximumf %19, %20 : vector<32x128xf32>
      %22 = arith.truncf %21 : vector<32x128xf32> to vector<32x128xbf16>
      %c0_14 = arith.constant 0 : index
      %c0_15 = arith.constant 0 : index
      %23 = vector.load %arg6[%c0_14, %c0_15] : memref<32x128xbf16, #tpu.memory_space<vmem>>, vector<32x128xbf16>
      tpu.vector_store %arg6[%c0_14, %c0_15], %22 {strides = array<i32>} : memref<32x128xbf16, #tpu.memory_space<vmem>>, vector<32x128xbf16>,
    } else {
    }
    return
  }
  func.func @transform_0(%arg0: i32, %arg1: i32, %arg2: i32) -> (i32, i32) {
    %c0_i32 = arith.constant 0 : i32
    return %arg0, %arg2 : i32, i32
  }
  func.func @transform_1(%arg0: i32, %arg1: i32, %arg2: i32) -> (i32, i32) {
    %c0_i32 = arith.constant 0 : i32
    return %arg2, %arg1 : i32, i32
  }
  func.func @transform_2(%arg0: i32, %arg1: i32, %arg2: i32) -> (i32, i32) {
    %c0_i32 = arith.constant 0 : i32
    %c0_i32_0 = arith.constant 0 : i32
    return %c0_i32, %arg1 : i32, i32
  }
  func.func @transform_3(%arg0: i32, %arg1: i32, %arg2: i32) -> (i32, i32) {
    %c0_i32 = arith.constant 0 : i32
    return %arg0, %arg1 : i32, i32
  }
}

module attributes {stable_mosaic.version = 11 : i64} {
  func.func @_conv_kernel(%arg0: i32, %arg1: i32, %arg2: i32, %arg3: memref<32x128xbf16, #tpu.memory_space<vmem>>, %arg4: memref<128x128xbf16, #tpu.memory_space<vmem>>, %arg5: memref<2x128xf32, #tpu.memory_space<vmem>>, %arg6: memref<32x128xbf16, #tpu.memory_space<vmem>>, %arg7: memref<32x128xf32, #tpu.memory_space<vmem>>) attributes {dimension_semantics = [#tpu.dimension_semantics<parallel>, #tpu.dimension_semantics<parallel>, #tpu.dimension_semantics<arbitrary>], iteration_bounds = array<i64: 1, 1, 1>, scalar_prefetch = 0 : i64, scratch_operands = 1 : i64, tpu.core_type = #tpu.core_type<tc>, window_params = [{transform_indices = @transform_0, window_bounds = array<i64: 32, 128>}, {transform_indices = @transform_1, window_bounds = array<i64: 128, 128>}, {transform_indices = @transform_2, window_bounds = array<i64: 2, 128>}, {transform_indices = @transform_3, window_bounds = array<i64: 32, 128>}]} {
    %c0_i32 = arith.constant 0 : i32
    %0 = arith.cmpi eq, %arg2, %c0_i32 : i32
    %1 = arith.extui %0 : i1 to i32
    %c0_i32_0 = arith.constant 0 : i32
    %2 = arith.cmpi ne, %1, %c0_i32_0 : i32
    scf.if %2 {
      %cst_10 = arith.constant 0.000000e+00 : f32
      %12 = vector.broadcast %cst_10 : f32 to vector<32x128xf32>
      %c0_11 = arith.constant 0 : index
      %c0_12 = arith.constant 0 : index
      %13 = vector.load %arg7[%c0_11, %c0_12] : memref<32x128xf32, #tpu.memory_space<vmem>>, vector<32x128xf32>
      tpu.vector_store %arg7[%c0_11, %c0_12], %12 {strides = array<i32>} : memref<32x128xf32, #tpu.memory_space<vmem>>, vector<32x128xf32>,
    } else {
    }
    %c0 = arith.constant 0 : index
    %c0_1 = arith.constant 0 : index
    %3 = vector.load %arg7[%c0, %c0_1] : memref<32x128xf32, #tpu.memory_space<vmem>>, vector<32x128xf32>
    %c0_2 = arith.constant 0 : index
    %c0_3 = arith.constant 0 : index
    %4 = vector.load %arg3[%c0_2, %c0_3] : memref<32x128xbf16, #tpu.memory_space<vmem>>, vector<32x128xbf16>
    %c0_4 = arith.constant 0 : index
    %c0_5 = arith.constant 0 : index
    %5 = vector.load %arg4[%c0_4, %c0_5] : memref<128x128xbf16, #tpu.memory_space<vmem>>, vector<128x128xbf16>
    %cst = arith.constant dense<0.000000e+00> : vector<32x128xf32>
    %6 = tpu.matmul %4, %5, %cst {dimension_numbers = #tpu.dot_dimension_numbers<[1], [0], [0], [1], [0, 0, 1, 1], [], []>} : vector<32x128xbf16>, vector<128x128xbf16>, vector<32x128xf32> -> vector<32x128xf32>
    %7 = arith.addf %3, %6 : vector<32x128xf32>
    %c0_6 = arith.constant 0 : index
    %c0_7 = arith.constant 0 : index
    %8 = vector.load %arg7[%c0_6, %c0_7] : memref<32x128xf32, #tpu.memory_space<vmem>>, vector<32x128xf32>
    tpu.vector_store %arg7[%c0_6, %c0_7], %7 {strides = array<i32>} : memref<32x128xf32, #tpu.memory_space<vmem>>, vector<32x128xf32>,
    %c0_i32_8 = arith.constant 0 : i32
    %9 = arith.cmpi eq, %arg2, %c0_i32_8 : i32
    %10 = arith.extui %9 : i1 to i32
    %c0_i32_9 = arith.constant 0 : i32
    %11 = arith.cmpi ne, %10, %c0_i32_9 : i32
    scf.if %11 {
      %c0_10 = arith.constant 0 : index
      %c0_11 = arith.constant 0 : index
      %12 = vector.load %arg5[%c0_10, %c0_11] : memref<2x128xf32, #tpu.memory_space<vmem>>, vector<2x128xf32>
      %c0_12 = arith.constant 0 : index
      %c0_13 = arith.constant 0 : index
      %13 = vector.load %arg7[%c0_12, %c0_13] : memref<32x128xf32, #tpu.memory_space<vmem>>, vector<32x128xf32>
      %14 = vector.extract_strided_slice %12 {offsets = [0, 0], sizes = [1, 128], strides = [1, 1]} : vector<2x128xf32> to vector<1x128xf32>
      %15 = vector.broadcast %14 : vector<1x128xf32> to vector<32x128xf32>
      %16 = arith.mulf %13, %15 : vector<32x128xf32>
      %17 = vector.extract_strided_slice %12 {offsets = [1, 0], sizes = [1, 128], strides = [1, 1]} : vector<2x128xf32> to vector<1x128xf32>
      %18 = vector.broadcast %17 : vector<1x128xf32> to vector<32x128xf32>
      %19 = arith.addf %16, %18 : vector<32x128xf32>
      %20 = arith.truncf %19 : vector<32x128xf32> to vector<32x128xbf16>
      %c0_14 = arith.constant 0 : index
      %c0_15 = arith.constant 0 : index
      %21 = vector.load %arg6[%c0_14, %c0_15] : memref<32x128xbf16, #tpu.memory_space<vmem>>, vector<32x128xbf16>
      tpu.vector_store %arg6[%c0_14, %c0_15], %20 {strides = array<i32>} : memref<32x128xbf16, #tpu.memory_space<vmem>>, vector<32x128xbf16>,
    } else {
    }
    return
  }
  func.func @transform_0(%arg0: i32, %arg1: i32, %arg2: i32) -> (i32, i32) {
    %c0_i32 = arith.constant 0 : i32
    return %arg0, %arg2 : i32, i32
  }
  func.func @transform_1(%arg0: i32, %arg1: i32, %arg2: i32) -> (i32, i32) {
    %c0_i32 = arith.constant 0 : i32
    return %arg2, %arg1 : i32, i32
  }
  func.func @transform_2(%arg0: i32, %arg1: i32, %arg2: i32) -> (i32, i32) {
    %c0_i32 = arith.constant 0 : i32
    %c0_i32_0 = arith.constant 0 : i32
    return %c0_i32, %arg1 : i32, i32
  }
  func.func @transform_3(%arg0: i32, %arg1: i32, %arg2: i32) -> (i32, i32) {
    %c0_i32 = arith.constant 0 : i32
    return %arg0, %arg1 : i32, i32
  }
}

module attributes {stable_mosaic.version = 11 : i64} {
  func.func @_conv_kernel(%arg0: i32, %arg1: i32, %arg2: i32, %arg3: memref<32x256xbf16, #tpu.memory_space<vmem>>, %arg4: memref<256x128xbf16, #tpu.memory_space<vmem>>, %arg5: memref<2x128xf32, #tpu.memory_space<vmem>>, %arg6: memref<32x128xbf16, #tpu.memory_space<vmem>>, %arg7: memref<32x128xf32, #tpu.memory_space<vmem>>) attributes {dimension_semantics = [#tpu.dimension_semantics<parallel>, #tpu.dimension_semantics<parallel>, #tpu.dimension_semantics<arbitrary>], iteration_bounds = array<i64: 1, 1, 5>, scalar_prefetch = 0 : i64, scratch_operands = 1 : i64, tpu.core_type = #tpu.core_type<tc>, window_params = [{transform_indices = @transform_0, window_bounds = array<i64: 32, 256>}, {transform_indices = @transform_1, window_bounds = array<i64: 256, 128>}, {transform_indices = @transform_2, window_bounds = array<i64: 2, 128>}, {transform_indices = @transform_3, window_bounds = array<i64: 32, 128>}]} {
    %c0_i32 = arith.constant 0 : i32
    %0 = arith.cmpi eq, %arg2, %c0_i32 : i32
    %1 = arith.extui %0 : i1 to i32
    %c0_i32_0 = arith.constant 0 : i32
    %2 = arith.cmpi ne, %1, %c0_i32_0 : i32
    scf.if %2 {
      %cst_9 = arith.constant 0.000000e+00 : f32
      %12 = vector.broadcast %cst_9 : f32 to vector<32x128xf32>
      %c0_10 = arith.constant 0 : index
      %c0_11 = arith.constant 0 : index
      %13 = vector.load %arg7[%c0_10, %c0_11] : memref<32x128xf32, #tpu.memory_space<vmem>>, vector<32x128xf32>
      tpu.vector_store %arg7[%c0_10, %c0_11], %12 {strides = array<i32>} : memref<32x128xf32, #tpu.memory_space<vmem>>, vector<32x128xf32>,
    } else {
    }
    %c0 = arith.constant 0 : index
    %c0_1 = arith.constant 0 : index
    %3 = vector.load %arg7[%c0, %c0_1] : memref<32x128xf32, #tpu.memory_space<vmem>>, vector<32x128xf32>
    %c0_2 = arith.constant 0 : index
    %c0_3 = arith.constant 0 : index
    %4 = vector.load %arg3[%c0_2, %c0_3] : memref<32x256xbf16, #tpu.memory_space<vmem>>, vector<32x256xbf16>
    %c0_4 = arith.constant 0 : index
    %c0_5 = arith.constant 0 : index
    %5 = vector.load %arg4[%c0_4, %c0_5] : memref<256x128xbf16, #tpu.memory_space<vmem>>, vector<256x128xbf16>
    %cst = arith.constant dense<0.000000e+00> : vector<32x128xf32>
    %6 = tpu.matmul %4, %5, %cst {dimension_numbers = #tpu.dot_dimension_numbers<[1], [0], [0], [1], [0, 0, 1, 1], [], []>} : vector<32x256xbf16>, vector<256x128xbf16>, vector<32x128xf32> -> vector<32x128xf32>
    %7 = arith.addf %3, %6 : vector<32x128xf32>
    %c0_6 = arith.constant 0 : index
    %c0_7 = arith.constant 0 : index
    %8 = vector.load %arg7[%c0_6, %c0_7] : memref<32x128xf32, #tpu.memory_space<vmem>>, vector<32x128xf32>
    tpu.vector_store %arg7[%c0_6, %c0_7], %7 {strides = array<i32>} : memref<32x128xf32, #tpu.memory_space<vmem>>, vector<32x128xf32>,
    %c4_i32 = arith.constant 4 : i32
    %9 = arith.cmpi eq, %arg2, %c4_i32 : i32
    %10 = arith.extui %9 : i1 to i32
    %c0_i32_8 = arith.constant 0 : i32
    %11 = arith.cmpi ne, %10, %c0_i32_8 : i32
    scf.if %11 {
      %c0_9 = arith.constant 0 : index
      %c0_10 = arith.constant 0 : index
      %12 = vector.load %arg5[%c0_9, %c0_10] : memref<2x128xf32, #tpu.memory_space<vmem>>, vector<2x128xf32>
      %c0_11 = arith.constant 0 : index
      %c0_12 = arith.constant 0 : index
      %13 = vector.load %arg7[%c0_11, %c0_12] : memref<32x128xf32, #tpu.memory_space<vmem>>, vector<32x128xf32>
      %14 = vector.extract_strided_slice %12 {offsets = [0, 0], sizes = [1, 128], strides = [1, 1]} : vector<2x128xf32> to vector<1x128xf32>
      %15 = vector.broadcast %14 : vector<1x128xf32> to vector<32x128xf32>
      %16 = arith.mulf %13, %15 : vector<32x128xf32>
      %17 = vector.extract_strided_slice %12 {offsets = [1, 0], sizes = [1, 128], strides = [1, 1]} : vector<2x128xf32> to vector<1x128xf32>
      %18 = vector.broadcast %17 : vector<1x128xf32> to vector<32x128xf32>
      %19 = arith.addf %16, %18 : vector<32x128xf32>
      %20 = arith.truncf %19 : vector<32x128xf32> to vector<32x128xbf16>
      %c0_13 = arith.constant 0 : index
      %c0_14 = arith.constant 0 : index
      %21 = vector.load %arg6[%c0_13, %c0_14] : memref<32x128xbf16, #tpu.memory_space<vmem>>, vector<32x128xbf16>
      tpu.vector_store %arg6[%c0_13, %c0_14], %20 {strides = array<i32>} : memref<32x128xbf16, #tpu.memory_space<vmem>>, vector<32x128xbf16>,
    } else {
    }
    return
  }
  func.func @transform_0(%arg0: i32, %arg1: i32, %arg2: i32) -> (i32, i32) {
    %c0_i32 = arith.constant 0 : i32
    return %arg0, %arg2 : i32, i32
  }
  func.func @transform_1(%arg0: i32, %arg1: i32, %arg2: i32) -> (i32, i32) {
    %c0_i32 = arith.constant 0 : i32
    return %arg2, %arg1 : i32, i32
  }
  func.func @transform_2(%arg0: i32, %arg1: i32, %arg2: i32) -> (i32, i32) {
    %c0_i32 = arith.constant 0 : i32
    %c0_i32_0 = arith.constant 0 : i32
    return %c0_i32, %arg1 : i32, i32
  }
  func.func @transform_3(%arg0: i32, %arg1: i32, %arg2: i32) -> (i32, i32) {
    %c0_i32 = arith.constant 0 : i32
    return %arg0, %arg1 : i32, i32
  }
}

</mosaic_0001>

<bundles_post_ra>
// kernel: forward.28
= control target key start
LH: loop header
LB: loop body
LE: loop exit
PB: predicated region body
PF: predicated region fallthrough
CT: control target
= control target key end

     0   :  { %v514_v38 = vlaneseq  ;;  %s1314_s1 = inlined_call_operand.vmem [shape: bf16[256,128], index: 1, kind: input, shape index: {}]   ;;  %s1315_s0 = inlined_call_operand.vmem [shape: bf16[176,256], index: 0, kind: input, shape index: {}]   ;;  %s1316_s2 = inlined_call_operand.vmem [shape: f32[4,128], index: 2, kind: input, shape index: {}]   ;;  %s1317_s3 = inlined_call_operand.vmem [shape: bf16[176,128], index: 3, kind: output, shape index: {}]  }
   0x1   :  { %v999_v0 = vld [vmem:[%s1314_s1 + $0x40] sm:$0xff]   ;;  %v1001_v2 = vld [vmem:[%s1314_s1 + $0x48] sm:$0xff]   ;;  %v1003_v4 = vld [vmem:[%s1314_s1 + $0x50] sm:$0xff]  }
   0x2   :  { %v1000_v1 = vld [vmem:[%s1314_s1] sm:$0xff]   ;;  %901 = vmatprep.subr.bf16.mxu0 %v999_v0  ;;  %983 = vmatprep.subr.bf16.mxu1 %v999_v0  ;;  %v1002_v3 = vld [vmem:[%s1314_s1 + $0x8] sm:$0xff]   ;;  %v1004_v5 = vld [vmem:[%s1314_s1 + $0x10] sm:$0xff]   ;;  %v515_v39 = vshrl.u32 %v514_v38, 7 }
   0x3   :  { %902 = vmatpush3.bf16.msra.mxu0 %v1000_v1  ;;  %991 = vmatpush3.bf16.msra.mxu1 %v1000_v1  ;;  %v1005_v6 = vld [vmem:[%s1314_s1 + $0x58] sm:$0xff]   ;;  %v1007_v8 = vld [vmem:[%s1314_s1 + $0x60] sm:$0xff]   ;;  %v1009_v10 = vld [vmem:[%s1314_s1 + $0x68] sm:$0xff]  }
   0x4   :  { %903 = vmatprep.subr.bf16.mxu0 %v1001_v2  ;;  %984 = vmatprep.subr.bf16.mxu1 %v1001_v2  ;;  %v1006_v7 = vld [vmem:[%s1314_s1 + $0x18] sm:$0xff]   ;;  %v1008_v9 = vld [vmem:[%s1314_s1 + $0x20] sm:$0xff]   ;;  %v1010_v13 = vld [vmem:[%s1314_s1 + $0x28] sm:$0xff]   ;;  %v516_v40 = vsub.s32 0, %v515_v39  ;;  %v542_v42 = vsub.s32 1, %v515_v39  ;;  %v590_v47 = vsub.s32 2, %v515_v39 }
   0x5   :  { %v1017_v11 = vld [vmem:[%s1315_s0 + $0x4] ss:$8 sps:$4 sm:$0xff]   ;;  %v1011_v14 = vld [vmem:[%s1314_s1 + $0x70] sm:$0xff]   ;;  %v1013_v16 = vld [vmem:[%s1314_s1 + $0x78] sm:$0xff]   ;;  %v616_v61 = vsub.s32 3, %v515_v39 }
   0x6   :  { %v1020_v12 = vld [vmem:[%s1315_s0 + $0x64] ss:$8 sps:$4 sm:$0xff]   ;;  %355 = vmatprep.mubr.bf16.mxu0 %v1017_v11  ;;  %v1012_v15 = vld [vmem:[%s1314_s1 + $0x30] sm:$0xff]   ;;  %v1014_v17 = vld [vmem:[%s1314_s1 + $0x38] sm:$0xff]  }
   0x7   :  { %904 = vmatpush3.bf16.msra.mxu0 %v1002_v3  ;;  %992 = vmatpush3.bf16.msra.mxu1 %v1002_v3  ;;  %v1015_v18 = vld [vmem:[%s1315_s0] ss:$8 sps:$4 sm:$0xff]   ;;  %v1021_v20 = vld [vmem:[%s1315_s0 + $0x14] ss:$8 sps:$4 sm:$0xff]   ;;  %v1023_v22 = vld [vmem:[%s1315_s0 + $0x10] ss:$8 sps:$4 sm:$0xff]  }
   0x8   :  { %905 = vmatprep.subr.bf16.mxu0 %v1003_v4  ;;  %985 = vmatprep.subr.bf16.mxu1 %v1003_v4  ;;  %v1018_v19 = vld [vmem:[%s1315_s0 + $0x60] ss:$8 sps:$4 sm:$0xff]   ;;  %v1024_v21 = vld [vmem:[%s1315_s0 + $0x74] ss:$8 sps:$4 sm:$0xff]   ;;  %v1026_v23 = vld [vmem:[%s1315_s0 + $0x70] ss:$8 sps:$4 sm:$0xff]  }
   0x9   :  { %403 = vmatprep.mubr.bf16.mxu1 %v1020_v12  ;;  %v1027_v24 = vld [vmem:[%s1315_s0 + $0x24] ss:$8 sps:$4 sm:$0xff]   ;;  %v1029_v26 = vld [vmem:[%s1315_s0 + $0x20] ss:$8 sps:$4 sm:$0xff]   ;;  %v1033_v28 = vld [vmem:[%s1315_s0 + $0x34] ss:$8 sps:$4 sm:$0xff]  }
   0xa   :  { %v1030_v25 = vld [vmem:[%s1315_s0 + $0x84] ss:$8 sps:$4 sm:$0xff]   ;;  %v1032_v27 = vld [vmem:[%s1315_s0 + $0x80] ss:$8 sps:$4 sm:$0xff]   ;;  %v1036_v29 = vld [vmem:[%s1315_s0 + $0x94] ss:$8 sps:$4 sm:$0xff]  }
   0xb   :  { %906 = vmatpush3.bf16.msra.mxu0 %v1004_v5  ;;  %993 = vmatpush3.bf16.msra.mxu1 %v1004_v5  ;;  %v1035_v30 = vld [vmem:[%s1315_s0 + $0x30] ss:$8 sps:$4 sm:$0xff]   ;;  %v1039_v32 = vld [vmem:[%s1315_s0 + $0x44] ss:$8 sps:$4 sm:$0xff]   ;;  %v1041_v34 = vld [vmem:[%s1315_s0 + $0x40] ss:$8 sps:$4 sm:$0xff]  }
   0xc   :  { %907 = vmatprep.subr.bf16.mxu0 %v1005_v6  ;;  %986 = vmatprep.subr.bf16.mxu1 %v1005_v6  ;;  %v1038_v31 = vld [vmem:[%s1315_s0 + $0x90] ss:$8 sps:$4 sm:$0xff]   ;;  %v1042_v33 = vld [vmem:[%s1315_s0 + $0xa4] ss:$8 sps:$4 sm:$0xff]   ;;  %v1044_v35 = vld [vmem:[%s1315_s0 + $0xa0] ss:$8 sps:$4 sm:$0xff]  }
   0xd   :  { %v1045_v36 = vld [vmem:[%s1315_s0 + $0x54] ss:$8 sps:$4 sm:$0xff]   ;;  %v1047_v37 = vld [vmem:[%s1315_s0 + $0x50] ss:$8 sps:$4 sm:$0xff]   ;;  %v491_v41 = vld [vmem:[%s1316_s2] sm:$0xf] }
   0xe   :  { %v1185_v44 = vrot.slane %v491_v41, %v516_v40  ;;  %v1187_v50 = vrot.slane %v491_v41, %v542_v42  ;;  %v1191_v60 = vrot.slane %v491_v41, %v590_v47 }
   0xf   :  { %908 = vmatpush3.bf16.msra.mxu0 %v1006_v7  ;;  %994 = vmatpush3.bf16.msra.mxu1 %v1006_v7 }
  0x10   :  { %909 = vmatprep.subr.bf16.mxu0 %v1007_v8  ;;  %987 = vmatprep.subr.bf16.mxu1 %v1007_v8  ;;  %v1199_v8 = vrot.slane %v491_v41, %v616_v61 }
  0x13   :  { %910 = vmatpush3.bf16.msra.mxu0 %v1008_v9  ;;  %995 = vmatpush3.bf16.msra.mxu1 %v1008_v9 }
  0x14   :  { %911 = vmatprep.subr.bf16.mxu0 %v1009_v10  ;;  %988 = vmatprep.subr.bf16.mxu1 %v1009_v10 }
  0x17   :  { %912 = vmatpush3.bf16.msra.mxu0 %v1010_v13  ;;  %996 = vmatpush3.bf16.msra.mxu1 %v1010_v13 }
  0x18   :  { %913 = vmatprep.subr.bf16.mxu0 %v1011_v14  ;;  %989 = vmatprep.subr.bf16.mxu1 %v1011_v14 }
  0x1b   :  { %914 = vmatpush3.bf16.msra.mxu0 %v1012_v15  ;;  %997 = vmatpush3.bf16.msra.mxu1 %v1012_v15 }
  0x1c   :  { %915 = vmatprep.subr.bf16.mxu0 %v1013_v16  ;;  %990 = vmatprep.subr.bf16.mxu1 %v1013_v16 }
  0x1f   :  { %916 = vmatpush3.bf16.msra.mxu0 %v1014_v17  ;;  %998 = vmatpush3.bf16.msra.mxu1 %v1014_v17 }
  0x22   :  { %356 = vmatmul.mubr.bf16.vlgmr.msra.gmra.mrb[0].mxu0 %v1015_v18  ;;  %404 = vmatmul.mubr.bf16.vlgmr.msra.gmra.mrb[0].mxu1 %v1018_v19 }
  0x23   :  { %363 = vmatprep.mubr.bf16.mxu0 %v1021_v20  ;;  %411 = vmatprep.mubr.bf16.mxu1 %v1024_v21 }
  0x2a   :  { %364 = vmatmul.mubr.bf16.gmra.mrb[4].mxu0 %v1023_v22  ;;  %412 = vmatmul.mubr.bf16.gmra.mrb[4].mxu1 %v1026_v23 }
  0x2b   :  { %371 = vmatprep.mubr.bf16.mxu0 %v1027_v24  ;;  %419 = vmatprep.mubr.bf16.mxu1 %v1030_v25 }
  0x32   :  { %372 = vmatmul.mubr.bf16.gmra.mrb[8].mxu0 %v1029_v26  ;;  %420 = vmatmul.mubr.bf16.gmra.mrb[8].mxu1 %v1032_v27 }
  0x33   :  { %379 = vmatprep.mubr.bf16.mxu0 %v1033_v28  ;;  %427 = vmatprep.mubr.bf16.mxu1 %v1036_v29 }
  0x3a   :  { %380 = vmatmul.mubr.bf16.gmra.mrb[12].mxu0 %v1035_v30  ;;  %428 = vmatmul.mubr.bf16.gmra.mrb[12].mxu1 %v1038_v31 }
  0x3b   :  { %387 = vmatprep.mubr.bf16.mxu0 %v1039_v32  ;;  %435 = vmatprep.mubr.bf16.mxu1 %v1042_v33 }
  0x42   :  { %388 = vmatmul.mubr.bf16.gmra.mrb[16].mxu0 %v1041_v34  ;;  %436 = vmatmul.mubr.bf16.gmra.mrb[16].mxu1 %v1044_v35 }
  0x43   :  { %395 = vmatprep.mubr.bf16.mxu0 %v1045_v36 }
  0x4a   :  { %396 = vmatmul.mubr.bf16.gmra.mrb[20].mxu0 %v1047_v37 }
  0xf5   :  { %v917_v43 = vpop.f32.mrb[0].mxu0  ;;  %v953_v45 = vpop.f32.mrb[0].mxu1 }
  0xf6   :  { %v918_v46 = vpop.f32.mrb[1].mxu0  ;;  %v954_v48 = vpop.f32.mrb[1].mxu1 }
  0xf7   :  { %v919_v49 = vadd.f32 %v918_v46, %v917_v43  ;;  %v920_v51 = vpop.f32.mrb[2].mxu0  ;;  %v955_v52 = vadd.f32 %v954_v48, %v953_v45  ;;  %v956_v53 = vpop.f32.mrb[2].mxu1 }
  0xf8   :  { %v921_v54 = vpop.f32.mrb[3].mxu0  ;;  %v957_v55 = vpop.f32.mrb[3].mxu1 }
  0xf9   :  { %v518_v56 = vmul.f32 %v919_v49, %v1185_v44  ;;  %v922_v57 = vadd.f32 %v921_v54, %v920_v51  ;;  %v530_v58 = vmul.f32 %v955_v52, %v1185_v44  ;;  %v958_v59 = vadd.f32 %v957_v55, %v956_v53 }
  0xfb   :  { %v544_v62 = vadd.f32 %v1187_v50, %v518_v56  ;;  %v519_v63 = vmul.f32 %v922_v57, %v1185_v44  ;;  %v556_v0 = vadd.f32 %v1187_v50, %v530_v58  ;;  %v531_v1 = vmul.f32 %v958_v59, %v1185_v44 }
  0xfd   :  { %v566_v2 = vmax.f32 %v544_v62, 0.0  ;;  %v545_v3 = vadd.f32 %v1187_v50, %v519_v63  ;;  %v578_v4 = vmax.f32 %v556_v0, 0.0  ;;  %v923_v5 = vpop.f32.mrb[4].mxu0  ;;  %v557_v6 = vadd.f32 %v1187_v50, %v531_v1  ;;  %v959_v7 = vpop.f32.mrb[4].mxu1 }
  0xfe   :  { %v924_v9 = vpop.f32.mrb[5].mxu0  ;;  %v960_v10 = vpop.f32.mrb[5].mxu1 }
  0xff   :  { %v592_v11 = vmul.f32 %v1191_v60, %v566_v2  ;;  %v567_v12 = vmax.f32 %v545_v3, 0.0  ;;  %v604_v13 = vmul.f32 %v1191_v60, %v578_v4  ;;  %v579_v14 = vmax.f32 %v557_v6, 0.0  ;;  %v926_v15 = vpop.f32.mrb[6].mxu0  ;;  %v962_v16 = vpop.f32.mrb[6].mxu1 }
 0x100   :  { %v925_v17 = vadd.f32 %v924_v9, %v923_v5  ;;  %v927_v18 = vpop.f32.mrb[7].mxu0  ;;  %v961_v19 = vadd.f32 %v960_v10, %v959_v7  ;;  %v963_v20 = vpop.f32.mrb[7].mxu1 }
 0x101   :  { %v593_v21 = vmul.f32 %v1191_v60, %v567_v12  ;;  %v630_v22 = vadd.f32 %v1199_v8, %v604_v13  ;;  %v605_v23 = vmul.f32 %v1191_v60, %v579_v14  ;;  %v928_v25 = vadd.f32 %v927_v18, %v926_v15 }
 0x102   :  { %v520_v24 = vmul.f32 %v925_v17, %v1185_v44  ;;  %v532_v26 = vmul.f32 %v961_v19, %v1185_v44  ;;  %v964_v27 = vadd.f32 %v963_v20, %v962_v16  ;;  %v618_v28 = vadd.f32 %v1199_v8, %v592_v11 }
 0x103   :  { %v619_v29 = vadd.f32 %v1199_v8, %v593_v21  ;;  %v631_v30 = vadd.f32 %v1199_v8, %v605_v23  ;;  %v521_v32 = vmul.f32 %v928_v25, %v1185_v44 }
 0x104   :  { %v546_v31 = vadd.f32 %v1187_v50, %v520_v24  ;;  %v558_v33 = vadd.f32 %v1187_v50, %v532_v26  ;;  %v533_v34 = vmul.f32 %v964_v27, %v1185_v44 }
 0x105   :  { %v839_v35 = vpack.c.bf16 %v619_v29, %v618_v28  ;;  %v869_v36 = vpack.c.bf16 %v631_v30, %v630_v22  ;;  %v929_v37 = vpop.f32.mrb[8].mxu0  ;;  %v965_v38 = vpop.f32.mrb[8].mxu1  ;;  %v547_v40 = vadd.f32 %v1187_v50, %v521_v32 }
 0x106   :  { %v568_v39 = vmax.f32 %v546_v31, 0.0  ;;  %v580_v41 = vmax.f32 %v558_v33, 0.0  ;;  %v559_v42 = vadd.f32 %v1187_v50, %v533_v34  ;;  %v930_v43 = vpop.f32.mrb[9].mxu0  ;;  %v966_v45 = vpop.f32.mrb[9].mxu1 }
 0x107   :  { %840 = vst [vmem:[%s1317_s3] sm:$0xff] %v839_v35   ;;  %896 = vst [vmem:[%s1317_s3 + $0x30] sm:$0xff] %v869_v36   ;;  %v931_v46 = vadd.f32 %v930_v43, %v929_v37  ;;  %v932_v47 = vpop.f32.mrb[10].mxu0  ;;  %v967_v48 = vadd.f32 %v966_v45, %v965_v38  ;;  %v968_v49 = vpop.f32.mrb[10].mxu1  ;;  %v569_v52 = vmax.f32 %v547_v40, 0.0 }
 0x108   :  { %v594_v51 = vmul.f32 %v1191_v60, %v568_v39  ;;  %v606_v53 = vmul.f32 %v1191_v60, %v580_v41  ;;  %v581_v54 = vmax.f32 %v559_v42, 0.0  ;;  %v933_v55 = vpop.f32.mrb[11].mxu0  ;;  %v969_v56 = vpop.f32.mrb[11].mxu1 }
 0x109   :  { %v522_v57 = vmul.f32 %v931_v46, %v1185_v44  ;;  %v934_v58 = vadd.f32 %v933_v55, %v932_v47  ;;  %v534_v59 = vmul.f32 %v967_v48, %v1185_v44  ;;  %v970_v61 = vadd.f32 %v969_v56, %v968_v49 }
 0x10a   :  { %v595_v62 = vmul.f32 %v1191_v60, %v569_v52  ;;  %v632_v63 = vadd.f32 %v1199_v8, %v606_v53  ;;  %v607_v0 = vmul.f32 %v1191_v60, %v581_v54  ;;  %v620_v5 = vadd.f32 %v1199_v8, %v594_v51 }
 0x10b   :  { %v548_v1 = vadd.f32 %v1187_v50, %v522_v57  ;;  %v523_v2 = vmul.f32 %v934_v58, %v1185_v44  ;;  %v560_v3 = vadd.f32 %v1187_v50, %v534_v59  ;;  %v535_v4 = vmul.f32 %v970_v61, %v1185_v44 }
 0x10c   :  { %v621_v6 = vadd.f32 %v1199_v8, %v595_v62  ;;  %v633_v7 = vadd.f32 %v1199_v8, %v607_v0 }
 0x10d   :  { %v570_v9 = vmax.f32 %v548_v1, 0.0  ;;  %v549_v10 = vadd.f32 %v1187_v50, %v523_v2  ;;  %v582_v11 = vmax.f32 %v560_v3, 0.0  ;;  %v935_v12 = vpop.f32.mrb[12].mxu0  ;;  %v561_v13 = vadd.f32 %v1187_v50, %v535_v4  ;;  %v971_v14 = vpop.f32.mrb[12].mxu1 }
 0x10e   :  { %v844_v15 = vpack.c.bf16 %v621_v6, %v620_v5  ;;  %v874_v16 = vpack.c.bf16 %v633_v7, %v632_v63  ;;  %v936_v17 = vpop.f32.mrb[13].mxu0  ;;  %v972_v18 = vpop.f32.mrb[13].mxu1 }
 0x10f   :  { %v596_v19 = vmul.f32 %v1191_v60, %v570_v9  ;;  %v571_v20 = vmax.f32 %v549_v10, 0.0  ;;  %v608_v21 = vmul.f32 %v1191_v60, %v582_v11  ;;  %v583_v22 = vmax.f32 %v561_v13, 0.0  ;;  %v938_v23 = vpop.f32.mrb[14].mxu0  ;;  %v974_v24 = vpop.f32.mrb[14].mxu1 }
 0x110   :  { %891 = vst [vmem:[%s1317_s3 + $0x8] sm:$0xff] %v844_v15   ;;  %897 = vst [vmem:[%s1317_s3 + $0x38] sm:$0xff] %v874_v16   ;;  %v937_v25 = vadd.f32 %v936_v17, %v935_v12  ;;  %v939_v26 = vpop.f32.mrb[15].mxu0  ;;  %v973_v27 = vadd.f32 %v972_v18, %v971_v14  ;;  %v975_v28 = vpop.f32.mrb[15].mxu1 }
 0x111   :  { %v597_v29 = vmul.f32 %v1191_v60, %v571_v20  ;;  %v634_v30 = vadd.f32 %v1199_v8, %v608_v21  ;;  %v609_v31 = vmul.f32 %v1191_v60, %v583_v22  ;;  %v940_v33 = vadd.f32 %v939_v26, %v938_v23 }
 0x112   :  { %v524_v32 = vmul.f32 %v937_v25, %v1185_v44  ;;  %v536_v34 = vmul.f32 %v973_v27, %v1185_v44  ;;  %v976_v35 = vadd.f32 %v975_v28, %v974_v24  ;;  %v622_v36 = vadd.f32 %v1199_v8, %v596_v19 }
 0x113   :  { %v623_v37 = vadd.f32 %v1199_v8, %v597_v29  ;;  %v635_v38 = vadd.f32 %v1199_v8, %v609_v31  ;;  %v525_v40 = vmul.f32 %v940_v33, %v1185_v44 }
 0x114   :  { %v550_v39 = vadd.f32 %v1187_v50, %v524_v32  ;;  %v562_v41 = vadd.f32 %v1187_v50, %v536_v34  ;;  %v537_v42 = vmul.f32 %v976_v35, %v1185_v44 }
 0x115   :  { %v849_v43 = vpack.c.bf16 %v623_v37, %v622_v36  ;;  %v879_v45 = vpack.c.bf16 %v635_v38, %v634_v30  ;;  %v941_v46 = vpop.f32.mrb[16].mxu0  ;;  %v977_v47 = vpop.f32.mrb[16].mxu1  ;;  %v551_v49 = vadd.f32 %v1187_v50, %v525_v40 }
 0x116   :  { %v572_v48 = vmax.f32 %v550_v39, 0.0  ;;  %v584_v51 = vmax.f32 %v562_v41, 0.0  ;;  %v563_v52 = vadd.f32 %v1187_v50, %v537_v42  ;;  %v942_v53 = vpop.f32.mrb[17].mxu0  ;;  %v978_v54 = vpop.f32.mrb[17].mxu1 }
 0x117   :  { %892 = vst [vmem:[%s1317_s3 + $0x10] sm:$0xff] %v849_v43   ;;  %898 = vst [vmem:[%s1317_s3 + $0x40] sm:$0xff] %v879_v45   ;;  %v943_v55 = vadd.f32 %v942_v53, %v941_v46  ;;  %v944_v56 = vpop.f32.mrb[18].mxu0  ;;  %v979_v57 = vadd.f32 %v978_v54, %v977_v47  ;;  %v980_v58 = vpop.f32.mrb[18].mxu1  ;;  %v573_v61 = vmax.f32 %v551_v49, 0.0 }
 0x118   :  { %v598_v59 = vmul.f32 %v1191_v60, %v572_v48  ;;  %v610_v62 = vmul.f32 %v1191_v60, %v584_v51  ;;  %v585_v63 = vmax.f32 %v563_v52, 0.0  ;;  %v945_v0 = vpop.f32.mrb[19].mxu0  ;;  %v981_v1 = vpop.f32.mrb[19].mxu1 }
 0x119   :  { %v526_v2 = vmul.f32 %v943_v55, %v1185_v44  ;;  %v946_v3 = vadd.f32 %v945_v0, %v944_v56  ;;  %v538_v4 = vmul.f32 %v979_v57, %v1185_v44  ;;  %v982_v5 = vadd.f32 %v981_v1, %v980_v58 }
 0x11a   :  { %v599_v6 = vmul.f32 %v1191_v60, %v573_v61  ;;  %v636_v7 = vadd.f32 %v1199_v8, %v610_v62  ;;  %v611_v9 = vmul.f32 %v1191_v60, %v585_v63  ;;  %v624_v14 = vadd.f32 %v1199_v8, %v598_v59 }
 0x11b   :  { %v552_v10 = vadd.f32 %v1187_v50, %v526_v2  ;;  %v527_v11 = vmul.f32 %v946_v3, %v1185_v44  ;;  %v564_v12 = vadd.f32 %v1187_v50, %v538_v4  ;;  %v539_v13 = vmul.f32 %v982_v5, %v1185_v44 }
 0x11c   :  { %v625_v15 = vadd.f32 %v1199_v8, %v599_v6  ;;  %v637_v16 = vadd.f32 %v1199_v8, %v611_v9 }
 0x11d   :  { %v574_v17 = vmax.f32 %v552_v10, 0.0  ;;  %v553_v18 = vadd.f32 %v1187_v50, %v527_v11  ;;  %v586_v19 = vmax.f32 %v564_v12, 0.0  ;;  %v947_v20 = vpop.f32.mrb[20].mxu0  ;;  %v565_v21 = vadd.f32 %v1187_v50, %v539_v13 }
 0x11e   :  { %v854_v22 = vpack.c.bf16 %v625_v15, %v624_v14  ;;  %v884_v23 = vpack.c.bf16 %v637_v16, %v636_v7  ;;  %v948_v24 = vpop.f32.mrb[21].mxu0 }
 0x11f   :  { %v600_v25 = vmul.f32 %v1191_v60, %v574_v17  ;;  %v575_v26 = vmax.f32 %v553_v18, 0.0  ;;  %v612_v27 = vmul.f32 %v1191_v60, %v586_v19  ;;  %v587_v28 = vmax.f32 %v565_v21, 0.0  ;;  %v950_v29 = vpop.f32.mrb[22].mxu0 }
 0x120   :  { %893 = vst [vmem:[%s1317_s3 + $0x18] sm:$0xff] %v854_v22   ;;  %899 = vst [vmem:[%s1317_s3 + $0x48] sm:$0xff] %v884_v23   ;;  %v949_v30 = vadd.f32 %v948_v24, %v947_v20  ;;  %v951_v31 = vpop.f32.mrb[23].mxu0 }
 0x121   :  { %v601_v32 = vmul.f32 %v1191_v60, %v575_v26  ;;  %v638_v33 = vadd.f32 %v1199_v8, %v612_v27  ;;  %v613_v34 = vmul.f32 %v1191_v60, %v587_v28  ;;  %v952_v36 = vadd.f32 %v951_v31, %v950_v29 }
 0x122   :  { %v528_v35 = vmul.f32 %v949_v30, %v1185_v44  ;;  %v626_v37 = vadd.f32 %v1199_v8, %v600_v25 }
 0x123   :  { %v627_v38 = vadd.f32 %v1199_v8, %v601_v32  ;;  %v639_v39 = vadd.f32 %v1199_v8, %v613_v34  ;;  %v529_v41 = vmul.f32 %v952_v36, %v1185_v44 }
 0x124   :  { %v554_v40 = vadd.f32 %v1187_v50, %v528_v35 }
 0x125   :  { %v859_v42 = vpack.c.bf16 %v627_v38, %v626_v37  ;;  %v889_v43 = vpack.c.bf16 %v639_v39, %v638_v33  ;;  %v555_v46 = vadd.f32 %v1187_v50, %v529_v41 }
 0x126   :  { %v576_v45 = vmax.f32 %v554_v40, 0.0 }
 0x127   :  { %894 = vst [vmem:[%s1317_s3 + $0x20] sm:$0xff] %v859_v42   ;;  %900 = vst [vmem:[%s1317_s3 + $0x50] sm:$0xff] %v889_v43   ;;  %v577_v48 = vmax.f32 %v555_v46, 0.0 }
 0x128   :  { %v602_v47 = vmul.f32 %v1191_v60, %v576_v45 }
 0x129   :  { %v603_v49 = vmul.f32 %v1191_v60, %v577_v48 }
 0x12a   :  { %v628_v44 = vadd.f32 %v1199_v8, %v602_v47 }
 0x12b   :  { %v629_v51 = vadd.f32 %v1199_v8, %v603_v49 }
 0x12d   :  { %v864_v52 = vpack.c.bf16 %v629_v51, %v628_v44 }
 0x12f   :  { %895 = vst [vmem:[%s1317_s3 + $0x28] sm:$0xff] %v864_v52  }

// kernel: forward.30
= control target key start
LH: loop header
LB: loop body
LE: loop exit
PB: predicated region body
PF: predicated region fallthrough
CT: control target
= control target key end

     0   :  { %v838_v0 = vmov 0.0   ;;  %vm839_vm0 = vmmov 0   ;;  %v406_v20 = vlaneseq  ;;  %s1039_s1 = inlined_call_operand.vmem [shape: bf16[128,128], index: 1, kind: input, shape index: {}]   ;;  %s1040_s0 = inlined_call_operand.vmem [shape: bf16[176,128], index: 0, kind: input, shape index: {}]   ;;  %s1041_s2 = inlined_call_operand.vmem [shape: f32[2,128], index: 2, kind: input, shape index: {}]   ;;  %s1042_s3 = inlined_call_operand.vmem [shape: bf16[176,128], index: 3, kind: output, shape index: {}]  }
   0x1   :  { %741 = vmatprep.subr.bf16.mxu0 %v838_v0  ;;  %v819_v1 = vld [vmem:[%s1039_s1] sm:$0xff]   ;;  %801 = vmatprep.subr.bf16.mxu1 %v838_v0  ;;  %v820_v2 = vld [vmem:[%s1039_s1 + $0x8] sm:$0xff]   ;;  %v821_v3 = vld [vmem:[%s1039_s1 + $0x10] sm:$0xff]  }
   0x2   :  { %757 = vmatprep.mubr.msk.bf16.mxu0 %vm839_vm0, %v838_v0  ;;  %781 = vmatprep.mubr.msk.bf16.mxu1 %vm839_vm0, %v838_v0  ;;  %v822_v4 = vld [vmem:[%s1039_s1 + $0x18] sm:$0xff]   ;;  %v823_v5 = vld [vmem:[%s1039_s1 + $0x20] sm:$0xff]   ;;  %v824_v6 = vld [vmem:[%s1039_s1 + $0x28] sm:$0xff]   ;;  %v407_v21 = vshrl.u32 %v406_v20, 7 }
   0x3   :  { %742 = vmatpush3.bf16.msra.mxu0 %v819_v1  ;;  %809 = vmatpush3.bf16.msra.mxu1 %v819_v1  ;;  %v825_v7 = vld [vmem:[%s1039_s1 + $0x30] sm:$0xff]   ;;  %v826_v8 = vld [vmem:[%s1039_s1 + $0x38] sm:$0xff]   ;;  %v827_v9 = vld [vmem:[%s1040_s0] sm:$0xff]  }
   0x4   :  { %743 = vmatprep.subr.bf16.mxu0 %v838_v0  ;;  %802 = vmatprep.subr.bf16.mxu1 %v838_v0  ;;  %v828_v10 = vld [vmem:[%s1040_s0 + $0x30] sm:$0xff]   ;;  %v829_v11 = vld [vmem:[%s1040_s0 + $0x8] sm:$0xff]   ;;  %v830_v12 = vld [vmem:[%s1040_s0 + $0x38] sm:$0xff]   ;;  %v408_v22 = vsub.s32 0, %v407_v21  ;;  %v434_v24 = vsub.s32 1, %v407_v21 }
   0x5   :  { %v831_v13 = vld [vmem:[%s1040_s0 + $0x10] sm:$0xff]   ;;  %v832_v14 = vld [vmem:[%s1040_s0 + $0x40] sm:$0xff]   ;;  %v833_v15 = vld [vmem:[%s1040_s0 + $0x18] sm:$0xff]  }
   0x6   :  { %v834_v16 = vld [vmem:[%s1040_s0 + $0x48] sm:$0xff]   ;;  %v835_v17 = vld [vmem:[%s1040_s0 + $0x20] sm:$0xff]   ;;  %v836_v18 = vld [vmem:[%s1040_s0 + $0x50] sm:$0xff]  }
   0x7   :  { %744 = vmatpush3.bf16.msra.mxu0 %v820_v2  ;;  %810 = vmatpush3.bf16.msra.mxu1 %v820_v2  ;;  %v837_v19 = vld [vmem:[%s1040_s0 + $0x28] sm:$0xff]   ;;  %v383_v23 = vld [vmem:[%s1041_s2] sm:$0x3] }
   0x8   :  { %745 = vmatprep.subr.bf16.mxu0 %v838_v0  ;;  %803 = vmatprep.subr.bf16.mxu1 %v838_v0  ;;  %v958_v25 = vrot.slane %v383_v23, %v408_v22  ;;  %v960_v26 = vrot.slane %v383_v23, %v434_v24 }
   0xb   :  { %746 = vmatpush3.bf16.msra.mxu0 %v821_v3  ;;  %811 = vmatpush3.bf16.msra.mxu1 %v821_v3 }
   0xc   :  { %747 = vmatprep.subr.bf16.mxu0 %v838_v0  ;;  %804 = vmatprep.subr.bf16.mxu1 %v838_v0 }
   0xf   :  { %748 = vmatpush3.bf16.msra.mxu0 %v822_v4  ;;  %812 = vmatpush3.bf16.msra.mxu1 %v822_v4 }
  0x10   :  { %749 = vmatprep.subr.bf16.mxu0 %v838_v0  ;;  %805 = vmatprep.subr.bf16.mxu1 %v838_v0 }
  0x13   :  { %750 = vmatpush3.bf16.msra.mxu0 %v823_v5  ;;  %813 = vmatpush3.bf16.msra.mxu1 %v823_v5 }
  0x14   :  { %751 = vmatprep.subr.bf16.mxu0 %v838_v0  ;;  %806 = vmatprep.subr.bf16.mxu1 %v838_v0 }
  0x17   :  { %752 = vmatpush3.bf16.msra.mxu0 %v824_v6  ;;  %814 = vmatpush3.bf16.msra.mxu1 %v824_v6 }
  0x18   :  { %753 = vmatprep.subr.bf16.mxu0 %v838_v0  ;;  %807 = vmatprep.subr.bf16.mxu1 %v838_v0 }
  0x1b   :  { %754 = vmatpush3.bf16.msra.mxu0 %v825_v7  ;;  %815 = vmatpush3.bf16.msra.mxu1 %v825_v7 }
  0x1c   :  { %755 = vmatprep.subr.bf16.mxu0 %v838_v0  ;;  %808 = vmatprep.subr.bf16.mxu1 %v838_v0 }
  0x1f   :  { %756 = vmatpush3.bf16.msra.mxu0 %v826_v8  ;;  %816 = vmatpush3.bf16.msra.mxu1 %v826_v8 }
  0x22   :  { %758 = vmatmul.mubr.bf16.vlgmr.msra.gmra.mrb[0].mxu0 %v827_v9  ;;  %782 = vmatmul.mubr.bf16.vlgmr.msra.gmra.mrb[0].mxu1 %v828_v10 }
  0x23   :  { %761 = vmatprep.mubr.msk.bf16.mxu0 %vm839_vm0, %v838_v0  ;;  %785 = vmatprep.mubr.msk.bf16.mxu1 %vm839_vm0, %v838_v0 }
  0x2a   :  { %762 = vmatmul.mubr.bf16.gmra.mrb[4].mxu0 %v829_v11  ;;  %786 = vmatmul.mubr.bf16.gmra.mrb[4].mxu1 %v830_v12 }
  0x2b   :  { %765 = vmatprep.mubr.msk.bf16.mxu0 %vm839_vm0, %v838_v0  ;;  %789 = vmatprep.mubr.msk.bf16.mxu1 %vm839_vm0, %v838_v0 }
  0x32   :  { %766 = vmatmul.mubr.bf16.gmra.mrb[8].mxu0 %v831_v13  ;;  %790 = vmatmul.mubr.bf16.gmra.mrb[8].mxu1 %v832_v14 }
  0x33   :  { %769 = vmatprep.mubr.msk.bf16.mxu0 %vm839_vm0, %v838_v0  ;;  %793 = vmatprep.mubr.msk.bf16.mxu1 %vm839_vm0, %v838_v0 }
  0x3a   :  { %770 = vmatmul.mubr.bf16.gmra.mrb[12].mxu0 %v833_v15  ;;  %794 = vmatmul.mubr.bf16.gmra.mrb[12].mxu1 %v834_v16 }
  0x3b   :  { %773 = vmatprep.mubr.msk.bf16.mxu0 %vm839_vm0, %v838_v0  ;;  %797 = vmatprep.mubr.msk.bf16.mxu1 %vm839_vm0, %v838_v0 }
  0x42   :  { %774 = vmatmul.mubr.bf16.gmra.mrb[16].mxu0 %v835_v17  ;;  %798 = vmatmul.mubr.bf16.gmra.mrb[16].mxu1 %v836_v18 }
  0x43   :  { %777 = vmatprep.mubr.msk.bf16.mxu0 %vm839_vm0, %v838_v0 }
  0x4a   :  { %778 = vmatmul.mubr.bf16.gmra.mrb[20].mxu0 %v837_v19 }
  0xf5   :  { %v249_v27 = vpop.f32.mrb[0].mxu0  ;;  %v297_v28 = vpop.f32.mrb[0].mxu1 }
  0xf6   :  { %v410_v29 = vmul.f32 %v958_v25, %v249_v27  ;;  %v759_v30 = vpop.f32.mrb[1].mxu0  ;;  %v422_v31 = vmul.f32 %v958_v25, %v297_v28  ;;  %v783_v32 = vpop.f32.mrb[1].mxu1 }
  0xf7   :  { %v252_v33 = vpop.f32.mrb[2].mxu0  ;;  %v300_v34 = vpop.f32.mrb[2].mxu1 }
  0xf8   :  { %v436_v35 = vadd.f32 %v960_v26, %v410_v29  ;;  %v411_v36 = vmul.f32 %v958_v25, %v252_v33  ;;  %v760_v37 = vpop.f32.mrb[3].mxu0  ;;  %v448_v38 = vadd.f32 %v960_v26, %v422_v31  ;;  %v423_v39 = vmul.f32 %v958_v25, %v300_v34  ;;  %v784_v40 = vpop.f32.mrb[3].mxu1 }
  0xfa   :  { %v437_v41 = vadd.f32 %v960_v26, %v411_v36  ;;  %v470_v42 = vmax.f32 %v448_v38, 0.0  ;;  %v449_v43 = vadd.f32 %v960_v26, %v423_v39  ;;  %v458_v44 = vmax.f32 %v436_v35, 0.0 }
  0xfc   :  { %v459_v45 = vmax.f32 %v437_v41, 0.0  ;;  %v471_v46 = vmax.f32 %v449_v43, 0.0 }
  0xfd   :  { %v257_v47 = vpop.f32.mrb[4].mxu0  ;;  %v305_v48 = vpop.f32.mrb[4].mxu1 }
  0xfe   :  { %v660_v49 = vpack.c.bf16 %v459_v45, %v458_v44  ;;  %v690_v50 = vpack.c.bf16 %v471_v46, %v470_v42  ;;  %v412_v51 = vmul.f32 %v958_v25, %v257_v47  ;;  %v763_v52 = vpop.f32.mrb[5].mxu0  ;;  %v424_v53 = vmul.f32 %v958_v25, %v305_v48  ;;  %v787_v54 = vpop.f32.mrb[5].mxu1 }
  0xff   :  { %v260_v55 = vpop.f32.mrb[6].mxu0  ;;  %v308_v56 = vpop.f32.mrb[6].mxu1 }
 0x100   :  { %661 = vst [vmem:[%s1042_s3] sm:$0xff] %v660_v49   ;;  %717 = vst [vmem:[%s1042_s3 + $0x30] sm:$0xff] %v690_v50   ;;  %v438_v57 = vadd.f32 %v960_v26, %v412_v51  ;;  %v413_v58 = vmul.f32 %v958_v25, %v260_v55  ;;  %v764_v59 = vpop.f32.mrb[7].mxu0  ;;  %v450_v60 = vadd.f32 %v960_v26, %v424_v53  ;;  %v788_v62 = vpop.f32.mrb[7].mxu1 }
 0x101   :  { %v425_v61 = vmul.f32 %v958_v25, %v308_v56 }
 0x102   :  { %v439_v63 = vadd.f32 %v960_v26, %v413_v58  ;;  %v472_v0 = vmax.f32 %v450_v60, 0.0  ;;  %v460_v2 = vmax.f32 %v438_v57, 0.0 }
 0x103   :  { %v451_v1 = vadd.f32 %v960_v26, %v425_v61 }
 0x104   :  { %v461_v3 = vmax.f32 %v439_v63, 0.0 }
 0x105   :  { %v473_v4 = vmax.f32 %v451_v1, 0.0  ;;  %v265_v5 = vpop.f32.mrb[8].mxu0  ;;  %v313_v6 = vpop.f32.mrb[8].mxu1 }
 0x106   :  { %v665_v7 = vpack.c.bf16 %v461_v3, %v460_v2  ;;  %v414_v9 = vmul.f32 %v958_v25, %v265_v5  ;;  %v767_v10 = vpop.f32.mrb[9].mxu0  ;;  %v426_v11 = vmul.f32 %v958_v25, %v313_v6  ;;  %v791_v12 = vpop.f32.mrb[9].mxu1 }
 0x107   :  { %v695_v8 = vpack.c.bf16 %v473_v4, %v472_v0  ;;  %v268_v13 = vpop.f32.mrb[10].mxu0  ;;  %v316_v14 = vpop.f32.mrb[10].mxu1 }
 0x108   :  { %712 = vst [vmem:[%s1042_s3 + $0x8] sm:$0xff] %v665_v7   ;;  %v440_v15 = vadd.f32 %v960_v26, %v414_v9  ;;  %v415_v16 = vmul.f32 %v958_v25, %v268_v13  ;;  %v768_v17 = vpop.f32.mrb[11].mxu0  ;;  %v452_v18 = vadd.f32 %v960_v26, %v426_v11  ;;  %v427_v19 = vmul.f32 %v958_v25, %v316_v14  ;;  %v792_v20 = vpop.f32.mrb[11].mxu1 }
 0x109   :  { %718 = vst [vmem:[%s1042_s3 + $0x38] sm:$0xff] %v695_v8  }
 0x10a   :  { %v441_v21 = vadd.f32 %v960_v26, %v415_v16  ;;  %v474_v22 = vmax.f32 %v452_v18, 0.0  ;;  %v453_v23 = vadd.f32 %v960_v26, %v427_v19  ;;  %v462_v24 = vmax.f32 %v440_v15, 0.0 }
 0x10c   :  { %v463_v27 = vmax.f32 %v441_v21, 0.0  ;;  %v475_v28 = vmax.f32 %v453_v23, 0.0 }
 0x10d   :  { %v273_v29 = vpop.f32.mrb[12].mxu0  ;;  %v321_v30 = vpop.f32.mrb[12].mxu1 }
 0x10e   :  { %v670_v31 = vpack.c.bf16 %v463_v27, %v462_v24  ;;  %v700_v32 = vpack.c.bf16 %v475_v28, %v474_v22  ;;  %v416_v33 = vmul.f32 %v958_v25, %v273_v29  ;;  %v771_v34 = vpop.f32.mrb[13].mxu0  ;;  %v428_v35 = vmul.f32 %v958_v25, %v321_v30  ;;  %v795_v36 = vpop.f32.mrb[13].mxu1 }
 0x10f   :  { %v276_v37 = vpop.f32.mrb[14].mxu0  ;;  %v324_v38 = vpop.f32.mrb[14].mxu1 }
 0x110   :  { %713 = vst [vmem:[%s1042_s3 + $0x10] sm:$0xff] %v670_v31   ;;  %719 = vst [vmem:[%s1042_s3 + $0x40] sm:$0xff] %v700_v32   ;;  %v442_v39 = vadd.f32 %v960_v26, %v416_v33  ;;  %v417_v40 = vmul.f32 %v958_v25, %v276_v37  ;;  %v772_v41 = vpop.f32.mrb[15].mxu0  ;;  %v454_v42 = vadd.f32 %v960_v26, %v428_v35  ;;  %v796_v44 = vpop.f32.mrb[15].mxu1 }
 0x111   :  { %v429_v43 = vmul.f32 %v958_v25, %v324_v38 }
 0x112   :  { %v443_v45 = vadd.f32 %v960_v26, %v417_v40  ;;  %v476_v46 = vmax.f32 %v454_v42, 0.0  ;;  %v464_v48 = vmax.f32 %v442_v39, 0.0 }
 0x113   :  { %v455_v47 = vadd.f32 %v960_v26, %v429_v43 }
 0x114   :  { %v465_v49 = vmax.f32 %v443_v45, 0.0 }
 0x115   :  { %v477_v50 = vmax.f32 %v455_v47, 0.0  ;;  %v281_v51 = vpop.f32.mrb[16].mxu0  ;;  %v329_v52 = vpop.f32.mrb[16].mxu1 }
 0x116   :  { %v675_v53 = vpack.c.bf16 %v465_v49, %v464_v48  ;;  %v418_v55 = vmul.f32 %v958_v25, %v281_v51  ;;  %v775_v56 = vpop.f32.mrb[17].mxu0  ;;  %v430_v57 = vmul.f32 %v958_v25, %v329_v52  ;;  %v799_v58 = vpop.f32.mrb[17].mxu1 }
 0x117   :  { %v705_v54 = vpack.c.bf16 %v477_v50, %v476_v46  ;;  %v284_v59 = vpop.f32.mrb[18].mxu0  ;;  %v332_v60 = vpop.f32.mrb[18].mxu1 }
 0x118   :  { %714 = vst [vmem:[%s1042_s3 + $0x18] sm:$0xff] %v675_v53   ;;  %v444_v61 = vadd.f32 %v960_v26, %v418_v55  ;;  %v419_v62 = vmul.f32 %v958_v25, %v284_v59  ;;  %v776_v63 = vpop.f32.mrb[19].mxu0  ;;  %v456_v0 = vadd.f32 %v960_v26, %v430_v57  ;;  %v431_v1 = vmul.f32 %v958_v25, %v332_v60  ;;  %v800_v2 = vpop.f32.mrb[19].mxu1 }
 0x119   :  { %720 = vst [vmem:[%s1042_s3 + $0x48] sm:$0xff] %v705_v54  }
 0x11a   :  { %v445_v3 = vadd.f32 %v960_v26, %v419_v62  ;;  %v478_v4 = vmax.f32 %v456_v0, 0.0  ;;  %v457_v5 = vadd.f32 %v960_v26, %v431_v1  ;;  %v466_v6 = vmax.f32 %v444_v61, 0.0 }
 0x11c   :  { %v467_v7 = vmax.f32 %v445_v3, 0.0  ;;  %v479_v8 = vmax.f32 %v457_v5, 0.0 }
 0x11d   :  { %v289_v9 = vpop.f32.mrb[20].mxu0 }
 0x11e   :  { %v680_v10 = vpack.c.bf16 %v467_v7, %v466_v6  ;;  %v710_v11 = vpack.c.bf16 %v479_v8, %v478_v4  ;;  %v420_v12 = vmul.f32 %v958_v25, %v289_v9  ;;  %v779_v13 = vpop.f32.mrb[21].mxu0 }
 0x11f   :  { %v292_v14 = vpop.f32.mrb[22].mxu0 }
 0x120   :  { %715 = vst [vmem:[%s1042_s3 + $0x20] sm:$0xff] %v680_v10   ;;  %721 = vst [vmem:[%s1042_s3 + $0x50] sm:$0xff] %v710_v11   ;;  %v446_v15 = vadd.f32 %v960_v26, %v420_v12  ;;  %v421_v16 = vmul.f32 %v958_v25, %v292_v14  ;;  %v780_v17 = vpop.f32.mrb[23].mxu0 }
 0x122   :  { %v447_v18 = vadd.f32 %v960_v26, %v421_v16  ;;  %v468_v19 = vmax.f32 %v446_v15, 0.0 }
 0x124   :  { %v469_v20 = vmax.f32 %v447_v18, 0.0 }
 0x126   :  { %v685_v21 = vpack.c.bf16 %v469_v20, %v468_v19 }
 0x128   :  { %716 = vst [vmem:[%s1042_s3 + $0x28] sm:$0xff] %v685_v21  }

// kernel: forward.29
= control target key start
LH: loop header
LB: loop body
LE: loop exit
PB: predicated region body
PF: predicated region fallthrough
CT: control target
= control target key end

     0   :  { %v816_v0 = vmov 0.0   ;;  %vm817_vm0 = vmmov 0   ;;  %v406_v20 = vlaneseq  ;;  %s1017_s1 = inlined_call_operand.vmem [shape: bf16[128,128], index: 1, kind: input, shape index: {}]   ;;  %s1018_s0 = inlined_call_operand.vmem [shape: bf16[176,128], index: 0, kind: input, shape index: {}]   ;;  %s1019_s2 = inlined_call_operand.vmem [shape: f32[2,128], index: 2, kind: input, shape index: {}]   ;;  %s1020_s3 = inlined_call_operand.vmem [shape: bf16[176,128], index: 3, kind: output, shape index: {}]  }
   0x1   :  { %719 = vmatprep.subr.bf16.mxu0 %v816_v0  ;;  %v797_v1 = vld [vmem:[%s1017_s1] sm:$0xff]   ;;  %779 = vmatprep.subr.bf16.mxu1 %v816_v0  ;;  %v798_v2 = vld [vmem:[%s1017_s1 + $0x8] sm:$0xff]   ;;  %v799_v3 = vld [vmem:[%s1017_s1 + $0x10] sm:$0xff]  }
   0x2   :  { %735 = vmatprep.mubr.msk.bf16.mxu0 %vm817_vm0, %v816_v0  ;;  %759 = vmatprep.mubr.msk.bf16.mxu1 %vm817_vm0, %v816_v0  ;;  %v800_v4 = vld [vmem:[%s1017_s1 + $0x18] sm:$0xff]   ;;  %v801_v5 = vld [vmem:[%s1017_s1 + $0x20] sm:$0xff]   ;;  %v802_v6 = vld [vmem:[%s1017_s1 + $0x28] sm:$0xff]   ;;  %v407_v21 = vshrl.u32 %v406_v20, 7 }
   0x3   :  { %720 = vmatpush3.bf16.msra.mxu0 %v797_v1  ;;  %787 = vmatpush3.bf16.msra.mxu1 %v797_v1  ;;  %v803_v7 = vld [vmem:[%s1017_s1 + $0x30] sm:$0xff]   ;;  %v804_v8 = vld [vmem:[%s1017_s1 + $0x38] sm:$0xff]   ;;  %v805_v9 = vld [vmem:[%s1018_s0] sm:$0xff]  }
   0x4   :  { %721 = vmatprep.subr.bf16.mxu0 %v816_v0  ;;  %780 = vmatprep.subr.bf16.mxu1 %v816_v0  ;;  %v806_v10 = vld [vmem:[%s1018_s0 + $0x30] sm:$0xff]   ;;  %v807_v11 = vld [vmem:[%s1018_s0 + $0x8] sm:$0xff]   ;;  %v808_v12 = vld [vmem:[%s1018_s0 + $0x38] sm:$0xff]   ;;  %v408_v22 = vsub.s32 0, %v407_v21  ;;  %v434_v25 = vsub.s32 1, %v407_v21 }
   0x5   :  { %v809_v13 = vld [vmem:[%s1018_s0 + $0x10] sm:$0xff]   ;;  %v810_v14 = vld [vmem:[%s1018_s0 + $0x40] sm:$0xff]   ;;  %v811_v15 = vld [vmem:[%s1018_s0 + $0x18] sm:$0xff]  }
   0x6   :  { %v812_v16 = vld [vmem:[%s1018_s0 + $0x48] sm:$0xff]   ;;  %v813_v17 = vld [vmem:[%s1018_s0 + $0x20] sm:$0xff]   ;;  %v814_v18 = vld [vmem:[%s1018_s0 + $0x50] sm:$0xff]  }
   0x7   :  { %722 = vmatpush3.bf16.msra.mxu0 %v798_v2  ;;  %788 = vmatpush3.bf16.msra.mxu1 %v798_v2  ;;  %v815_v19 = vld [vmem:[%s1018_s0 + $0x28] sm:$0xff]   ;;  %v383_v23 = vld [vmem:[%s1019_s2] sm:$0x3] }
   0x8   :  { %723 = vmatprep.subr.bf16.mxu0 %v816_v0  ;;  %781 = vmatprep.subr.bf16.mxu1 %v816_v0  ;;  %v936_v24 = vrot.slane %v383_v23, %v408_v22  ;;  %v939_v29 = vrot.slane %v383_v23, %v434_v25 }
   0xb   :  { %724 = vmatpush3.bf16.msra.mxu0 %v799_v3  ;;  %789 = vmatpush3.bf16.msra.mxu1 %v799_v3 }
   0xc   :  { %725 = vmatprep.subr.bf16.mxu0 %v816_v0  ;;  %782 = vmatprep.subr.bf16.mxu1 %v816_v0 }
   0xf   :  { %726 = vmatpush3.bf16.msra.mxu0 %v800_v4  ;;  %790 = vmatpush3.bf16.msra.mxu1 %v800_v4 }
  0x10   :  { %727 = vmatprep.subr.bf16.mxu0 %v816_v0  ;;  %783 = vmatprep.subr.bf16.mxu1 %v816_v0 }
  0x13   :  { %728 = vmatpush3.bf16.msra.mxu0 %v801_v5  ;;  %791 = vmatpush3.bf16.msra.mxu1 %v801_v5 }
  0x14   :  { %729 = vmatprep.subr.bf16.mxu0 %v816_v0  ;;  %784 = vmatprep.subr.bf16.mxu1 %v816_v0 }
  0x17   :  { %730 = vmatpush3.bf16.msra.mxu0 %v802_v6  ;;  %792 = vmatpush3.bf16.msra.mxu1 %v802_v6 }
  0x18   :  { %731 = vmatprep.subr.bf16.mxu0 %v816_v0  ;;  %785 = vmatprep.subr.bf16.mxu1 %v816_v0 }
  0x1b   :  { %732 = vmatpush3.bf16.msra.mxu0 %v803_v7  ;;  %793 = vmatpush3.bf16.msra.mxu1 %v803_v7 }
  0x1c   :  { %733 = vmatprep.subr.bf16.mxu0 %v816_v0  ;;  %786 = vmatprep.subr.bf16.mxu1 %v816_v0 }
  0x1f   :  { %734 = vmatpush3.bf16.msra.mxu0 %v804_v8  ;;  %794 = vmatpush3.bf16.msra.mxu1 %v804_v8 }
  0x22   :  { %736 = vmatmul.mubr.bf16.vlgmr.msra.gmra.mrb[0].mxu0 %v805_v9  ;;  %760 = vmatmul.mubr.bf16.vlgmr.msra.gmra.mrb[0].mxu1 %v806_v10 }
  0x23   :  { %739 = vmatprep.mubr.msk.bf16.mxu0 %vm817_vm0, %v816_v0  ;;  %763 = vmatprep.mubr.msk.bf16.mxu1 %vm817_vm0, %v816_v0 }
  0x2a   :  { %740 = vmatmul.mubr.bf16.gmra.mrb[4].mxu0 %v807_v11  ;;  %764 = vmatmul.mubr.bf16.gmra.mrb[4].mxu1 %v808_v12 }
  0x2b   :  { %743 = vmatprep.mubr.msk.bf16.mxu0 %vm817_vm0, %v816_v0  ;;  %767 = vmatprep.mubr.msk.bf16.mxu1 %vm817_vm0, %v816_v0 }
  0x32   :  { %744 = vmatmul.mubr.bf16.gmra.mrb[8].mxu0 %v809_v13  ;;  %768 = vmatmul.mubr.bf16.gmra.mrb[8].mxu1 %v810_v14 }
  0x33   :  { %747 = vmatprep.mubr.msk.bf16.mxu0 %vm817_vm0, %v816_v0  ;;  %771 = vmatprep.mubr.msk.bf16.mxu1 %vm817_vm0, %v816_v0 }
  0x3a   :  { %748 = vmatmul.mubr.bf16.gmra.mrb[12].mxu0 %v811_v15  ;;  %772 = vmatmul.mubr.bf16.gmra.mrb[12].mxu1 %v812_v16 }
  0x3b   :  { %751 = vmatprep.mubr.msk.bf16.mxu0 %vm817_vm0, %v816_v0  ;;  %775 = vmatprep.mubr.msk.bf16.mxu1 %vm817_vm0, %v816_v0 }
  0x42   :  { %752 = vmatmul.mubr.bf16.gmra.mrb[16].mxu0 %v813_v17  ;;  %776 = vmatmul.mubr.bf16.gmra.mrb[16].mxu1 %v814_v18 }
  0x43   :  { %755 = vmatprep.mubr.msk.bf16.mxu0 %vm817_vm0, %v816_v0 }
  0x4a   :  { %756 = vmatmul.mubr.bf16.gmra.mrb[20].mxu0 %v815_v19 }
  0xf5   :  { %v249_v26 = vpop.f32.mrb[0].mxu0  ;;  %v297_v27 = vpop.f32.mrb[0].mxu1 }
  0xf6   :  { %v410_v28 = vmul.f32 %v936_v24, %v249_v26  ;;  %v737_v30 = vpop.f32.mrb[1].mxu0  ;;  %v422_v31 = vmul.f32 %v936_v24, %v297_v27  ;;  %v761_v32 = vpop.f32.mrb[1].mxu1 }
  0xf7   :  { %v252_v33 = vpop.f32.mrb[2].mxu0  ;;  %v300_v34 = vpop.f32.mrb[2].mxu1 }
  0xf8   :  { %v411_v35 = vmul.f32 %v936_v24, %v252_v33  ;;  %v738_v36 = vpop.f32.mrb[3].mxu0  ;;  %v448_v37 = vadd.f32 %v939_v29, %v422_v31  ;;  %v423_v38 = vmul.f32 %v936_v24, %v300_v34  ;;  %v762_v39 = vpop.f32.mrb[3].mxu1  ;;  %v436_v40 = vadd.f32 %v939_v29, %v410_v28 }
  0xfa   :  { %v437_v41 = vadd.f32 %v939_v29, %v411_v35  ;;  %v449_v42 = vadd.f32 %v939_v29, %v423_v38 }
  0xfc   :  { %v638_v43 = vpack.c.bf16 %v437_v41, %v436_v40  ;;  %v668_v44 = vpack.c.bf16 %v449_v42, %v448_v37 }
  0xfd   :  { %v257_v45 = vpop.f32.mrb[4].mxu0  ;;  %v305_v46 = vpop.f32.mrb[4].mxu1 }
  0xfe   :  { %639 = vst [vmem:[%s1020_s3] sm:$0xff] %v638_v43   ;;  %695 = vst [vmem:[%s1020_s3 + $0x30] sm:$0xff] %v668_v44   ;;  %v412_v47 = vmul.f32 %v936_v24, %v257_v45  ;;  %v741_v48 = vpop.f32.mrb[5].mxu0  ;;  %v424_v49 = vmul.f32 %v936_v24, %v305_v46  ;;  %v765_v50 = vpop.f32.mrb[5].mxu1 }
  0xff   :  { %v260_v51 = vpop.f32.mrb[6].mxu0  ;;  %v308_v52 = vpop.f32.mrb[6].mxu1 }
 0x100   :  { %v413_v53 = vmul.f32 %v936_v24, %v260_v51  ;;  %v742_v54 = vpop.f32.mrb[7].mxu0  ;;  %v450_v55 = vadd.f32 %v939_v29, %v424_v49  ;;  %v425_v56 = vmul.f32 %v936_v24, %v308_v52  ;;  %v766_v57 = vpop.f32.mrb[7].mxu1  ;;  %v438_v58 = vadd.f32 %v939_v29, %v412_v47 }
 0x102   :  { %v439_v59 = vadd.f32 %v939_v29, %v413_v53  ;;  %v451_v60 = vadd.f32 %v939_v29, %v425_v56 }
 0x104   :  { %v643_v61 = vpack.c.bf16 %v439_v59, %v438_v58  ;;  %v673_v62 = vpack.c.bf16 %v451_v60, %v450_v55 }
 0x105   :  { %v265_v63 = vpop.f32.mrb[8].mxu0  ;;  %v313_v0 = vpop.f32.mrb[8].mxu1 }
 0x106   :  { %690 = vst [vmem:[%s1020_s3 + $0x8] sm:$0xff] %v643_v61   ;;  %696 = vst [vmem:[%s1020_s3 + $0x38] sm:$0xff] %v673_v62   ;;  %v414_v1 = vmul.f32 %v936_v24, %v265_v63  ;;  %v745_v2 = vpop.f32.mrb[9].mxu0  ;;  %v426_v3 = vmul.f32 %v936_v24, %v313_v0  ;;  %v769_v4 = vpop.f32.mrb[9].mxu1 }
 0x107   :  { %v268_v5 = vpop.f32.mrb[10].mxu0  ;;  %v316_v6 = vpop.f32.mrb[10].mxu1 }
 0x108   :  { %v415_v7 = vmul.f32 %v936_v24, %v268_v5  ;;  %v746_v8 = vpop.f32.mrb[11].mxu0  ;;  %v452_v9 = vadd.f32 %v939_v29, %v426_v3  ;;  %v427_v10 = vmul.f32 %v936_v24, %v316_v6  ;;  %v770_v11 = vpop.f32.mrb[11].mxu1  ;;  %v440_v12 = vadd.f32 %v939_v29, %v414_v1 }
 0x10a   :  { %v441_v13 = vadd.f32 %v939_v29, %v415_v7  ;;  %v453_v14 = vadd.f32 %v939_v29, %v427_v10 }
 0x10c   :  { %v648_v15 = vpack.c.bf16 %v441_v13, %v440_v12  ;;  %v678_v16 = vpack.c.bf16 %v453_v14, %v452_v9 }
 0x10d   :  { %v273_v17 = vpop.f32.mrb[12].mxu0  ;;  %v321_v18 = vpop.f32.mrb[12].mxu1 }
 0x10e   :  { %691 = vst [vmem:[%s1020_s3 + $0x10] sm:$0xff] %v648_v15   ;;  %697 = vst [vmem:[%s1020_s3 + $0x40] sm:$0xff] %v678_v16   ;;  %v416_v19 = vmul.f32 %v936_v24, %v273_v17  ;;  %v749_v20 = vpop.f32.mrb[13].mxu0  ;;  %v428_v21 = vmul.f32 %v936_v24, %v321_v18  ;;  %v773_v22 = vpop.f32.mrb[13].mxu1 }
 0x10f   :  { %v276_v23 = vpop.f32.mrb[14].mxu0  ;;  %v324_v25 = vpop.f32.mrb[14].mxu1 }
 0x110   :  { %v417_v26 = vmul.f32 %v936_v24, %v276_v23  ;;  %v750_v27 = vpop.f32.mrb[15].mxu0  ;;  %v454_v28 = vadd.f32 %v939_v29, %v428_v21  ;;  %v429_v30 = vmul.f32 %v936_v24, %v324_v25  ;;  %v774_v31 = vpop.f32.mrb[15].mxu1  ;;  %v442_v32 = vadd.f32 %v939_v29, %v416_v19 }
 0x112   :  { %v443_v33 = vadd.f32 %v939_v29, %v417_v26  ;;  %v455_v34 = vadd.f32 %v939_v29, %v429_v30 }
 0x114   :  { %v653_v35 = vpack.c.bf16 %v443_v33, %v442_v32  ;;  %v683_v36 = vpack.c.bf16 %v455_v34, %v454_v28 }
 0x115   :  { %v281_v37 = vpop.f32.mrb[16].mxu0  ;;  %v329_v38 = vpop.f32.mrb[16].mxu1 }
 0x116   :  { %692 = vst [vmem:[%s1020_s3 + $0x18] sm:$0xff] %v653_v35   ;;  %698 = vst [vmem:[%s1020_s3 + $0x48] sm:$0xff] %v683_v36   ;;  %v418_v39 = vmul.f32 %v936_v24, %v281_v37  ;;  %v753_v40 = vpop.f32.mrb[17].mxu0  ;;  %v430_v41 = vmul.f32 %v936_v24, %v329_v38  ;;  %v777_v42 = vpop.f32.mrb[17].mxu1 }
 0x117   :  { %v284_v43 = vpop.f32.mrb[18].mxu0  ;;  %v332_v44 = vpop.f32.mrb[18].mxu1 }
 0x118   :  { %v419_v45 = vmul.f32 %v936_v24, %v284_v43  ;;  %v754_v46 = vpop.f32.mrb[19].mxu0  ;;  %v456_v47 = vadd.f32 %v939_v29, %v430_v41  ;;  %v431_v48 = vmul.f32 %v936_v24, %v332_v44  ;;  %v778_v49 = vpop.f32.mrb[19].mxu1  ;;  %v444_v50 = vadd.f32 %v939_v29, %v418_v39 }
 0x11a   :  { %v445_v51 = vadd.f32 %v939_v29, %v419_v45  ;;  %v457_v52 = vadd.f32 %v939_v29, %v431_v48 }
 0x11c   :  { %v658_v53 = vpack.c.bf16 %v445_v51, %v444_v50  ;;  %v688_v54 = vpack.c.bf16 %v457_v52, %v456_v47 }
 0x11d   :  { %v289_v55 = vpop.f32.mrb[20].mxu0 }
 0x11e   :  { %693 = vst [vmem:[%s1020_s3 + $0x20] sm:$0xff] %v658_v53   ;;  %699 = vst [vmem:[%s1020_s3 + $0x50] sm:$0xff] %v688_v54   ;;  %v420_v56 = vmul.f32 %v936_v24, %v289_v55  ;;  %v757_v57 = vpop.f32.mrb[21].mxu0 }
 0x11f   :  { %v292_v58 = vpop.f32.mrb[22].mxu0 }
 0x120   :  { %v421_v59 = vmul.f32 %v936_v24, %v292_v58  ;;  %v758_v60 = vpop.f32.mrb[23].mxu0  ;;  %v446_v61 = vadd.f32 %v939_v29, %v420_v56 }
 0x122   :  { %v447_v62 = vadd.f32 %v939_v29, %v421_v59 }
 0x124   :  { %v663_v63 = vpack.c.bf16 %v447_v62, %v446_v61 }
 0x126   :  { %694 = vst [vmem:[%s1020_s3 + $0x28] sm:$0xff] %v663_v63  }

// kernel: forward.31
= control target key start
LH: loop header
LB: loop body
LE: loop exit
PB: predicated region body
PF: predicated region fallthrough
CT: control target
= control target key end

     0   :  { %s1588_s12 = smov 0   ;;  %s1590_s13 = smov 0   ;;  %s1829_s0 = inlined_call_operand.vmem [shape: bf16[176,512], index: 0, kind: input, shape index: {}]   ;;  %s1830_s1 = inlined_call_operand.vmem [shape: bf16[512,128], index: 1, kind: input, shape index: {}]   ;;  %s1831_s2 = inlined_call_operand.vmem [shape: f32[2,128], index: 2, kind: input, shape index: {}]   ;;  %s1832_s3 = inlined_call_operand.vmem [shape: bf16[176,128], index: 3, kind: output, shape index: {}]  }
   0x1   :  { %s1592_s14 = smov 0   ;;  %s1594_s15 = smov 0  }
   0x2   :  { %s1596_s16 = smov 0  }
   0x3 LB: > { %s25_s17 = sadd.s32 1, %s1561_s15  ;;  %p48_p1 = scmp.ne.s32.totalorder %s1553_s13, %s1549_s12  ;;  %s1565_s16 = sphi %s1596_s16, %s13_s16   ;;  %s1561_s15 = sphi %s1594_s15, %s1836_s15   ;;  %s1557_s14 = sphi %s1592_s14, %s1835_s14   ;;  %s1553_s13 = sphi %s1590_s13, %s1834_s13   ;;  %s1549_s12 = sphi %s1588_s12, %s1833_s12  }
   0x4   : > { %p26_p0 = scmp.ge.s32.totalorder %s25_s17, 2  ;;  %p49_p2 = scmp.eq.s32.totalorder %s1565_s16, 0 }
   0x5   : > { %s41_s19 = sadd.s32 1, %s1553_s13  ;;  %p1177_p5 = scmp.ge.s32.totalorder %s1565_s16, 2 }
   0x6   : > { %s1838_s17 = smov (%p26_p0, %s25_s17), 0  ;;  %p50_p3 = por %p49_p2, %p48_p1 }
   0x7   : > { %s37_s18 = ssub.s32 %s1561_s15, %s1838_s17  ;;  %163 = sbr.rel (%p1177_p5) target bundleno = 29 (0x1d), region = 20 }
   0x8   : > { %p39_p4 = scmp.eq.s32.totalorder %s37_s18, 0 }
   0xa   : > { %s1623_s20 = scalar_select %p39_p4, %s1553_s13, %s41_s19  }
   0xe   : > { %166 = sbr.rel (!%p50_p3) target bundleno = 29 (0x1d), region = 24  ;;  %s168_s21 = sand.u32 (%p50_p3), 1, %s1553_s13  }
   0xf   : > { %s1249_s22 = sshll.u32 (%p50_p3), %s1561_s15, 3  ;;  %s1435_s23 = smul.u32 (%p50_p3), 176, %s168_s21 }
  0x10   : > { %s1631_s26 = scalar_lea.vmem (%p50_p3), %s1829_s0, %s1249_s22 }
  0x11   : > { %v246_v0 = vld [vmem:[%s1631_s26] sm:$0xff] (%p50_p3)  ;;  %v248_v1 = vld [vmem:[%s1631_s26 + $0x10] sm:$0xff] (%p50_p3)  ;;  %s1639_s27 = scalar_lea.vmem (%p50_p3), [#allocation3], %s1435_s23 }
  0x12   : > { %v250_v2 = vld [vmem:[%s1631_s26 + $0x20] sm:$0xff] (%p50_p3)  ;;  %v252_v3 = vld [vmem:[%s1631_s26 + $0x30] sm:$0xff] (%p50_p3)  ;;  %247 = vst [vmem:[%s1639_s27] sm:$0xff] (%p50_p3), %v246_v0  ;;  %249 = vst [vmem:[%s1639_s27 + $0x8] sm:$0xff] (%p50_p3), %v248_v1 }
  0x13   : > { %v254_v4 = vld [vmem:[%s1631_s26 + $0x40] sm:$0xff] (%p50_p3)  ;;  %v256_v5 = vld [vmem:[%s1631_s26 + $0x50] sm:$0xff] (%p50_p3)  ;;  %251 = vst [vmem:[%s1639_s27 + $0x10] sm:$0xff] (%p50_p3), %v250_v2  ;;  %253 = vst [vmem:[%s1639_s27 + $0x18] sm:$0xff] (%p50_p3), %v252_v3 }
  0x14   : > { %255 = vst [vmem:[%s1639_s27 + $0x20] sm:$0xff] (%p50_p3), %v254_v4  ;;  %257 = vst [vmem:[%s1639_s27 + $0x28] sm:$0xff] (%p50_p3), %v256_v5  ;;  %v258_v6 = vld [vmem:[%s1631_s26 + $0x60] sm:$0xff] (%p50_p3)  ;;  %v260_v7 = vld [vmem:[%s1631_s26 + $0x70] sm:$0xff] (%p50_p3) }
  0x15   : > { %v262_v8 = vld [vmem:[%s1631_s26 + $0x80] sm:$0xff]  ;;  %259 = vst [vmem:[%s1639_s27 + $0x30] sm:$0xff] %v258_v6  ;;  %261 = vst [vmem:[%s1639_s27 + $0x38] sm:$0xff] %v260_v7  ;;  %v264_v9 = vld [vmem:[%s1631_s26 + $0x90] sm:$0xff] }
  0x16   : > { %263 = vst [vmem:[%s1639_s27 + $0x40] sm:$0xff] %v262_v8  ;;  %v266_v10 = vld [vmem:[%s1631_s26 + $0xa0] sm:$0xff]  ;;  %v268_v11 = vld [vmem:[%s1631_s26 + $0xb0] sm:$0xff]  ;;  %265 = vst [vmem:[%s1639_s27 + $0x48] sm:$0xff] %v264_v9 }
  0x17   : > { %267 = vst [vmem:[%s1639_s27 + $0x50] sm:$0xff] %v266_v10  ;;  %269 = vst [vmem:[%s1639_s27 + $0x58] sm:$0xff] %v268_v11  ;;  %v270_v12 = vld [vmem:[%s1631_s26 + $0xc0] sm:$0xff]  ;;  %v272_v13 = vld [vmem:[%s1631_s26 + $0xd0] sm:$0xff] }
  0x18   : > { %v274_v14 = vld [vmem:[%s1631_s26 + $0xe0] sm:$0xff]  ;;  %271 = vst [vmem:[%s1639_s27 + $0x60] sm:$0xff] %v270_v12  ;;  %273 = vst [vmem:[%s1639_s27 + $0x68] sm:$0xff] %v272_v13  ;;  %v276_v15 = vld [vmem:[%s1631_s26 + $0xf0] sm:$0xff] }
  0x19   : > { %275 = vst [vmem:[%s1639_s27 + $0x70] sm:$0xff] %v274_v14  ;;  %v278_v16 = vld [vmem:[%s1631_s26 + $0x100] sm:$0xff]  ;;  %v280_v17 = vld [vmem:[%s1631_s26 + $0x110] sm:$0xff]  ;;  %277 = vst [vmem:[%s1639_s27 + $0x78] sm:$0xff] %v276_v15 }
  0x1a   : > { %279 = vst [vmem:[%s1639_s27 + $0x80] sm:$0xff] %v278_v16  ;;  %281 = vst [vmem:[%s1639_s27 + $0x88] sm:$0xff] %v280_v17  ;;  %v282_v18 = vld [vmem:[%s1631_s26 + $0x120] sm:$0xff]  ;;  %v284_v19 = vld [vmem:[%s1631_s26 + $0x130] sm:$0xff] }
  0x1b   : > { %v286_v20 = vld [vmem:[%s1631_s26 + $0x140] sm:$0xff]  ;;  %283 = vst [vmem:[%s1639_s27 + $0x90] sm:$0xff] %v282_v18  ;;  %285 = vst [vmem:[%s1639_s27 + $0x98] sm:$0xff] %v284_v19  ;;  %v288_v21 = vld [vmem:[%s1631_s26 + $0x150] sm:$0xff] }
  0x1c   : > { %287 = vst [vmem:[%s1639_s27 + $0xa0] sm:$0xff] %v286_v20  ;;  %289 = vst [vmem:[%s1639_s27 + $0xa8] sm:$0xff] %v288_v21 }
  0x1d PF: > { %p1180_p6 = scmp.ge.s32.totalorder %s1565_s16, 1  ;;  %p306_p7 = scmp.lt.s32.totalorder %s1565_s16, 3 }
  0x1f   : > { %p307_p8 = pnand %p1180_p6, %p306_p7 }
  0x20   : > { %s313_s28 = sand.u32 (!%p307_p8), 1, %s1549_s12   ;;  %s1181_s29 = sshll.u32 (!%p307_p8), %s1557_s14, 5 }
  0x21   : > { %310 = sbr.rel (%p307_p8) target bundleno = 362 (0x16a), region = 66  ;;  %p354_p9 = scmp.lt.s32.totalorder (!%p307_p8), %s1181_s29, 63 }
  0x22   : > { %s1436_s30 = smul.u32 (!%p307_p8), 176, %s313_s28  ;;  %p1183_p10 = scmp.ne.s32.totalorder (!%p307_p8), %s1557_s14, 0 }
  0x24   : > { %s1688_s8 = scalar_lea.vmem (!%p307_p8), [#allocation3], %s1436_s30 }
  0x28   : > { %s1840_s29 = smov (!%p354_p9, %s1181_s29), 63  ;;  %379 = sbr.rel (%p1183_p10) target bundleno = 53 (0x35), region = 74 }
  0x29   : > { %s1182_s4 = sshll.u32 %s1840_s29, 2  ;;  %v1567_v22 = vmov (!%p1183_p10), 0.0  }
  0x2a   : > { %s1686_s7 = scalar_lea.vmem %s1830_s1, %s1182_s4  ;;  %380 = vst [vmem:[#allocation2] sm:$0xff] (!%p1183_p10), %v1567_v22  ;;  %381 = vst [vmem:[#allocation2 + $0x8] sm:$0xff] (!%p1183_p10), %v1567_v22 }
  0x2b   : > { %382 = vst [vmem:[#allocation2 + $0x10] sm:$0xff] (!%p1183_p10), %v1567_v22  ;;  %383 = vst [vmem:[#allocation2 + $0x18] sm:$0xff] (!%p1183_p10), %v1567_v22 }
  0x2c   : > { %384 = vst [vmem:[#allocation2 + $0x20] sm:$0xff] (!%p1183_p10), %v1567_v22  ;;  %385 = vst [vmem:[#allocation2 + $0x28] sm:$0xff] (!%p1183_p10), %v1567_v22 }
  0x2d   : > { %386 = vst [vmem:[#allocation2 + $0x30] sm:$0xff] (!%p1183_p10), %v1567_v22  ;;  %387 = vst [vmem:[#allocation2 + $0x38] sm:$0xff] (!%p1183_p10), %v1567_v22 }
  0x2e   : > { %388 = vst [vmem:[#allocation2 + $0x40] sm:$0xff] (!%p1183_p10), %v1567_v22  ;;  %389 = vst [vmem:[#allocation2 + $0x48] sm:$0xff] (!%p1183_p10), %v1567_v22 }
  0x2f   : > { %390 = vst [vmem:[#allocation2 + $0x50] sm:$0xff] %v1567_v22  ;;  %391 = vst [vmem:[#allocation2 + $0x58] sm:$0xff] %v1567_v22 }
  0x30   : > { %392 = vst [vmem:[#allocation2 + $0x60] sm:$0xff] %v1567_v22  ;;  %393 = vst [vmem:[#allocation2 + $0x68] sm:$0xff] %v1567_v22 }
  0x31   : > { %394 = vst [vmem:[#allocation2 + $0x70] sm:$0xff] %v1567_v22  ;;  %395 = vst [vmem:[#allocation2 + $0x78] sm:$0xff] %v1567_v22 }
  0x32   : > { %396 = vst [vmem:[#allocation2 + $0x80] sm:$0xff] %v1567_v22  ;;  %397 = vst [vmem:[#allocation2 + $0x88] sm:$0xff] %v1567_v22 }
  0x33   : > { %398 = vst [vmem:[#allocation2 + $0x90] sm:$0xff] %v1567_v22  ;;  %399 = vst [vmem:[#allocation2 + $0x98] sm:$0xff] %v1567_v22 }
  0x34   : > { %400 = vst [vmem:[#allocation2 + $0xa0] sm:$0xff] %v1567_v22  ;;  %401 = vst [vmem:[#allocation2 + $0xa8] sm:$0xff] %v1567_v22 }
  0x35 PF: > { %v1478_v23 = vld [vmem:[%s1686_s7 + $0x40] sm:$0xff]   ;;  %v1480_v25 = vld [vmem:[%s1686_s7 + $0x48] sm:$0xff]   ;;  %v1482_v27 = vld [vmem:[%s1686_s7 + $0x50] sm:$0xff]   ;;  %p1222_p11 = scmp.ne.s32.totalorder %s1557_s14, 1 }
  0x36   : > { %v1479_v24 = vld [vmem:[%s1686_s7] sm:$0xff]   ;;  %1337 = vmatprep.subr.bf16.mxu0 %v1478_v23  ;;  %1419 = vmatprep.subr.bf16.mxu1 %v1478_v23  ;;  %v1481_v26 = vld [vmem:[%s1686_s7 + $0x8] sm:$0xff]   ;;  %v1483_v28 = vld [vmem:[%s1686_s7 + $0x10] sm:$0xff]  }
  0x37   : > { %1338 = vmatpush3.bf16.msra.mxu0 %v1479_v24  ;;  %1427 = vmatpush3.bf16.msra.mxu1 %v1479_v24  ;;  %v1484_v29 = vld [vmem:[%s1686_s7 + $0x58] sm:$0xff]   ;;  %v1486_v31 = vld [vmem:[%s1686_s7 + $0x60] sm:$0xff]   ;;  %v1488_v33 = vld [vmem:[%s1686_s7 + $0x68] sm:$0xff]  }
  0x38   : > { %1339 = vmatprep.subr.bf16.mxu0 %v1480_v25  ;;  %1420 = vmatprep.subr.bf16.mxu1 %v1480_v25  ;;  %v1485_v30 = vld [vmem:[%s1686_s7 + $0x18] sm:$0xff]   ;;  %v1487_v32 = vld [vmem:[%s1686_s7 + $0x20] sm:$0xff]   ;;  %v1489_v36 = vld [vmem:[%s1686_s7 + $0x28] sm:$0xff]  }
  0x39   : > { %v1496_v34 = vld [vmem:[%s1688_s8 + $0x4] ss:$8 sps:$4 sm:$0xff]   ;;  %v1494_v41 = vld [vmem:[%s1688_s8] ss:$8 sps:$4 sm:$0xff]   ;;  %v1500_v43 = vld [vmem:[%s1688_s8 + $0x14] ss:$8 sps:$4 sm:$0xff]  }
  0x3a   : > { %v1499_v35 = vld [vmem:[%s1688_s8 + $0x64] ss:$8 sps:$4 sm:$0xff]   ;;  %716 = vmatprep.mubr.bf16.mxu0 %v1496_v34  ;;  %v1497_v42 = vld [vmem:[%s1688_s8 + $0x60] ss:$8 sps:$4 sm:$0xff]   ;;  %v1503_v44 = vld [vmem:[%s1688_s8 + $0x74] ss:$8 sps:$4 sm:$0xff]  }
  0x3b   : > { %1340 = vmatpush3.bf16.msra.mxu0 %v1481_v26  ;;  %1428 = vmatpush3.bf16.msra.mxu1 %v1481_v26  ;;  %v1490_v37 = vld [vmem:[%s1686_s7 + $0x70] sm:$0xff]   ;;  %v1492_v39 = vld [vmem:[%s1686_s7 + $0x78] sm:$0xff]   ;;  %v402_v63 = vld [vmem:[#allocation2] sm:$0xff] }
  0x3c   : > { %1341 = vmatprep.subr.bf16.mxu0 %v1482_v27  ;;  %1421 = vmatprep.subr.bf16.mxu1 %v1482_v27  ;;  %v1491_v38 = vld [vmem:[%s1686_s7 + $0x30] sm:$0xff]   ;;  %v1493_v40 = vld [vmem:[%s1686_s7 + $0x38] sm:$0xff]   ;;  %v414_v1 = vld [vmem:[#allocation2 + $0x60] sm:$0xff] }
  0x3d   : > { %764 = vmatprep.mubr.bf16.mxu1 %v1499_v35  ;;  %v1502_v45 = vld [vmem:[%s1688_s8 + $0x10] ss:$8 sps:$4 sm:$0xff]   ;;  %v1506_v47 = vld [vmem:[%s1688_s8 + $0x24] ss:$8 sps:$4 sm:$0xff]   ;;  %v1508_v49 = vld [vmem:[%s1688_s8 + $0x20] ss:$8 sps:$4 sm:$0xff]  }
  0x3e   : > { %v1505_v46 = vld [vmem:[%s1688_s8 + $0x70] ss:$8 sps:$4 sm:$0xff]   ;;  %v1509_v48 = vld [vmem:[%s1688_s8 + $0x84] ss:$8 sps:$4 sm:$0xff]   ;;  %v1511_v50 = vld [vmem:[%s1688_s8 + $0x80] ss:$8 sps:$4 sm:$0xff]  }
  0x3f   : > { %1342 = vmatpush3.bf16.msra.mxu0 %v1483_v28  ;;  %1429 = vmatpush3.bf16.msra.mxu1 %v1483_v28  ;;  %v1512_v51 = vld [vmem:[%s1688_s8 + $0x34] ss:$8 sps:$4 sm:$0xff]   ;;  %v1514_v53 = vld [vmem:[%s1688_s8 + $0x30] ss:$8 sps:$4 sm:$0xff]   ;;  %v1518_v55 = vld [vmem:[%s1688_s8 + $0x44] ss:$8 sps:$4 sm:$0xff]  }
  0x40   : > { %1343 = vmatprep.subr.bf16.mxu0 %v1484_v29  ;;  %1422 = vmatprep.subr.bf16.mxu1 %v1484_v29  ;;  %v1515_v52 = vld [vmem:[%s1688_s8 + $0x94] ss:$8 sps:$4 sm:$0xff]   ;;  %v1517_v54 = vld [vmem:[%s1688_s8 + $0x90] ss:$8 sps:$4 sm:$0xff]   ;;  %v1521_v56 = vld [vmem:[%s1688_s8 + $0xa4] ss:$8 sps:$4 sm:$0xff]  }
  0x41   : > { %v1520_v57 = vld [vmem:[%s1688_s8 + $0x40] ss:$8 sps:$4 sm:$0xff]   ;;  %v1524_v59 = vld [vmem:[%s1688_s8 + $0x54] ss:$8 sps:$4 sm:$0xff]   ;;  %v1526_v60 = vld [vmem:[%s1688_s8 + $0x50] ss:$8 sps:$4 sm:$0xff]  }
  0x42   : > { %v1523_v58 = vld [vmem:[%s1688_s8 + $0xa0] ss:$8 sps:$4 sm:$0xff]  }
  0x43   : > { %1344 = vmatpush3.bf16.msra.mxu0 %v1485_v30  ;;  %1430 = vmatpush3.bf16.msra.mxu1 %v1485_v30  ;;  %v403_v7 = vld [vmem:[#allocation2 + $0x8] sm:$0xff]  ;;  %v404_v19 = vld [vmem:[#allocation2 + $0x10] sm:$0xff]  ;;  %v405_v27 = vld [vmem:[#allocation2 + $0x18] sm:$0xff] }
  0x44   : > { %1345 = vmatprep.subr.bf16.mxu0 %v1486_v31  ;;  %1423 = vmatprep.subr.bf16.mxu1 %v1486_v31  ;;  %v415_v9 = vld [vmem:[#allocation2 + $0x68] sm:$0xff]  ;;  %v416_v21 = vld [vmem:[#allocation2 + $0x70] sm:$0xff]  ;;  %v417_v29 = vld [vmem:[#allocation2 + $0x78] sm:$0xff] }
  0x47   : > { %1346 = vmatpush3.bf16.msra.mxu0 %v1487_v32  ;;  %1431 = vmatpush3.bf16.msra.mxu1 %v1487_v32 }
  0x48   : > { %1347 = vmatprep.subr.bf16.mxu0 %v1488_v33  ;;  %1424 = vmatprep.subr.bf16.mxu1 %v1488_v33 }
  0x4b   : > { %1348 = vmatpush3.bf16.msra.mxu0 %v1489_v36  ;;  %1432 = vmatpush3.bf16.msra.mxu1 %v1489_v36 }
  0x4c   : > { %1349 = vmatprep.subr.bf16.mxu0 %v1490_v37  ;;  %1425 = vmatprep.subr.bf16.mxu1 %v1490_v37 }
  0x4f   : > { %1350 = vmatpush3.bf16.msra.mxu0 %v1491_v38  ;;  %1433 = vmatpush3.bf16.msra.mxu1 %v1491_v38 }
  0x50   : > { %1351 = vmatprep.subr.bf16.mxu0 %v1492_v39  ;;  %1426 = vmatprep.subr.bf16.mxu1 %v1492_v39  ;;  %v406_v39 = vld [vmem:[#allocation2 + $0x20] sm:$0xff] }
  0x53   : > { %1352 = vmatpush3.bf16.msra.mxu0 %v1493_v40  ;;  %1434 = vmatpush3.bf16.msra.mxu1 %v1493_v40 }
  0x56   : > { %717 = vmatmul.mubr.bf16.vlgmr.msra.gmra.mrb[0].mxu0 %v1494_v41  ;;  %765 = vmatmul.mubr.bf16.vlgmr.msra.gmra.mrb[0].mxu1 %v1497_v42  ;;  %v418_v41 = vld [vmem:[#allocation2 + $0x80] sm:$0xff] }
  0x57   : > { %724 = vmatprep.mubr.bf16.mxu0 %v1500_v43  ;;  %772 = vmatprep.mubr.bf16.mxu1 %v1503_v44 }
  0x5e   : > { %725 = vmatmul.mubr.bf16.gmra.mrb[4].mxu0 %v1502_v45  ;;  %773 = vmatmul.mubr.bf16.gmra.mrb[4].mxu1 %v1505_v46 }
  0x5f   : > { %732 = vmatprep.mubr.bf16.mxu0 %v1506_v47  ;;  %780 = vmatprep.mubr.bf16.mxu1 %v1509_v48  ;;  %v407_v47 = vld [vmem:[#allocation2 + $0x28] sm:$0xff] }
  0x66   : > { %733 = vmatmul.mubr.bf16.gmra.mrb[8].mxu0 %v1508_v49  ;;  %781 = vmatmul.mubr.bf16.gmra.mrb[8].mxu1 %v1511_v50  ;;  %v419_v49 = vld [vmem:[#allocation2 + $0x88] sm:$0xff] }
  0x67   : > { %740 = vmatprep.mubr.bf16.mxu0 %v1512_v51  ;;  %788 = vmatprep.mubr.bf16.mxu1 %v1515_v52 }
  0x6e   : > { %741 = vmatmul.mubr.bf16.gmra.mrb[12].mxu0 %v1514_v53  ;;  %789 = vmatmul.mubr.bf16.gmra.mrb[12].mxu1 %v1517_v54 }
  0x6f   : > { %748 = vmatprep.mubr.bf16.mxu0 %v1518_v55  ;;  %796 = vmatprep.mubr.bf16.mxu1 %v1521_v56 }
  0x76   : > { %749 = vmatmul.mubr.bf16.gmra.mrb[16].mxu0 %v1520_v57  ;;  %797 = vmatmul.mubr.bf16.gmra.mrb[16].mxu1 %v1523_v58 }
  0x77   : > { %756 = vmatprep.mubr.bf16.mxu0 %v1524_v59  ;;  %v408_v59 = vld [vmem:[#allocation2 + $0x30] sm:$0xff] }
  0x7e   : > { %757 = vmatmul.mubr.bf16.gmra.mrb[20].mxu0 %v1526_v60 }
 0x129   : > { %v1353_v61 = vpop.f32.mrb[0].mxu0  ;;  %v1389_v62 = vpop.f32.mrb[0].mxu1 }
 0x12a   : > { %v1354_v0 = vpop.f32.mrb[1].mxu0  ;;  %v1390_v2 = vpop.f32.mrb[1].mxu1 }
 0x12b   : > { %v1355_v3 = vadd.f32 %v1354_v0, %v1353_v61  ;;  %v1356_v4 = vpop.f32.mrb[2].mxu0  ;;  %v1391_v5 = vadd.f32 %v1390_v2, %v1389_v62  ;;  %v1392_v6 = vpop.f32.mrb[2].mxu1  ;;  %v420_v61 = vld [vmem:[#allocation2 + $0x90] sm:$0xff] }
 0x12c   : > { %v1357_v8 = vpop.f32.mrb[3].mxu0  ;;  %v1393_v10 = vpop.f32.mrb[3].mxu1 }
 0x12d   : > { %v805_v11 = vadd.f32 %v1355_v3, %v402_v63  ;;  %v1358_v12 = vadd.f32 %v1357_v8, %v1356_v4  ;;  %v817_v13 = vadd.f32 %v1391_v5, %v414_v1  ;;  %v1394_v14 = vadd.f32 %v1393_v10, %v1392_v6  ;;  %v409_v3 = vld [vmem:[#allocation2 + $0x38] sm:$0xff] }
 0x12e   : > { %v421_v5 = vld [vmem:[#allocation2 + $0x98] sm:$0xff] }
 0x12f   : > { %827 = vst [vmem:[#allocation2] sm:$0xff] %v805_v11  ;;  %v806_v15 = vadd.f32 %v1358_v12, %v403_v7  ;;  %839 = vst [vmem:[#allocation2 + $0x60] sm:$0xff] %v817_v13  ;;  %v818_v16 = vadd.f32 %v1394_v14, %v415_v9 }
 0x131   : > { %828 = vst [vmem:[#allocation2 + $0x8] sm:$0xff] %v806_v15  ;;  %v1359_v17 = vpop.f32.mrb[4].mxu0  ;;  %840 = vst [vmem:[#allocation2 + $0x68] sm:$0xff] %v818_v16  ;;  %v1395_v18 = vpop.f32.mrb[4].mxu1  ;;  %v410_v15 = vld [vmem:[#allocation2 + $0x40] sm:$0xff] }
 0x132   : > { %v1360_v20 = vpop.f32.mrb[5].mxu0  ;;  %v1396_v22 = vpop.f32.mrb[5].mxu1 }
 0x133   : > { %v1361_v23 = vadd.f32 %v1360_v20, %v1359_v17  ;;  %v1362_v24 = vpop.f32.mrb[6].mxu0  ;;  %v1397_v25 = vadd.f32 %v1396_v22, %v1395_v18  ;;  %v1398_v26 = vpop.f32.mrb[6].mxu1  ;;  %v422_v17 = vld [vmem:[#allocation2 + $0xa0] sm:$0xff] }
 0x134   : > { %v1363_v28 = vpop.f32.mrb[7].mxu0  ;;  %v1399_v30 = vpop.f32.mrb[7].mxu1 }
 0x135   : > { %v807_v31 = vadd.f32 %v1361_v23, %v404_v19  ;;  %v1364_v32 = vadd.f32 %v1363_v28, %v1362_v24  ;;  %v819_v33 = vadd.f32 %v1397_v25, %v416_v21  ;;  %v1400_v34 = vadd.f32 %v1399_v30, %v1398_v26  ;;  %v411_v23 = vld [vmem:[#allocation2 + $0x48] sm:$0xff] }
 0x136   : > { %v423_v25 = vld [vmem:[#allocation2 + $0xa8] sm:$0xff] }
 0x137   : > { %829 = vst [vmem:[#allocation2 + $0x10] sm:$0xff] %v807_v31  ;;  %v808_v35 = vadd.f32 %v1364_v32, %v405_v27  ;;  %841 = vst [vmem:[#allocation2 + $0x70] sm:$0xff] %v819_v33  ;;  %v820_v36 = vadd.f32 %v1400_v34, %v417_v29  ;;  %v412_v34 = vld [vmem:[#allocation2 + $0x50] sm:$0xff] }
 0x139   : > { %830 = vst [vmem:[#allocation2 + $0x18] sm:$0xff] %v808_v35  ;;  %v1365_v37 = vpop.f32.mrb[8].mxu0  ;;  %842 = vst [vmem:[#allocation2 + $0x78] sm:$0xff] %v820_v36  ;;  %v1401_v38 = vpop.f32.mrb[8].mxu1 }
 0x13a   : > { %v1366_v40 = vpop.f32.mrb[9].mxu0  ;;  %v1402_v42 = vpop.f32.mrb[9].mxu1 }
 0x13b   : > { %v1367_v43 = vadd.f32 %v1366_v40, %v1365_v37  ;;  %v1368_v44 = vpop.f32.mrb[10].mxu0  ;;  %v1403_v45 = vadd.f32 %v1402_v42, %v1401_v38  ;;  %v1404_v46 = vpop.f32.mrb[10].mxu1  ;;  %v413_v38 = vld [vmem:[#allocation2 + $0x58] sm:$0xff] }
 0x13c   : > { %v1369_v48 = vpop.f32.mrb[11].mxu0  ;;  %v1405_v50 = vpop.f32.mrb[11].mxu1 }
 0x13d   : > { %v809_v51 = vadd.f32 %v1367_v43, %v406_v39  ;;  %v1370_v52 = vadd.f32 %v1369_v48, %v1368_v44  ;;  %v821_v53 = vadd.f32 %v1403_v45, %v418_v41  ;;  %v1406_v54 = vadd.f32 %v1405_v50, %v1404_v46  ;;  %v853_v45 = vld [vmem:[%s1831_s2] sm:$0x3] (!%p1222_p11) }
 0x13e   : > { %v876_v43 = vlaneseq (!%p1222_p11)  ;;  %v854_v46 = vld [vmem:[#allocation2] sm:$0xff] (!%p1222_p11)  ;;  %v856_v50 = vld [vmem:[#allocation2 + $0x10] sm:$0xff] (!%p1222_p11) }
 0x13f   : > { %831 = vst [vmem:[#allocation2 + $0x20] sm:$0xff] %v809_v51  ;;  %v810_v55 = vadd.f32 %v1370_v52, %v407_v47  ;;  %843 = vst [vmem:[#allocation2 + $0x80] sm:$0xff] %v821_v53  ;;  %v822_v56 = vadd.f32 %v1406_v54, %v419_v49  ;;  %v855_v47 = vld [vmem:[#allocation2 + $0x8] sm:$0xff] (!%p1222_p11) }
 0x140   : > { %v877_v44 = vshrl.u32 (!%p1222_p11), %v876_v43, 7  ;;  %v857_v51 = vld [vmem:[#allocation2 + $0x18] sm:$0xff] (!%p1222_p11) }
 0x141   : > { %832 = vst [vmem:[#allocation2 + $0x28] sm:$0xff] %v810_v55  ;;  %v1371_v57 = vpop.f32.mrb[12].mxu0  ;;  %844 = vst [vmem:[#allocation2 + $0x88] sm:$0xff] %v822_v56  ;;  %v1407_v58 = vpop.f32.mrb[12].mxu1 }
 0x142   : > { %v1372_v60 = vpop.f32.mrb[13].mxu0  ;;  %v1408_v62 = vpop.f32.mrb[13].mxu1  ;;  %v878_v48 = vsub.s32 (!%p1222_p11), 0, %v877_v44  ;;  %v904_v49 = vsub.s32 (!%p1222_p11), 1, %v877_v44 }
 0x143   : > { %v1373_v63 = vadd.f32 %v1372_v60, %v1371_v57  ;;  %v1374_v0 = vpop.f32.mrb[14].mxu0  ;;  %v1409_v1 = vadd.f32 %v1408_v62, %v1407_v58  ;;  %v1410_v2 = vpop.f32.mrb[14].mxu1 }
 0x144   : > { %v1375_v4 = vpop.f32.mrb[15].mxu0  ;;  %v1411_v6 = vpop.f32.mrb[15].mxu1  ;;  %v1733_v53 = vrot.slane (!%p1222_p11), %v853_v45, %v878_v48  ;;  %v1735_v54 = vrot.slane (!%p1222_p11), %v853_v45, %v904_v49 }
 0x145   : > { %v811_v7 = vadd.f32 %v1373_v63, %v408_v59  ;;  %v1376_v8 = vadd.f32 %v1375_v4, %v1374_v0  ;;  %v823_v9 = vadd.f32 %v1409_v1, %v420_v61  ;;  %v1412_v10 = vadd.f32 %v1411_v6, %v1410_v2 }
 0x146   : > { %v858_v52 = vld [vmem:[#allocation2 + $0x20] sm:$0xff] (!%p1222_p11)  ;;  %v880_v58 = vmul.f32 (!%p1222_p11), %v1733_v53, %v854_v46  ;;  %v881_v59 = vmul.f32 (!%p1222_p11), %v1733_v53, %v855_v47  ;;  %v882_v60 = vmul.f32 (!%p1222_p11), %v1733_v53, %v856_v50  ;;  %v883_v61 = vmul.f32 (!%p1222_p11), %v1733_v53, %v857_v51 }
 0x147   : > { %833 = vst [vmem:[#allocation2 + $0x30] sm:$0xff] %v811_v7  ;;  %v812_v11 = vadd.f32 %v1376_v8, %v409_v3  ;;  %845 = vst [vmem:[#allocation2 + $0x90] sm:$0xff] %v823_v9  ;;  %v824_v12 = vadd.f32 %v1412_v10, %v421_v5  ;;  %v884_v62 = vmul.f32 (!%p1222_p11), %v1733_v53, %v858_v52 }
 0x148   : > { %v859_v55 = vld [vmem:[#allocation2 + $0x28] sm:$0xff] (!%p1222_p11)  ;;  %v906_v2 = vadd.f32 (!%p1222_p11), %v1735_v54, %v880_v58  ;;  %v907_v3 = vadd.f32 (!%p1222_p11), %v1735_v54, %v881_v59  ;;  %v908_v4 = vadd.f32 (!%p1222_p11), %v1735_v54, %v882_v60  ;;  %v909_v5 = vadd.f32 (!%p1222_p11), %v1735_v54, %v883_v61 }
 0x149   : > { %834 = vst [vmem:[#allocation2 + $0x38] sm:$0xff] %v812_v11  ;;  %v1377_v13 = vpop.f32.mrb[16].mxu0  ;;  %846 = vst [vmem:[#allocation2 + $0x98] sm:$0xff] %v824_v12  ;;  %v1413_v14 = vpop.f32.mrb[16].mxu1  ;;  %v885_v63 = vmul.f32 (!%p1222_p11), %v1733_v53, %v859_v55  ;;  %v910_v6 = vadd.f32 (!%p1222_p11), %v1735_v54, %v884_v62  ;;  %v871_v47 = vld [vmem:[#allocation2 + $0x88] sm:$0xff] (!%p1222_p11) }
 0x14a   : > { %v1378_v16 = vpop.f32.mrb[17].mxu0  ;;  %v1414_v18 = vpop.f32.mrb[17].mxu1  ;;  %v928_v12 = vmax.f32 (!%p1222_p11), %v906_v2, 0.0 }
 0x14b   : > { %v1379_v19 = vadd.f32 %v1378_v16, %v1377_v13  ;;  %v1380_v20 = vpop.f32.mrb[18].mxu0  ;;  %v1415_v21 = vadd.f32 %v1414_v18, %v1413_v14  ;;  %v1416_v22 = vpop.f32.mrb[18].mxu1  ;;  %v911_v7 = vadd.f32 (!%p1222_p11), %v1735_v54, %v885_v63  ;;  %v929_v13 = vmax.f32 (!%p1222_p11), %v907_v3, 0.0 }
 0x14c   : > { %v1381_v24 = vpop.f32.mrb[19].mxu0  ;;  %v1417_v26 = vpop.f32.mrb[19].mxu1  ;;  %v930_v14 = vmax.f32 (!%p1222_p11), %v908_v4, 0.0  ;;  %v932_v18 = vmax.f32 (!%p1222_p11), %v910_v6, 0.0 }
 0x14d   : > { %v813_v27 = vadd.f32 %v1379_v19, %v410_v15  ;;  %v1382_v28 = vadd.f32 %v1381_v24, %v1380_v20  ;;  %v825_v29 = vadd.f32 %v1415_v21, %v422_v17  ;;  %v1418_v30 = vadd.f32 %v1417_v26, %v1416_v22  ;;  %v866_v22 = vld [vmem:[#allocation2 + $0x60] sm:$0xff] (!%p1222_p11) }
 0x14e   : > { %v860_v56 = vld [vmem:[#allocation2 + $0x30] sm:$0xff] (!%p1222_p11)  ;;  %v931_v15 = vmax.f32 (!%p1222_p11), %v909_v5, 0.0  ;;  %v933_v19 = vmax.f32 (!%p1222_p11), %v911_v7, 0.0  ;;  %v1275_v24 = vpack.c.bf16 (!%p1222_p11), %v929_v13, %v928_v12 }
 0x14f   : > { %835 = vst [vmem:[#allocation2 + $0x40] sm:$0xff] %v813_v27  ;;  %v814_v31 = vadd.f32 %v1382_v28, %v411_v23  ;;  %847 = vst [vmem:[#allocation2 + $0xa0] sm:$0xff] %v825_v29  ;;  %v826_v32 = vadd.f32 %v1418_v30, %v423_v25  ;;  %v886_v0 = vmul.f32 (!%p1222_p11), %v1733_v53, %v860_v56  ;;  %v867_v23 = vld [vmem:[#allocation2 + $0x68] sm:$0xff] (!%p1222_p11)  ;;  %v868_v28 = vld [vmem:[#allocation2 + $0x70] sm:$0xff] (!%p1222_p11) }
 0x150   : > { %v861_v57 = vld [vmem:[#allocation2 + $0x38] sm:$0xff] (!%p1222_p11)  ;;  %v1280_v25 = vpack.c.bf16 (!%p1222_p11), %v931_v15, %v930_v14  ;;  %v1285_v30 = vpack.c.bf16 (!%p1222_p11), %v933_v19, %v932_v18  ;;  %1276 = vst [vmem:[%s1832_s3] sm:$0xff] (!%p1222_p11), %v1275_v24   ;;  %v872_v52 = vld [vmem:[#allocation2 + $0x90] sm:$0xff] (!%p1222_p11) }
 0x151   : > { %836 = vst [vmem:[#allocation2 + $0x48] sm:$0xff] %v814_v31  ;;  %v1383_v33 = vpop.f32.mrb[20].mxu0  ;;  %848 = vst [vmem:[#allocation2 + $0xa8] sm:$0xff] %v826_v32  ;;  %v887_v1 = vmul.f32 (!%p1222_p11), %v1733_v53, %v861_v57  ;;  %v912_v8 = vadd.f32 (!%p1222_p11), %v1735_v54, %v886_v0  ;;  %v869_v29 = vld [vmem:[#allocation2 + $0x78] sm:$0xff] (!%p1222_p11)  ;;  %v898_v4 = vmul.f32 (!%p1222_p11), %v1733_v53, %v872_v52 }
 0x152   : > { %v1384_v35 = vpop.f32.mrb[21].mxu0  ;;  %1327 = vst [vmem:[%s1832_s3 + $0x8] sm:$0xff] (!%p1222_p11), %v1280_v25   ;;  %1328 = vst [vmem:[%s1832_s3 + $0x10] sm:$0xff] (!%p1222_p11), %v1285_v30   ;;  %v873_v55 = vld [vmem:[#allocation2 + $0x98] sm:$0xff] (!%p1222_p11) }
 0x153   : > { %v1385_v36 = vadd.f32 %v1384_v35, %v1383_v33  ;;  %v1386_v37 = vpop.f32.mrb[22].mxu0  ;;  %852 = sbr.rel (%p1222_p11) target bundleno = 362 (0x16a), region = 78  ;;  %v913_v9 = vadd.f32 (!%p1222_p11), %v1735_v54, %v887_v1  ;;  %v934_v20 = vmax.f32 (!%p1222_p11), %v912_v8, 0.0  ;;  %v897_v1 = vmul.f32 (!%p1222_p11), %v1733_v53, %v871_v47 }
 0x154   : > { %v1387_v39 = vpop.f32.mrb[23].mxu0  ;;  %v899_v5 = vmul.f32 (!%p1222_p11), %v1733_v53, %v873_v55 }
 0x155   : > { %v815_v40 = vadd.f32 %v1385_v36, %v412_v34  ;;  %v1388_v41 = vadd.f32 %v1387_v39, %v1386_v37  ;;  %v935_v21 = vmax.f32 (!%p1222_p11), %v913_v9, 0.0  ;;  %v892_v36 = vmul.f32 (!%p1222_p11), %v1733_v53, %v866_v22 }
 0x156   : > { %v862_v10 = vld [vmem:[#allocation2 + $0x40] sm:$0xff] (!%p1222_p11)  ;;  %v893_v37 = vmul.f32 (!%p1222_p11), %v1733_v53, %v867_v23  ;;  %v923_v7 = vadd.f32 (!%p1222_p11), %v1735_v54, %v897_v1  ;;  %v925_v12 = vadd.f32 (!%p1222_p11), %v1735_v54, %v899_v5 }
 0x157   : > { %837 = vst [vmem:[#allocation2 + $0x50] sm:$0xff] %v815_v40  ;;  %v816_v42 = vadd.f32 %v1388_v41, %v413_v38  ;;  %v888_v26 = vmul.f32 (!%p1222_p11), %v1733_v53, %v862_v10  ;;  %v1290_v31 = vpack.c.bf16 (!%p1222_p11), %v935_v21, %v934_v20  ;;  %v894_v40 = vmul.f32 (!%p1222_p11), %v1733_v53, %v868_v28  ;;  %v874_v60 = vld [vmem:[#allocation2 + $0xa0] sm:$0xff] (!%p1222_p11) }
 0x158   : > { %v863_v11 = vld [vmem:[#allocation2 + $0x48] sm:$0xff] (!%p1222_p11)  ;;  %v895_v41 = vmul.f32 (!%p1222_p11), %v1733_v53, %v869_v29  ;;  %v918_v45 = vadd.f32 (!%p1222_p11), %v1735_v54, %v892_v36  ;;  %v919_v46 = vadd.f32 (!%p1222_p11), %v1735_v54, %v893_v37  ;;  %v900_v8 = vmul.f32 (!%p1222_p11), %v1733_v53, %v874_v60 }
 0x159   : > { %838 = vst [vmem:[#allocation2 + $0x58] sm:$0xff] %v816_v42  ;;  %v889_v27 = vmul.f32 (!%p1222_p11), %v1733_v53, %v863_v11  ;;  %v914_v34 = vadd.f32 (!%p1222_p11), %v1735_v54, %v888_v26  ;;  %1329 = vst [vmem:[%s1832_s3 + $0x18] sm:$0xff] (!%p1222_p11), %v1290_v31   ;;  %v870_v42 = vld [vmem:[#allocation2 + $0x80] sm:$0xff] (!%p1222_p11)  ;;  %v920_v50 = vadd.f32 (!%p1222_p11), %v1735_v54, %v894_v40  ;;  %v875_v61 = vld [vmem:[#allocation2 + $0xa8] sm:$0xff] (!%p1222_p11)  ;;  %v945_v13 = vmax.f32 (!%p1222_p11), %v923_v7, 0.0 }
 0x15a   : > { %v921_v51 = vadd.f32 %v1735_v54, %v895_v41  ;;  %v940_v57 = vmax.f32 %v918_v45, 0.0  ;;  %v941_v58 = vmax.f32 %v919_v46, 0.0  ;;  %v896_v59 = vmul.f32 %v1733_v53, %v870_v42 }
 0x15b   : > { %v915_v35 = vadd.f32 %v1735_v54, %v889_v27  ;;  %v936_v43 = vmax.f32 %v914_v34, 0.0  ;;  %v942_v63 = vmax.f32 %v920_v50, 0.0  ;;  %v901_v9 = vmul.f32 %v1733_v53, %v875_v61 }
 0x15c   : > { %v943_v0 = vmax.f32 %v921_v51, 0.0  ;;  %v1305_v2 = vpack.c.bf16 %v941_v58, %v940_v57  ;;  %v922_v3 = vadd.f32 %v1735_v54, %v896_v59  ;;  %v924_v11 = vadd.f32 %v1735_v54, %v898_v4 }
 0x15d   : > { %v937_v44 = vmax.f32 %v915_v35, 0.0  ;;  %v926_v14 = vadd.f32 %v1735_v54, %v900_v8  ;;  %v927_v15 = vadd.f32 %v1735_v54, %v901_v9 }
 0x15e   : > { %v864_v16 = vld [vmem:[#allocation2 + $0x50] sm:$0xff]  ;;  %v1310_v6 = vpack.c.bf16 %v943_v0, %v942_v63  ;;  %1332 = vst [vmem:[%s1832_s3 + $0x30] sm:$0xff] %v1305_v2   ;;  %v944_v10 = vmax.f32 %v922_v3, 0.0 }
 0x15f   : > { %v890_v32 = vmul.f32 %v1733_v53, %v864_v16  ;;  %v1295_v56 = vpack.c.bf16 %v937_v44, %v936_v43  ;;  %v946_v16 = vmax.f32 %v924_v11, 0.0  ;;  %v948_v18 = vmax.f32 %v926_v14, 0.0 }
 0x160   : > { %v865_v17 = vld [vmem:[#allocation2 + $0x58] sm:$0xff]  ;;  %1333 = vst [vmem:[%s1832_s3 + $0x38] sm:$0xff] %v1310_v6   ;;  %v949_v19 = vmax.f32 %v927_v15, 0.0 }
 0x161   : > { %v891_v33 = vmul.f32 %v1733_v53, %v865_v17  ;;  %v916_v38 = vadd.f32 %v1735_v54, %v890_v32  ;;  %1330 = vst [vmem:[%s1832_s3 + $0x20] sm:$0xff] %v1295_v56   ;;  %v947_v53 = vmax.f32 %v925_v12, 0.0  ;;  %v1315_v17 = vpack.c.bf16 %v945_v13, %v944_v10 }
 0x162   : > { %v1325_v21 = vpack.c.bf16 %v949_v19, %v948_v18 }
 0x163   : > { %v917_v39 = vadd.f32 %v1735_v54, %v891_v33  ;;  %v938_v48 = vmax.f32 %v916_v38, 0.0  ;;  %v1320_v20 = vpack.c.bf16 %v947_v53, %v946_v16  ;;  %1334 = vst [vmem:[%s1832_s3 + $0x40] sm:$0xff] %v1315_v17  }
 0x164   : > { %1336 = vst [vmem:[%s1832_s3 + $0x50] sm:$0xff] %v1325_v21  }
 0x165   : > { %v939_v49 = vmax.f32 %v917_v39, 0.0  ;;  %1335 = vst [vmem:[%s1832_s3 + $0x48] sm:$0xff] %v1320_v20  }
 0x167   : > { %v1300_v62 = vpack.c.bf16 %v939_v49, %v938_v48 }
 0x169   : > { %1331 = vst [vmem:[%s1832_s3 + $0x28] sm:$0xff] %v1300_v62  }
 0x16a PF: > { %s13_s16 = sadd.s32 1, %s1565_s16   ;;  %s1833_s12 = smov %s1553_s13 }
 0x16b   : > { %p10_p12 = scmp.ge.s32.totalorder %s13_s16, 4   ;;  %s1834_s13 = smov %s1623_s20 }
 0x16c   : > { %s1835_s14 = smov %s1561_s15  ;;  %s1836_s15 = smov %s1838_s17 }
 0x16d   :  { %12 = sbr.rel (!%p10_p12) target bundleno = 3 (0x3), region = 119 }

// kernel: forward.32
= control target key start
LH: loop header
LB: loop body
LE: loop exit
PB: predicated region body
PF: predicated region fallthrough
CT: control target
= control target key end

     0   :  { %v961_v0 = vmov 0.0   ;;  %vm962_vm0 = vmmov 0   ;;  %v409_v20 = vlaneseq  ;;  %s1200_s1 = inlined_call_operand.vmem [shape: bf16[128,128], index: 1, kind: input, shape index: {}]   ;;  %s1201_s0 = inlined_call_operand.vmem [shape: bf16[176,128], index: 0, kind: input, shape index: {}]   ;;  %s1202_s2 = inlined_call_operand.vmem [shape: f32[2,128], index: 2, kind: input, shape index: {}]   ;;  %s1203_s3 = inlined_call_operand.vmem [shape: bf16[176,128], index: 3, kind: input, shape index: {}]   ;;  %s1204_s4 = inlined_call_operand.vmem [shape: bf16[176,128], index: 4, kind: output, shape index: {}]  }
   0x1   :  { %864 = vmatprep.subr.bf16.mxu0 %v961_v0  ;;  %v942_v1 = vld [vmem:[%s1200_s1] sm:$0xff]   ;;  %924 = vmatprep.subr.bf16.mxu1 %v961_v0  ;;  %v943_v2 = vld [vmem:[%s1200_s1 + $0x8] sm:$0xff]   ;;  %v944_v3 = vld [vmem:[%s1200_s1 + $0x10] sm:$0xff]  }
   0x2   :  { %880 = vmatprep.mubr.msk.bf16.mxu0 %vm962_vm0, %v961_v0  ;;  %904 = vmatprep.mubr.msk.bf16.mxu1 %vm962_vm0, %v961_v0  ;;  %v945_v4 = vld [vmem:[%s1200_s1 + $0x18] sm:$0xff]   ;;  %v946_v5 = vld [vmem:[%s1200_s1 + $0x20] sm:$0xff]   ;;  %v947_v6 = vld [vmem:[%s1200_s1 + $0x28] sm:$0xff]   ;;  %v410_v21 = vshrl.u32 %v409_v20, 7 }
   0x3   :  { %865 = vmatpush3.bf16.msra.mxu0 %v942_v1  ;;  %932 = vmatpush3.bf16.msra.mxu1 %v942_v1  ;;  %v948_v7 = vld [vmem:[%s1200_s1 + $0x30] sm:$0xff]   ;;  %v949_v8 = vld [vmem:[%s1200_s1 + $0x38] sm:$0xff]   ;;  %v950_v9 = vld [vmem:[%s1201_s0] sm:$0xff]  }
   0x4   :  { %866 = vmatprep.subr.bf16.mxu0 %v961_v0  ;;  %925 = vmatprep.subr.bf16.mxu1 %v961_v0  ;;  %v951_v10 = vld [vmem:[%s1201_s0 + $0x30] sm:$0xff]   ;;  %v952_v11 = vld [vmem:[%s1201_s0 + $0x8] sm:$0xff]   ;;  %v953_v12 = vld [vmem:[%s1201_s0 + $0x38] sm:$0xff]   ;;  %v411_v22 = vsub.s32 0, %v410_v21  ;;  %v437_v24 = vsub.s32 1, %v410_v21 }
   0x5   :  { %v954_v13 = vld [vmem:[%s1201_s0 + $0x10] sm:$0xff]   ;;  %v955_v14 = vld [vmem:[%s1201_s0 + $0x40] sm:$0xff]   ;;  %v956_v15 = vld [vmem:[%s1201_s0 + $0x18] sm:$0xff]  }
   0x6   :  { %v957_v16 = vld [vmem:[%s1201_s0 + $0x48] sm:$0xff]   ;;  %v958_v17 = vld [vmem:[%s1201_s0 + $0x20] sm:$0xff]   ;;  %v959_v18 = vld [vmem:[%s1201_s0 + $0x50] sm:$0xff]  }
   0x7   :  { %867 = vmatpush3.bf16.msra.mxu0 %v943_v2  ;;  %933 = vmatpush3.bf16.msra.mxu1 %v943_v2  ;;  %v960_v19 = vld [vmem:[%s1201_s0 + $0x28] sm:$0xff]   ;;  %v386_v23 = vld [vmem:[%s1202_s2] sm:$0x3]  ;;  %v830_v27 = vld [vmem:[%s1203_s3 + $0x30] sm:$0xff]  }
   0x8   :  { %868 = vmatprep.subr.bf16.mxu0 %v961_v0  ;;  %926 = vmatprep.subr.bf16.mxu1 %v961_v0  ;;  %v1086_v25 = vrot.slane %v386_v23, %v411_v22  ;;  %v1088_v26 = vrot.slane %v386_v23, %v437_v24  ;;  %v727_v31 = vld [vmem:[%s1203_s3] sm:$0xff]   ;;  %v752_v36 = vunpack.c.l.bf16 %v830_v27  ;;  %v753_v46 = vunpack.c.h.bf16 %v830_v27  ;;  %v831_v62 = vld [vmem:[%s1203_s3 + $0x38] sm:$0xff]  }
   0x9   :  { %v728_v44 = vunpack.c.l.bf16 %v727_v31  ;;  %v729_v45 = vunpack.c.h.bf16 %v727_v31 }
   0xb   :  { %869 = vmatpush3.bf16.msra.mxu0 %v944_v3  ;;  %934 = vmatpush3.bf16.msra.mxu1 %v944_v3 }
   0xc   :  { %870 = vmatprep.subr.bf16.mxu0 %v961_v0  ;;  %927 = vmatprep.subr.bf16.mxu1 %v961_v0 }
   0xf   :  { %871 = vmatpush3.bf16.msra.mxu0 %v945_v4  ;;  %935 = vmatpush3.bf16.msra.mxu1 %v945_v4 }
  0x10   :  { %872 = vmatprep.subr.bf16.mxu0 %v961_v0  ;;  %928 = vmatprep.subr.bf16.mxu1 %v961_v0 }
  0x13   :  { %873 = vmatpush3.bf16.msra.mxu0 %v946_v5  ;;  %936 = vmatpush3.bf16.msra.mxu1 %v946_v5 }
  0x14   :  { %874 = vmatprep.subr.bf16.mxu0 %v961_v0  ;;  %929 = vmatprep.subr.bf16.mxu1 %v961_v0 }
  0x17   :  { %875 = vmatpush3.bf16.msra.mxu0 %v947_v6  ;;  %937 = vmatpush3.bf16.msra.mxu1 %v947_v6 }
  0x18   :  { %876 = vmatprep.subr.bf16.mxu0 %v961_v0  ;;  %930 = vmatprep.subr.bf16.mxu1 %v961_v0 }
  0x1b   :  { %877 = vmatpush3.bf16.msra.mxu0 %v948_v7  ;;  %938 = vmatpush3.bf16.msra.mxu1 %v948_v7 }
  0x1c   :  { %878 = vmatprep.subr.bf16.mxu0 %v961_v0  ;;  %931 = vmatprep.subr.bf16.mxu1 %v961_v0 }
  0x1f   :  { %879 = vmatpush3.bf16.msra.mxu0 %v949_v8  ;;  %939 = vmatpush3.bf16.msra.mxu1 %v949_v8 }
  0x22   :  { %881 = vmatmul.mubr.bf16.vlgmr.msra.gmra.mrb[0].mxu0 %v950_v9  ;;  %905 = vmatmul.mubr.bf16.vlgmr.msra.gmra.mrb[0].mxu1 %v951_v10  ;;  %v756_v10 = vunpack.c.l.bf16 %v831_v62 }
  0x23   :  { %884 = vmatprep.mubr.msk.bf16.mxu0 %vm962_vm0, %v961_v0  ;;  %908 = vmatprep.mubr.msk.bf16.mxu1 %vm962_vm0, %v961_v0 }
  0x2a   :  { %885 = vmatmul.mubr.bf16.gmra.mrb[4].mxu0 %v952_v11  ;;  %909 = vmatmul.mubr.bf16.gmra.mrb[4].mxu1 %v953_v12 }
  0x2b   :  { %888 = vmatprep.mubr.msk.bf16.mxu0 %vm962_vm0, %v961_v0  ;;  %912 = vmatprep.mubr.msk.bf16.mxu1 %vm962_vm0, %v961_v0 }
  0x32   :  { %889 = vmatmul.mubr.bf16.gmra.mrb[8].mxu0 %v954_v13  ;;  %913 = vmatmul.mubr.bf16.gmra.mrb[8].mxu1 %v955_v14 }
  0x33   :  { %892 = vmatprep.mubr.msk.bf16.mxu0 %vm962_vm0, %v961_v0  ;;  %916 = vmatprep.mubr.msk.bf16.mxu1 %vm962_vm0, %v961_v0 }
  0x3a   :  { %893 = vmatmul.mubr.bf16.gmra.mrb[12].mxu0 %v956_v15  ;;  %917 = vmatmul.mubr.bf16.gmra.mrb[12].mxu1 %v957_v16 }
  0x3b   :  { %896 = vmatprep.mubr.msk.bf16.mxu0 %vm962_vm0, %v961_v0  ;;  %920 = vmatprep.mubr.msk.bf16.mxu1 %vm962_vm0, %v961_v0 }
  0x42   :  { %897 = vmatmul.mubr.bf16.gmra.mrb[16].mxu0 %v958_v17  ;;  %921 = vmatmul.mubr.bf16.gmra.mrb[16].mxu1 %v959_v18  ;;  %v757_v18 = vunpack.c.h.bf16 %v831_v62 }
  0x43   :  { %900 = vmatprep.mubr.msk.bf16.mxu0 %vm962_vm0, %v961_v0  ;;  %v825_v0 = vld [vmem:[%s1203_s3 + $0x8] sm:$0xff]  }
  0x44   :  { %v732_v13 = vunpack.c.l.bf16 %v825_v0  ;;  %v733_v15 = vunpack.c.h.bf16 %v825_v0  ;;  %v833_v0 = vld [vmem:[%s1203_s3 + $0x48] sm:$0xff]  }
  0x4a   :  { %901 = vmatmul.mubr.bf16.gmra.mrb[20].mxu0 %v960_v19 }
  0xf5   :  { %v252_v28 = vpop.f32.mrb[0].mxu0  ;;  %v300_v29 = vpop.f32.mrb[0].mxu1 }
  0xf6   :  { %v413_v30 = vmul.f32 %v1086_v25, %v252_v28  ;;  %v882_v32 = vpop.f32.mrb[1].mxu0  ;;  %v425_v33 = vmul.f32 %v1086_v25, %v300_v29  ;;  %v906_v34 = vpop.f32.mrb[1].mxu1  ;;  %v826_v29 = vld [vmem:[%s1203_s3 + $0x10] sm:$0xff]  }
  0xf7   :  { %v255_v35 = vpop.f32.mrb[2].mxu0  ;;  %v303_v37 = vpop.f32.mrb[2].mxu1  ;;  %v832_v32 = vld [vmem:[%s1203_s3 + $0x40] sm:$0xff]  }
  0xf8   :  { %v439_v38 = vadd.f32 %v1088_v26, %v413_v30  ;;  %v414_v39 = vmul.f32 %v1086_v25, %v255_v35  ;;  %v883_v40 = vpop.f32.mrb[3].mxu0  ;;  %v451_v41 = vadd.f32 %v1088_v26, %v425_v33  ;;  %v426_v42 = vmul.f32 %v1086_v25, %v303_v37  ;;  %v907_v43 = vpop.f32.mrb[3].mxu1 }
  0xfa   :  { %v461_v47 = vmax.f32 %v439_v38, 0.0  ;;  %v440_v48 = vadd.f32 %v1088_v26, %v414_v39  ;;  %v473_v49 = vmax.f32 %v451_v41, 0.0  ;;  %v452_v50 = vadd.f32 %v1088_v26, %v426_v42 }
  0xfc   :  { %v462_v51 = vmax.f32 %v440_v48, 0.0  ;;  %v539_v52 = vadd.f32 %v752_v36, %v473_v49  ;;  %v474_v53 = vmax.f32 %v452_v50, 0.0  ;;  %v527_v54 = vadd.f32 %v728_v44, %v461_v47 }
  0xfd   :  { %v260_v55 = vpop.f32.mrb[4].mxu0  ;;  %v308_v56 = vpop.f32.mrb[4].mxu1  ;;  %v736_v44 = vunpack.c.l.bf16 %v826_v29  ;;  %v737_v49 = vunpack.c.h.bf16 %v826_v29 }
  0xfe   :  { %v528_v57 = vadd.f32 %v729_v45, %v462_v51  ;;  %v540_v58 = vadd.f32 %v753_v46, %v474_v53  ;;  %v415_v59 = vmul.f32 %v1086_v25, %v260_v55  ;;  %v886_v60 = vpop.f32.mrb[5].mxu0  ;;  %v427_v61 = vmul.f32 %v1086_v25, %v308_v56  ;;  %v910_v63 = vpop.f32.mrb[5].mxu1 }
  0xff   :  { %v263_v1 = vpop.f32.mrb[6].mxu0  ;;  %v311_v2 = vpop.f32.mrb[6].mxu1  ;;  %v760_v45 = vunpack.c.l.bf16 %v832_v32 }
 0x100   :  { %v773_v3 = vpack.c.bf16 %v528_v57, %v527_v54  ;;  %v803_v4 = vpack.c.bf16 %v540_v58, %v539_v52  ;;  %v441_v5 = vadd.f32 %v1088_v26, %v415_v59  ;;  %v416_v6 = vmul.f32 %v1086_v25, %v263_v1  ;;  %v887_v7 = vpop.f32.mrb[7].mxu0  ;;  %v911_v8 = vpop.f32.mrb[7].mxu1 }
 0x101   :  { %v453_v9 = vadd.f32 %v1088_v26, %v427_v61  ;;  %v428_v11 = vmul.f32 %v1086_v25, %v311_v2  ;;  %v761_v52 = vunpack.c.h.bf16 %v832_v32  ;;  %v827_v61 = vld [vmem:[%s1203_s3 + $0x18] sm:$0xff]  }
 0x102   :  { %774 = vst [vmem:[%s1204_s4] sm:$0xff] %v773_v3   ;;  %840 = vst [vmem:[%s1204_s4 + $0x30] sm:$0xff] %v803_v4   ;;  %v463_v12 = vmax.f32 %v441_v5, 0.0  ;;  %v442_v14 = vadd.f32 %v1088_v26, %v416_v6 }
 0x103   :  { %v475_v16 = vmax.f32 %v453_v9, 0.0  ;;  %v454_v17 = vadd.f32 %v1088_v26, %v428_v11 }
 0x104   :  { %v464_v19 = vmax.f32 %v442_v14, 0.0  ;;  %v529_v24 = vadd.f32 %v732_v13, %v463_v12  ;;  %v740_v12 = vunpack.c.l.bf16 %v827_v61  ;;  %v764_v13 = vunpack.c.l.bf16 %v833_v0 }
 0x105   :  { %v541_v20 = vadd.f32 %v756_v10, %v475_v16  ;;  %v476_v21 = vmax.f32 %v454_v17, 0.0  ;;  %v268_v22 = vpop.f32.mrb[8].mxu0  ;;  %v316_v23 = vpop.f32.mrb[8].mxu1  ;;  %v741_v17 = vunpack.c.h.bf16 %v827_v61 }
 0x106   :  { %v530_v27 = vadd.f32 %v733_v15, %v464_v19  ;;  %v417_v28 = vmul.f32 %v1086_v25, %v268_v22  ;;  %v890_v30 = vpop.f32.mrb[9].mxu0  ;;  %v429_v31 = vmul.f32 %v1086_v25, %v316_v23  ;;  %v914_v33 = vpop.f32.mrb[9].mxu1 }
 0x107   :  { %v542_v34 = vadd.f32 %v757_v18, %v476_v21  ;;  %v271_v35 = vpop.f32.mrb[10].mxu0  ;;  %v319_v36 = vpop.f32.mrb[10].mxu1 }
 0x108   :  { %v778_v37 = vpack.c.bf16 %v530_v27, %v529_v24  ;;  %v443_v38 = vadd.f32 %v1088_v26, %v417_v28  ;;  %v418_v39 = vmul.f32 %v1086_v25, %v271_v35  ;;  %v891_v40 = vpop.f32.mrb[11].mxu0  ;;  %v455_v41 = vadd.f32 %v1088_v26, %v429_v31  ;;  %v915_v42 = vpop.f32.mrb[11].mxu1  ;;  %v828_v31 = vld [vmem:[%s1203_s3 + $0x20] sm:$0xff]  }
 0x109   :  { %v808_v43 = vpack.c.bf16 %v542_v34, %v541_v20  ;;  %v430_v46 = vmul.f32 %v1086_v25, %v319_v36  ;;  %v765_v20 = vunpack.c.h.bf16 %v833_v0  ;;  %v834_v34 = vld [vmem:[%s1203_s3 + $0x50] sm:$0xff]   ;;  %v829_v0 = vld [vmem:[%s1203_s3 + $0x28] sm:$0xff]  }
 0x10a   :  { %835 = vst [vmem:[%s1204_s4 + $0x8] sm:$0xff] %v778_v37   ;;  %v465_v47 = vmax.f32 %v443_v38, 0.0  ;;  %v444_v48 = vadd.f32 %v1088_v26, %v418_v39  ;;  %v477_v50 = vmax.f32 %v455_v41, 0.0 }
 0x10b   :  { %841 = vst [vmem:[%s1204_s4 + $0x38] sm:$0xff] %v808_v43   ;;  %v456_v51 = vadd.f32 %v1088_v26, %v430_v46  ;;  %v744_v46 = vunpack.c.l.bf16 %v828_v31 }
 0x10c   :  { %v466_v53 = vmax.f32 %v444_v48, 0.0  ;;  %v543_v54 = vadd.f32 %v760_v45, %v477_v50  ;;  %v531_v58 = vadd.f32 %v736_v44, %v465_v47  ;;  %v768_v47 = vunpack.c.l.bf16 %v834_v34 }
 0x10d   :  { %v478_v55 = vmax.f32 %v456_v51, 0.0  ;;  %v276_v56 = vpop.f32.mrb[12].mxu0  ;;  %v324_v57 = vpop.f32.mrb[12].mxu1  ;;  %v745_v51 = vunpack.c.h.bf16 %v828_v31 }
 0x10e   :  { %v532_v59 = vadd.f32 %v737_v49, %v466_v53  ;;  %v419_v60 = vmul.f32 %v1086_v25, %v276_v56  ;;  %v894_v62 = vpop.f32.mrb[13].mxu0  ;;  %v431_v63 = vmul.f32 %v1086_v25, %v324_v57  ;;  %v918_v1 = vpop.f32.mrb[13].mxu1 }
 0x10f   :  { %v544_v2 = vadd.f32 %v761_v52, %v478_v55  ;;  %v279_v3 = vpop.f32.mrb[14].mxu0  ;;  %v327_v4 = vpop.f32.mrb[14].mxu1 }
 0x110   :  { %v783_v5 = vpack.c.bf16 %v532_v59, %v531_v58  ;;  %v445_v6 = vadd.f32 %v1088_v26, %v419_v60  ;;  %v420_v7 = vmul.f32 %v1086_v25, %v279_v3  ;;  %v895_v8 = vpop.f32.mrb[15].mxu0  ;;  %v457_v9 = vadd.f32 %v1088_v26, %v431_v63  ;;  %v919_v10 = vpop.f32.mrb[15].mxu1 }
 0x111   :  { %v813_v11 = vpack.c.bf16 %v544_v2, %v543_v54  ;;  %v432_v14 = vmul.f32 %v1086_v25, %v327_v4  ;;  %v769_v54 = vunpack.c.h.bf16 %v834_v34  ;;  %v748_v8 = vunpack.c.l.bf16 %v829_v0 }
 0x112   :  { %836 = vst [vmem:[%s1204_s4 + $0x10] sm:$0xff] %v783_v5   ;;  %v467_v15 = vmax.f32 %v445_v6, 0.0  ;;  %v446_v16 = vadd.f32 %v1088_v26, %v420_v7  ;;  %v479_v18 = vmax.f32 %v457_v9, 0.0  ;;  %v749_v10 = vunpack.c.h.bf16 %v829_v0 }
 0x113   :  { %842 = vst [vmem:[%s1204_s4 + $0x40] sm:$0xff] %v813_v11   ;;  %v458_v19 = vadd.f32 %v1088_v26, %v432_v14 }
 0x114   :  { %v468_v21 = vmax.f32 %v446_v16, 0.0  ;;  %v545_v22 = vadd.f32 %v764_v13, %v479_v18  ;;  %v533_v28 = vadd.f32 %v740_v12, %v467_v15 }
 0x115   :  { %v480_v23 = vmax.f32 %v458_v19, 0.0  ;;  %v284_v24 = vpop.f32.mrb[16].mxu0  ;;  %v332_v27 = vpop.f32.mrb[16].mxu1 }
 0x116   :  { %v534_v29 = vadd.f32 %v741_v17, %v468_v21  ;;  %v421_v30 = vmul.f32 %v1086_v25, %v284_v24  ;;  %v898_v32 = vpop.f32.mrb[17].mxu0  ;;  %v433_v33 = vmul.f32 %v1086_v25, %v332_v27  ;;  %v922_v35 = vpop.f32.mrb[17].mxu1 }
 0x117   :  { %v546_v36 = vadd.f32 %v765_v20, %v480_v23  ;;  %v287_v37 = vpop.f32.mrb[18].mxu0  ;;  %v335_v38 = vpop.f32.mrb[18].mxu1 }
 0x118   :  { %v788_v39 = vpack.c.bf16 %v534_v29, %v533_v28  ;;  %v447_v40 = vadd.f32 %v1088_v26, %v421_v30  ;;  %v422_v41 = vmul.f32 %v1086_v25, %v287_v37  ;;  %v899_v42 = vpop.f32.mrb[19].mxu0  ;;  %v459_v43 = vadd.f32 %v1088_v26, %v433_v33  ;;  %v923_v44 = vpop.f32.mrb[19].mxu1 }
 0x119   :  { %v818_v45 = vpack.c.bf16 %v546_v36, %v545_v22  ;;  %v434_v48 = vmul.f32 %v1086_v25, %v335_v38 }
 0x11a   :  { %837 = vst [vmem:[%s1204_s4 + $0x18] sm:$0xff] %v788_v39   ;;  %v469_v49 = vmax.f32 %v447_v40, 0.0  ;;  %v448_v50 = vadd.f32 %v1088_v26, %v422_v41  ;;  %v481_v52 = vmax.f32 %v459_v43, 0.0 }
 0x11b   :  { %843 = vst [vmem:[%s1204_s4 + $0x48] sm:$0xff] %v818_v45   ;;  %v460_v53 = vadd.f32 %v1088_v26, %v434_v48 }
 0x11c   :  { %v470_v55 = vmax.f32 %v448_v50, 0.0  ;;  %v547_v56 = vadd.f32 %v768_v47, %v481_v52  ;;  %v535_v59 = vadd.f32 %v744_v46, %v469_v49 }
 0x11d   :  { %v482_v57 = vmax.f32 %v460_v53, 0.0  ;;  %v292_v58 = vpop.f32.mrb[20].mxu0 }
 0x11e   :  { %v536_v60 = vadd.f32 %v745_v51, %v470_v55  ;;  %v423_v61 = vmul.f32 %v1086_v25, %v292_v58  ;;  %v902_v62 = vpop.f32.mrb[21].mxu0 }
 0x11f   :  { %v548_v63 = vadd.f32 %v769_v54, %v482_v57  ;;  %v295_v1 = vpop.f32.mrb[22].mxu0 }
 0x120   :  { %v793_v2 = vpack.c.bf16 %v536_v60, %v535_v59  ;;  %v449_v3 = vadd.f32 %v1088_v26, %v423_v61  ;;  %v424_v4 = vmul.f32 %v1086_v25, %v295_v1  ;;  %v903_v5 = vpop.f32.mrb[23].mxu0 }
 0x121   :  { %v823_v6 = vpack.c.bf16 %v548_v63, %v547_v56 }
 0x122   :  { %838 = vst [vmem:[%s1204_s4 + $0x20] sm:$0xff] %v793_v2   ;;  %v471_v7 = vmax.f32 %v449_v3, 0.0  ;;  %v450_v9 = vadd.f32 %v1088_v26, %v424_v4 }
 0x123   :  { %844 = vst [vmem:[%s1204_s4 + $0x50] sm:$0xff] %v823_v6  }
 0x124   :  { %v472_v11 = vmax.f32 %v450_v9, 0.0  ;;  %v537_v12 = vadd.f32 %v748_v8, %v471_v7 }
 0x126   :  { %v538_v13 = vadd.f32 %v749_v10, %v472_v11 }
 0x128   :  { %v798_v14 = vpack.c.bf16 %v538_v13, %v537_v12 }
 0x12a   :  { %839 = vst [vmem:[%s1204_s4 + $0x28] sm:$0xff] %v798_v14  }

// kernel: forward.33
= control target key start
LH: loop header
LB: loop body
LE: loop exit
PB: predicated region body
PF: predicated region fallthrough
CT: control target
= control target key end

     0   :  { %s352_s6 = smov 0   ;;  %s354_s7 = smov 0   ;;  %s385_s0 = inlined_call_operand.vmem [shape: bf16[2,4,2,4,256], index: 0, kind: input, shape index: {}]   ;;  %s386_s1 = inlined_call_operand.vmem [shape: bf16[2,4,4,128], index: 1, kind: output, shape index: {}]  }
   0x1   :  { %s356_s8 = smov 0  }
   0x2 LB: > { %s23_s9 = sadd.s32 1, %s336_s7  ;;  %p285_p0 = scmp.ge.s32.totalorder %s340_s8, 1  ;;  %s340_s8 = sphi %s356_s8, %s11_s8   ;;  %s336_s7 = sphi %s354_s7, %s388_s7   ;;  %s332_s6 = sphi %s352_s6, %s387_s6  }
   0x3   : > { %p25_p1 = scmp.ge.s32.totalorder %s23_s9, 2  ;;  %p109_p2 = scmp.lt.s32.totalorder %s340_s8, 3 }
   0x5   : > { %s390_s9 = smov (%p25_p1, %s23_s9), 0  ;;  %p110_p3 = pnand %p285_p0, %p109_p2 }
   0x6   : > { %p139_p4 = scmp.lt.s32.totalorder (!%p110_p3), %s332_s6, 1 }
   0x7   : > { %113 = sbr.rel (%p110_p3) target bundleno = 27 (0x1b), region = 24 }
   0xe   : > { %s392_s6 = smov (!%p139_p4, %s332_s6), 1 }
   0xf   : > { %s292_s10 = sshll.u32 %s392_s6, 5  ;;  %s293_s14 = sshll.u32 %s392_s6, 3 }
  0x10   : > { %s147_s13 = scalar_lea.vmem %s385_s0, %s292_s10  ;;  %s157_s17 = scalar_lea.vmem %s386_s1, %s293_s14 }
  0x11   : > { %v159_v0 = vld [vmem:[%s147_s13] sm:$0xf]  ;;  %v160_v1 = vld [vmem:[%s147_s13 + $0x4] sm:$0xf]  ;;  %v161_v2 = vld [vmem:[%s147_s13 + $0x8] sm:$0xf] }
  0x12   : > { %v167_v3 = vmax.bf16 %v160_v1, %v159_v0  ;;  %v162_v4 = vld [vmem:[%s147_s13 + $0xc] sm:$0xf]  ;;  %v163_v5 = vld [vmem:[%s147_s13 + $0x10] sm:$0xf]  ;;  %v164_v6 = vld [vmem:[%s147_s13 + $0x14] sm:$0xf] }
  0x13   : > { %v168_v7 = vmax.bf16 %v162_v4, %v161_v2  ;;  %v169_v8 = vmax.bf16 %v164_v6, %v163_v5  ;;  %v165_v9 = vld [vmem:[%s147_s13 + $0x18] sm:$0xf]  ;;  %v166_v10 = vld [vmem:[%s147_s13 + $0x1c] sm:$0xf] }
  0x14   : > { %v175_v11 = vrot.slane %v167_v3, 2  ;;  %v170_v12 = vmax.bf16 %v166_v10, %v165_v9 }
  0x15   : > { %v176_v13 = vrot.slane %v168_v7, 2  ;;  %v177_v14 = vrot.slane %v169_v8, 2 }
  0x16   : > { %v183_v15 = vmax.bf16 %v175_v11, %v167_v3  ;;  %v178_v16 = vrot.slane %v170_v12, 2 }
  0x17   : > { %v184_v17 = vmax.bf16 %v176_v13, %v168_v7  ;;  %v185_v18 = vmax.bf16 %v177_v14, %v169_v8 }
  0x18   : > { %187 = vst [vmem:[%s157_s17] sm:$0x3] %v183_v15  ;;  %v186_v19 = vmax.bf16 %v178_v16, %v170_v12 }
  0x19   : > { %188 = vst [vmem:[%s157_s17 + $0x2] sm:$0x3] %v184_v17  ;;  %189 = vst [vmem:[%s157_s17 + $0x4] sm:$0x3] %v185_v18 }
  0x1a   : > { %190 = vst [vmem:[%s157_s17 + $0x6] sm:$0x3] %v186_v19 }
  0x1b PF: > { %s11_s8 = sadd.s32 1, %s340_s8   ;;  %s387_s6 = smov %s336_s7 }
  0x1c   : > { %p8_p5 = scmp.ge.s32.totalorder %s11_s8, 4   ;;  %s388_s7 = smov %s390_s9 }
  0x1e   :  { %10 = sbr.rel (!%p8_p5) target bundleno = 2 (0x2), region = 54 }

// kernel: forward.34
= control target key start
LH: loop header
LB: loop body
LE: loop exit
PB: predicated region body
PF: predicated region fallthrough
CT: control target
= control target key end

     0   :  { %v172_v10 = vlaneseq  ;;  %s344_s1 = inlined_call_operand.vmem [shape: bf16[128,128], index: 1, kind: input, shape index: {}]   ;;  %s345_s0 = inlined_call_operand.vmem [shape: bf16[32,128], index: 0, kind: input, shape index: {}]   ;;  %s346_s2 = inlined_call_operand.vmem [shape: f32[2,128], index: 2, kind: input, shape index: {}]   ;;  %s347_s3 = inlined_call_operand.vmem [shape: bf16[32,128], index: 3, kind: output, shape index: {}]  }
   0x1   :  { %v275_v0 = vld [vmem:[%s344_s1] sm:$0xff]   ;;  %v276_v1 = vld [vmem:[%s344_s1 + $0x8] sm:$0xff]   ;;  %v277_v2 = vld [vmem:[%s344_s1 + $0x10] sm:$0xff]  }
   0x2   :  { %255 = vmatprep.subr.bf16.mxu0 %v275_v0  ;;  %v278_v3 = vld [vmem:[%s344_s1 + $0x18] sm:$0xff]   ;;  %v283_v4 = vld [vmem:[%s345_s0] sm:$0xff]   ;;  %v280_v6 = vld [vmem:[%s344_s1 + $0x28] sm:$0xff]   ;;  %v173_v11 = vshrl.u32 %v172_v10, 7 }
   0x3   :  { %256 = vmatpush3.bf16.msra.mxu0 %v275_v0  ;;  %271 = vmatprep.mubr.bf16.mxu0 %v283_v4  ;;  %v279_v5 = vld [vmem:[%s344_s1 + $0x20] sm:$0xff]   ;;  %v281_v7 = vld [vmem:[%s344_s1 + $0x30] sm:$0xff]   ;;  %v282_v8 = vld [vmem:[%s344_s1 + $0x38] sm:$0xff]  }
   0x4   :  { %257 = vmatprep.subr.bf16.mxu0 %v276_v1  ;;  %v284_v9 = vld [vmem:[%s345_s0 + $0x8] sm:$0xff]   ;;  %v174_v12 = vsub.s32 0, %v173_v11  ;;  %v167_v13 = vld [vmem:[%s346_s2] sm:$0x3]  ;;  %v182_v14 = vsub.s32 1, %v173_v11 }
   0x6   :  { %v175_v15 = vrot.slane %v167_v13, %v174_v12  ;;  %v183_v16 = vrot.slane %v167_v13, %v182_v14 }
   0x7   :  { %258 = vmatpush3.bf16.msra.mxu0 %v276_v1 }
   0x8   :  { %259 = vmatprep.subr.bf16.mxu0 %v277_v2 }
   0xb   :  { %260 = vmatpush3.bf16.msra.mxu0 %v277_v2 }
   0xc   :  { %261 = vmatprep.subr.bf16.mxu0 %v278_v3 }
   0xf   :  { %262 = vmatpush3.bf16.msra.mxu0 %v278_v3 }
  0x10   :  { %263 = vmatprep.subr.bf16.mxu0 %v279_v5 }
  0x13   :  { %264 = vmatpush3.bf16.msra.mxu0 %v279_v5 }
  0x14   :  { %265 = vmatprep.subr.bf16.mxu0 %v280_v6 }
  0x17   :  { %266 = vmatpush3.bf16.msra.mxu0 %v280_v6 }
  0x18   :  { %267 = vmatprep.subr.bf16.mxu0 %v281_v7 }
  0x1b   :  { %268 = vmatpush3.bf16.msra.mxu0 %v281_v7 }
  0x1c   :  { %269 = vmatprep.subr.bf16.mxu0 %v282_v8 }
  0x1f   :  { %270 = vmatpush3.bf16.msra.mxu0 %v282_v8 }
  0x22   :  { %272 = vmatmul.mubr.bf16.vlgmr.msra.gmra.mrb[0].mxu0 %v284_v9 }
  0xf5   :  { %v273_v17 = vpop.f32.mrb[0].mxu0 }
  0xf6   :  { %v178_v18 = vmul.f32 %v273_v17, %v175_v15  ;;  %v141_v19 = vpop.f32.mrb[1].mxu0 }
  0xf7   :  { %v176_v20 = vmul.f32 %v175_v15, %v141_v19  ;;  %v274_v21 = vpop.f32.mrb[2].mxu0 }
  0xf8   :  { %v186_v22 = vadd.f32 %v183_v16, %v178_v18  ;;  %v179_v23 = vmul.f32 %v274_v21, %v175_v15  ;;  %v144_v24 = vpop.f32.mrb[3].mxu0 }
  0xf9   :  { %v184_v25 = vadd.f32 %v183_v16, %v176_v20  ;;  %v177_v26 = vmul.f32 %v175_v15, %v144_v24 }
  0xfa   :  { %v187_v27 = vadd.f32 %v183_v16, %v179_v23  ;;  %v190_v29 = vmax.f32 %v186_v22, 0.0 }
  0xfb   :  { %v185_v28 = vadd.f32 %v183_v16, %v177_v26  ;;  %v188_v31 = vmax.f32 %v184_v25, 0.0 }
  0xfc   :  { %v191_v30 = vmax.f32 %v187_v27, 0.0 }
  0xfd   :  { %v189_v32 = vmax.f32 %v185_v28, 0.0 }
  0xfe   :  { %v242_v33 = vpack.c.bf16 %v191_v30, %v190_v29 }
  0xff   :  { %v237_v34 = vpack.c.bf16 %v189_v32, %v188_v31 }
 0x100   :  { %244 = vst [vmem:[%s347_s3 + $0x8] sm:$0xff] %v242_v33  }
 0x101   :  { %238 = vst [vmem:[%s347_s3] sm:$0xff] %v237_v34  }

// kernel: forward.35
= control target key start
LH: loop header
LB: loop body
LE: loop exit
PB: predicated region body
PF: predicated region fallthrough
CT: control target
= control target key end

     0   :  { %s913_s12 = smov 0   ;;  %s915_s13 = smov 0   ;;  %s1013_s0 = inlined_call_operand.vmem [shape: bf16[32,768], index: 0, kind: input, shape index: {}]   ;;  %s1014_s1 = inlined_call_operand.vmem [shape: bf16[768,128], index: 1, kind: input, shape index: {}]   ;;  %s1015_s2 = inlined_call_operand.vmem [shape: f32[2,128], index: 2, kind: input, shape index: {}]   ;;  %s1016_s3 = inlined_call_operand.vmem [shape: bf16[32,128], index: 3, kind: output, shape index: {}]  }
   0x1   :  { %s917_s14 = smov 0   ;;  %s919_s15 = smov 0  }
   0x2   :  { %s921_s16 = smov 0  }
   0x3 LB: > { %s25_s17 = sadd.s32 1, %s886_s15  ;;  %p48_p1 = scmp.ne.s32.totalorder %s878_s13, %s874_s12  ;;  %s890_s16 = sphi %s921_s16, %s13_s16   ;;  %s886_s15 = sphi %s919_s15, %s1020_s15   ;;  %s882_s14 = sphi %s917_s14, %s1019_s14   ;;  %s878_s13 = sphi %s915_s13, %s1018_s13   ;;  %s874_s12 = sphi %s913_s12, %s1017_s12  }
   0x4   : > { %p26_p0 = scmp.ge.s32.totalorder %s25_s17, 3  ;;  %p49_p2 = scmp.eq.s32.totalorder %s890_s16, 0 }
   0x5   : > { %s41_s19 = sadd.s32 1, %s878_s13  ;;  %p691_p5 = scmp.ge.s32.totalorder %s890_s16, 3 }
   0x6   : > { %s1022_s17 = smov (%p26_p0, %s25_s17), 0  ;;  %p50_p3 = por %p49_p2, %p48_p1 }
   0x7   : > { %s37_s18 = ssub.s32 %s886_s15, %s1022_s17  ;;  %163 = sbr.rel (%p691_p5) target bundleno = 21 (0x15), region = 20 }
   0x8   : > { %p39_p4 = scmp.eq.s32.totalorder %s37_s18, 0 }
   0xa   : > { %s948_s20 = scalar_select %p39_p4, %s878_s13, %s41_s19  }
   0xe   : > { %166 = sbr.rel (!%p50_p3) target bundleno = 21 (0x15), region = 24  ;;  %s168_s21 = sand.u32 (%p50_p3), 1, %s878_s13  }
   0xf   : > { %s729_s22 = sshll.u32 (%p50_p3), %s886_s15, 3  ;;  %s692_s23 = sshll.u32 (%p50_p3), %s168_s21, 5 }
  0x10   : > { %s176_s26 = scalar_lea.vmem (%p50_p3), %s1013_s0, %s729_s22  ;;  %s170_s27 = scalar_lea.vmem (%p50_p3), [#allocation3], %s692_s23 }
  0x11   : > { %v210_v0 = vld [vmem:[%s176_s26] sm:$0xff] (%p50_p3)  ;;  %v212_v1 = vld [vmem:[%s176_s26 + $0x18] sm:$0xff] (%p50_p3)  ;;  %v214_v2 = vld [vmem:[%s176_s26 + $0x30] sm:$0xff] (%p50_p3) }
  0x12   : > { %211 = vst [vmem:[%s170_s27] sm:$0xff] (%p50_p3), %v210_v0  ;;  %213 = vst [vmem:[%s170_s27 + $0x8] sm:$0xff] (%p50_p3), %v212_v1  ;;  %v216_v3 = vld [vmem:[%s176_s26 + $0x48] sm:$0xff] (%p50_p3) }
  0x13   : > { %215 = vst [vmem:[%s170_s27 + $0x10] sm:$0xff] (%p50_p3), %v214_v2  ;;  %217 = vst [vmem:[%s170_s27 + $0x18] sm:$0xff] (%p50_p3), %v216_v3 }
  0x15 PF: > { %p695_p6 = scmp.ge.s32.totalorder %s890_s16, 1  ;;  %p234_p7 = scmp.lt.s32.totalorder %s890_s16, 4 }
  0x17   : > { %p235_p8 = pnand %p695_p6, %p234_p7 }
  0x18   : > { %s241_s28 = sand.u32 (!%p235_p8), 1, %s874_s12   ;;  %s697_s29 = sshll.u32 (!%p235_p8), %s882_s14, 5 }
  0x19   : > { %238 = sbr.rel (%p235_p8) target bundleno = 308 (0x134), region = 66  ;;  %s696_s30 = sshll.u32 (!%p235_p8), %s241_s28, 5 }
  0x1a   : > { %p282_p9 = scmp.lt.s32.totalorder (!%p235_p8), %s697_s29, 95  ;;  %s965_s8 = scalar_lea.vmem (!%p235_p8), [#allocation3], %s696_s30 }
  0x1b   : > { %p699_p10 = scmp.ne.s32.totalorder (!%p235_p8), %s882_s14, 0 }
  0x20   : > { %s1024_s29 = smov (!%p282_p9, %s697_s29), 95  ;;  %307 = sbr.rel (%p699_p10) target bundleno = 39 (0x27), region = 74 }
  0x21   : > { %s698_s4 = sshll.u32 %s1024_s29, 2  ;;  %v892_v4 = vmov (!%p699_p10), 0.0  }
  0x22   : > { %s963_s7 = scalar_lea.vmem %s1014_s1, %s698_s4  ;;  %308 = vst [vmem:[#allocation2] sm:$0xff] (!%p699_p10), %v892_v4  ;;  %309 = vst [vmem:[#allocation2 + $0x8] sm:$0xff] (!%p699_p10), %v892_v4 }
  0x23   : > { %310 = vst [vmem:[#allocation2 + $0x10] sm:$0xff] (!%p699_p10), %v892_v4  ;;  %311 = vst [vmem:[#allocation2 + $0x18] sm:$0xff] (!%p699_p10), %v892_v4 }
  0x27 PF: > { %v830_v5 = vld [vmem:[%s963_s7 + $0x40] sm:$0xff]   ;;  %v832_v7 = vld [vmem:[%s963_s7 + $0x48] sm:$0xff]   ;;  %v834_v9 = vld [vmem:[%s963_s7 + $0x50] sm:$0xff]   ;;  %p720_p11 = scmp.ne.s32.totalorder %s882_s14, 2 }
  0x28   : > { %v831_v6 = vld [vmem:[%s963_s7] sm:$0xff]   ;;  %745 = vmatprep.subr.bf16.mxu0 %v830_v5  ;;  %773 = vmatprep.subr.bf16.mxu1 %v830_v5  ;;  %v833_v8 = vld [vmem:[%s963_s7 + $0x8] sm:$0xff]   ;;  %v835_v10 = vld [vmem:[%s963_s7 + $0x10] sm:$0xff]   ;;  %v534_v45 = vlaneseq (!%p720_p11) }
  0x29   : > { %746 = vmatpush3.bf16.msra.mxu0 %v831_v6  ;;  %781 = vmatpush3.bf16.msra.mxu1 %v831_v6  ;;  %v836_v11 = vld [vmem:[%s963_s7 + $0x58] sm:$0xff]   ;;  %v838_v13 = vld [vmem:[%s963_s7 + $0x60] sm:$0xff]   ;;  %v840_v15 = vld [vmem:[%s963_s7 + $0x68] sm:$0xff]  }
  0x2a   : > { %747 = vmatprep.subr.bf16.mxu0 %v832_v7  ;;  %774 = vmatprep.subr.bf16.mxu1 %v832_v7  ;;  %v837_v12 = vld [vmem:[%s963_s7 + $0x18] sm:$0xff]   ;;  %v839_v14 = vld [vmem:[%s963_s7 + $0x20] sm:$0xff]   ;;  %v841_v18 = vld [vmem:[%s963_s7 + $0x28] sm:$0xff]   ;;  %v535_v46 = vshrl.u32 (!%p720_p11), %v534_v45, 7 }
  0x2b   : > { %v848_v16 = vld [vmem:[%s965_s8 + $0x4] ss:$8 sps:$4 sm:$0xff]   ;;  %v851_v17 = vld [vmem:[%s965_s8 + $0x14] ss:$8 sps:$4 sm:$0xff]   ;;  %v846_v23 = vld [vmem:[%s965_s8] ss:$8 sps:$4 sm:$0xff]  }
  0x2c   : > { %v842_v19 = vld [vmem:[%s963_s7 + $0x70] sm:$0xff]   ;;  %500 = vmatprep.mubr.bf16.mxu0 %v848_v16  ;;  %508 = vmatprep.mubr.bf16.mxu1 %v851_v17  ;;  %v844_v21 = vld [vmem:[%s963_s7 + $0x78] sm:$0xff]   ;;  %v312_v27 = vld [vmem:[#allocation2] sm:$0xff]  ;;  %v536_v49 = vsub.s32 (!%p720_p11), 0, %v535_v46  ;;  %v544_v50 = vsub.s32 (!%p720_p11), 1, %v535_v46 }
  0x2d   : > { %748 = vmatpush3.bf16.msra.mxu0 %v833_v8  ;;  %782 = vmatpush3.bf16.msra.mxu1 %v833_v8  ;;  %v843_v20 = vld [vmem:[%s963_s7 + $0x30] sm:$0xff]   ;;  %v845_v22 = vld [vmem:[%s963_s7 + $0x38] sm:$0xff]   ;;  %v313_v35 = vld [vmem:[#allocation2 + $0x8] sm:$0xff] }
  0x2e   : > { %749 = vmatprep.subr.bf16.mxu0 %v834_v9  ;;  %775 = vmatprep.subr.bf16.mxu1 %v834_v9  ;;  %v849_v24 = vld [vmem:[%s965_s8 + $0x10] ss:$8 sps:$4 sm:$0xff]   ;;  %v529_v47 = vld [vmem:[%s1015_s2] sm:$0x3] (!%p720_p11) }
  0x2f   : > { %v314_v29 = vld [vmem:[#allocation2 + $0x10] sm:$0xff]  ;;  %v315_v37 = vld [vmem:[#allocation2 + $0x18] sm:$0xff]  ;;  %v537_v54 = vrot.slane (!%p720_p11), %v529_v47, %v536_v49  ;;  %v545_v55 = vrot.slane (!%p720_p11), %v529_v47, %v544_v50 }
  0x31   : > { %750 = vmatpush3.bf16.msra.mxu0 %v835_v10  ;;  %783 = vmatpush3.bf16.msra.mxu1 %v835_v10 }
  0x32   : > { %751 = vmatprep.subr.bf16.mxu0 %v836_v11  ;;  %776 = vmatprep.subr.bf16.mxu1 %v836_v11 }
  0x35   : > { %752 = vmatpush3.bf16.msra.mxu0 %v837_v12  ;;  %784 = vmatpush3.bf16.msra.mxu1 %v837_v12 }
  0x36   : > { %753 = vmatprep.subr.bf16.mxu0 %v838_v13  ;;  %777 = vmatprep.subr.bf16.mxu1 %v838_v13 }
  0x39   : > { %754 = vmatpush3.bf16.msra.mxu0 %v839_v14  ;;  %785 = vmatpush3.bf16.msra.mxu1 %v839_v14 }
  0x3a   : > { %755 = vmatprep.subr.bf16.mxu0 %v840_v15  ;;  %778 = vmatprep.subr.bf16.mxu1 %v840_v15 }
  0x3d   : > { %756 = vmatpush3.bf16.msra.mxu0 %v841_v18  ;;  %786 = vmatpush3.bf16.msra.mxu1 %v841_v18 }
  0x3e   : > { %757 = vmatprep.subr.bf16.mxu0 %v842_v19  ;;  %779 = vmatprep.subr.bf16.mxu1 %v842_v19 }
  0x41   : > { %758 = vmatpush3.bf16.msra.mxu0 %v843_v20  ;;  %787 = vmatpush3.bf16.msra.mxu1 %v843_v20 }
  0x42   : > { %759 = vmatprep.subr.bf16.mxu0 %v844_v21  ;;  %780 = vmatprep.subr.bf16.mxu1 %v844_v21 }
  0x45   : > { %760 = vmatpush3.bf16.msra.mxu0 %v845_v22  ;;  %788 = vmatpush3.bf16.msra.mxu1 %v845_v22 }
  0x48   : > { %501 = vmatmul.mubr.bf16.vlgmr.msra.gmra.mrb[0].mxu0 %v846_v23  ;;  %509 = vmatmul.mubr.bf16.vlgmr.msra.gmra.mrb[0].mxu1 %v849_v24 }
 0x11b   : > { %v761_v25 = vpop.f32.mrb[0].mxu0  ;;  %v767_v26 = vpop.f32.mrb[0].mxu1 }
 0x11c   : > { %v762_v28 = vpop.f32.mrb[1].mxu0  ;;  %v768_v30 = vpop.f32.mrb[1].mxu1 }
 0x11d   : > { %v763_v31 = vadd.f32 %v762_v28, %v761_v25  ;;  %v769_v32 = vadd.f32 %v768_v30, %v767_v26  ;;  %v764_v33 = vpop.f32.mrb[2].mxu0  ;;  %v770_v34 = vpop.f32.mrb[2].mxu1  ;;  %528 = sbr.rel (%p720_p11) target bundleno = 308 (0x134), region = 78 }
 0x11e   : > { %v765_v36 = vpop.f32.mrb[3].mxu0  ;;  %v771_v38 = vpop.f32.mrb[3].mxu1 }
 0x11f   : > { %v517_v39 = vadd.f32 %v763_v31, %v312_v27  ;;  %v519_v40 = vadd.f32 %v769_v32, %v314_v29  ;;  %v766_v41 = vadd.f32 %v765_v36, %v764_v33  ;;  %v772_v42 = vadd.f32 %v771_v38, %v770_v34 }
 0x121   : > { %521 = vst [vmem:[#allocation2] sm:$0xff] %v517_v39  ;;  %523 = vst [vmem:[#allocation2 + $0x10] sm:$0xff] %v519_v40  ;;  %v518_v43 = vadd.f32 %v766_v41, %v313_v35  ;;  %v520_v44 = vadd.f32 %v772_v42, %v315_v37 }
 0x123   : > { %522 = vst [vmem:[#allocation2 + $0x8] sm:$0xff] %v518_v43  ;;  %524 = vst [vmem:[#allocation2 + $0x18] sm:$0xff] %v520_v44 }
 0x128   : > { %v530_v48 = vld [vmem:[#allocation2] sm:$0xff]  ;;  %v532_v52 = vld [vmem:[#allocation2 + $0x10] sm:$0xff] }
 0x129   : > { %v538_v56 = vmul.f32 %v537_v54, %v530_v48  ;;  %v540_v58 = vmul.f32 %v537_v54, %v532_v52 }
 0x12a   : > { %v531_v51 = vld [vmem:[#allocation2 + $0x8] sm:$0xff]  ;;  %v533_v53 = vld [vmem:[#allocation2 + $0x18] sm:$0xff] }
 0x12b   : > { %v539_v57 = vmul.f32 %v537_v54, %v531_v51  ;;  %v541_v59 = vmul.f32 %v537_v54, %v533_v53  ;;  %v546_v60 = vadd.f32 %v545_v55, %v538_v56  ;;  %v548_v62 = vadd.f32 %v545_v55, %v540_v58 }
 0x12d   : > { %v547_v61 = vadd.f32 %v545_v55, %v539_v57  ;;  %v549_v63 = vadd.f32 %v545_v55, %v541_v59  ;;  %v550_v0 = vmax.f32 %v546_v60, 0.0  ;;  %v552_v2 = vmax.f32 %v548_v62, 0.0 }
 0x12f   : > { %v551_v1 = vmax.f32 %v547_v61, 0.0  ;;  %v553_v3 = vmax.f32 %v549_v63, 0.0 }
 0x131   : > { %v737_v4 = vpack.c.bf16 %v551_v1, %v550_v0  ;;  %v742_v5 = vpack.c.bf16 %v553_v3, %v552_v2 }
 0x133   : > { %738 = vst [vmem:[%s1016_s3] sm:$0xff] %v737_v4   ;;  %744 = vst [vmem:[%s1016_s3 + $0x8] sm:$0xff] %v742_v5  }
 0x134 PF: > { %s13_s16 = sadd.s32 1, %s890_s16   ;;  %s1017_s12 = smov %s878_s13 }
 0x135   : > { %p10_p12 = scmp.ge.s32.totalorder %s13_s16, 5   ;;  %s1018_s13 = smov %s948_s20 }
 0x136   : > { %s1019_s14 = smov %s886_s15  ;;  %s1020_s15 = smov %s1022_s17 }
 0x137   :  { %12 = sbr.rel (!%p10_p12) target bundleno = 3 (0x3), region = 119 }

// kernel: forward.36
= control target key start
LH: loop header
LB: loop body
LE: loop exit
PB: predicated region body
PF: predicated region fallthrough
CT: control target
= control target key end

     0   :  { %v175_v10 = vlaneseq  ;;  %s379_s1 = inlined_call_operand.vmem [shape: bf16[128,128], index: 1, kind: input, shape index: {}]   ;;  %s380_s0 = inlined_call_operand.vmem [shape: bf16[32,128], index: 0, kind: input, shape index: {}]   ;;  %s381_s2 = inlined_call_operand.vmem [shape: f32[2,128], index: 2, kind: input, shape index: {}]   ;;  %s382_s3 = inlined_call_operand.vmem [shape: bf16[32,128], index: 3, kind: input, shape index: {}]   ;;  %s383_s4 = inlined_call_operand.vmem [shape: bf16[32,128], index: 4, kind: output, shape index: {}]  }
   0x1   :  { %v299_v0 = vld [vmem:[%s379_s1] sm:$0xff]   ;;  %v300_v1 = vld [vmem:[%s379_s1 + $0x8] sm:$0xff]   ;;  %v301_v2 = vld [vmem:[%s379_s1 + $0x10] sm:$0xff]  }
   0x2   :  { %279 = vmatprep.subr.bf16.mxu0 %v299_v0  ;;  %v302_v3 = vld [vmem:[%s379_s1 + $0x18] sm:$0xff]   ;;  %v307_v4 = vld [vmem:[%s380_s0] sm:$0xff]   ;;  %v304_v6 = vld [vmem:[%s379_s1 + $0x28] sm:$0xff]   ;;  %v176_v11 = vshrl.u32 %v175_v10, 7 }
   0x3   :  { %280 = vmatpush3.bf16.msra.mxu0 %v299_v0  ;;  %295 = vmatprep.mubr.bf16.mxu0 %v307_v4  ;;  %v303_v5 = vld [vmem:[%s379_s1 + $0x20] sm:$0xff]   ;;  %v305_v7 = vld [vmem:[%s379_s1 + $0x30] sm:$0xff]   ;;  %v306_v8 = vld [vmem:[%s379_s1 + $0x38] sm:$0xff]  }
   0x4   :  { %281 = vmatprep.subr.bf16.mxu0 %v300_v1  ;;  %v308_v9 = vld [vmem:[%s380_s0 + $0x8] sm:$0xff]   ;;  %v177_v12 = vsub.s32 0, %v176_v11  ;;  %v170_v13 = vld [vmem:[%s381_s2] sm:$0x3]  ;;  %v185_v14 = vsub.s32 1, %v176_v11 }
   0x5   :  { %v267_v20 = vld [vmem:[%s382_s3 + $0x8] sm:$0xff]   ;;  %v250_v24 = vld [vmem:[%s382_s3] sm:$0xff]  }
   0x6   :  { %v178_v15 = vrot.slane %v170_v13, %v177_v12  ;;  %v186_v16 = vrot.slane %v170_v13, %v185_v14  ;;  %v255_v30 = vunpack.c.l.bf16 %v267_v20  ;;  %v256_v32 = vunpack.c.h.bf16 %v267_v20 }
   0x7   :  { %282 = vmatpush3.bf16.msra.mxu0 %v300_v1  ;;  %v251_v34 = vunpack.c.l.bf16 %v250_v24  ;;  %v252_v36 = vunpack.c.h.bf16 %v250_v24 }
   0x8   :  { %283 = vmatprep.subr.bf16.mxu0 %v301_v2 }
   0xb   :  { %284 = vmatpush3.bf16.msra.mxu0 %v301_v2 }
   0xc   :  { %285 = vmatprep.subr.bf16.mxu0 %v302_v3 }
   0xf   :  { %286 = vmatpush3.bf16.msra.mxu0 %v302_v3 }
  0x10   :  { %287 = vmatprep.subr.bf16.mxu0 %v303_v5 }
  0x13   :  { %288 = vmatpush3.bf16.msra.mxu0 %v303_v5 }
  0x14   :  { %289 = vmatprep.subr.bf16.mxu0 %v304_v6 }
  0x17   :  { %290 = vmatpush3.bf16.msra.mxu0 %v304_v6 }
  0x18   :  { %291 = vmatprep.subr.bf16.mxu0 %v305_v7 }
  0x1b   :  { %292 = vmatpush3.bf16.msra.mxu0 %v305_v7 }
  0x1c   :  { %293 = vmatprep.subr.bf16.mxu0 %v306_v8 }
  0x1f   :  { %294 = vmatpush3.bf16.msra.mxu0 %v306_v8 }
  0x22   :  { %296 = vmatmul.mubr.bf16.vlgmr.msra.gmra.mrb[0].mxu0 %v308_v9 }
  0xf5   :  { %v297_v17 = vpop.f32.mrb[0].mxu0 }
  0xf6   :  { %v181_v18 = vmul.f32 %v297_v17, %v178_v15  ;;  %v144_v19 = vpop.f32.mrb[1].mxu0 }
  0xf7   :  { %v179_v21 = vmul.f32 %v178_v15, %v144_v19  ;;  %v298_v22 = vpop.f32.mrb[2].mxu0 }
  0xf8   :  { %v189_v23 = vadd.f32 %v186_v16, %v181_v18  ;;  %v182_v25 = vmul.f32 %v298_v22, %v178_v15  ;;  %v147_v26 = vpop.f32.mrb[3].mxu0 }
  0xf9   :  { %v187_v27 = vadd.f32 %v186_v16, %v179_v21  ;;  %v180_v28 = vmul.f32 %v178_v15, %v147_v26 }
  0xfa   :  { %v193_v29 = vmax.f32 %v189_v23, 0.0  ;;  %v190_v31 = vadd.f32 %v186_v16, %v182_v25 }
  0xfb   :  { %v191_v33 = vmax.f32 %v187_v27, 0.0  ;;  %v188_v35 = vadd.f32 %v186_v16, %v180_v28 }
  0xfc   :  { %v194_v37 = vmax.f32 %v190_v31, 0.0  ;;  %v205_v39 = vadd.f32 %v255_v30, %v193_v29 }
  0xfd   :  { %v192_v38 = vmax.f32 %v188_v35, 0.0  ;;  %v203_v41 = vadd.f32 %v251_v34, %v191_v33 }
  0xfe   :  { %v206_v40 = vadd.f32 %v256_v32, %v194_v37 }
  0xff   :  { %v204_v42 = vadd.f32 %v252_v36, %v192_v38 }
 0x100   :  { %v265_v43 = vpack.c.bf16 %v206_v40, %v205_v39 }
 0x101   :  { %v260_v44 = vpack.c.bf16 %v204_v42, %v203_v41 }
 0x102   :  { %268 = vst [vmem:[%s383_s4 + $0x8] sm:$0xff] %v265_v43  }
 0x103   :  { %261 = vst [vmem:[%s383_s4] sm:$0xff] %v260_v44  }

// kernel: forward.40
= control target key start
LH: loop header
LB: loop body
LE: loop exit
PB: predicated region body
PF: predicated region fallthrough
CT: control target
= control target key end

     0   :  { %v382_v1 = vmov 0   ;;  %v229_v19 = vlaneseq  ;;  %s472_s1 = inlined_call_operand.vmem [shape: bf16[128,256], index: 1, kind: input, shape index: {}]   ;;  %s473_s0 = inlined_call_operand.vmem [shape: bf16[32,128], index: 0, kind: input, shape index: {}]   ;;  %s474_s2 = inlined_call_operand.vmem [shape: f32[2,256], index: 2, kind: input, shape index: {}]   ;;  %s475_s3 = inlined_call_operand.vmem [shape: bf16[32,256], index: 3, kind: output, shape index: {}]  }
   0x1   :  { %v356_v0 = vld [vmem:[%s472_s1 + $0x4] ss:$8 sps:$4 sm:$0xff]   ;;  %179 = vmatprep.mubr.bf16.mxu0 %v382_v1  ;;  %189 = vmatprep.mubr.bf16.mxu1 %v382_v1  ;;  %v358_v2 = vld [vmem:[%s472_s1] ss:$8 sps:$4 sm:$0xff]   ;;  %v359_v3 = vld [vmem:[%s472_s1 + $0x14] ss:$8 sps:$4 sm:$0xff]  }
   0x2   :  { %147 = vmatprep.subr.bf16.mxu0 %v356_v0  ;;  %339 = vmatprep.subr.bf16.mxu1 %v356_v0  ;;  %v361_v4 = vld [vmem:[%s472_s1 + $0x10] ss:$8 sps:$4 sm:$0xff]   ;;  %v362_v5 = vld [vmem:[%s472_s1 + $0x24] ss:$8 sps:$4 sm:$0xff]   ;;  %v364_v6 = vld [vmem:[%s472_s1 + $0x20] ss:$8 sps:$4 sm:$0xff]  }
   0x3   :  { %148 = vmatpush1.bf16.msra.mxu0 %v358_v2  ;;  %347 = vmatpush1.bf16.msra.mxu1 %v358_v2  ;;  %v365_v7 = vld [vmem:[%s472_s1 + $0x34] ss:$8 sps:$4 sm:$0xff]   ;;  %v367_v8 = vld [vmem:[%s472_s1 + $0x30] ss:$8 sps:$4 sm:$0xff]   ;;  %v368_v9 = vld [vmem:[%s472_s1 + $0x44] ss:$8 sps:$4 sm:$0xff]  }
   0x4   :  { %149 = vmatprep.subr.bf16.mxu0 %v359_v3  ;;  %340 = vmatprep.subr.bf16.mxu1 %v359_v3  ;;  %v370_v10 = vld [vmem:[%s472_s1 + $0x40] ss:$8 sps:$4 sm:$0xff]   ;;  %v371_v11 = vld [vmem:[%s472_s1 + $0x54] ss:$8 sps:$4 sm:$0xff]   ;;  %v373_v12 = vld [vmem:[%s472_s1 + $0x50] ss:$8 sps:$4 sm:$0xff]  }
   0x5   :  { %v374_v13 = vld [vmem:[%s472_s1 + $0x64] ss:$8 sps:$4 sm:$0xff]   ;;  %v376_v14 = vld [vmem:[%s472_s1 + $0x60] ss:$8 sps:$4 sm:$0xff]   ;;  %v377_v15 = vld [vmem:[%s472_s1 + $0x74] ss:$8 sps:$4 sm:$0xff]  }
   0x6   :  { %v379_v16 = vld [vmem:[%s472_s1 + $0x70] ss:$8 sps:$4 sm:$0xff]   ;;  %v380_v17 = vld [vmem:[%s473_s0] sm:$0xff]   ;;  %v381_v18 = vld [vmem:[%s473_s0 + $0x8] sm:$0xff]   ;;  %v230_v20 = vshrl.u32 %v229_v19, 7 }
   0x7   :  { %150 = vmatpush1.bf16.msra.mxu0 %v361_v4  ;;  %348 = vmatpush1.bf16.msra.mxu1 %v361_v4  ;;  %v219_v22 = vld [vmem:[%s474_s2] sm:$0xf] }
   0x8   :  { %151 = vmatprep.subr.bf16.mxu0 %v362_v5  ;;  %341 = vmatprep.subr.bf16.mxu1 %v362_v5  ;;  %v231_v21 = vsub.s32 0, %v230_v20  ;;  %v235_v23 = vsub.s32 2, %v230_v20  ;;  %v257_v24 = vsub.s32 1, %v230_v20  ;;  %v261_v25 = vsub.s32 3, %v230_v20 }
   0xa   :  { %v232_v26 = vrot.slane %v219_v22, %v231_v21  ;;  %v236_v27 = vrot.slane %v219_v22, %v235_v23  ;;  %v258_v28 = vrot.slane %v219_v22, %v257_v24  ;;  %v262_v29 = vrot.slane %v219_v22, %v261_v25 }
   0xb   :  { %152 = vmatpush1.bf16.msra.mxu0 %v364_v6  ;;  %349 = vmatpush1.bf16.msra.mxu1 %v364_v6 }
   0xc   :  { %153 = vmatprep.subr.bf16.mxu0 %v365_v7  ;;  %342 = vmatprep.subr.bf16.mxu1 %v365_v7  ;;  %v242_v30 = vrot.slane %v232_v26, %v231_v21  ;;  %v246_v31 = vrot.slane %v236_v27, %v231_v21  ;;  %v268_v32 = vrot.slane %v258_v28, %v257_v24 }
   0xd   :  { %v272_v35 = vrot.slane %v262_v29, %v257_v24 }
   0xf   :  { %154 = vmatpush1.bf16.msra.mxu0 %v367_v8  ;;  %350 = vmatpush1.bf16.msra.mxu1 %v367_v8 }
  0x10   :  { %155 = vmatprep.subr.bf16.mxu0 %v368_v9  ;;  %343 = vmatprep.subr.bf16.mxu1 %v368_v9 }
  0x13   :  { %156 = vmatpush1.bf16.msra.mxu0 %v370_v10  ;;  %351 = vmatpush1.bf16.msra.mxu1 %v370_v10 }
  0x14   :  { %157 = vmatprep.subr.bf16.mxu0 %v371_v11  ;;  %344 = vmatprep.subr.bf16.mxu1 %v371_v11 }
  0x17   :  { %158 = vmatpush1.bf16.msra.mxu0 %v373_v12  ;;  %352 = vmatpush1.bf16.msra.mxu1 %v373_v12 }
  0x18   :  { %159 = vmatprep.subr.bf16.mxu0 %v374_v13  ;;  %345 = vmatprep.subr.bf16.mxu1 %v374_v13 }
  0x1b   :  { %160 = vmatpush1.bf16.msra.mxu0 %v376_v14  ;;  %353 = vmatpush1.bf16.msra.mxu1 %v376_v14 }
  0x1c   :  { %161 = vmatprep.subr.bf16.mxu0 %v377_v15  ;;  %346 = vmatprep.subr.bf16.mxu1 %v377_v15 }
  0x1f   :  { %162 = vmatpush1.bf16.msra.mxu0 %v379_v16  ;;  %354 = vmatpush1.bf16.msra.mxu1 %v379_v16 }
  0x22   :  { %180 = vmatmul.mubr.bf16.vlgmr.msra.gmra.mrb[0].mxu0 %v380_v17  ;;  %190 = vmatmul.mubr.bf16.vlgmr.msra.gmra.mrb[0].mxu1 %v381_v18 }
  0xf5   :  { %v181_v33 = vpop.f32.mrb[0].mxu0  ;;  %v191_v34 = vpop.f32.mrb[0].mxu1 }
  0xf6   :  { %v247_v36 = vmul.f32 %v242_v30, %v181_v33  ;;  %v251_v37 = vmul.f32 %v242_v30, %v191_v34  ;;  %v183_v38 = vpop.f32.mrb[1].mxu0  ;;  %v193_v39 = vpop.f32.mrb[1].mxu1 }
  0xf7   :  { %v248_v40 = vmul.f32 %v246_v31, %v183_v38  ;;  %v252_v41 = vmul.f32 %v246_v31, %v193_v39  ;;  %v185_v42 = vpop.f32.mrb[2].mxu0  ;;  %v195_v43 = vpop.f32.mrb[2].mxu1 }
  0xf8   :  { %v273_v44 = vadd.f32 %v268_v32, %v247_v36  ;;  %v277_v45 = vadd.f32 %v268_v32, %v251_v37  ;;  %v249_v46 = vmul.f32 %v242_v30, %v185_v42  ;;  %v253_v47 = vmul.f32 %v242_v30, %v195_v43  ;;  %v187_v48 = vpop.f32.mrb[3].mxu0  ;;  %v197_v49 = vpop.f32.mrb[3].mxu1 }
  0xf9   :  { %v274_v50 = vadd.f32 %v272_v35, %v248_v40  ;;  %v278_v51 = vadd.f32 %v272_v35, %v252_v41  ;;  %v250_v52 = vmul.f32 %v246_v31, %v187_v48  ;;  %v254_v53 = vmul.f32 %v246_v31, %v197_v49 }
  0xfa   :  { %v275_v54 = vadd.f32 %v268_v32, %v249_v46  ;;  %v279_v55 = vadd.f32 %v268_v32, %v253_v47 }
  0xfb   :  { %v335_v56 = vpack.c.bf16 %v274_v50, %v273_v44  ;;  %v337_v57 = vpack.c.bf16 %v278_v51, %v277_v45  ;;  %v276_v58 = vadd.f32 %v272_v35, %v250_v52  ;;  %v280_v59 = vadd.f32 %v272_v35, %v254_v53 }
  0xfd   :  { %305 = vst [vmem:[%s475_s3] sm:$0xff] %v335_v56  ;;  %307 = vst [vmem:[%s475_s3 + $0x10] sm:$0xff] %v337_v57  ;;  %v336_v60 = vpack.c.bf16 %v276_v58, %v275_v54  ;;  %v338_v61 = vpack.c.bf16 %v280_v59, %v279_v55 }
  0xff   :  { %306 = vst [vmem:[%s475_s3 + $0x8] sm:$0xff] %v336_v60  ;;  %308 = vst [vmem:[%s475_s3 + $0x18] sm:$0xff] %v338_v61 }

// kernel: forward.43
= control target key start
LH: loop header
LB: loop body
LE: loop exit
PB: predicated region body
PF: predicated region fallthrough
CT: control target
= control target key end

     0   :  { %v413_v1 = vmov 0   ;;  %v232_v19 = vlaneseq  ;;  %s520_s1 = inlined_call_operand.vmem [shape: bf16[128,256], index: 1, kind: input, shape index: {}]   ;;  %s521_s0 = inlined_call_operand.vmem [shape: bf16[32,128], index: 0, kind: input, shape index: {}]   ;;  %s522_s2 = inlined_call_operand.vmem [shape: f32[2,256], index: 2, kind: input, shape index: {}]   ;;  %s523_s3 = inlined_call_operand.vmem [shape: bf16[32,256], index: 3, kind: input, shape index: {}]   ;;  %s524_s4 = inlined_call_operand.vmem [shape: bf16[32,256], index: 4, kind: output, shape index: {}]  }
   0x1   :  { %v387_v0 = vld [vmem:[%s520_s1 + $0x4] ss:$8 sps:$4 sm:$0xff]   ;;  %182 = vmatprep.mubr.bf16.mxu0 %v413_v1  ;;  %192 = vmatprep.mubr.bf16.mxu1 %v413_v1  ;;  %v389_v2 = vld [vmem:[%s520_s1] ss:$8 sps:$4 sm:$0xff]   ;;  %v390_v3 = vld [vmem:[%s520_s1 + $0x14] ss:$8 sps:$4 sm:$0xff]  }
   0x2   :  { %150 = vmatprep.subr.bf16.mxu0 %v387_v0  ;;  %370 = vmatprep.subr.bf16.mxu1 %v387_v0  ;;  %v392_v4 = vld [vmem:[%s520_s1 + $0x10] ss:$8 sps:$4 sm:$0xff]   ;;  %v393_v5 = vld [vmem:[%s520_s1 + $0x24] ss:$8 sps:$4 sm:$0xff]   ;;  %v395_v6 = vld [vmem:[%s520_s1 + $0x20] ss:$8 sps:$4 sm:$0xff]  }
   0x3   :  { %151 = vmatpush1.bf16.msra.mxu0 %v389_v2  ;;  %378 = vmatpush1.bf16.msra.mxu1 %v389_v2  ;;  %v396_v7 = vld [vmem:[%s520_s1 + $0x34] ss:$8 sps:$4 sm:$0xff]   ;;  %v398_v8 = vld [vmem:[%s520_s1 + $0x30] ss:$8 sps:$4 sm:$0xff]   ;;  %v399_v9 = vld [vmem:[%s520_s1 + $0x44] ss:$8 sps:$4 sm:$0xff]  }
   0x4   :  { %152 = vmatprep.subr.bf16.mxu0 %v390_v3  ;;  %371 = vmatprep.subr.bf16.mxu1 %v390_v3  ;;  %v401_v10 = vld [vmem:[%s520_s1 + $0x40] ss:$8 sps:$4 sm:$0xff]   ;;  %v402_v11 = vld [vmem:[%s520_s1 + $0x54] ss:$8 sps:$4 sm:$0xff]   ;;  %v404_v12 = vld [vmem:[%s520_s1 + $0x50] ss:$8 sps:$4 sm:$0xff]  }
   0x5   :  { %v405_v13 = vld [vmem:[%s520_s1 + $0x64] ss:$8 sps:$4 sm:$0xff]   ;;  %v407_v14 = vld [vmem:[%s520_s1 + $0x60] ss:$8 sps:$4 sm:$0xff]   ;;  %v408_v15 = vld [vmem:[%s520_s1 + $0x74] ss:$8 sps:$4 sm:$0xff]  }
   0x6   :  { %v410_v16 = vld [vmem:[%s520_s1 + $0x70] ss:$8 sps:$4 sm:$0xff]   ;;  %v411_v17 = vld [vmem:[%s521_s0] sm:$0xff]   ;;  %v412_v18 = vld [vmem:[%s521_s0 + $0x8] sm:$0xff]   ;;  %v233_v20 = vshrl.u32 %v232_v19, 7 }
   0x7   :  { %153 = vmatpush1.bf16.msra.mxu0 %v392_v4  ;;  %379 = vmatpush1.bf16.msra.mxu1 %v392_v4  ;;  %v222_v22 = vld [vmem:[%s522_s2] sm:$0xf]  ;;  %v294_v32 = vld [vmem:[%s523_s3 + $0x10] sm:$0xff]  ;;  %v293_v34 = vld [vmem:[%s523_s3 + $0x8] sm:$0xff] }
   0x8   :  { %154 = vmatprep.subr.bf16.mxu0 %v393_v5  ;;  %372 = vmatprep.subr.bf16.mxu1 %v393_v5  ;;  %v234_v21 = vsub.s32 0, %v233_v20  ;;  %v238_v23 = vsub.s32 2, %v233_v20  ;;  %v260_v24 = vsub.s32 1, %v233_v20  ;;  %v264_v25 = vsub.s32 3, %v233_v20  ;;  %v292_v31 = vld [vmem:[%s523_s3] sm:$0xff]  ;;  %v295_v35 = vld [vmem:[%s523_s3 + $0x18] sm:$0xff] }
   0x9   :  { %v296_v39 = vunpack.c.l.bf16 %v292_v31  ;;  %v300_v41 = vunpack.c.l.bf16 %v294_v32  ;;  %v297_v42 = vunpack.c.h.bf16 %v292_v31  ;;  %v301_v43 = vunpack.c.h.bf16 %v294_v32 }
   0xa   :  { %v235_v26 = vrot.slane %v222_v22, %v234_v21  ;;  %v239_v27 = vrot.slane %v222_v22, %v238_v23  ;;  %v261_v28 = vrot.slane %v222_v22, %v260_v24  ;;  %v265_v29 = vrot.slane %v222_v22, %v264_v25 }
   0xb   :  { %155 = vmatpush1.bf16.msra.mxu0 %v395_v6  ;;  %380 = vmatpush1.bf16.msra.mxu1 %v395_v6  ;;  %v298_v48 = vunpack.c.l.bf16 %v293_v34  ;;  %v302_v49 = vunpack.c.l.bf16 %v295_v35  ;;  %v299_v54 = vunpack.c.h.bf16 %v293_v34  ;;  %v303_v55 = vunpack.c.h.bf16 %v295_v35 }
   0xc   :  { %156 = vmatprep.subr.bf16.mxu0 %v396_v7  ;;  %373 = vmatprep.subr.bf16.mxu1 %v396_v7  ;;  %v245_v30 = vrot.slane %v235_v26, %v234_v21  ;;  %v249_v33 = vrot.slane %v239_v27, %v234_v21  ;;  %v271_v36 = vrot.slane %v261_v28, %v260_v24 }
   0xd   :  { %v275_v37 = vrot.slane %v265_v29, %v260_v24 }
   0xf   :  { %157 = vmatpush1.bf16.msra.mxu0 %v398_v8  ;;  %381 = vmatpush1.bf16.msra.mxu1 %v398_v8 }
  0x10   :  { %158 = vmatprep.subr.bf16.mxu0 %v399_v9  ;;  %374 = vmatprep.subr.bf16.mxu1 %v399_v9 }
  0x13   :  { %159 = vmatpush1.bf16.msra.mxu0 %v401_v10  ;;  %382 = vmatpush1.bf16.msra.mxu1 %v401_v10 }
  0x14   :  { %160 = vmatprep.subr.bf16.mxu0 %v402_v11  ;;  %375 = vmatprep.subr.bf16.mxu1 %v402_v11 }
  0x17   :  { %161 = vmatpush1.bf16.msra.mxu0 %v404_v12  ;;  %383 = vmatpush1.bf16.msra.mxu1 %v404_v12 }
  0x18   :  { %162 = vmatprep.subr.bf16.mxu0 %v405_v13  ;;  %376 = vmatprep.subr.bf16.mxu1 %v405_v13 }
  0x1b   :  { %163 = vmatpush1.bf16.msra.mxu0 %v407_v14  ;;  %384 = vmatpush1.bf16.msra.mxu1 %v407_v14 }
  0x1c   :  { %164 = vmatprep.subr.bf16.mxu0 %v408_v15  ;;  %377 = vmatprep.subr.bf16.mxu1 %v408_v15 }
  0x1f   :  { %165 = vmatpush1.bf16.msra.mxu0 %v410_v16  ;;  %385 = vmatpush1.bf16.msra.mxu1 %v410_v16 }
  0x22   :  { %183 = vmatmul.mubr.bf16.vlgmr.msra.gmra.mrb[0].mxu0 %v411_v17  ;;  %193 = vmatmul.mubr.bf16.vlgmr.msra.gmra.mrb[0].mxu1 %v412_v18 }
  0xf5   :  { %v184_v38 = vpop.f32.mrb[0].mxu0  ;;  %v194_v40 = vpop.f32.mrb[0].mxu1 }
  0xf6   :  { %v250_v44 = vmul.f32 %v245_v30, %v184_v38  ;;  %v254_v45 = vmul.f32 %v245_v30, %v194_v40  ;;  %v186_v46 = vpop.f32.mrb[1].mxu0  ;;  %v196_v47 = vpop.f32.mrb[1].mxu1 }
  0xf7   :  { %v251_v50 = vmul.f32 %v249_v33, %v186_v46  ;;  %v255_v51 = vmul.f32 %v249_v33, %v196_v47  ;;  %v188_v52 = vpop.f32.mrb[2].mxu0  ;;  %v198_v53 = vpop.f32.mrb[2].mxu1 }
  0xf8   :  { %v276_v56 = vadd.f32 %v271_v36, %v250_v44  ;;  %v280_v57 = vadd.f32 %v271_v36, %v254_v45  ;;  %v252_v58 = vmul.f32 %v245_v30, %v188_v52  ;;  %v256_v59 = vmul.f32 %v245_v30, %v198_v53  ;;  %v190_v60 = vpop.f32.mrb[3].mxu0  ;;  %v200_v61 = vpop.f32.mrb[3].mxu1 }
  0xf9   :  { %v277_v62 = vadd.f32 %v275_v37, %v251_v50  ;;  %v281_v63 = vadd.f32 %v275_v37, %v255_v51  ;;  %v253_v0 = vmul.f32 %v249_v33, %v190_v60  ;;  %v257_v1 = vmul.f32 %v249_v33, %v200_v61 }
  0xfa   :  { %v284_v2 = vmax.f32 %v276_v56, 0.0  ;;  %v288_v3 = vmax.f32 %v280_v57, 0.0  ;;  %v278_v4 = vadd.f32 %v271_v36, %v252_v58  ;;  %v282_v5 = vadd.f32 %v271_v36, %v256_v59 }
  0xfb   :  { %v285_v6 = vmax.f32 %v277_v62, 0.0  ;;  %v289_v7 = vmax.f32 %v281_v63, 0.0  ;;  %v279_v8 = vadd.f32 %v275_v37, %v253_v0  ;;  %v283_v9 = vadd.f32 %v275_v37, %v257_v1 }
  0xfc   :  { %v304_v10 = vadd.f32 %v296_v39, %v284_v2  ;;  %v308_v11 = vadd.f32 %v300_v41, %v288_v3  ;;  %v286_v12 = vmax.f32 %v278_v4, 0.0  ;;  %v290_v13 = vmax.f32 %v282_v5, 0.0 }
  0xfd   :  { %v305_v14 = vadd.f32 %v297_v42, %v285_v6  ;;  %v309_v15 = vadd.f32 %v301_v43, %v289_v7  ;;  %v287_v16 = vmax.f32 %v279_v8, 0.0  ;;  %v291_v17 = vmax.f32 %v283_v9, 0.0 }
  0xfe   :  { %v306_v18 = vadd.f32 %v298_v48, %v286_v12  ;;  %v310_v19 = vadd.f32 %v302_v49, %v290_v13 }
  0xff   :  { %v366_v20 = vpack.c.bf16 %v305_v14, %v304_v10  ;;  %v368_v21 = vpack.c.bf16 %v309_v15, %v308_v11  ;;  %v307_v22 = vadd.f32 %v299_v54, %v287_v16  ;;  %v311_v23 = vadd.f32 %v303_v55, %v291_v17 }
 0x101   :  { %336 = vst [vmem:[%s524_s4] sm:$0xff] %v366_v20  ;;  %338 = vst [vmem:[%s524_s4 + $0x10] sm:$0xff] %v368_v21  ;;  %v367_v24 = vpack.c.bf16 %v307_v22, %v306_v18  ;;  %v369_v25 = vpack.c.bf16 %v311_v23, %v310_v19 }
 0x103   :  { %337 = vst [vmem:[%s524_s4 + $0x8] sm:$0xff] %v367_v24  ;;  %339 = vst [vmem:[%s524_s4 + $0x18] sm:$0xff] %v369_v25 }

// kernel: forward.44
= control target key start
LH: loop header
LB: loop body
LE: loop exit
PB: predicated region body
PF: predicated region fallthrough
CT: control target
= control target key end

     0   :  { %s1106_s12 = smov 0   ;;  %s1108_s13 = smov 0   ;;  %s1228_s0 = inlined_call_operand.vmem [shape: bf16[32,2304], index: 0, kind: input, shape index: {}]   ;;  %s1229_s1 = inlined_call_operand.vmem [shape: bf16[2304,256], index: 1, kind: input, shape index: {}]   ;;  %s1230_s2 = inlined_call_operand.vmem [shape: f32[2,256], index: 2, kind: input, shape index: {}]   ;;  %s1231_s3 = inlined_call_operand.vmem [shape: bf16[32,256], index: 3, kind: output, shape index: {}]  }
   0x1   :  { %s1110_s14 = smov 0   ;;  %s1112_s15 = smov 0  }
   0x2   :  { %s1114_s16 = smov 0  }
   0x3 LB: > { %s25_s17 = sadd.s32 1, %s1079_s15  ;;  %p48_p1 = scmp.ne.s32.totalorder %s1071_s13, %s1067_s12  ;;  %s1083_s16 = sphi %s1114_s16, %s13_s16   ;;  %s1079_s15 = sphi %s1112_s15, %s1235_s15   ;;  %s1075_s14 = sphi %s1110_s14, %s1234_s14   ;;  %s1071_s13 = sphi %s1108_s13, %s1233_s13   ;;  %s1067_s12 = sphi %s1106_s12, %s1232_s12  }
   0x4   : > { %p26_p0 = scmp.ge.s32.totalorder %s25_s17, 9  ;;  %p49_p2 = scmp.eq.s32.totalorder %s1083_s16, 0 }
   0x5   : > { %s41_s19 = sadd.s32 1, %s1071_s13  ;;  %p857_p5 = scmp.ge.s32.totalorder %s1083_s16, 9 }
   0x6   : > { %s1237_s17 = smov (%p26_p0, %s25_s17), 0  ;;  %p50_p3 = por %p49_p2, %p48_p1 }
   0x7   : > { %s37_s18 = ssub.s32 %s1079_s15, %s1237_s17  ;;  %165 = sbr.rel (%p857_p5) target bundleno = 21 (0x15), region = 20 }
   0x8   : > { %p39_p4 = scmp.eq.s32.totalorder %s37_s18, 0 }
   0xa   : > { %s1141_s20 = scalar_select %p39_p4, %s1071_s13, %s41_s19  }
   0xe   : > { %168 = sbr.rel (!%p50_p3) target bundleno = 21 (0x15), region = 24  ;;  %s170_s21 = sand.u32 (%p50_p3), 1, %s1071_s13  }
   0xf   : > { %s912_s22 = sshll.u32 (%p50_p3), %s1079_s15, 3  ;;  %s858_s23 = sshll.u32 (%p50_p3), %s170_s21, 5 }
  0x10   : > { %s178_s26 = scalar_lea.vmem (%p50_p3), %s1228_s0, %s912_s22  ;;  %s172_s27 = scalar_lea.vmem (%p50_p3), [#allocation3], %s858_s23 }
  0x11   : > { %v212_v0 = vld [vmem:[%s178_s26] sm:$0xff] (%p50_p3)  ;;  %v214_v1 = vld [vmem:[%s178_s26 + $0x48] sm:$0xff] (%p50_p3)  ;;  %v216_v2 = vld [vmem:[%s178_s26 + $0x90] sm:$0xff] (%p50_p3) }
  0x12   : > { %213 = vst [vmem:[%s172_s27] sm:$0xff] (%p50_p3), %v212_v0  ;;  %215 = vst [vmem:[%s172_s27 + $0x8] sm:$0xff] (%p50_p3), %v214_v1  ;;  %v218_v3 = vld [vmem:[%s178_s26 + $0xd8] sm:$0xff] (%p50_p3) }
  0x13   : > { %217 = vst [vmem:[%s172_s27 + $0x10] sm:$0xff] (%p50_p3), %v216_v2  ;;  %219 = vst [vmem:[%s172_s27 + $0x18] sm:$0xff] (%p50_p3), %v218_v3 }
  0x15 PF: > { %p861_p6 = scmp.ge.s32.totalorder %s1083_s16, 1  ;;  %p239_p7 = scmp.lt.s32.totalorder %s1083_s16, 10 }
  0x17   : > { %p240_p8 = pnand %p861_p6, %p239_p7 }
  0x18   : > { %s246_s28 = sand.u32 (!%p240_p8), 1, %s1067_s12   ;;  %s863_s29 = sshll.u32 (!%p240_p8), %s1075_s14, 5 }
  0x19   : > { %243 = sbr.rel (%p240_p8) target bundleno = 339 (0x153), region = 66  ;;  %s862_s30 = sshll.u32 (!%p240_p8), %s246_s28, 5 }
  0x1a   : > { %p293_p9 = scmp.lt.s32.totalorder (!%p240_p8), %s863_s29, 287  ;;  %s1158_s8 = scalar_lea.vmem (!%p240_p8), [#allocation3], %s862_s30 }
  0x1b   : > { %p866_p10 = scmp.ne.s32.totalorder (!%p240_p8), %s1075_s14, 0 }
  0x20   : > { %s1239_s29 = smov (!%p293_p9, %s863_s29), 287  ;;  %324 = sbr.rel (%p866_p10) target bundleno = 39 (0x27), region = 74 }
  0x21   : > { %s913_s4 = sshll.u32 %s1239_s29, 3  ;;  %v1085_v4 = vmov (!%p866_p10), 0.0  }
  0x22   : > { %s1156_s7 = scalar_lea.vmem %s1229_s1, %s913_s4  ;;  %325 = vst [vmem:[#allocation2] sm:$0xff] (!%p866_p10), %v1085_v4  ;;  %326 = vst [vmem:[#allocation2 + $0x8] sm:$0xff] (!%p866_p10), %v1085_v4 }
  0x23   : > { %327 = vst [vmem:[#allocation2 + $0x10] sm:$0xff] (!%p866_p10), %v1085_v4  ;;  %328 = vst [vmem:[#allocation2 + $0x18] sm:$0xff] (!%p866_p10), %v1085_v4 }
  0x24   : > { %329 = vst [vmem:[#allocation2 + $0x20] sm:$0xff] (!%p866_p10), %v1085_v4  ;;  %330 = vst [vmem:[#allocation2 + $0x28] sm:$0xff] (!%p866_p10), %v1085_v4 }
  0x25   : > { %331 = vst [vmem:[#allocation2 + $0x30] sm:$0xff] (!%p866_p10), %v1085_v4  ;;  %332 = vst [vmem:[#allocation2 + $0x38] sm:$0xff] (!%p866_p10), %v1085_v4 }
  0x27 PF: > { %v991_v5 = vld [vmem:[%s1156_s7 + $0x4] ss:$8 sps:$4 sm:$0xff]   ;;  %v993_v6 = vld [vmem:[%s1156_s7] ss:$8 sps:$4 sm:$0xff]   ;;  %v994_v7 = vld [vmem:[%s1156_s7 + $0x14] ss:$8 sps:$4 sm:$0xff]  }
  0x28   : > { %557 = vmatprep.subr.bf16.mxu0 %v991_v5  ;;  %918 = vmatprep.subr.bf16.mxu1 %v991_v5  ;;  %v996_v8 = vld [vmem:[%s1156_s7 + $0x10] ss:$8 sps:$4 sm:$0xff]   ;;  %v997_v9 = vld [vmem:[%s1156_s7 + $0x24] ss:$8 sps:$4 sm:$0xff]   ;;  %v999_v10 = vld [vmem:[%s1156_s7 + $0x20] ss:$8 sps:$4 sm:$0xff]  }
  0x29   : > { %558 = vmatpush1.bf16.msra.mxu0 %v993_v6  ;;  %934 = vmatpush1.bf16.msra.mxu1 %v993_v6  ;;  %v1000_v11 = vld [vmem:[%s1156_s7 + $0x34] ss:$8 sps:$4 sm:$0xff]   ;;  %v1002_v12 = vld [vmem:[%s1156_s7 + $0x30] ss:$8 sps:$4 sm:$0xff]   ;;  %v1003_v13 = vld [vmem:[%s1156_s7 + $0x44] ss:$8 sps:$4 sm:$0xff]  }
  0x2a   : > { %559 = vmatprep.subr.bf16.mxu0 %v994_v7  ;;  %919 = vmatprep.subr.bf16.mxu1 %v994_v7  ;;  %v1005_v14 = vld [vmem:[%s1156_s7 + $0x40] ss:$8 sps:$4 sm:$0xff]   ;;  %v1006_v15 = vld [vmem:[%s1156_s7 + $0x54] ss:$8 sps:$4 sm:$0xff]   ;;  %v1008_v16 = vld [vmem:[%s1156_s7 + $0x50] ss:$8 sps:$4 sm:$0xff]  }
  0x2b   : > { %v1009_v17 = vld [vmem:[%s1156_s7 + $0x64] ss:$8 sps:$4 sm:$0xff]   ;;  %v1011_v19 = vld [vmem:[%s1156_s7 + $0x60] ss:$8 sps:$4 sm:$0xff]   ;;  %v1044_v20 = vld [vmem:[%s1158_s8 + $0x14] ss:$8 sps:$4 sm:$0xff]  }
  0x2c   : > { %v1041_v18 = vld [vmem:[%s1158_s8 + $0x4] ss:$8 sps:$4 sm:$0xff]   ;;  %v1012_v21 = vld [vmem:[%s1156_s7 + $0x74] ss:$8 sps:$4 sm:$0xff]   ;;  %599 = vmatprep.mubr.bf16.mxu1 %v1044_v20  ;;  %v1014_v22 = vld [vmem:[%s1156_s7 + $0x70] ss:$8 sps:$4 sm:$0xff]  }
  0x2d   : > { %560 = vmatpush1.bf16.msra.mxu0 %v996_v8  ;;  %935 = vmatpush1.bf16.msra.mxu1 %v996_v8  ;;  %v1015_v23 = vld [vmem:[%s1156_s7 + $0x84] ss:$8 sps:$4 sm:$0xff]   ;;  %v1017_v24 = vld [vmem:[%s1156_s7 + $0x80] ss:$8 sps:$4 sm:$0xff]   ;;  %v1018_v25 = vld [vmem:[%s1156_s7 + $0x94] ss:$8 sps:$4 sm:$0xff]  }
  0x2e   : > { %561 = vmatprep.subr.bf16.mxu0 %v997_v9  ;;  %920 = vmatprep.subr.bf16.mxu1 %v997_v9  ;;  %v1020_v26 = vld [vmem:[%s1156_s7 + $0x90] ss:$8 sps:$4 sm:$0xff]   ;;  %v1021_v27 = vld [vmem:[%s1156_s7 + $0xa4] ss:$8 sps:$4 sm:$0xff]   ;;  %v1023_v28 = vld [vmem:[%s1156_s7 + $0xa0] ss:$8 sps:$4 sm:$0xff]  }
  0x2f   : > { %589 = vmatprep.mubr.bf16.mxu0 %v1041_v18  ;;  %v1024_v29 = vld [vmem:[%s1156_s7 + $0xb4] ss:$8 sps:$4 sm:$0xff]   ;;  %v1026_v30 = vld [vmem:[%s1156_s7 + $0xb0] ss:$8 sps:$4 sm:$0xff]   ;;  %v1027_v31 = vld [vmem:[%s1156_s7 + $0xc4] ss:$8 sps:$4 sm:$0xff]  }
  0x30   : > { %v1029_v32 = vld [vmem:[%s1156_s7 + $0xc0] ss:$8 sps:$4 sm:$0xff]   ;;  %v1030_v33 = vld [vmem:[%s1156_s7 + $0xd4] ss:$8 sps:$4 sm:$0xff]   ;;  %v1032_v34 = vld [vmem:[%s1156_s7 + $0xd0] ss:$8 sps:$4 sm:$0xff]  }
  0x31   : > { %562 = vmatpush1.bf16.msra.mxu0 %v999_v10  ;;  %936 = vmatpush1.bf16.msra.mxu1 %v999_v10  ;;  %v1033_v35 = vld [vmem:[%s1156_s7 + $0xe4] ss:$8 sps:$4 sm:$0xff]   ;;  %v1035_v36 = vld [vmem:[%s1156_s7 + $0xe0] ss:$8 sps:$4 sm:$0xff]   ;;  %v1036_v37 = vld [vmem:[%s1156_s7 + $0xf4] ss:$8 sps:$4 sm:$0xff]  }
  0x32   : > { %563 = vmatprep.subr.bf16.mxu0 %v1000_v11  ;;  %921 = vmatprep.subr.bf16.mxu1 %v1000_v11  ;;  %v1038_v38 = vld [vmem:[%s1156_s7 + $0xf0] ss:$8 sps:$4 sm:$0xff]   ;;  %v1039_v39 = vld [vmem:[%s1158_s8] ss:$8 sps:$4 sm:$0xff]   ;;  %p903_p11 = scmp.ne.s32.totalorder %s1075_s14, 8 }
  0x33   : > { %v1042_v40 = vld [vmem:[%s1158_s8 + $0x10] ss:$8 sps:$4 sm:$0xff]   ;;  %v333_v41 = vld [vmem:[#allocation2] sm:$0xff]  ;;  %v334_v43 = vld [vmem:[#allocation2 + $0x8] sm:$0xff]  ;;  %v640_v1 = vlaneseq (!%p903_p11) }
  0x34   : > { %v337_v42 = vld [vmem:[#allocation2 + $0x20] sm:$0xff]  ;;  %v338_v44 = vld [vmem:[#allocation2 + $0x28] sm:$0xff]  ;;  %v335_v47 = vld [vmem:[#allocation2 + $0x10] sm:$0xff] }
  0x35   : > { %564 = vmatpush1.bf16.msra.mxu0 %v1002_v12  ;;  %937 = vmatpush1.bf16.msra.mxu1 %v1002_v12  ;;  %v339_v48 = vld [vmem:[#allocation2 + $0x30] sm:$0xff]  ;;  %v336_v53 = vld [vmem:[#allocation2 + $0x18] sm:$0xff]  ;;  %v641_v2 = vshrl.u32 (!%p903_p11), %v640_v1, 7  ;;  %v630_v3 = vld [vmem:[%s1230_s2] sm:$0xf] (!%p903_p11) }
  0x36   : > { %565 = vmatprep.subr.bf16.mxu0 %v1003_v13  ;;  %922 = vmatprep.subr.bf16.mxu1 %v1003_v13  ;;  %v340_v54 = vld [vmem:[#allocation2 + $0x38] sm:$0xff] }
  0x37   : > { %v642_v4 = vsub.s32 (!%p903_p11), 0, %v641_v2  ;;  %v646_v5 = vsub.s32 (!%p903_p11), 2, %v641_v2  ;;  %v668_v6 = vsub.s32 (!%p903_p11), 1, %v641_v2  ;;  %v672_v7 = vsub.s32 (!%p903_p11), 3, %v641_v2 }
  0x39   : > { %566 = vmatpush1.bf16.msra.mxu0 %v1005_v14  ;;  %938 = vmatpush1.bf16.msra.mxu1 %v1005_v14  ;;  %v643_v10 = vrot.slane (!%p903_p11), %v630_v3, %v642_v4  ;;  %v647_v11 = vrot.slane (!%p903_p11), %v630_v3, %v646_v5  ;;  %v669_v12 = vrot.slane (!%p903_p11), %v630_v3, %v668_v6 }
  0x3a   : > { %567 = vmatprep.subr.bf16.mxu0 %v1006_v15  ;;  %923 = vmatprep.subr.bf16.mxu1 %v1006_v15  ;;  %v673_v13 = vrot.slane (!%p903_p11), %v630_v3, %v672_v7 }
  0x3b   : > { %v657_v18 = vrot.slane (!%p903_p11), %v647_v11, %v642_v4 }
  0x3c   : > { %v683_v20 = vrot.slane (!%p903_p11), %v673_v13, %v668_v6 }
  0x3d   : > { %568 = vmatpush1.bf16.msra.mxu0 %v1008_v16  ;;  %939 = vmatpush1.bf16.msra.mxu1 %v1008_v16 }
  0x3e   : > { %569 = vmatprep.subr.bf16.mxu0 %v1009_v17  ;;  %924 = vmatprep.subr.bf16.mxu1 %v1009_v17  ;;  %v653_v17 = vrot.slane (!%p903_p11), %v643_v10, %v642_v4 }
  0x41   : > { %570 = vmatpush1.bf16.msra.mxu0 %v1011_v19  ;;  %940 = vmatpush1.bf16.msra.mxu1 %v1011_v19  ;;  %v679_v19 = vrot.slane (!%p903_p11), %v669_v12, %v668_v6 }
  0x42   : > { %571 = vmatprep.subr.bf16.mxu0 %v1012_v21  ;;  %925 = vmatprep.subr.bf16.mxu1 %v1012_v21 }
  0x45   : > { %572 = vmatpush1.bf16.msra.mxu0 %v1014_v22  ;;  %941 = vmatpush1.bf16.msra.mxu1 %v1014_v22 }
  0x46   : > { %573 = vmatprep.subr.bf16.mxu0 %v1015_v23  ;;  %926 = vmatprep.subr.bf16.mxu1 %v1015_v23 }
  0x49   : > { %574 = vmatpush1.bf16.msra.mxu0 %v1017_v24  ;;  %942 = vmatpush1.bf16.msra.mxu1 %v1017_v24 }
  0x4a   : > { %575 = vmatprep.subr.bf16.mxu0 %v1018_v25  ;;  %927 = vmatprep.subr.bf16.mxu1 %v1018_v25 }
  0x4d   : > { %576 = vmatpush1.bf16.msra.mxu0 %v1020_v26  ;;  %943 = vmatpush1.bf16.msra.mxu1 %v1020_v26 }
  0x4e   : > { %577 = vmatprep.subr.bf16.mxu0 %v1021_v27  ;;  %928 = vmatprep.subr.bf16.mxu1 %v1021_v27 }
  0x51   : > { %578 = vmatpush1.bf16.msra.mxu0 %v1023_v28  ;;  %944 = vmatpush1.bf16.msra.mxu1 %v1023_v28 }
  0x52   : > { %579 = vmatprep.subr.bf16.mxu0 %v1024_v29  ;;  %929 = vmatprep.subr.bf16.mxu1 %v1024_v29 }
  0x55   : > { %580 = vmatpush1.bf16.msra.mxu0 %v1026_v30  ;;  %945 = vmatpush1.bf16.msra.mxu1 %v1026_v30 }
  0x56   : > { %581 = vmatprep.subr.bf16.mxu0 %v1027_v31  ;;  %930 = vmatprep.subr.bf16.mxu1 %v1027_v31 }
  0x59   : > { %582 = vmatpush1.bf16.msra.mxu0 %v1029_v32  ;;  %946 = vmatpush1.bf16.msra.mxu1 %v1029_v32 }
  0x5a   : > { %583 = vmatprep.subr.bf16.mxu0 %v1030_v33  ;;  %931 = vmatprep.subr.bf16.mxu1 %v1030_v33 }
  0x5d   : > { %584 = vmatpush1.bf16.msra.mxu0 %v1032_v34  ;;  %947 = vmatpush1.bf16.msra.mxu1 %v1032_v34 }
  0x5e   : > { %585 = vmatprep.subr.bf16.mxu0 %v1033_v35  ;;  %932 = vmatprep.subr.bf16.mxu1 %v1033_v35 }
  0x61   : > { %586 = vmatpush1.bf16.msra.mxu0 %v1035_v36  ;;  %948 = vmatpush1.bf16.msra.mxu1 %v1035_v36 }
  0x62   : > { %587 = vmatprep.subr.bf16.mxu0 %v1036_v37  ;;  %933 = vmatprep.subr.bf16.mxu1 %v1036_v37 }
  0x65   : > { %588 = vmatpush1.bf16.msra.mxu0 %v1038_v38  ;;  %949 = vmatpush1.bf16.msra.mxu1 %v1038_v38 }
  0x68   : > { %590 = vmatmul.mubr.bf16.vlgmr.msra.gmra.mrb[0].mxu0 %v1039_v39  ;;  %600 = vmatmul.mubr.bf16.vlgmr.msra.gmra.mrb[0].mxu1 %v1042_v40 }
 0x13b   : > { %v591_v45 = vpop.f32.mrb[0].mxu0  ;;  %v601_v46 = vpop.f32.mrb[0].mxu1  ;;  %629 = sbr.rel (%p903_p11) target bundleno = 339 (0x153), region = 78 }
 0x13c   : > { %v610_v49 = vadd.f32 %v591_v45, %v333_v41  ;;  %v614_v50 = vadd.f32 %v601_v46, %v337_v42  ;;  %v593_v51 = vpop.f32.mrb[1].mxu0  ;;  %v603_v52 = vpop.f32.mrb[1].mxu1 }
 0x13d   : > { %v611_v55 = vadd.f32 %v593_v51, %v334_v43  ;;  %v615_v56 = vadd.f32 %v603_v52, %v338_v44  ;;  %v595_v57 = vpop.f32.mrb[2].mxu0  ;;  %v605_v58 = vpop.f32.mrb[2].mxu1 }
 0x13e   : > { %618 = vst [vmem:[#allocation2] sm:$0xff] %v610_v49  ;;  %622 = vst [vmem:[#allocation2 + $0x20] sm:$0xff] %v614_v50  ;;  %v612_v59 = vadd.f32 %v595_v57, %v335_v47  ;;  %v616_v60 = vadd.f32 %v605_v58, %v339_v48  ;;  %v597_v61 = vpop.f32.mrb[3].mxu0  ;;  %v607_v62 = vpop.f32.mrb[3].mxu1 }
 0x13f   : > { %619 = vst [vmem:[#allocation2 + $0x8] sm:$0xff] %v611_v55  ;;  %623 = vst [vmem:[#allocation2 + $0x28] sm:$0xff] %v615_v56  ;;  %v613_v63 = vadd.f32 %v597_v61, %v336_v53  ;;  %v617_v0 = vadd.f32 %v607_v62, %v340_v54 }
 0x140   : > { %620 = vst [vmem:[#allocation2 + $0x10] sm:$0xff] %v612_v59  ;;  %624 = vst [vmem:[#allocation2 + $0x30] sm:$0xff] %v616_v60 }
 0x141   : > { %621 = vst [vmem:[#allocation2 + $0x18] sm:$0xff] %v613_v63  ;;  %625 = vst [vmem:[#allocation2 + $0x38] sm:$0xff] %v617_v0 }
 0x145   : > { %v631_v8 = vld [vmem:[#allocation2] sm:$0xff] }
 0x146   : > { %v632_v9 = vld [vmem:[#allocation2 + $0x8] sm:$0xff]  ;;  %v635_v16 = vld [vmem:[#allocation2 + $0x20] sm:$0xff]  ;;  %v658_v24 = vmul.f32 %v653_v17, %v631_v8 }
 0x147   : > { %v633_v14 = vld [vmem:[#allocation2 + $0x10] sm:$0xff]  ;;  %v636_v21 = vld [vmem:[#allocation2 + $0x28] sm:$0xff]  ;;  %v659_v25 = vmul.f32 %v657_v18, %v632_v9  ;;  %v662_v28 = vmul.f32 %v653_v17, %v635_v16 }
 0x148   : > { %v634_v15 = vld [vmem:[#allocation2 + $0x18] sm:$0xff]  ;;  %v637_v22 = vld [vmem:[#allocation2 + $0x30] sm:$0xff]  ;;  %v660_v26 = vmul.f32 %v653_v17, %v633_v14  ;;  %v663_v29 = vmul.f32 %v657_v18, %v636_v21  ;;  %v684_v32 = vadd.f32 %v679_v19, %v658_v24 }
 0x149   : > { %v638_v23 = vld [vmem:[#allocation2 + $0x38] sm:$0xff]  ;;  %v661_v27 = vmul.f32 %v657_v18, %v634_v15  ;;  %v664_v30 = vmul.f32 %v653_v17, %v637_v22  ;;  %v685_v33 = vadd.f32 %v683_v20, %v659_v25  ;;  %v688_v36 = vadd.f32 %v679_v19, %v662_v28 }
 0x14a   : > { %v665_v31 = vmul.f32 %v657_v18, %v638_v23  ;;  %v686_v34 = vadd.f32 %v679_v19, %v660_v26  ;;  %v689_v37 = vadd.f32 %v683_v20, %v663_v29  ;;  %v692_v40 = vmax.f32 %v684_v32, 0.0 }
 0x14b   : > { %v687_v35 = vadd.f32 %v683_v20, %v661_v27  ;;  %v690_v38 = vadd.f32 %v679_v19, %v664_v30  ;;  %v693_v41 = vmax.f32 %v685_v33, 0.0  ;;  %v696_v44 = vmax.f32 %v688_v36, 0.0 }
 0x14c   : > { %v691_v39 = vadd.f32 %v683_v20, %v665_v31  ;;  %v694_v42 = vmax.f32 %v686_v34, 0.0  ;;  %v697_v45 = vmax.f32 %v689_v37, 0.0 }
 0x14d   : > { %v695_v43 = vmax.f32 %v687_v35, 0.0  ;;  %v698_v46 = vmax.f32 %v690_v38, 0.0  ;;  %v914_v48 = vpack.c.bf16 %v693_v41, %v692_v40 }
 0x14e   : > { %v699_v47 = vmax.f32 %v691_v39, 0.0  ;;  %v916_v50 = vpack.c.bf16 %v697_v45, %v696_v44 }
 0x14f   : > { %v915_v49 = vpack.c.bf16 %v695_v43, %v694_v42  ;;  %724 = vst [vmem:[%s1231_s3] sm:$0xff] %v914_v48 }
 0x150   : > { %v917_v51 = vpack.c.bf16 %v699_v47, %v698_v46  ;;  %726 = vst [vmem:[%s1231_s3 + $0x10] sm:$0xff] %v916_v50 }
 0x151   : > { %725 = vst [vmem:[%s1231_s3 + $0x8] sm:$0xff] %v915_v49 }
 0x152   : > { %727 = vst [vmem:[%s1231_s3 + $0x18] sm:$0xff] %v917_v51 }
 0x153 PF: > { %s13_s16 = sadd.s32 1, %s1083_s16   ;;  %s1232_s12 = smov %s1071_s13 }
 0x154   : > { %p10_p12 = scmp.ge.s32.totalorder %s13_s16, 11   ;;  %s1233_s13 = smov %s1141_s20 }
 0x155   : > { %s1234_s14 = smov %s1079_s15  ;;  %s1235_s15 = smov %s1237_s17 }
 0x156   :  { %12 = sbr.rel (!%p10_p12) target bundleno = 3 (0x3), region = 119 }

// kernel: forward.46
= control target key start
LH: loop header
LB: loop body
LE: loop exit
PB: predicated region body
PF: predicated region fallthrough
CT: control target
= control target key end

     0   :  { %s1657_s0 = inlined_call_operand.vmem [shape: bf16[32,2304], index: 0, kind: input, shape index: {}]   ;;  %s1658_s1 = inlined_call_operand.vmem [shape: bf16[2304,512], index: 1, kind: input, shape index: {}]   ;;  %s1659_s2 = inlined_call_operand.vmem [shape: f32[2,512], index: 2, kind: input, shape index: {}]   ;;  %s1660_s3 = inlined_call_operand.vmem [shape: bf16[32,512], index: 3, kind: output, shape index: {}]  }
   0x1   :  { %1663 = sst [smem:[#allocation8_spill]] %s1657_s0 }
   0x2   :  { %1664 = sst [smem:[#allocation9_spill]] %s1658_s1 }
   0x3   :  { %s1372_s12 = smov 0   ;;  %s1374_s13 = smov 0  }
   0x4   :  { %s1376_s14 = smov 0   ;;  %s1378_s15 = smov 0  }
   0x5   :  { %s1380_s16 = smov 0   ;;  %s1382_s17 = smov 0  }
   0x6   :  { %s1384_s18 = smov 0   ;;  %s1386_s19 = smov 0  }
   0x7   :  { %s1388_s20 = smov 0   ;;  %s1390_s21 = smov 0  }
   0x8   :  { %s1392_s22 = smov 0  }
   0x9 LB: > { %s1016_s23 = sadd.s32 4294967295, %s1349_s22   ;;  %s25_s24 = sadd.s32 1, %s1341_s20  ;;  %s1349_s22 = sphi %s1392_s22, %s13_s22   ;;  %s1345_s21 = sphi %s1390_s21, %s1683_s21   ;;  %s1341_s20 = sphi %s1388_s20, %s1682_s20   ;;  %s1337_s19 = sphi %s1386_s19, %s1681_s19   ;;  %s1333_s18 = sphi %s1384_s18, %s1680_s18   ;;  %s1329_s17 = sphi %s1382_s17, %s1679_s17   ;;  %s1325_s16 = sphi %s1380_s16, %s1678_s16   ;;  %s1321_s15 = sphi %s1378_s15, %s1677_s15   ;;  %s1317_s14 = sphi %s1376_s14, %s1676_s14   ;;  %s1313_s13 = sphi %s1374_s13, %s1675_s13   ;;  %s1309_s12 = sphi %s1372_s12, %s1674_s12  }
   0xa   : > { %p26_p0 = scmp.ge.s32.totalorder %s25_s24, 9  ;;  %s28_s25 = sadd.s32 1, %s1345_s21 }
   0xb   : > { %s41_s26 = sadd.s32 1, %s1329_s17  ;;  %p48_p1 = scmp.ne.s32.totalorder %s1329_s17, %s1325_s16 }
   0xc   : > { %s1685_s24 = smov (%p26_p0, %s25_s24), 0  ;;  %s1687_s25 = smov (!%p26_p0, %s28_s25), %s1345_s21 }
   0xd   : > { %1665 = sst [smem:[#allocation6_spill]] %s1685_s24  ;;  %s37_s27 = ssub.s32 %s1341_s20, %s1685_s24 }
   0xe   : > { %p49_p2 = scmp.eq.s32.totalorder %s1349_s22, 0  ;;  %p30_p3 = scmp.ge.s32.totalorder %s1687_s25, 2 }
   0xf   : > { %p39_p4 = scmp.eq.s32.totalorder %s37_s27, 0  ;;  %s69_s29 = sadd.s32 1, %s1321_s15 }
  0x10   : > { %p1439_p5 = por %p49_p2, %p48_p1  ;;  %s1689_s25 = smov (%p30_p3, %s1687_s25), 0 }
  0x11   : > { %1667 = sst [smem:[#allocation7_spill]] %s1689_s25  ;;  %s65_s4 = ssub.s32 %s1345_s21, %s1689_s25 }
  0x12   : > { %s1447_s30 = scalar_select %p39_p4, %s1329_s17, %s41_s26  }
  0x13   : > { %p76_p6 = scmp.ne.s32.totalorder %s1321_s15, %s1317_s14  ;;  %s66_s5 = sor.u32 %s65_s4, %s37_s27 }
  0x14   : > { %p121_p7 = scmp.eq.s32.totalorder %s65_s4, 0  ;;  %p67_p8 = scmp.eq.s32.totalorder %s66_s5, 0 }
  0x15   : > { %p1453_p9 = por %p76_p6, %p49_p2  ;;  %s123_s7 = sadd.s32 1, %s1313_s13 }
  0x16   : > { %p133_p10 = scmp.ne.s32.totalorder %s1313_s13, %s1309_s12  ;;  %p134_p11 = scmp.eq.s32.totalorder %s1016_s23, 17 }
  0x17   : > { %s1461_s8 = scalar_select %p67_p8, %s1321_s15, %s69_s29  }
  0x18   : > { %s1464_s9 = scalar_select %p121_p7, %s1313_s13, %s123_s7  }
  0x19   : > { %p1466_p12 = por %p134_p11, %p133_p10  ;;  %p1019_p13 = scmp.ge.s32.totalorder %s1349_s22, 18 }
  0x1b   : > { %156 = sbr.rel (%p1019_p13) target bundleno = 72 (0x48), region = 16 }
  0x22   : > { %159 = sbr.rel (!%p1439_p5) target bundleno = 46 (0x2e), region = 20  ;;  %s161_s11 = sand.u32 (%p1439_p5), 1, %s1329_s17  }
  0x23   : > { %s1081_s26 = sshll.u32 (%p1439_p5), %s1341_s20, 3  ;;  %s1020_s27 = sshll.u32 (%p1439_p5), %s161_s11, 5 }
  0x24   : > { %s1670_s0 = sld [smem:[#allocation8_spill]] (%p1439_p5)  ;;  %s163_s23 = scalar_lea.vmem (%p1439_p5), [#allocation3], %s1020_s27 }
  0x2a   : > { %s169_s5 = scalar_lea.vmem %s1670_s0, %s1081_s26 }
  0x2b   : > { %v203_v0 = vld [vmem:[%s169_s5] sm:$0xff]  ;;  %v205_v1 = vld [vmem:[%s169_s5 + $0x48] sm:$0xff]  ;;  %v207_v2 = vld [vmem:[%s169_s5 + $0x90] sm:$0xff] }
  0x2c   : > { %204 = vst [vmem:[%s163_s23] sm:$0xff] %v203_v0  ;;  %206 = vst [vmem:[%s163_s23 + $0x8] sm:$0xff] %v205_v1  ;;  %v209_v3 = vld [vmem:[%s169_s5 + $0xd8] sm:$0xff] }
  0x2d   : > { %208 = vst [vmem:[%s163_s23 + $0x10] sm:$0xff] %v207_v2  ;;  %210 = vst [vmem:[%s163_s23 + $0x18] sm:$0xff] %v209_v3 }
  0x2e PF: > { %216 = sbr.rel (!%p1453_p9) target bundleno = 72 (0x48), region = 58  ;;  %s218_s28 = sand.u32 (%p1453_p9), 1, %s1321_s15  }
  0x2f   : > { %s1025_s7 = sshll.u32 (%p1453_p9), %s1345_s21, 1  ;;  %s1023_s11 = sshll.u32 (%p1453_p9), %s218_s28, 8 }
  0x30   : > { %s1082_s26 = sshll.u32 (%p1453_p9), %s1341_s20, 7  ;;  %s1671_s1 = sld [smem:[#allocation9_spill]] (%p1453_p9) }
  0x31   : > { %s224_s29 = sadd.s32 (%p1453_p9), %s1082_s26, %s1025_s7  ;;  %s1491_s6 = scalar_lea.vmem (%p1453_p9), [#allocation4], %s1023_s11 }
  0x32   : > { %s1027_s4 = sshll.u32 (%p1453_p9), %s224_s29, 2 }
  0x36   : > { %s1486_s25 = scalar_lea.vmem %s1671_s1, %s1027_s4 }
  0x37   : > { %v316_v4 = vld [vmem:[%s1486_s25] sm:$0xff]  ;;  %v318_v5 = vld [vmem:[%s1486_s25 + $0x10] sm:$0xff] }
  0x38   : > { %v320_v6 = vld [vmem:[%s1486_s25 + $0x20] sm:$0xff]  ;;  %317 = vst [vmem:[%s1491_s6] sm:$0xff] %v316_v4  ;;  %319 = vst [vmem:[%s1491_s6 + $0x8] sm:$0xff] %v318_v5  ;;  %v322_v7 = vld [vmem:[%s1486_s25 + $0x30] sm:$0xff] }
  0x39   : > { %321 = vst [vmem:[%s1491_s6 + $0x10] sm:$0xff] %v320_v6  ;;  %v324_v8 = vld [vmem:[%s1486_s25 + $0x40] sm:$0xff]  ;;  %v326_v9 = vld [vmem:[%s1486_s25 + $0x50] sm:$0xff]  ;;  %323 = vst [vmem:[%s1491_s6 + $0x18] sm:$0xff] %v322_v7 }
  0x3a   : > { %325 = vst [vmem:[%s1491_s6 + $0x20] sm:$0xff] %v324_v8  ;;  %327 = vst [vmem:[%s1491_s6 + $0x28] sm:$0xff] %v326_v9  ;;  %v328_v10 = vld [vmem:[%s1486_s25 + $0x60] sm:$0xff]  ;;  %v330_v11 = vld [vmem:[%s1486_s25 + $0x70] sm:$0xff] }
  0x3b   : > { %v332_v12 = vld [vmem:[%s1486_s25 + $0x80] sm:$0xff]  ;;  %329 = vst [vmem:[%s1491_s6 + $0x30] sm:$0xff] %v328_v10  ;;  %331 = vst [vmem:[%s1491_s6 + $0x38] sm:$0xff] %v330_v11  ;;  %v334_v13 = vld [vmem:[%s1486_s25 + $0x90] sm:$0xff] }
  0x3c   : > { %333 = vst [vmem:[%s1491_s6 + $0x40] sm:$0xff] %v332_v12  ;;  %v336_v14 = vld [vmem:[%s1486_s25 + $0xa0] sm:$0xff]  ;;  %v338_v15 = vld [vmem:[%s1486_s25 + $0xb0] sm:$0xff]  ;;  %335 = vst [vmem:[%s1491_s6 + $0x48] sm:$0xff] %v334_v13 }
  0x3d   : > { %337 = vst [vmem:[%s1491_s6 + $0x50] sm:$0xff] %v336_v14  ;;  %339 = vst [vmem:[%s1491_s6 + $0x58] sm:$0xff] %v338_v15  ;;  %v340_v16 = vld [vmem:[%s1486_s25 + $0xc0] sm:$0xff]  ;;  %v342_v17 = vld [vmem:[%s1486_s25 + $0xd0] sm:$0xff] }
  0x3e   : > { %v344_v18 = vld [vmem:[%s1486_s25 + $0xe0] sm:$0xff]  ;;  %341 = vst [vmem:[%s1491_s6 + $0x60] sm:$0xff] %v340_v16  ;;  %343 = vst [vmem:[%s1491_s6 + $0x68] sm:$0xff] %v342_v17  ;;  %v346_v19 = vld [vmem:[%s1486_s25 + $0xf0] sm:$0xff] }
  0x3f   : > { %345 = vst [vmem:[%s1491_s6 + $0x70] sm:$0xff] %v344_v18  ;;  %v348_v20 = vld [vmem:[%s1486_s25 + $0x100] sm:$0xff]  ;;  %v350_v21 = vld [vmem:[%s1486_s25 + $0x110] sm:$0xff]  ;;  %347 = vst [vmem:[%s1491_s6 + $0x78] sm:$0xff] %v346_v19 }
  0x40   : > { %349 = vst [vmem:[%s1491_s6 + $0x80] sm:$0xff] %v348_v20  ;;  %351 = vst [vmem:[%s1491_s6 + $0x88] sm:$0xff] %v350_v21  ;;  %v352_v22 = vld [vmem:[%s1486_s25 + $0x120] sm:$0xff]  ;;  %v354_v23 = vld [vmem:[%s1486_s25 + $0x130] sm:$0xff] }
  0x41   : > { %v356_v24 = vld [vmem:[%s1486_s25 + $0x140] sm:$0xff]  ;;  %353 = vst [vmem:[%s1491_s6 + $0x90] sm:$0xff] %v352_v22  ;;  %355 = vst [vmem:[%s1491_s6 + $0x98] sm:$0xff] %v354_v23  ;;  %v358_v25 = vld [vmem:[%s1486_s25 + $0x150] sm:$0xff] }
  0x42   : > { %357 = vst [vmem:[%s1491_s6 + $0xa0] sm:$0xff] %v356_v24  ;;  %v360_v26 = vld [vmem:[%s1486_s25 + $0x160] sm:$0xff]  ;;  %v362_v27 = vld [vmem:[%s1486_s25 + $0x170] sm:$0xff]  ;;  %359 = vst [vmem:[%s1491_s6 + $0xa8] sm:$0xff] %v358_v25 }
  0x43   : > { %361 = vst [vmem:[%s1491_s6 + $0xb0] sm:$0xff] %v360_v26  ;;  %363 = vst [vmem:[%s1491_s6 + $0xb8] sm:$0xff] %v362_v27  ;;  %v364_v28 = vld [vmem:[%s1486_s25 + $0x180] sm:$0xff]  ;;  %v366_v29 = vld [vmem:[%s1486_s25 + $0x190] sm:$0xff] }
  0x44   : > { %v368_v30 = vld [vmem:[%s1486_s25 + $0x1a0] sm:$0xff]  ;;  %365 = vst [vmem:[%s1491_s6 + $0xc0] sm:$0xff] %v364_v28  ;;  %367 = vst [vmem:[%s1491_s6 + $0xc8] sm:$0xff] %v366_v29  ;;  %v370_v31 = vld [vmem:[%s1486_s25 + $0x1b0] sm:$0xff] }
  0x45   : > { %369 = vst [vmem:[%s1491_s6 + $0xd0] sm:$0xff] %v368_v30  ;;  %v372_v32 = vld [vmem:[%s1486_s25 + $0x1c0] sm:$0xff]  ;;  %v374_v33 = vld [vmem:[%s1486_s25 + $0x1d0] sm:$0xff]  ;;  %371 = vst [vmem:[%s1491_s6 + $0xd8] sm:$0xff] %v370_v31 }
  0x46   : > { %373 = vst [vmem:[%s1491_s6 + $0xe0] sm:$0xff] %v372_v32  ;;  %375 = vst [vmem:[%s1491_s6 + $0xe8] sm:$0xff] %v374_v33  ;;  %v376_v34 = vld [vmem:[%s1486_s25 + $0x1e0] sm:$0xff]  ;;  %v378_v35 = vld [vmem:[%s1486_s25 + $0x1f0] sm:$0xff] }
  0x47   : > { %377 = vst [vmem:[%s1491_s6 + $0xf0] sm:$0xff] %v376_v34  ;;  %379 = vst [vmem:[%s1491_s6 + $0xf8] sm:$0xff] %v378_v35 }
  0x48 PF: > { %p1028_p0 = scmp.ge.s32.totalorder %s1349_s22, 1  ;;  %p393_p1 = scmp.lt.s32.totalorder %s1349_s22, 19 }
  0x4a   : > { %p394_p2 = pnand %p1028_p0, %p393_p1 }
  0x4b   : > { %s400_s0 = sand.u32 (!%p394_p2), 1, %s1325_s16   ;;  %s407_s5 = sand.u32 (!%p394_p2), 1, %s1317_s14  }
  0x4c   : > { %397 = sbr.rel (%p394_p2) target bundleno = 396 (0x18c), region = 100  ;;  %s1029_s23 = sshll.u32 (!%p394_p2), %s400_s0, 5 }
  0x4d   : > { %s1030_s28 = sshll.u32 (!%p394_p2), %s407_s5, 8  ;;  %s435_s7 = sand.u32 (!%p394_p2), 1, %s1309_s12  }
  0x4e   : > { %s1032_s25 = sshll.u32 (!%p394_p2), %s1337_s19, 1  ;;  %s1031_s11 = sshll.u32 (!%p394_p2), %s435_s7, 5 }
  0x4f   : > { %p443_p3 = scmp.lt.s32.totalorder (!%p394_p2), %s1032_s25, 3  ;;  %s1565_s6 = scalar_lea.vmem (!%p394_p2), [#allocation3], %s1029_s23 }
  0x50   : > { %s1567_s1 = scalar_lea.vmem (!%p394_p2), [#allocation4], %s1030_s28  ;;  %s1569_s24 = scalar_lea.vmem (!%p394_p2), [#allocation5], %s1031_s11 }
  0x51   : > { %p1034_p4 = scmp.ne.s32.totalorder (!%p394_p2), %s1333_s18, 0 }
  0x53   : > { %s1691_s25 = smov (!%p443_p3, %s1032_s25), 3  ;;  %453 = sbr.rel (%p1034_p4) target bundleno = 90 (0x5a), region = 112 }
  0x54   : > { %s1033_s26 = sshll.u32 %s1691_s25, 1  ;;  %v1351_v36 = vmov (!%p1034_p4), 0.0  }
  0x55   : > { %s1563_s27 = scalar_lea.vmem %s1659_s2, %s1033_s26  ;;  %454 = vst [vmem:[#allocation2] sm:$0xff] (!%p1034_p4), %v1351_v36  ;;  %455 = vst [vmem:[#allocation2 + $0x8] sm:$0xff] (!%p1034_p4), %v1351_v36 }
  0x56   : > { %456 = vst [vmem:[#allocation2 + $0x10] sm:$0xff] (!%p1034_p4), %v1351_v36  ;;  %457 = vst [vmem:[#allocation2 + $0x18] sm:$0xff] (!%p1034_p4), %v1351_v36 }
  0x57   : > { %458 = vst [vmem:[#allocation2 + $0x20] sm:$0xff] (!%p1034_p4), %v1351_v36  ;;  %459 = vst [vmem:[#allocation2 + $0x28] sm:$0xff] (!%p1034_p4), %v1351_v36 }
  0x58   : > { %460 = vst [vmem:[#allocation2 + $0x30] sm:$0xff] (!%p1034_p4), %v1351_v36  ;;  %461 = vst [vmem:[#allocation2 + $0x38] sm:$0xff] (!%p1034_p4), %v1351_v36 }
  0x5a PF: > { %v1209_v37 = vld [vmem:[%s1567_s1 + $0x4] ss:$8 sps:$4 sm:$0xff]   ;;  %v1211_v38 = vld [vmem:[%s1567_s1] ss:$8 sps:$4 sm:$0xff]   ;;  %v1212_v39 = vld [vmem:[%s1567_s1 + $0x14] ss:$8 sps:$4 sm:$0xff]  }
  0x5b   : > { %686 = vmatprep.subr.bf16.mxu0 %v1209_v37  ;;  %1088 = vmatprep.subr.bf16.mxu1 %v1209_v37  ;;  %v1214_v40 = vld [vmem:[%s1567_s1 + $0x10] ss:$8 sps:$4 sm:$0xff]   ;;  %v1215_v41 = vld [vmem:[%s1567_s1 + $0x24] ss:$8 sps:$4 sm:$0xff]   ;;  %v1217_v42 = vld [vmem:[%s1567_s1 + $0x20] ss:$8 sps:$4 sm:$0xff]  }
  0x5c   : > { %687 = vmatpush1.bf16.msra.mxu0 %v1211_v38  ;;  %1104 = vmatpush1.bf16.msra.mxu1 %v1211_v38  ;;  %v1218_v43 = vld [vmem:[%s1567_s1 + $0x34] ss:$8 sps:$4 sm:$0xff]   ;;  %v1220_v44 = vld [vmem:[%s1567_s1 + $0x30] ss:$8 sps:$4 sm:$0xff]   ;;  %v1221_v45 = vld [vmem:[%s1567_s1 + $0x44] ss:$8 sps:$4 sm:$0xff]  }
  0x5d   : > { %688 = vmatprep.subr.bf16.mxu0 %v1212_v39  ;;  %1089 = vmatprep.subr.bf16.mxu1 %v1212_v39  ;;  %v1223_v46 = vld [vmem:[%s1567_s1 + $0x40] ss:$8 sps:$4 sm:$0xff]   ;;  %v1224_v47 = vld [vmem:[%s1567_s1 + $0x54] ss:$8 sps:$4 sm:$0xff]   ;;  %v1226_v48 = vld [vmem:[%s1567_s1 + $0x50] ss:$8 sps:$4 sm:$0xff]  }
  0x5e   : > { %v1227_v49 = vld [vmem:[%s1567_s1 + $0x64] ss:$8 sps:$4 sm:$0xff]   ;;  %v1229_v51 = vld [vmem:[%s1567_s1 + $0x60] ss:$8 sps:$4 sm:$0xff]   ;;  %v1262_v52 = vld [vmem:[%s1565_s6 + $0x14] ss:$8 sps:$4 sm:$0xff]  }
  0x5f   : > { %v1259_v50 = vld [vmem:[%s1565_s6 + $0x4] ss:$8 sps:$4 sm:$0xff]   ;;  %v1230_v53 = vld [vmem:[%s1567_s1 + $0x74] ss:$8 sps:$4 sm:$0xff]   ;;  %728 = vmatprep.mubr.bf16.mxu1 %v1262_v52  ;;  %v1232_v54 = vld [vmem:[%s1567_s1 + $0x70] ss:$8 sps:$4 sm:$0xff]  }
  0x60   : > { %689 = vmatpush1.bf16.msra.mxu0 %v1214_v40  ;;  %1105 = vmatpush1.bf16.msra.mxu1 %v1214_v40  ;;  %v1233_v55 = vld [vmem:[%s1567_s1 + $0x84] ss:$8 sps:$4 sm:$0xff]   ;;  %v1235_v56 = vld [vmem:[%s1567_s1 + $0x80] ss:$8 sps:$4 sm:$0xff]   ;;  %v1236_v57 = vld [vmem:[%s1567_s1 + $0x94] ss:$8 sps:$4 sm:$0xff]  }
  0x61   : > { %690 = vmatprep.subr.bf16.mxu0 %v1215_v41  ;;  %1090 = vmatprep.subr.bf16.mxu1 %v1215_v41  ;;  %v1238_v58 = vld [vmem:[%s1567_s1 + $0x90] ss:$8 sps:$4 sm:$0xff]   ;;  %v1239_v59 = vld [vmem:[%s1567_s1 + $0xa4] ss:$8 sps:$4 sm:$0xff]   ;;  %v1241_v60 = vld [vmem:[%s1567_s1 + $0xa0] ss:$8 sps:$4 sm:$0xff]  }
  0x62   : > { %718 = vmatprep.mubr.bf16.mxu0 %v1259_v50  ;;  %v1242_v61 = vld [vmem:[%s1567_s1 + $0xb4] ss:$8 sps:$4 sm:$0xff]   ;;  %v1244_v62 = vld [vmem:[%s1567_s1 + $0xb0] ss:$8 sps:$4 sm:$0xff]   ;;  %v1245_v63 = vld [vmem:[%s1567_s1 + $0xc4] ss:$8 sps:$4 sm:$0xff]  }
  0x63   : > { %v1247_v0 = vld [vmem:[%s1567_s1 + $0xc0] ss:$8 sps:$4 sm:$0xff]   ;;  %v1248_v1 = vld [vmem:[%s1567_s1 + $0xd4] ss:$8 sps:$4 sm:$0xff]   ;;  %v1250_v2 = vld [vmem:[%s1567_s1 + $0xd0] ss:$8 sps:$4 sm:$0xff]  }
  0x64   : > { %691 = vmatpush1.bf16.msra.mxu0 %v1217_v42  ;;  %1106 = vmatpush1.bf16.msra.mxu1 %v1217_v42  ;;  %v1251_v3 = vld [vmem:[%s1567_s1 + $0xe4] ss:$8 sps:$4 sm:$0xff]   ;;  %v1253_v4 = vld [vmem:[%s1567_s1 + $0xe0] ss:$8 sps:$4 sm:$0xff]   ;;  %v1254_v5 = vld [vmem:[%s1567_s1 + $0xf4] ss:$8 sps:$4 sm:$0xff]  }
  0x65   : > { %692 = vmatprep.subr.bf16.mxu0 %v1218_v43  ;;  %1091 = vmatprep.subr.bf16.mxu1 %v1218_v43  ;;  %v1256_v6 = vld [vmem:[%s1567_s1 + $0xf0] ss:$8 sps:$4 sm:$0xff]   ;;  %v1257_v7 = vld [vmem:[%s1565_s6] ss:$8 sps:$4 sm:$0xff]   ;;  %p1071_p5 = scmp.ne.s32.totalorder %s1333_s18, 8 }
  0x66   : > { %v1260_v8 = vld [vmem:[%s1565_s6 + $0x10] ss:$8 sps:$4 sm:$0xff]   ;;  %v462_v9 = vld [vmem:[#allocation2] sm:$0xff]  ;;  %v463_v11 = vld [vmem:[#allocation2 + $0x8] sm:$0xff]  ;;  %v769_v33 = vlaneseq (!%p1071_p5) }
  0x67   : > { %v466_v10 = vld [vmem:[#allocation2 + $0x20] sm:$0xff]  ;;  %v467_v12 = vld [vmem:[#allocation2 + $0x28] sm:$0xff]  ;;  %v464_v15 = vld [vmem:[#allocation2 + $0x10] sm:$0xff] }
  0x68   : > { %693 = vmatpush1.bf16.msra.mxu0 %v1220_v44  ;;  %1107 = vmatpush1.bf16.msra.mxu1 %v1220_v44  ;;  %v468_v16 = vld [vmem:[#allocation2 + $0x30] sm:$0xff]  ;;  %v465_v21 = vld [vmem:[#allocation2 + $0x18] sm:$0xff]  ;;  %v770_v34 = vshrl.u32 (!%p1071_p5), %v769_v33, 7  ;;  %v759_v35 = vld [vmem:[%s1563_s27] sm:$0xf] (!%p1071_p5) }
  0x69   : > { %694 = vmatprep.subr.bf16.mxu0 %v1221_v45  ;;  %1092 = vmatprep.subr.bf16.mxu1 %v1221_v45  ;;  %v469_v22 = vld [vmem:[#allocation2 + $0x38] sm:$0xff] }
  0x6a   : > { %v771_v36 = vsub.s32 (!%p1071_p5), 0, %v770_v34  ;;  %v775_v37 = vsub.s32 (!%p1071_p5), 2, %v770_v34  ;;  %v797_v38 = vsub.s32 (!%p1071_p5), 1, %v770_v34  ;;  %v801_v39 = vsub.s32 (!%p1071_p5), 3, %v770_v34 }
  0x6c   : > { %695 = vmatpush1.bf16.msra.mxu0 %v1223_v46  ;;  %1108 = vmatpush1.bf16.msra.mxu1 %v1223_v46  ;;  %v772_v42 = vrot.slane (!%p1071_p5), %v759_v35, %v771_v36  ;;  %v776_v43 = vrot.slane (!%p1071_p5), %v759_v35, %v775_v37  ;;  %v798_v44 = vrot.slane (!%p1071_p5), %v759_v35, %v797_v38 }
  0x6d   : > { %696 = vmatprep.subr.bf16.mxu0 %v1224_v47  ;;  %1093 = vmatprep.subr.bf16.mxu1 %v1224_v47  ;;  %v802_v45 = vrot.slane (!%p1071_p5), %v759_v35, %v801_v39 }
  0x6e   : > { %v786_v50 = vrot.slane (!%p1071_p5), %v776_v43, %v771_v36 }
  0x6f   : > { %v812_v52 = vrot.slane (!%p1071_p5), %v802_v45, %v797_v38 }
  0x70   : > { %697 = vmatpush1.bf16.msra.mxu0 %v1226_v48  ;;  %1109 = vmatpush1.bf16.msra.mxu1 %v1226_v48 }
  0x71   : > { %698 = vmatprep.subr.bf16.mxu0 %v1227_v49  ;;  %1094 = vmatprep.subr.bf16.mxu1 %v1227_v49  ;;  %v782_v49 = vrot.slane (!%p1071_p5), %v772_v42, %v771_v36 }
  0x74   : > { %699 = vmatpush1.bf16.msra.mxu0 %v1229_v51  ;;  %1110 = vmatpush1.bf16.msra.mxu1 %v1229_v51  ;;  %v808_v51 = vrot.slane (!%p1071_p5), %v798_v44, %v797_v38 }
  0x75   : > { %700 = vmatprep.subr.bf16.mxu0 %v1230_v53  ;;  %1095 = vmatprep.subr.bf16.mxu1 %v1230_v53 }
  0x78   : > { %701 = vmatpush1.bf16.msra.mxu0 %v1232_v54  ;;  %1111 = vmatpush1.bf16.msra.mxu1 %v1232_v54 }
  0x79   : > { %702 = vmatprep.subr.bf16.mxu0 %v1233_v55  ;;  %1096 = vmatprep.subr.bf16.mxu1 %v1233_v55 }
  0x7c   : > { %703 = vmatpush1.bf16.msra.mxu0 %v1235_v56  ;;  %1112 = vmatpush1.bf16.msra.mxu1 %v1235_v56 }
  0x7d   : > { %704 = vmatprep.subr.bf16.mxu0 %v1236_v57  ;;  %1097 = vmatprep.subr.bf16.mxu1 %v1236_v57 }
  0x80   : > { %705 = vmatpush1.bf16.msra.mxu0 %v1238_v58  ;;  %1113 = vmatpush1.bf16.msra.mxu1 %v1238_v58 }
  0x81   : > { %706 = vmatprep.subr.bf16.mxu0 %v1239_v59  ;;  %1098 = vmatprep.subr.bf16.mxu1 %v1239_v59 }
  0x84   : > { %707 = vmatpush1.bf16.msra.mxu0 %v1241_v60  ;;  %1114 = vmatpush1.bf16.msra.mxu1 %v1241_v60 }
  0x85   : > { %708 = vmatprep.subr.bf16.mxu0 %v1242_v61  ;;  %1099 = vmatprep.subr.bf16.mxu1 %v1242_v61 }
  0x88   : > { %709 = vmatpush1.bf16.msra.mxu0 %v1244_v62  ;;  %1115 = vmatpush1.bf16.msra.mxu1 %v1244_v62 }
  0x89   : > { %710 = vmatprep.subr.bf16.mxu0 %v1245_v63  ;;  %1100 = vmatprep.subr.bf16.mxu1 %v1245_v63 }
  0x8c   : > { %711 = vmatpush1.bf16.msra.mxu0 %v1247_v0  ;;  %1116 = vmatpush1.bf16.msra.mxu1 %v1247_v0 }
  0x8d   : > { %712 = vmatprep.subr.bf16.mxu0 %v1248_v1  ;;  %1101 = vmatprep.subr.bf16.mxu1 %v1248_v1 }
  0x90   : > { %713 = vmatpush1.bf16.msra.mxu0 %v1250_v2  ;;  %1117 = vmatpush1.bf16.msra.mxu1 %v1250_v2 }
  0x91   : > { %714 = vmatprep.subr.bf16.mxu0 %v1251_v3  ;;  %1102 = vmatprep.subr.bf16.mxu1 %v1251_v3 }
  0x94   : > { %715 = vmatpush1.bf16.msra.mxu0 %v1253_v4  ;;  %1118 = vmatpush1.bf16.msra.mxu1 %v1253_v4 }
  0x95   : > { %716 = vmatprep.subr.bf16.mxu0 %v1254_v5  ;;  %1103 = vmatprep.subr.bf16.mxu1 %v1254_v5 }
  0x98   : > { %717 = vmatpush1.bf16.msra.mxu0 %v1256_v6  ;;  %1119 = vmatpush1.bf16.msra.mxu1 %v1256_v6 }
  0x9b   : > { %719 = vmatmul.mubr.bf16.vlgmr.msra.gmra.mrb[0].mxu0 %v1257_v7  ;;  %729 = vmatmul.mubr.bf16.vlgmr.msra.gmra.mrb[0].mxu1 %v1260_v8 }
 0x16e   : > { %v720_v13 = vpop.f32.mrb[0].mxu0  ;;  %v730_v14 = vpop.f32.mrb[0].mxu1  ;;  %758 = sbr.rel (%p1071_p5) target bundleno = 388 (0x184), region = 116 }
 0x16f   : > { %v739_v17 = vadd.f32 %v720_v13, %v462_v9  ;;  %v743_v18 = vadd.f32 %v730_v14, %v466_v10  ;;  %v722_v19 = vpop.f32.mrb[1].mxu0  ;;  %v732_v20 = vpop.f32.mrb[1].mxu1 }
 0x170   : > { %v740_v23 = vadd.f32 %v722_v19, %v463_v11  ;;  %v744_v24 = vadd.f32 %v732_v20, %v467_v12  ;;  %v724_v25 = vpop.f32.mrb[2].mxu0  ;;  %v734_v26 = vpop.f32.mrb[2].mxu1 }
 0x171   : > { %747 = vst [vmem:[#allocation2] sm:$0xff] %v739_v17  ;;  %751 = vst [vmem:[#allocation2 + $0x20] sm:$0xff] %v743_v18  ;;  %v741_v27 = vadd.f32 %v724_v25, %v464_v15  ;;  %v745_v28 = vadd.f32 %v734_v26, %v468_v16  ;;  %v726_v29 = vpop.f32.mrb[3].mxu0  ;;  %v736_v30 = vpop.f32.mrb[3].mxu1 }
 0x172   : > { %748 = vst [vmem:[#allocation2 + $0x8] sm:$0xff] %v740_v23  ;;  %752 = vst [vmem:[#allocation2 + $0x28] sm:$0xff] %v744_v24  ;;  %v742_v31 = vadd.f32 %v726_v29, %v465_v21  ;;  %v746_v32 = vadd.f32 %v736_v30, %v469_v22 }
 0x173   : > { %749 = vst [vmem:[#allocation2 + $0x10] sm:$0xff] %v741_v27  ;;  %753 = vst [vmem:[#allocation2 + $0x30] sm:$0xff] %v745_v28 }
 0x174   : > { %750 = vst [vmem:[#allocation2 + $0x18] sm:$0xff] %v742_v31  ;;  %754 = vst [vmem:[#allocation2 + $0x38] sm:$0xff] %v746_v32 }
 0x178   : > { %v760_v40 = vld [vmem:[#allocation2] sm:$0xff] }
 0x179   : > { %v761_v41 = vld [vmem:[#allocation2 + $0x8] sm:$0xff]  ;;  %v764_v48 = vld [vmem:[#allocation2 + $0x20] sm:$0xff]  ;;  %v787_v56 = vmul.f32 %v782_v49, %v760_v40 }
 0x17a   : > { %v762_v46 = vld [vmem:[#allocation2 + $0x10] sm:$0xff]  ;;  %v765_v53 = vld [vmem:[#allocation2 + $0x28] sm:$0xff]  ;;  %v788_v57 = vmul.f32 %v786_v50, %v761_v41  ;;  %v791_v60 = vmul.f32 %v782_v49, %v764_v48 }
 0x17b   : > { %v763_v47 = vld [vmem:[#allocation2 + $0x18] sm:$0xff]  ;;  %v766_v54 = vld [vmem:[#allocation2 + $0x30] sm:$0xff]  ;;  %v789_v58 = vmul.f32 %v782_v49, %v762_v46  ;;  %v792_v61 = vmul.f32 %v786_v50, %v765_v53  ;;  %v813_v0 = vadd.f32 %v808_v51, %v787_v56 }
 0x17c   : > { %v767_v55 = vld [vmem:[#allocation2 + $0x38] sm:$0xff]  ;;  %v790_v59 = vmul.f32 %v786_v50, %v763_v47  ;;  %v793_v62 = vmul.f32 %v782_v49, %v766_v54  ;;  %v814_v1 = vadd.f32 %v812_v52, %v788_v57  ;;  %v817_v4 = vadd.f32 %v808_v51, %v791_v60 }
 0x17d   : > { %v794_v63 = vmul.f32 %v786_v50, %v767_v55  ;;  %v815_v2 = vadd.f32 %v808_v51, %v789_v58  ;;  %v818_v5 = vadd.f32 %v812_v52, %v792_v61 }
 0x17e   : > { %v816_v3 = vadd.f32 %v812_v52, %v790_v59  ;;  %v819_v6 = vadd.f32 %v808_v51, %v793_v62  ;;  %v1083_v8 = vpack.c.bf16 %v814_v1, %v813_v0 }
 0x17f   : > { %v820_v7 = vadd.f32 %v812_v52, %v794_v63  ;;  %v1085_v10 = vpack.c.bf16 %v818_v5, %v817_v4 }
 0x180   : > { %v1084_v9 = vpack.c.bf16 %v816_v3, %v815_v2  ;;  %845 = vst [vmem:[%s1569_s24] sm:$0xff] %v1083_v8 }
 0x181   : > { %v1086_v11 = vpack.c.bf16 %v820_v7, %v819_v6  ;;  %847 = vst [vmem:[%s1569_s24 + $0x10] sm:$0xff] %v1085_v10 }
 0x182   : > { %846 = vst [vmem:[%s1569_s24 + $0x8] sm:$0xff] %v1084_v9 }
 0x183   : > { %848 = vst [vmem:[%s1569_s24 + $0x18] sm:$0xff] %v1086_v11 }
 0x184 PF: > { %855 = sbr.rel (!%p1466_p12) target bundleno = 396 (0x18c), region = 120  ;;  %s1087_s1 = sshll.u32 (%p1466_p12), %s1337_s19, 3 }
 0x185   : > { %s861_s16 = scalar_lea.vmem (%p1466_p12), %s1660_s3, %s1087_s1 }
 0x187   : > { %v895_v12 = vld [vmem:[%s1569_s24] sm:$0xff] (%p1466_p12) }
 0x188   : > { %v899_v14 = vld [vmem:[%s1569_s24 + $0x10] sm:$0xff] (%p1466_p12)  ;;  %896 = vst [vmem:[%s861_s16] sm:$0xff] (%p1466_p12), %v895_v12 }
 0x189   : > { %v897_v13 = vld [vmem:[%s1569_s24 + $0x8] sm:$0xff] (%p1466_p12)  ;;  %900 = vst [vmem:[%s861_s16 + $0x20] sm:$0xff] (%p1466_p12), %v899_v14 }
 0x18a   : > { %v901_v15 = vld [vmem:[%s1569_s24 + $0x18] sm:$0xff] (%p1466_p12)  ;;  %898 = vst [vmem:[%s861_s16 + $0x10] sm:$0xff] (%p1466_p12), %v897_v13 }
 0x18b   : > { %902 = vst [vmem:[%s861_s16 + $0x30] sm:$0xff] %v901_v15 }
 0x18c PF: > { %s13_s22 = sadd.s32 1, %s1349_s22   ;;  %s1672_s10 = sld [smem:[#allocation6_spill]] }
 0x18d   : > { %p10_p6 = scmp.ge.s32.totalorder %s13_s22, 20   ;;  %s1673_s0 = sld [smem:[#allocation7_spill]] }
 0x18e   : > { %s1674_s12 = smov %s1313_s13  ;;  %s1675_s13 = smov %s1464_s9 }
 0x18f   : > { %s1676_s14 = smov %s1321_s15  ;;  %s1677_s15 = smov %s1461_s8 }
 0x190   : > { %s1678_s16 = smov %s1329_s17  ;;  %s1679_s17 = smov %s1447_s30 }
 0x191   : > { %s1680_s18 = smov %s1341_s20  ;;  %s1681_s19 = smov %s1345_s21 }
 0x192   : > { %s1682_s20 = smov %s1672_s10  ;;  %12 = sbr.rel (!%p10_p6) target bundleno = 9 (0x9), region = 200 }
 0x193   : > { %s1683_s21 = smov %s1673_s0 }

// kernel: forward.47
= control target key start
LH: loop header
LB: loop body
LE: loop exit
PB: predicated region body
PF: predicated region fallthrough
CT: control target
= control target key end

     0   :  { %v244_v20 = vlaneseq  ;;  %s482_s1 = inlined_call_operand.vmem [shape: bf16[256,128], index: 1, kind: input, shape index: {}]   ;;  %s483_s0 = inlined_call_operand.vmem [shape: bf16[32,256], index: 0, kind: input, shape index: {}]   ;;  %s484_s2 = inlined_call_operand.vmem [shape: f32[2,128], index: 2, kind: input, shape index: {}]   ;;  %s485_s3 = inlined_call_operand.vmem [shape: bf16[32,128], index: 3, kind: output, shape index: {}]  }
   0x1   :  { %v371_v0 = vld [vmem:[%s482_s1 + $0x40] sm:$0xff]   ;;  %v373_v2 = vld [vmem:[%s482_s1 + $0x48] sm:$0xff]   ;;  %v375_v4 = vld [vmem:[%s482_s1 + $0x50] sm:$0xff]  }
   0x2   :  { %v372_v1 = vld [vmem:[%s482_s1] sm:$0xff]   ;;  %327 = vmatprep.subr.bf16.mxu0 %v371_v0  ;;  %355 = vmatprep.subr.bf16.mxu1 %v371_v0  ;;  %v374_v3 = vld [vmem:[%s482_s1 + $0x8] sm:$0xff]   ;;  %v376_v5 = vld [vmem:[%s482_s1 + $0x10] sm:$0xff]   ;;  %v245_v21 = vshrl.u32 %v244_v20, 7 }
   0x3   :  { %328 = vmatpush3.bf16.msra.mxu0 %v372_v1  ;;  %363 = vmatpush3.bf16.msra.mxu1 %v372_v1  ;;  %v377_v6 = vld [vmem:[%s482_s1 + $0x58] sm:$0xff]   ;;  %v379_v8 = vld [vmem:[%s482_s1 + $0x60] sm:$0xff]   ;;  %v381_v10 = vld [vmem:[%s482_s1 + $0x68] sm:$0xff]  }
   0x4   :  { %329 = vmatprep.subr.bf16.mxu0 %v373_v2  ;;  %356 = vmatprep.subr.bf16.mxu1 %v373_v2  ;;  %v378_v7 = vld [vmem:[%s482_s1 + $0x18] sm:$0xff]   ;;  %v380_v9 = vld [vmem:[%s482_s1 + $0x20] sm:$0xff]   ;;  %v382_v13 = vld [vmem:[%s482_s1 + $0x28] sm:$0xff]   ;;  %v246_v22 = vsub.s32 0, %v245_v21  ;;  %v254_v24 = vsub.s32 1, %v245_v21 }
   0x5   :  { %v389_v11 = vld [vmem:[%s483_s0 + $0x4] ss:$8 sps:$4 sm:$0xff]   ;;  %v392_v12 = vld [vmem:[%s483_s0 + $0x14] ss:$8 sps:$4 sm:$0xff]   ;;  %v387_v18 = vld [vmem:[%s483_s0] ss:$8 sps:$4 sm:$0xff]  }
   0x6   :  { %v383_v14 = vld [vmem:[%s482_s1 + $0x70] sm:$0xff]   ;;  %211 = vmatprep.mubr.bf16.mxu0 %v389_v11  ;;  %219 = vmatprep.mubr.bf16.mxu1 %v392_v12  ;;  %v385_v16 = vld [vmem:[%s482_s1 + $0x78] sm:$0xff]   ;;  %v239_v23 = vld [vmem:[%s484_s2] sm:$0x3] }
   0x7   :  { %330 = vmatpush3.bf16.msra.mxu0 %v374_v3  ;;  %364 = vmatpush3.bf16.msra.mxu1 %v374_v3  ;;  %v384_v15 = vld [vmem:[%s482_s1 + $0x30] sm:$0xff]   ;;  %v386_v17 = vld [vmem:[%s482_s1 + $0x38] sm:$0xff]   ;;  %v247_v27 = vrot.slane %v239_v23, %v246_v22  ;;  %v255_v31 = vrot.slane %v239_v23, %v254_v24 }
   0x8   :  { %331 = vmatprep.subr.bf16.mxu0 %v375_v4  ;;  %357 = vmatprep.subr.bf16.mxu1 %v375_v4  ;;  %v390_v19 = vld [vmem:[%s483_s0 + $0x10] ss:$8 sps:$4 sm:$0xff]  }
   0xb   :  { %332 = vmatpush3.bf16.msra.mxu0 %v376_v5  ;;  %365 = vmatpush3.bf16.msra.mxu1 %v376_v5 }
   0xc   :  { %333 = vmatprep.subr.bf16.mxu0 %v377_v6  ;;  %358 = vmatprep.subr.bf16.mxu1 %v377_v6 }
   0xf   :  { %334 = vmatpush3.bf16.msra.mxu0 %v378_v7  ;;  %366 = vmatpush3.bf16.msra.mxu1 %v378_v7 }
  0x10   :  { %335 = vmatprep.subr.bf16.mxu0 %v379_v8  ;;  %359 = vmatprep.subr.bf16.mxu1 %v379_v8 }
  0x13   :  { %336 = vmatpush3.bf16.msra.mxu0 %v380_v9  ;;  %367 = vmatpush3.bf16.msra.mxu1 %v380_v9 }
  0x14   :  { %337 = vmatprep.subr.bf16.mxu0 %v381_v10  ;;  %360 = vmatprep.subr.bf16.mxu1 %v381_v10 }
  0x17   :  { %338 = vmatpush3.bf16.msra.mxu0 %v382_v13  ;;  %368 = vmatpush3.bf16.msra.mxu1 %v382_v13 }
  0x18   :  { %339 = vmatprep.subr.bf16.mxu0 %v383_v14  ;;  %361 = vmatprep.subr.bf16.mxu1 %v383_v14 }
  0x1b   :  { %340 = vmatpush3.bf16.msra.mxu0 %v384_v15  ;;  %369 = vmatpush3.bf16.msra.mxu1 %v384_v15 }
  0x1c   :  { %341 = vmatprep.subr.bf16.mxu0 %v385_v16  ;;  %362 = vmatprep.subr.bf16.mxu1 %v385_v16 }
  0x1f   :  { %342 = vmatpush3.bf16.msra.mxu0 %v386_v17  ;;  %370 = vmatpush3.bf16.msra.mxu1 %v386_v17 }
  0x22   :  { %212 = vmatmul.mubr.bf16.vlgmr.msra.gmra.mrb[0].mxu0 %v387_v18  ;;  %220 = vmatmul.mubr.bf16.vlgmr.msra.gmra.mrb[0].mxu1 %v390_v19 }
  0xf5   :  { %v343_v25 = vpop.f32.mrb[0].mxu0  ;;  %v349_v26 = vpop.f32.mrb[0].mxu1 }
  0xf6   :  { %v344_v28 = vpop.f32.mrb[1].mxu0  ;;  %v350_v29 = vpop.f32.mrb[1].mxu1 }
  0xf7   :  { %v345_v30 = vadd.f32 %v344_v28, %v343_v25  ;;  %v351_v32 = vadd.f32 %v350_v29, %v349_v26  ;;  %v346_v33 = vpop.f32.mrb[2].mxu0  ;;  %v352_v34 = vpop.f32.mrb[2].mxu1 }
  0xf8   :  { %v347_v35 = vpop.f32.mrb[3].mxu0  ;;  %v353_v36 = vpop.f32.mrb[3].mxu1 }
  0xf9   :  { %v248_v37 = vmul.f32 %v345_v30, %v247_v27  ;;  %v250_v38 = vmul.f32 %v351_v32, %v247_v27  ;;  %v348_v39 = vadd.f32 %v347_v35, %v346_v33  ;;  %v354_v40 = vadd.f32 %v353_v36, %v352_v34 }
  0xfb   :  { %v256_v41 = vadd.f32 %v255_v31, %v248_v37  ;;  %v258_v42 = vadd.f32 %v255_v31, %v250_v38  ;;  %v249_v43 = vmul.f32 %v348_v39, %v247_v27  ;;  %v251_v44 = vmul.f32 %v354_v40, %v247_v27 }
  0xfd   :  { %v257_v45 = vadd.f32 %v255_v31, %v249_v43  ;;  %v259_v46 = vadd.f32 %v255_v31, %v251_v44  ;;  %v260_v47 = vmax.f32 %v256_v41, 0.0  ;;  %v262_v48 = vmax.f32 %v258_v42, 0.0 }
  0xff   :  { %v261_v49 = vmax.f32 %v257_v45, 0.0  ;;  %v263_v50 = vmax.f32 %v259_v46, 0.0 }
 0x101   :  { %v319_v51 = vpack.c.bf16 %v261_v49, %v260_v47  ;;  %v324_v52 = vpack.c.bf16 %v263_v50, %v262_v48 }
 0x103   :  { %320 = vst [vmem:[%s485_s3] sm:$0xff] %v319_v51   ;;  %326 = vst [vmem:[%s485_s3 + $0x8] sm:$0xff] %v324_v52  }

// kernel: forward.49
= control target key start
LH: loop header
LB: loop body
LE: loop exit
PB: predicated region body
PF: predicated region fallthrough
CT: control target
= control target key end

     0   :  { %s1151_s15 = smov 0   ;;  %s1153_s16 = smov 0   ;;  %s1290_s0 = inlined_call_operand.vmem [shape: bf16[32,128], index: 0, kind: input, shape index: {}]   ;;  %s1291_s1 = inlined_call_operand.vmem [shape: bf16[128,512], index: 1, kind: input, shape index: {}]   ;;  %s1292_s2 = inlined_call_operand.vmem [shape: f32[2,512], index: 2, kind: input, shape index: {}]   ;;  %s1293_s3 = inlined_call_operand.vmem [shape: bf16[32,512], index: 3, kind: input, shape index: {}]   ;;  %s1294_s4 = inlined_call_operand.vmem [shape: bf16[32,512], index: 4, kind: output, shape index: {}]  }
   0x1   :  { %s1155_s17 = smov 0   ;;  %s1157_s18 = smov 0  }
   0x2   :  { %s1159_s19 = smov 0  }
   0x3 LB: > { %s29_s20 = sadd.s32 1, %s1119_s18  ;;  %s951_s21 = sadd.s32 4294967295, %s1123_s19   ;;  %s1123_s19 = sphi %s1159_s19, %s14_s19   ;;  %s1119_s18 = sphi %s1157_s18, %s1300_s18   ;;  %s1115_s17 = sphi %s1155_s17, %s1299_s17   ;;  %s1111_s16 = sphi %s1153_s16, %s1298_s16   ;;  %s1107_s15 = sphi %s1151_s15, %s1297_s15  }
   0x4   : > { %p31_p0 = scmp.ge.s32.totalorder %s29_s20, 2  ;;  %p77_p1 = scmp.ne.s32.totalorder %s1111_s16, %s1107_s15 }
   0x5   : > { %p78_p2 = scmp.eq.s32.totalorder %s1123_s19, 0  ;;  %p163_p4 = scmp.eq.s32.totalorder %s951_s21, 1 }
   0x6   : > { %s1302_s20 = smov (%p31_p0, %s29_s20), 0  ;;  %s70_s24 = sadd.s32 1, %s1111_s16 }
   0x7   : > { %p1183_p3 = por %p78_p2, %p77_p1  ;;  %s66_s23 = ssub.s32 %s1119_s18, %s1302_s20 }
   0x8   : > { %p68_p5 = scmp.eq.s32.totalorder %s66_s23, 0  ;;  %p1190_p6 = por %p163_p4, %p77_p1 }
   0x9   : > { %p955_p7 = scmp.ge.s32.totalorder %s1123_s19, 2 }
   0xa   : > { %s1195_s26 = scalar_select %p68_p5, %s1111_s16, %s70_s24  }
   0xb   : > { %197 = sbr.rel (%p955_p7) target bundleno = 37 (0x25), region = 20 }
  0x12   : > { %200 = sbr.rel (!%p1183_p3) target bundleno = 30 (0x1e), region = 24  ;;  %s202_s27 = sand.u32 (%p1183_p3), 1, %s1111_s16  }
  0x13   : > { %s995_s28 = sshll.u32 (%p1183_p3), %s1119_s18, 3  ;;  %s956_s29 = sshll.u32 (%p1183_p3), %s202_s27, 7 }
  0x14   : > { %s1205_s6 = scalar_lea.vmem (%p1183_p3), %s1291_s1, %s995_s28  ;;  %s204_s7 = scalar_lea.vmem (%p1183_p3), [#allocation3], %s956_s29 }
  0x15   : > { %v268_v0 = vld [vmem:[%s1205_s6] sm:$0xff] (%p1183_p3)  ;;  %v270_v1 = vld [vmem:[%s1205_s6 + $0x10] sm:$0xff] (%p1183_p3) }
  0x16   : > { %v272_v2 = vld [vmem:[%s1205_s6 + $0x20] sm:$0xff] (%p1183_p3)  ;;  %269 = vst [vmem:[%s204_s7] sm:$0xff] (%p1183_p3), %v268_v0  ;;  %271 = vst [vmem:[%s204_s7 + $0x8] sm:$0xff] (%p1183_p3), %v270_v1  ;;  %v274_v3 = vld [vmem:[%s1205_s6 + $0x30] sm:$0xff] (%p1183_p3) }
  0x17   : > { %273 = vst [vmem:[%s204_s7 + $0x10] sm:$0xff] (%p1183_p3), %v272_v2  ;;  %v276_v4 = vld [vmem:[%s1205_s6 + $0x40] sm:$0xff] (%p1183_p3)  ;;  %v278_v5 = vld [vmem:[%s1205_s6 + $0x50] sm:$0xff] (%p1183_p3)  ;;  %275 = vst [vmem:[%s204_s7 + $0x18] sm:$0xff] (%p1183_p3), %v274_v3 }
  0x18   : > { %277 = vst [vmem:[%s204_s7 + $0x20] sm:$0xff] (%p1183_p3), %v276_v4  ;;  %279 = vst [vmem:[%s204_s7 + $0x28] sm:$0xff] (%p1183_p3), %v278_v5  ;;  %v280_v6 = vld [vmem:[%s1205_s6 + $0x60] sm:$0xff] (%p1183_p3)  ;;  %v282_v7 = vld [vmem:[%s1205_s6 + $0x70] sm:$0xff] (%p1183_p3) }
  0x19   : > { %v284_v8 = vld [vmem:[%s1205_s6 + $0x80] sm:$0xff]  ;;  %281 = vst [vmem:[%s204_s7 + $0x30] sm:$0xff] %v280_v6  ;;  %283 = vst [vmem:[%s204_s7 + $0x38] sm:$0xff] %v282_v7  ;;  %v286_v9 = vld [vmem:[%s1205_s6 + $0x90] sm:$0xff] }
  0x1a   : > { %285 = vst [vmem:[%s204_s7 + $0x40] sm:$0xff] %v284_v8  ;;  %v288_v10 = vld [vmem:[%s1205_s6 + $0xa0] sm:$0xff]  ;;  %v290_v11 = vld [vmem:[%s1205_s6 + $0xb0] sm:$0xff]  ;;  %287 = vst [vmem:[%s204_s7 + $0x48] sm:$0xff] %v286_v9 }
  0x1b   : > { %289 = vst [vmem:[%s204_s7 + $0x50] sm:$0xff] %v288_v10  ;;  %291 = vst [vmem:[%s204_s7 + $0x58] sm:$0xff] %v290_v11  ;;  %v292_v12 = vld [vmem:[%s1205_s6 + $0xc0] sm:$0xff]  ;;  %v294_v13 = vld [vmem:[%s1205_s6 + $0xd0] sm:$0xff] }
  0x1c   : > { %v296_v14 = vld [vmem:[%s1205_s6 + $0xe0] sm:$0xff]  ;;  %293 = vst [vmem:[%s204_s7 + $0x60] sm:$0xff] %v292_v12  ;;  %295 = vst [vmem:[%s204_s7 + $0x68] sm:$0xff] %v294_v13  ;;  %v298_v15 = vld [vmem:[%s1205_s6 + $0xf0] sm:$0xff] }
  0x1d   : > { %297 = vst [vmem:[%s204_s7 + $0x70] sm:$0xff] %v296_v14  ;;  %299 = vst [vmem:[%s204_s7 + $0x78] sm:$0xff] %v298_v15 }
  0x1e PF: > { %314 = sbr.rel (!%p1183_p3) target bundleno = 37 (0x25), region = 66  ;;  %s316_s8 = sand.u32 (%p1183_p3), 1, %s1111_s16  }
  0x1f   : > { %s996_s9 = sshll.u32 (%p1183_p3), %s1119_s18, 3  ;;  %s959_s10 = sshll.u32 (%p1183_p3), %s316_s8, 5 }
  0x20   : > { %s324_s13 = scalar_lea.vmem (%p1183_p3), %s1293_s3, %s996_s9  ;;  %s318_s14 = scalar_lea.vmem (%p1183_p3), [#allocation4], %s959_s10 }
  0x21   : > { %v358_v16 = vld [vmem:[%s324_s13] sm:$0xff] (%p1183_p3)  ;;  %v360_v17 = vld [vmem:[%s324_s13 + $0x10] sm:$0xff] (%p1183_p3) }
  0x22   : > { %v362_v18 = vld [vmem:[%s324_s13 + $0x20] sm:$0xff] (%p1183_p3)  ;;  %359 = vst [vmem:[%s318_s14] sm:$0xff] (%p1183_p3), %v358_v16  ;;  %361 = vst [vmem:[%s318_s14 + $0x8] sm:$0xff] (%p1183_p3), %v360_v17  ;;  %v364_v19 = vld [vmem:[%s324_s13 + $0x30] sm:$0xff] (%p1183_p3) }
  0x23   : > { %363 = vst [vmem:[%s318_s14 + $0x10] sm:$0xff] (%p1183_p3), %v362_v18  ;;  %365 = vst [vmem:[%s318_s14 + $0x18] sm:$0xff] (%p1183_p3), %v364_v19 }
  0x25 PF: > { %p962_p8 = scmp.ge.s32.totalorder %s1123_s19, 1  ;;  %p370_p9 = scmp.lt.s32.totalorder %s1123_s19, 3 }
  0x27   : > { %p371_p10 = pnand %p962_p8, %p370_p9 }
  0x28   : > { %s377_s21 = sand.u32 (!%p371_p10), 1, %s1107_s15   ;;  %v1125_v20 = vmov (!%p371_p10), 0   ;;  %v1083_v37 = vld [vmem:[%s1290_s0] sm:$0xff] (!%p371_p10)   ;;  %v1084_v38 = vld [vmem:[%s1290_s0 + $0x8] sm:$0xff] (!%p371_p10)   ;;  %s966_s30 = sshll.u32 (!%p371_p10), %s1115_s17, 1  ;;  %v661_v39 = vlaneseq (!%p371_p10) }
  0x29   : > { %374 = sbr.rel (%p371_p10) target bundleno = 310 (0x136), region = 104  ;;  %s963_s22 = sshll.u32 (!%p371_p10), %s377_s21, 7  ;;  %611 = vmatprep.mubr.bf16.mxu0 (!%p371_p10), %v1125_v20  ;;  %621 = vmatprep.mubr.bf16.mxu1 (!%p371_p10), %v1125_v20 }
  0x2a   : > { %s1235_s23 = scalar_lea.vmem (!%p371_p10), [#allocation3], %s963_s22  ;;  %p437_p11 = scmp.lt.s32.totalorder (!%p371_p10), %s966_s30, 3  ;;  %v662_v40 = vshrl.u32 (!%p371_p10), %v661_v39, 7 }
  0x2b   : > { %v1059_v21 = vld [vmem:[%s1235_s23 + $0x4] ss:$8 sps:$4 sm:$0xff] (!%p371_p10)   ;;  %v1061_v22 = vld [vmem:[%s1235_s23] ss:$8 sps:$4 sm:$0xff] (!%p371_p10)   ;;  %v1062_v23 = vld [vmem:[%s1235_s23 + $0x14] ss:$8 sps:$4 sm:$0xff] (!%p371_p10)  }
  0x2c   : > { %579 = vmatprep.subr.bf16.mxu0 (!%p371_p10), %v1059_v21  ;;  %1002 = vmatprep.subr.bf16.mxu1 (!%p371_p10), %v1059_v21  ;;  %v1064_v24 = vld [vmem:[%s1235_s23 + $0x10] ss:$8 sps:$4 sm:$0xff] (!%p371_p10)   ;;  %v1065_v25 = vld [vmem:[%s1235_s23 + $0x24] ss:$8 sps:$4 sm:$0xff] (!%p371_p10)   ;;  %v1067_v26 = vld [vmem:[%s1235_s23 + $0x20] ss:$8 sps:$4 sm:$0xff] (!%p371_p10)  }
  0x2d   : > { %580 = vmatpush1.bf16.msra.mxu0 (!%p371_p10), %v1061_v22  ;;  %1010 = vmatpush1.bf16.msra.mxu1 (!%p371_p10), %v1061_v22  ;;  %v1068_v27 = vld [vmem:[%s1235_s23 + $0x34] ss:$8 sps:$4 sm:$0xff] (!%p371_p10)   ;;  %v1070_v28 = vld [vmem:[%s1235_s23 + $0x30] ss:$8 sps:$4 sm:$0xff] (!%p371_p10)   ;;  %v1071_v29 = vld [vmem:[%s1235_s23 + $0x44] ss:$8 sps:$4 sm:$0xff] (!%p371_p10)  }
  0x2e   : > { %581 = vmatprep.subr.bf16.mxu0 (!%p371_p10), %v1062_v23  ;;  %1003 = vmatprep.subr.bf16.mxu1 (!%p371_p10), %v1062_v23  ;;  %v1073_v30 = vld [vmem:[%s1235_s23 + $0x40] ss:$8 sps:$4 sm:$0xff] (!%p371_p10)   ;;  %v1074_v31 = vld [vmem:[%s1235_s23 + $0x54] ss:$8 sps:$4 sm:$0xff] (!%p371_p10)   ;;  %v1076_v32 = vld [vmem:[%s1235_s23 + $0x50] ss:$8 sps:$4 sm:$0xff] (!%p371_p10)  }
  0x2f   : > { %v1077_v33 = vld [vmem:[%s1235_s23 + $0x64] ss:$8 sps:$4 sm:$0xff] (!%p371_p10)   ;;  %v1079_v34 = vld [vmem:[%s1235_s23 + $0x60] ss:$8 sps:$4 sm:$0xff] (!%p371_p10)   ;;  %v1080_v35 = vld [vmem:[%s1235_s23 + $0x74] ss:$8 sps:$4 sm:$0xff] (!%p371_p10)  }
  0x30   : > { %v1082_v36 = vld [vmem:[%s1235_s23 + $0x70] ss:$8 sps:$4 sm:$0xff]   ;;  %s1304_s30 = smov (!%p437_p11, %s966_s30), 3  ;;  %v663_v41 = vsub.s32 0, %v662_v40  ;;  %v667_v43 = vsub.s32 2, %v662_v40  ;;  %s1265_s9 = sshll.u32 %s377_s21, 5 }
  0x31   : > { %582 = vmatpush1.bf16.msra.mxu0 %v1064_v24  ;;  %1011 = vmatpush1.bf16.msra.mxu1 %v1064_v24  ;;  %s967_s5 = sshll.u32 %s1304_s30, 1  ;;  %v689_v44 = vsub.s32 1, %v662_v40  ;;  %v693_v45 = vsub.s32 3, %v662_v40  ;;  %s386_s10 = scalar_lea.vmem [#allocation4], %s1265_s9 }
  0x32   : > { %583 = vmatprep.subr.bf16.mxu0 %v1065_v25  ;;  %1004 = vmatprep.subr.bf16.mxu1 %v1065_v25  ;;  %s440_s8 = scalar_lea.vmem %s1292_s2, %s967_s5  ;;  %v721_v51 = vld [vmem:[%s386_s10] sm:$0xff]  ;;  %v723_v52 = vld [vmem:[%s386_s10 + $0x10] sm:$0xff]  ;;  %v722_v54 = vld [vmem:[%s386_s10 + $0x8] sm:$0xff]  ;;  %s424_s15 = scalar_lea.vmem [#allocation5], %s1265_s9 }
  0x33   : > { %v651_v42 = vld [vmem:[%s440_s8] sm:$0xf]  ;;  %v724_v55 = vld [vmem:[%s386_s10 + $0x18] sm:$0xff]  ;;  %v725_v59 = vunpack.c.l.bf16 %v721_v51  ;;  %v729_v61 = vunpack.c.l.bf16 %v723_v52  ;;  %v726_v62 = vunpack.c.h.bf16 %v721_v51  ;;  %v730_v63 = vunpack.c.h.bf16 %v723_v52  ;;  %s1001_s11 = sshll.u32 (%p1190_p6), %s1115_s17, 3 }
  0x34   : > { %v664_v46 = vrot.slane %v651_v42, %v663_v41  ;;  %v668_v47 = vrot.slane %v651_v42, %v667_v43  ;;  %v690_v48 = vrot.slane %v651_v42, %v689_v44  ;;  %v694_v49 = vrot.slane %v651_v42, %v693_v45  ;;  %s781_s14 = scalar_lea.vmem (%p1190_p6), %s1294_s4, %s1001_s11 }
  0x35   : > { %584 = vmatpush1.bf16.msra.mxu0 %v1067_v26  ;;  %1012 = vmatpush1.bf16.msra.mxu1 %v1067_v26  ;;  %v727_v4 = vunpack.c.l.bf16 %v722_v54  ;;  %v731_v5 = vunpack.c.l.bf16 %v724_v55  ;;  %v728_v10 = vunpack.c.h.bf16 %v722_v54  ;;  %v732_v11 = vunpack.c.h.bf16 %v724_v55 }
  0x36   : > { %585 = vmatprep.subr.bf16.mxu0 %v1068_v27  ;;  %1005 = vmatprep.subr.bf16.mxu1 %v1068_v27  ;;  %v674_v50 = vrot.slane %v664_v46, %v663_v41  ;;  %v678_v53 = vrot.slane %v668_v47, %v663_v41  ;;  %v700_v56 = vrot.slane %v690_v48, %v689_v44 }
  0x37   : > { %v704_v57 = vrot.slane %v694_v49, %v689_v44 }
  0x39   : > { %586 = vmatpush1.bf16.msra.mxu0 %v1070_v28  ;;  %1013 = vmatpush1.bf16.msra.mxu1 %v1070_v28 }
  0x3a   : > { %587 = vmatprep.subr.bf16.mxu0 %v1071_v29  ;;  %1006 = vmatprep.subr.bf16.mxu1 %v1071_v29 }
  0x3d   : > { %588 = vmatpush1.bf16.msra.mxu0 %v1073_v30  ;;  %1014 = vmatpush1.bf16.msra.mxu1 %v1073_v30 }
  0x3e   : > { %589 = vmatprep.subr.bf16.mxu0 %v1074_v31  ;;  %1007 = vmatprep.subr.bf16.mxu1 %v1074_v31 }
  0x41   : > { %590 = vmatpush1.bf16.msra.mxu0 %v1076_v32  ;;  %1015 = vmatpush1.bf16.msra.mxu1 %v1076_v32 }
  0x42   : > { %591 = vmatprep.subr.bf16.mxu0 %v1077_v33  ;;  %1008 = vmatprep.subr.bf16.mxu1 %v1077_v33 }
  0x45   : > { %592 = vmatpush1.bf16.msra.mxu0 %v1079_v34  ;;  %1016 = vmatpush1.bf16.msra.mxu1 %v1079_v34 }
  0x46   : > { %593 = vmatprep.subr.bf16.mxu0 %v1080_v35  ;;  %1009 = vmatprep.subr.bf16.mxu1 %v1080_v35 }
  0x49   : > { %594 = vmatpush1.bf16.msra.mxu0 %v1082_v36  ;;  %1017 = vmatpush1.bf16.msra.mxu1 %v1082_v36 }
  0x4c   : > { %612 = vmatmul.mubr.bf16.vlgmr.msra.gmra.mrb[0].mxu0 %v1083_v37  ;;  %622 = vmatmul.mubr.bf16.vlgmr.msra.gmra.mrb[0].mxu1 %v1084_v38 }
 0x11f   : > { %v613_v58 = vpop.f32.mrb[0].mxu0  ;;  %v623_v60 = vpop.f32.mrb[0].mxu1 }
 0x120   : > { %v679_v0 = vmul.f32 %v674_v50, %v613_v58  ;;  %v683_v1 = vmul.f32 %v674_v50, %v623_v60  ;;  %v615_v2 = vpop.f32.mrb[1].mxu0  ;;  %v625_v3 = vpop.f32.mrb[1].mxu1 }
 0x121   : > { %v680_v6 = vmul.f32 %v678_v53, %v615_v2  ;;  %v684_v7 = vmul.f32 %v678_v53, %v625_v3  ;;  %v617_v8 = vpop.f32.mrb[2].mxu0  ;;  %v627_v9 = vpop.f32.mrb[2].mxu1 }
 0x122   : > { %v705_v12 = vadd.f32 %v700_v56, %v679_v0  ;;  %v709_v13 = vadd.f32 %v700_v56, %v683_v1  ;;  %v681_v14 = vmul.f32 %v674_v50, %v617_v8  ;;  %v685_v15 = vmul.f32 %v674_v50, %v627_v9  ;;  %v619_v16 = vpop.f32.mrb[3].mxu0  ;;  %v629_v17 = vpop.f32.mrb[3].mxu1 }
 0x123   : > { %v706_v18 = vadd.f32 %v704_v57, %v680_v6  ;;  %v710_v19 = vadd.f32 %v704_v57, %v684_v7  ;;  %v682_v20 = vmul.f32 %v678_v53, %v619_v16  ;;  %v686_v21 = vmul.f32 %v678_v53, %v629_v17 }
 0x124   : > { %v713_v22 = vmax.f32 %v705_v12, 0.0  ;;  %v717_v23 = vmax.f32 %v709_v13, 0.0  ;;  %v707_v24 = vadd.f32 %v700_v56, %v681_v14  ;;  %v711_v25 = vadd.f32 %v700_v56, %v685_v15 }
 0x125   : > { %v714_v26 = vmax.f32 %v706_v18, 0.0  ;;  %v718_v27 = vmax.f32 %v710_v19, 0.0  ;;  %v708_v28 = vadd.f32 %v704_v57, %v682_v20  ;;  %v712_v29 = vadd.f32 %v704_v57, %v686_v21 }
 0x126   : > { %v733_v30 = vadd.f32 %v725_v59, %v713_v22  ;;  %v737_v31 = vadd.f32 %v729_v61, %v717_v23  ;;  %v715_v32 = vmax.f32 %v707_v24, 0.0  ;;  %v719_v33 = vmax.f32 %v711_v25, 0.0 }
 0x127   : > { %v734_v34 = vadd.f32 %v726_v62, %v714_v26  ;;  %v738_v35 = vadd.f32 %v730_v63, %v718_v27  ;;  %v716_v36 = vmax.f32 %v708_v28, 0.0  ;;  %v720_v37 = vmax.f32 %v712_v29, 0.0  ;;  %775 = sbr.rel (!%p1190_p6) target bundleno = 310 (0x136), region = 124 }
 0x128   : > { %v735_v38 = vadd.f32 %v727_v4, %v715_v32  ;;  %v739_v39 = vadd.f32 %v731_v5, %v719_v33 }
 0x129   : > { %v997_v40 = vpack.c.bf16 %v734_v34, %v733_v30  ;;  %v999_v41 = vpack.c.bf16 %v738_v35, %v737_v31  ;;  %v736_v42 = vadd.f32 %v728_v10, %v716_v36  ;;  %v740_v43 = vadd.f32 %v732_v11, %v720_v37 }
 0x12b   : > { %765 = vst [vmem:[%s424_s15] sm:$0xff] %v997_v40  ;;  %767 = vst [vmem:[%s424_s15 + $0x10] sm:$0xff] %v999_v41  ;;  %v998_v44 = vpack.c.bf16 %v736_v42, %v735_v38  ;;  %v1000_v45 = vpack.c.bf16 %v740_v43, %v739_v39 }
 0x12d   : > { %766 = vst [vmem:[%s424_s15 + $0x8] sm:$0xff] %v998_v44  ;;  %768 = vst [vmem:[%s424_s15 + $0x18] sm:$0xff] %v1000_v45 }
 0x132   : > { %v815_v46 = vld [vmem:[%s424_s15] sm:$0xff]  ;;  %v819_v48 = vld [vmem:[%s424_s15 + $0x10] sm:$0xff] }
 0x133   : > { %816 = vst [vmem:[%s781_s14] sm:$0xff] %v815_v46  ;;  %820 = vst [vmem:[%s781_s14 + $0x20] sm:$0xff] %v819_v48 }
 0x134   : > { %v817_v47 = vld [vmem:[%s424_s15 + $0x8] sm:$0xff]  ;;  %v821_v49 = vld [vmem:[%s424_s15 + $0x18] sm:$0xff] }
 0x135   : > { %818 = vst [vmem:[%s781_s14 + $0x10] sm:$0xff] %v817_v47  ;;  %822 = vst [vmem:[%s781_s14 + $0x30] sm:$0xff] %v821_v49 }
 0x136 PF: > { %s14_s19 = sadd.s32 1, %s1123_s19   ;;  %s1297_s15 = smov %s1111_s16 }
 0x137   : > { %p11_p12 = scmp.ge.s32.totalorder %s14_s19, 4   ;;  %s1298_s16 = smov %s1195_s26 }
 0x138   : > { %s1299_s17 = smov %s1119_s18  ;;  %s1300_s18 = smov %s1302_s20 }
 0x139   :  { %13 = sbr.rel (!%p11_p12) target bundleno = 3 (0x3), region = 207 }

// kernel: forward.50
= control target key start
LH: loop header
LB: loop body
LE: loop exit
PB: predicated region body
PF: predicated region fallthrough
CT: control target
= control target key end

     0   :  { %s1665_s0 = inlined_call_operand.vmem [shape: bf16[32,4608], index: 0, kind: input, shape index: {}]   ;;  %s1666_s1 = inlined_call_operand.vmem [shape: bf16[4608,2048], index: 1, kind: input, shape index: {}]   ;;  %s1667_s2 = inlined_call_operand.vmem [shape: f32[2,2048], index: 2, kind: input, shape index: {}]   ;;  %s1668_s3 = inlined_call_operand.vmem [shape: bf16[32,2048], index: 3, kind: output, shape index: {}]  }
   0x1   :  { %1671 = sst [smem:[#allocation8_spill]] %s1665_s0 }
   0x2   :  { %1672 = sst [smem:[#allocation9_spill]] %s1666_s1 }
   0x3   :  { %s1380_s12 = smov 0   ;;  %s1382_s13 = smov 0  }
   0x4   :  { %s1384_s14 = smov 0   ;;  %s1386_s15 = smov 0  }
   0x5   :  { %s1388_s16 = smov 0   ;;  %s1390_s17 = smov 0  }
   0x6   :  { %s1392_s18 = smov 0   ;;  %s1394_s19 = smov 0  }
   0x7   :  { %s1396_s20 = smov 0   ;;  %s1398_s21 = smov 0  }
   0x8   :  { %s1400_s22 = smov 0  }
   0x9 LB: > { %s1024_s23 = sadd.s32 4294967295, %s1357_s22   ;;  %s25_s24 = sadd.s32 1, %s1349_s20  ;;  %s1357_s22 = sphi %s1400_s22, %s13_s22   ;;  %s1353_s21 = sphi %s1398_s21, %s1691_s21   ;;  %s1349_s20 = sphi %s1396_s20, %s1690_s20   ;;  %s1345_s19 = sphi %s1394_s19, %s1689_s19   ;;  %s1341_s18 = sphi %s1392_s18, %s1688_s18   ;;  %s1337_s17 = sphi %s1390_s17, %s1687_s17   ;;  %s1333_s16 = sphi %s1388_s16, %s1686_s16   ;;  %s1329_s15 = sphi %s1386_s15, %s1685_s15   ;;  %s1325_s14 = sphi %s1384_s14, %s1684_s14   ;;  %s1321_s13 = sphi %s1382_s13, %s1683_s13   ;;  %s1317_s12 = sphi %s1380_s12, %s1682_s12  }
   0xa   : > { %p26_p0 = scmp.ge.s32.totalorder %s25_s24, 18  ;;  %s28_s25 = sadd.s32 1, %s1353_s21 }
   0xb   : > { %s41_s26 = sadd.s32 1, %s1337_s17  ;;  %p48_p1 = scmp.ne.s32.totalorder %s1337_s17, %s1333_s16 }
   0xc   : > { %s1693_s24 = smov (%p26_p0, %s25_s24), 0  ;;  %s1695_s25 = smov (!%p26_p0, %s28_s25), %s1353_s21 }
   0xd   : > { %1673 = sst [smem:[#allocation6_spill]] %s1693_s24  ;;  %s37_s27 = ssub.s32 %s1349_s20, %s1693_s24 }
   0xe   : > { %p49_p2 = scmp.eq.s32.totalorder %s1357_s22, 0  ;;  %p30_p3 = scmp.ge.s32.totalorder %s1695_s25, 8 }
   0xf   : > { %p39_p4 = scmp.eq.s32.totalorder %s37_s27, 0  ;;  %s69_s29 = sadd.s32 1, %s1329_s15 }
  0x10   : > { %p1447_p5 = por %p49_p2, %p48_p1  ;;  %s1697_s25 = smov (%p30_p3, %s1695_s25), 0 }
  0x11   : > { %1675 = sst [smem:[#allocation7_spill]] %s1697_s25  ;;  %s65_s4 = ssub.s32 %s1353_s21, %s1697_s25 }
  0x12   : > { %s1455_s30 = scalar_select %p39_p4, %s1337_s17, %s41_s26  }
  0x13   : > { %p76_p6 = scmp.ne.s32.totalorder %s1329_s15, %s1325_s14  ;;  %s66_s5 = sor.u32 %s65_s4, %s37_s27 }
  0x14   : > { %p121_p7 = scmp.eq.s32.totalorder %s65_s4, 0  ;;  %p67_p8 = scmp.eq.s32.totalorder %s66_s5, 0 }
  0x15   : > { %p1461_p9 = por %p76_p6, %p49_p2  ;;  %s123_s7 = sadd.s32 1, %s1321_s13 }
  0x16   : > { %p133_p10 = scmp.ne.s32.totalorder %s1321_s13, %s1317_s12  ;;  %p134_p11 = scmp.eq.s32.totalorder %s1024_s23, 143 }
  0x17   : > { %s1469_s8 = scalar_select %p67_p8, %s1329_s15, %s69_s29  }
  0x18   : > { %s1472_s9 = scalar_select %p121_p7, %s1321_s13, %s123_s7  }
  0x19   : > { %p1474_p12 = por %p134_p11, %p133_p10  ;;  %p1027_p13 = scmp.ge.s32.totalorder %s1357_s22, 144 }
  0x1b   : > { %156 = sbr.rel (%p1027_p13) target bundleno = 88 (0x58), region = 16 }
  0x22   : > { %159 = sbr.rel (!%p1447_p5) target bundleno = 46 (0x2e), region = 20  ;;  %s161_s11 = sand.u32 (%p1447_p5), 1, %s1337_s17  }
  0x23   : > { %s1089_s26 = sshll.u32 (%p1447_p5), %s1349_s20, 3  ;;  %s1028_s27 = sshll.u32 (%p1447_p5), %s161_s11, 5 }
  0x24   : > { %s1678_s0 = sld [smem:[#allocation8_spill]] (%p1447_p5)  ;;  %s163_s23 = scalar_lea.vmem (%p1447_p5), [#allocation3], %s1028_s27 }
  0x2a   : > { %s169_s5 = scalar_lea.vmem %s1678_s0, %s1089_s26 }
  0x2b   : > { %v203_v0 = vld [vmem:[%s169_s5] sm:$0xff]  ;;  %v205_v1 = vld [vmem:[%s169_s5 + $0x90] sm:$0xff] }
  0x2c   : > { %v207_v2 = vld [vmem:[%s169_s5 + $0x120] sm:$0xff]  ;;  %204 = vst [vmem:[%s163_s23] sm:$0xff] %v203_v0  ;;  %206 = vst [vmem:[%s163_s23 + $0x8] sm:$0xff] %v205_v1  ;;  %v209_v3 = vld [vmem:[%s169_s5 + $0x1b0] sm:$0xff] }
  0x2d   : > { %208 = vst [vmem:[%s163_s23 + $0x10] sm:$0xff] %v207_v2  ;;  %210 = vst [vmem:[%s163_s23 + $0x18] sm:$0xff] %v209_v3 }
  0x2e PF: > { %216 = sbr.rel (!%p1461_p9) target bundleno = 88 (0x58), region = 58  ;;  %s218_s28 = sand.u32 (%p1461_p9), 1, %s1329_s15  }
  0x2f   : > { %s1033_s7 = sshll.u32 (%p1461_p9), %s1353_s21, 1  ;;  %s1031_s11 = sshll.u32 (%p1461_p9), %s218_s28, 8 }
  0x30   : > { %s1090_s26 = sshll.u32 (%p1461_p9), %s1349_s20, 9  ;;  %s1679_s1 = sld [smem:[#allocation9_spill]] (%p1461_p9) }
  0x31   : > { %s224_s29 = sadd.s32 (%p1461_p9), %s1090_s26, %s1033_s7  ;;  %s1499_s6 = scalar_lea.vmem (%p1461_p9), [#allocation4], %s1031_s11 }
  0x32   : > { %s1035_s4 = sshll.u32 (%p1461_p9), %s224_s29, 2 }
  0x36   : > { %s1494_s25 = scalar_lea.vmem %s1679_s1, %s1035_s4 }
  0x37   : > { %v316_v4 = vld [vmem:[%s1494_s25] sm:$0xff] }
  0x38   : > { %v318_v5 = vld [vmem:[%s1494_s25 + $0x40] sm:$0xff]  ;;  %317 = vst [vmem:[%s1499_s6] sm:$0xff] %v316_v4 }
  0x39   : > { %v320_v6 = vld [vmem:[%s1494_s25 + $0x80] sm:$0xff]  ;;  %319 = vst [vmem:[%s1499_s6 + $0x8] sm:$0xff] %v318_v5 }
  0x3a   : > { %321 = vst [vmem:[%s1499_s6 + $0x10] sm:$0xff] %v320_v6  ;;  %v322_v7 = vld [vmem:[%s1494_s25 + $0xc0] sm:$0xff] }
  0x3b   : > { %v324_v8 = vld [vmem:[%s1494_s25 + $0x100] sm:$0xff]  ;;  %323 = vst [vmem:[%s1499_s6 + $0x18] sm:$0xff] %v322_v7 }
  0x3c   : > { %v326_v9 = vld [vmem:[%s1494_s25 + $0x140] sm:$0xff]  ;;  %325 = vst [vmem:[%s1499_s6 + $0x20] sm:$0xff] %v324_v8 }
  0x3d   : > { %327 = vst [vmem:[%s1499_s6 + $0x28] sm:$0xff] %v326_v9  ;;  %v328_v10 = vld [vmem:[%s1494_s25 + $0x180] sm:$0xff] }
  0x3e   : > { %v330_v11 = vld [vmem:[%s1494_s25 + $0x1c0] sm:$0xff]  ;;  %329 = vst [vmem:[%s1499_s6 + $0x30] sm:$0xff] %v328_v10 }
  0x3f   : > { %v332_v12 = vld [vmem:[%s1494_s25 + $0x200] sm:$0xff]  ;;  %331 = vst [vmem:[%s1499_s6 + $0x38] sm:$0xff] %v330_v11 }
  0x40   : > { %333 = vst [vmem:[%s1499_s6 + $0x40] sm:$0xff] %v332_v12  ;;  %v334_v13 = vld [vmem:[%s1494_s25 + $0x240] sm:$0xff] }
  0x41   : > { %v336_v14 = vld [vmem:[%s1494_s25 + $0x280] sm:$0xff]  ;;  %335 = vst [vmem:[%s1499_s6 + $0x48] sm:$0xff] %v334_v13 }
  0x42   : > { %v338_v15 = vld [vmem:[%s1494_s25 + $0x2c0] sm:$0xff]  ;;  %337 = vst [vmem:[%s1499_s6 + $0x50] sm:$0xff] %v336_v14 }
  0x43   : > { %339 = vst [vmem:[%s1499_s6 + $0x58] sm:$0xff] %v338_v15  ;;  %v340_v16 = vld [vmem:[%s1494_s25 + $0x300] sm:$0xff] }
  0x44   : > { %v342_v17 = vld [vmem:[%s1494_s25 + $0x340] sm:$0xff]  ;;  %341 = vst [vmem:[%s1499_s6 + $0x60] sm:$0xff] %v340_v16 }
  0x45   : > { %v344_v18 = vld [vmem:[%s1494_s25 + $0x380] sm:$0xff]  ;;  %343 = vst [vmem:[%s1499_s6 + $0x68] sm:$0xff] %v342_v17 }
  0x46   : > { %345 = vst [vmem:[%s1499_s6 + $0x70] sm:$0xff] %v344_v18  ;;  %v346_v19 = vld [vmem:[%s1494_s25 + $0x3c0] sm:$0xff] }
  0x47   : > { %v348_v20 = vld [vmem:[%s1494_s25 + $0x400] sm:$0xff]  ;;  %347 = vst [vmem:[%s1499_s6 + $0x78] sm:$0xff] %v346_v19 }
  0x48   : > { %v350_v21 = vld [vmem:[%s1494_s25 + $0x440] sm:$0xff]  ;;  %349 = vst [vmem:[%s1499_s6 + $0x80] sm:$0xff] %v348_v20 }
  0x49   : > { %351 = vst [vmem:[%s1499_s6 + $0x88] sm:$0xff] %v350_v21  ;;  %v352_v22 = vld [vmem:[%s1494_s25 + $0x480] sm:$0xff] }
  0x4a   : > { %v354_v23 = vld [vmem:[%s1494_s25 + $0x4c0] sm:$0xff]  ;;  %353 = vst [vmem:[%s1499_s6 + $0x90] sm:$0xff] %v352_v22 }
  0x4b   : > { %v356_v24 = vld [vmem:[%s1494_s25 + $0x500] sm:$0xff]  ;;  %355 = vst [vmem:[%s1499_s6 + $0x98] sm:$0xff] %v354_v23 }
  0x4c   : > { %357 = vst [vmem:[%s1499_s6 + $0xa0] sm:$0xff] %v356_v24  ;;  %v358_v25 = vld [vmem:[%s1494_s25 + $0x540] sm:$0xff] }
  0x4d   : > { %v360_v26 = vld [vmem:[%s1494_s25 + $0x580] sm:$0xff]  ;;  %359 = vst [vmem:[%s1499_s6 + $0xa8] sm:$0xff] %v358_v25 }
  0x4e   : > { %v362_v27 = vld [vmem:[%s1494_s25 + $0x5c0] sm:$0xff]  ;;  %361 = vst [vmem:[%s1499_s6 + $0xb0] sm:$0xff] %v360_v26 }
  0x4f   : > { %363 = vst [vmem:[%s1499_s6 + $0xb8] sm:$0xff] %v362_v27  ;;  %v364_v28 = vld [vmem:[%s1494_s25 + $0x600] sm:$0xff] }
  0x50   : > { %v366_v29 = vld [vmem:[%s1494_s25 + $0x640] sm:$0xff]  ;;  %365 = vst [vmem:[%s1499_s6 + $0xc0] sm:$0xff] %v364_v28 }
  0x51   : > { %v368_v30 = vld [vmem:[%s1494_s25 + $0x680] sm:$0xff]  ;;  %367 = vst [vmem:[%s1499_s6 + $0xc8] sm:$0xff] %v366_v29 }
  0x52   : > { %369 = vst [vmem:[%s1499_s6 + $0xd0] sm:$0xff] %v368_v30  ;;  %v370_v31 = vld [vmem:[%s1494_s25 + $0x6c0] sm:$0xff] }
  0x53   : > { %v372_v32 = vld [vmem:[%s1494_s25 + $0x700] sm:$0xff]  ;;  %371 = vst [vmem:[%s1499_s6 + $0xd8] sm:$0xff] %v370_v31 }
  0x54   : > { %v374_v33 = vld [vmem:[%s1494_s25 + $0x740] sm:$0xff]  ;;  %373 = vst [vmem:[%s1499_s6 + $0xe0] sm:$0xff] %v372_v32 }
  0x55   : > { %375 = vst [vmem:[%s1499_s6 + $0xe8] sm:$0xff] %v374_v33  ;;  %v376_v34 = vld [vmem:[%s1494_s25 + $0x780] sm:$0xff] }
  0x56   : > { %v378_v35 = vld [vmem:[%s1494_s25 + $0x7c0] sm:$0xff]  ;;  %377 = vst [vmem:[%s1499_s6 + $0xf0] sm:$0xff] %v376_v34 }
  0x57   : > { %379 = vst [vmem:[%s1499_s6 + $0xf8] sm:$0xff] %v378_v35 }
  0x58 PF: > { %p1036_p0 = scmp.ge.s32.totalorder %s1357_s22, 1  ;;  %p393_p1 = scmp.lt.s32.totalorder %s1357_s22, 145 }
  0x5a   : > { %p394_p2 = pnand %p1036_p0, %p393_p1 }
  0x5b   : > { %s400_s0 = sand.u32 (!%p394_p2), 1, %s1333_s16   ;;  %s407_s5 = sand.u32 (!%p394_p2), 1, %s1325_s14  }
  0x5c   : > { %397 = sbr.rel (%p394_p2) target bundleno = 414 (0x19e), region = 100  ;;  %s1037_s23 = sshll.u32 (!%p394_p2), %s400_s0, 5 }
  0x5d   : > { %s1038_s28 = sshll.u32 (!%p394_p2), %s407_s5, 8  ;;  %s435_s7 = sand.u32 (!%p394_p2), 1, %s1317_s12  }
  0x5e   : > { %s1040_s25 = sshll.u32 (!%p394_p2), %s1345_s19, 1  ;;  %s1039_s11 = sshll.u32 (!%p394_p2), %s435_s7, 5 }
  0x5f   : > { %p443_p3 = scmp.lt.s32.totalorder (!%p394_p2), %s1040_s25, 15  ;;  %s1573_s6 = scalar_lea.vmem (!%p394_p2), [#allocation3], %s1037_s23 }
  0x60   : > { %s1575_s1 = scalar_lea.vmem (!%p394_p2), [#allocation4], %s1038_s28  ;;  %s1577_s24 = scalar_lea.vmem (!%p394_p2), [#allocation5], %s1039_s11 }
  0x61   : > { %p1042_p4 = scmp.ne.s32.totalorder (!%p394_p2), %s1341_s18, 0 }
  0x63   : > { %s1699_s25 = smov (!%p443_p3, %s1040_s25), 15  ;;  %453 = sbr.rel (%p1042_p4) target bundleno = 106 (0x6a), region = 112 }
  0x64   : > { %s1041_s26 = sshll.u32 %s1699_s25, 1  ;;  %v1359_v36 = vmov (!%p1042_p4), 0.0  }
  0x65   : > { %s1571_s27 = scalar_lea.vmem %s1667_s2, %s1041_s26  ;;  %454 = vst [vmem:[#allocation2] sm:$0xff] (!%p1042_p4), %v1359_v36  ;;  %455 = vst [vmem:[#allocation2 + $0x8] sm:$0xff] (!%p1042_p4), %v1359_v36 }
  0x66   : > { %456 = vst [vmem:[#allocation2 + $0x10] sm:$0xff] (!%p1042_p4), %v1359_v36  ;;  %457 = vst [vmem:[#allocation2 + $0x18] sm:$0xff] (!%p1042_p4), %v1359_v36 }
  0x67   : > { %458 = vst [vmem:[#allocation2 + $0x20] sm:$0xff] (!%p1042_p4), %v1359_v36  ;;  %459 = vst [vmem:[#allocation2 + $0x28] sm:$0xff] (!%p1042_p4), %v1359_v36 }
  0x68   : > { %460 = vst [vmem:[#allocation2 + $0x30] sm:$0xff] (!%p1042_p4), %v1359_v36  ;;  %461 = vst [vmem:[#allocation2 + $0x38] sm:$0xff] (!%p1042_p4), %v1359_v36 }
  0x6a PF: > { %v1217_v37 = vld [vmem:[%s1575_s1 + $0x4] ss:$8 sps:$4 sm:$0xff]   ;;  %v1219_v38 = vld [vmem:[%s1575_s1] ss:$8 sps:$4 sm:$0xff]   ;;  %v1220_v39 = vld [vmem:[%s1575_s1 + $0x14] ss:$8 sps:$4 sm:$0xff]  }
  0x6b   : > { %686 = vmatprep.subr.bf16.mxu0 %v1217_v37  ;;  %1096 = vmatprep.subr.bf16.mxu1 %v1217_v37  ;;  %v1222_v40 = vld [vmem:[%s1575_s1 + $0x10] ss:$8 sps:$4 sm:$0xff]   ;;  %v1223_v41 = vld [vmem:[%s1575_s1 + $0x24] ss:$8 sps:$4 sm:$0xff]   ;;  %v1225_v42 = vld [vmem:[%s1575_s1 + $0x20] ss:$8 sps:$4 sm:$0xff]  }
  0x6c   : > { %687 = vmatpush1.bf16.msra.mxu0 %v1219_v38  ;;  %1112 = vmatpush1.bf16.msra.mxu1 %v1219_v38  ;;  %v1226_v43 = vld [vmem:[%s1575_s1 + $0x34] ss:$8 sps:$4 sm:$0xff]   ;;  %v1228_v44 = vld [vmem:[%s1575_s1 + $0x30] ss:$8 sps:$4 sm:$0xff]   ;;  %v1229_v45 = vld [vmem:[%s1575_s1 + $0x44] ss:$8 sps:$4 sm:$0xff]  }
  0x6d   : > { %688 = vmatprep.subr.bf16.mxu0 %v1220_v39  ;;  %1097 = vmatprep.subr.bf16.mxu1 %v1220_v39  ;;  %v1231_v46 = vld [vmem:[%s1575_s1 + $0x40] ss:$8 sps:$4 sm:$0xff]   ;;  %v1232_v47 = vld [vmem:[%s1575_s1 + $0x54] ss:$8 sps:$4 sm:$0xff]   ;;  %v1234_v48 = vld [vmem:[%s1575_s1 + $0x50] ss:$8 sps:$4 sm:$0xff]  }
  0x6e   : > { %v1235_v49 = vld [vmem:[%s1575_s1 + $0x64] ss:$8 sps:$4 sm:$0xff]   ;;  %v1237_v51 = vld [vmem:[%s1575_s1 + $0x60] ss:$8 sps:$4 sm:$0xff]   ;;  %v1270_v52 = vld [vmem:[%s1573_s6 + $0x14] ss:$8 sps:$4 sm:$0xff]  }
  0x6f   : > { %v1267_v50 = vld [vmem:[%s1573_s6 + $0x4] ss:$8 sps:$4 sm:$0xff]   ;;  %v1238_v53 = vld [vmem:[%s1575_s1 + $0x74] ss:$8 sps:$4 sm:$0xff]   ;;  %728 = vmatprep.mubr.bf16.mxu1 %v1270_v52  ;;  %v1240_v54 = vld [vmem:[%s1575_s1 + $0x70] ss:$8 sps:$4 sm:$0xff]  }
  0x70   : > { %689 = vmatpush1.bf16.msra.mxu0 %v1222_v40  ;;  %1113 = vmatpush1.bf16.msra.mxu1 %v1222_v40  ;;  %v1241_v55 = vld [vmem:[%s1575_s1 + $0x84] ss:$8 sps:$4 sm:$0xff]   ;;  %v1243_v56 = vld [vmem:[%s1575_s1 + $0x80] ss:$8 sps:$4 sm:$0xff]   ;;  %v1244_v57 = vld [vmem:[%s1575_s1 + $0x94] ss:$8 sps:$4 sm:$0xff]  }
  0x71   : > { %690 = vmatprep.subr.bf16.mxu0 %v1223_v41  ;;  %1098 = vmatprep.subr.bf16.mxu1 %v1223_v41  ;;  %v1246_v58 = vld [vmem:[%s1575_s1 + $0x90] ss:$8 sps:$4 sm:$0xff]   ;;  %v1247_v59 = vld [vmem:[%s1575_s1 + $0xa4] ss:$8 sps:$4 sm:$0xff]   ;;  %v1249_v60 = vld [vmem:[%s1575_s1 + $0xa0] ss:$8 sps:$4 sm:$0xff]  }
  0x72   : > { %718 = vmatprep.mubr.bf16.mxu0 %v1267_v50  ;;  %v1250_v61 = vld [vmem:[%s1575_s1 + $0xb4] ss:$8 sps:$4 sm:$0xff]   ;;  %v1252_v62 = vld [vmem:[%s1575_s1 + $0xb0] ss:$8 sps:$4 sm:$0xff]   ;;  %v1253_v63 = vld [vmem:[%s1575_s1 + $0xc4] ss:$8 sps:$4 sm:$0xff]  }
  0x73   : > { %v1255_v0 = vld [vmem:[%s1575_s1 + $0xc0] ss:$8 sps:$4 sm:$0xff]   ;;  %v1256_v1 = vld [vmem:[%s1575_s1 + $0xd4] ss:$8 sps:$4 sm:$0xff]   ;;  %v1258_v2 = vld [vmem:[%s1575_s1 + $0xd0] ss:$8 sps:$4 sm:$0xff]  }
  0x74   : > { %691 = vmatpush1.bf16.msra.mxu0 %v1225_v42  ;;  %1114 = vmatpush1.bf16.msra.mxu1 %v1225_v42  ;;  %v1259_v3 = vld [vmem:[%s1575_s1 + $0xe4] ss:$8 sps:$4 sm:$0xff]   ;;  %v1261_v4 = vld [vmem:[%s1575_s1 + $0xe0] ss:$8 sps:$4 sm:$0xff]   ;;  %v1262_v5 = vld [vmem:[%s1575_s1 + $0xf4] ss:$8 sps:$4 sm:$0xff]  }
  0x75   : > { %692 = vmatprep.subr.bf16.mxu0 %v1226_v43  ;;  %1099 = vmatprep.subr.bf16.mxu1 %v1226_v43  ;;  %v1264_v6 = vld [vmem:[%s1575_s1 + $0xf0] ss:$8 sps:$4 sm:$0xff]   ;;  %v1265_v7 = vld [vmem:[%s1573_s6] ss:$8 sps:$4 sm:$0xff]   ;;  %p1079_p5 = scmp.ne.s32.totalorder %s1341_s18, 17 }
  0x76   : > { %v1268_v8 = vld [vmem:[%s1573_s6 + $0x10] ss:$8 sps:$4 sm:$0xff]   ;;  %v462_v9 = vld [vmem:[#allocation2] sm:$0xff]  ;;  %v463_v11 = vld [vmem:[#allocation2 + $0x8] sm:$0xff]  ;;  %v769_v33 = vlaneseq (!%p1079_p5) }
  0x77   : > { %v466_v10 = vld [vmem:[#allocation2 + $0x20] sm:$0xff]  ;;  %v467_v12 = vld [vmem:[#allocation2 + $0x28] sm:$0xff]  ;;  %v464_v15 = vld [vmem:[#allocation2 + $0x10] sm:$0xff] }
  0x78   : > { %693 = vmatpush1.bf16.msra.mxu0 %v1228_v44  ;;  %1115 = vmatpush1.bf16.msra.mxu1 %v1228_v44  ;;  %v468_v16 = vld [vmem:[#allocation2 + $0x30] sm:$0xff]  ;;  %v465_v21 = vld [vmem:[#allocation2 + $0x18] sm:$0xff]  ;;  %v770_v34 = vshrl.u32 (!%p1079_p5), %v769_v33, 7  ;;  %v759_v35 = vld [vmem:[%s1571_s27] sm:$0xf] (!%p1079_p5) }
  0x79   : > { %694 = vmatprep.subr.bf16.mxu0 %v1229_v45  ;;  %1100 = vmatprep.subr.bf16.mxu1 %v1229_v45  ;;  %v469_v22 = vld [vmem:[#allocation2 + $0x38] sm:$0xff] }
  0x7a   : > { %v771_v36 = vsub.s32 (!%p1079_p5), 0, %v770_v34  ;;  %v775_v37 = vsub.s32 (!%p1079_p5), 2, %v770_v34  ;;  %v797_v38 = vsub.s32 (!%p1079_p5), 1, %v770_v34  ;;  %v801_v39 = vsub.s32 (!%p1079_p5), 3, %v770_v34 }
  0x7c   : > { %695 = vmatpush1.bf16.msra.mxu0 %v1231_v46  ;;  %1116 = vmatpush1.bf16.msra.mxu1 %v1231_v46  ;;  %v772_v42 = vrot.slane (!%p1079_p5), %v759_v35, %v771_v36  ;;  %v776_v43 = vrot.slane (!%p1079_p5), %v759_v35, %v775_v37  ;;  %v798_v44 = vrot.slane (!%p1079_p5), %v759_v35, %v797_v38 }
  0x7d   : > { %696 = vmatprep.subr.bf16.mxu0 %v1232_v47  ;;  %1101 = vmatprep.subr.bf16.mxu1 %v1232_v47  ;;  %v802_v45 = vrot.slane (!%p1079_p5), %v759_v35, %v801_v39 }
  0x7e   : > { %v786_v50 = vrot.slane (!%p1079_p5), %v776_v43, %v771_v36 }
  0x7f   : > { %v812_v52 = vrot.slane (!%p1079_p5), %v802_v45, %v797_v38 }
  0x80   : > { %697 = vmatpush1.bf16.msra.mxu0 %v1234_v48  ;;  %1117 = vmatpush1.bf16.msra.mxu1 %v1234_v48 }
  0x81   : > { %698 = vmatprep.subr.bf16.mxu0 %v1235_v49  ;;  %1102 = vmatprep.subr.bf16.mxu1 %v1235_v49  ;;  %v782_v49 = vrot.slane (!%p1079_p5), %v772_v42, %v771_v36 }
  0x84   : > { %699 = vmatpush1.bf16.msra.mxu0 %v1237_v51  ;;  %1118 = vmatpush1.bf16.msra.mxu1 %v1237_v51  ;;  %v808_v51 = vrot.slane (!%p1079_p5), %v798_v44, %v797_v38 }
  0x85   : > { %700 = vmatprep.subr.bf16.mxu0 %v1238_v53  ;;  %1103 = vmatprep.subr.bf16.mxu1 %v1238_v53 }
  0x88   : > { %701 = vmatpush1.bf16.msra.mxu0 %v1240_v54  ;;  %1119 = vmatpush1.bf16.msra.mxu1 %v1240_v54 }
  0x89   : > { %702 = vmatprep.subr.bf16.mxu0 %v1241_v55  ;;  %1104 = vmatprep.subr.bf16.mxu1 %v1241_v55 }
  0x8c   : > { %703 = vmatpush1.bf16.msra.mxu0 %v1243_v56  ;;  %1120 = vmatpush1.bf16.msra.mxu1 %v1243_v56 }
  0x8d   : > { %704 = vmatprep.subr.bf16.mxu0 %v1244_v57  ;;  %1105 = vmatprep.subr.bf16.mxu1 %v1244_v57 }
  0x90   : > { %705 = vmatpush1.bf16.msra.mxu0 %v1246_v58  ;;  %1121 = vmatpush1.bf16.msra.mxu1 %v1246_v58 }
  0x91   : > { %706 = vmatprep.subr.bf16.mxu0 %v1247_v59  ;;  %1106 = vmatprep.subr.bf16.mxu1 %v1247_v59 }
  0x94   : > { %707 = vmatpush1.bf16.msra.mxu0 %v1249_v60  ;;  %1122 = vmatpush1.bf16.msra.mxu1 %v1249_v60 }
  0x95   : > { %708 = vmatprep.subr.bf16.mxu0 %v1250_v61  ;;  %1107 = vmatprep.subr.bf16.mxu1 %v1250_v61 }
  0x98   : > { %709 = vmatpush1.bf16.msra.mxu0 %v1252_v62  ;;  %1123 = vmatpush1.bf16.msra.mxu1 %v1252_v62 }
  0x99   : > { %710 = vmatprep.subr.bf16.mxu0 %v1253_v63  ;;  %1108 = vmatprep.subr.bf16.mxu1 %v1253_v63 }
  0x9c   : > { %711 = vmatpush1.bf16.msra.mxu0 %v1255_v0  ;;  %1124 = vmatpush1.bf16.msra.mxu1 %v1255_v0 }
  0x9d   : > { %712 = vmatprep.subr.bf16.mxu0 %v1256_v1  ;;  %1109 = vmatprep.subr.bf16.mxu1 %v1256_v1 }
  0xa0   : > { %713 = vmatpush1.bf16.msra.mxu0 %v1258_v2  ;;  %1125 = vmatpush1.bf16.msra.mxu1 %v1258_v2 }
  0xa1   : > { %714 = vmatprep.subr.bf16.mxu0 %v1259_v3  ;;  %1110 = vmatprep.subr.bf16.mxu1 %v1259_v3 }
  0xa4   : > { %715 = vmatpush1.bf16.msra.mxu0 %v1261_v4  ;;  %1126 = vmatpush1.bf16.msra.mxu1 %v1261_v4 }
  0xa5   : > { %716 = vmatprep.subr.bf16.mxu0 %v1262_v5  ;;  %1111 = vmatprep.subr.bf16.mxu1 %v1262_v5 }
  0xa8   : > { %717 = vmatpush1.bf16.msra.mxu0 %v1264_v6  ;;  %1127 = vmatpush1.bf16.msra.mxu1 %v1264_v6 }
  0xab   : > { %719 = vmatmul.mubr.bf16.vlgmr.msra.gmra.mrb[0].mxu0 %v1265_v7  ;;  %729 = vmatmul.mubr.bf16.vlgmr.msra.gmra.mrb[0].mxu1 %v1268_v8 }
 0x17e   : > { %v720_v13 = vpop.f32.mrb[0].mxu0  ;;  %v730_v14 = vpop.f32.mrb[0].mxu1  ;;  %758 = sbr.rel (%p1079_p5) target bundleno = 406 (0x196), region = 116 }
 0x17f   : > { %v739_v17 = vadd.f32 %v720_v13, %v462_v9  ;;  %v743_v18 = vadd.f32 %v730_v14, %v466_v10  ;;  %v722_v19 = vpop.f32.mrb[1].mxu0  ;;  %v732_v20 = vpop.f32.mrb[1].mxu1 }
 0x180   : > { %v740_v23 = vadd.f32 %v722_v19, %v463_v11  ;;  %v744_v24 = vadd.f32 %v732_v20, %v467_v12  ;;  %v724_v25 = vpop.f32.mrb[2].mxu0  ;;  %v734_v26 = vpop.f32.mrb[2].mxu1 }
 0x181   : > { %747 = vst [vmem:[#allocation2] sm:$0xff] %v739_v17  ;;  %751 = vst [vmem:[#allocation2 + $0x20] sm:$0xff] %v743_v18  ;;  %v741_v27 = vadd.f32 %v724_v25, %v464_v15  ;;  %v745_v28 = vadd.f32 %v734_v26, %v468_v16  ;;  %v726_v29 = vpop.f32.mrb[3].mxu0  ;;  %v736_v30 = vpop.f32.mrb[3].mxu1 }
 0x182   : > { %748 = vst [vmem:[#allocation2 + $0x8] sm:$0xff] %v740_v23  ;;  %752 = vst [vmem:[#allocation2 + $0x28] sm:$0xff] %v744_v24  ;;  %v742_v31 = vadd.f32 %v726_v29, %v465_v21  ;;  %v746_v32 = vadd.f32 %v736_v30, %v469_v22 }
 0x183   : > { %749 = vst [vmem:[#allocation2 + $0x10] sm:$0xff] %v741_v27  ;;  %753 = vst [vmem:[#allocation2 + $0x30] sm:$0xff] %v745_v28 }
 0x184   : > { %750 = vst [vmem:[#allocation2 + $0x18] sm:$0xff] %v742_v31  ;;  %754 = vst [vmem:[#allocation2 + $0x38] sm:$0xff] %v746_v32 }
 0x188   : > { %v760_v40 = vld [vmem:[#allocation2] sm:$0xff] }
 0x189   : > { %v761_v41 = vld [vmem:[#allocation2 + $0x8] sm:$0xff]  ;;  %v764_v48 = vld [vmem:[#allocation2 + $0x20] sm:$0xff]  ;;  %v787_v56 = vmul.f32 %v782_v49, %v760_v40 }
 0x18a   : > { %v762_v46 = vld [vmem:[#allocation2 + $0x10] sm:$0xff]  ;;  %v765_v53 = vld [vmem:[#allocation2 + $0x28] sm:$0xff]  ;;  %v788_v57 = vmul.f32 %v786_v50, %v761_v41  ;;  %v791_v60 = vmul.f32 %v782_v49, %v764_v48 }
 0x18b   : > { %v763_v47 = vld [vmem:[#allocation2 + $0x18] sm:$0xff]  ;;  %v766_v54 = vld [vmem:[#allocation2 + $0x30] sm:$0xff]  ;;  %v789_v58 = vmul.f32 %v782_v49, %v762_v46  ;;  %v792_v61 = vmul.f32 %v786_v50, %v765_v53  ;;  %v813_v0 = vadd.f32 %v808_v51, %v787_v56 }
 0x18c   : > { %v767_v55 = vld [vmem:[#allocation2 + $0x38] sm:$0xff]  ;;  %v790_v59 = vmul.f32 %v786_v50, %v763_v47  ;;  %v793_v62 = vmul.f32 %v782_v49, %v766_v54  ;;  %v814_v1 = vadd.f32 %v812_v52, %v788_v57  ;;  %v817_v4 = vadd.f32 %v808_v51, %v791_v60 }
 0x18d   : > { %v794_v63 = vmul.f32 %v786_v50, %v767_v55  ;;  %v815_v2 = vadd.f32 %v808_v51, %v789_v58  ;;  %v818_v5 = vadd.f32 %v812_v52, %v792_v61  ;;  %v821_v8 = vmax.f32 %v813_v0, 0.0 }
 0x18e   : > { %v816_v3 = vadd.f32 %v812_v52, %v790_v59  ;;  %v819_v6 = vadd.f32 %v808_v51, %v793_v62  ;;  %v822_v9 = vmax.f32 %v814_v1, 0.0  ;;  %v825_v12 = vmax.f32 %v817_v4, 0.0 }
 0x18f   : > { %v820_v7 = vadd.f32 %v812_v52, %v794_v63  ;;  %v823_v10 = vmax.f32 %v815_v2, 0.0  ;;  %v826_v13 = vmax.f32 %v818_v5, 0.0 }
 0x190   : > { %v824_v11 = vmax.f32 %v816_v3, 0.0  ;;  %v827_v14 = vmax.f32 %v819_v6, 0.0  ;;  %v1091_v16 = vpack.c.bf16 %v822_v9, %v821_v8 }
 0x191   : > { %v828_v15 = vmax.f32 %v820_v7, 0.0  ;;  %v1093_v18 = vpack.c.bf16 %v826_v13, %v825_v12 }
 0x192   : > { %v1092_v17 = vpack.c.bf16 %v824_v11, %v823_v10  ;;  %853 = vst [vmem:[%s1577_s24] sm:$0xff] %v1091_v16 }
 0x193   : > { %v1094_v19 = vpack.c.bf16 %v828_v15, %v827_v14  ;;  %855 = vst [vmem:[%s1577_s24 + $0x10] sm:$0xff] %v1093_v18 }
 0x194   : > { %854 = vst [vmem:[%s1577_s24 + $0x8] sm:$0xff] %v1092_v17 }
 0x195   : > { %856 = vst [vmem:[%s1577_s24 + $0x18] sm:$0xff] %v1094_v19 }
 0x196 PF: > { %863 = sbr.rel (!%p1474_p12) target bundleno = 414 (0x19e), region = 120  ;;  %s1095_s1 = sshll.u32 (%p1474_p12), %s1345_s19, 3 }
 0x197   : > { %s869_s16 = scalar_lea.vmem (%p1474_p12), %s1668_s3, %s1095_s1 }
 0x199   : > { %v903_v20 = vld [vmem:[%s1577_s24] sm:$0xff] (%p1474_p12) }
 0x19a   : > { %v907_v22 = vld [vmem:[%s1577_s24 + $0x10] sm:$0xff] (%p1474_p12)  ;;  %904 = vst [vmem:[%s869_s16] sm:$0xff] (%p1474_p12), %v903_v20 }
 0x19b   : > { %v905_v21 = vld [vmem:[%s1577_s24 + $0x8] sm:$0xff] (%p1474_p12)  ;;  %908 = vst [vmem:[%s869_s16 + $0x80] sm:$0xff] (%p1474_p12), %v907_v22 }
 0x19c   : > { %v909_v23 = vld [vmem:[%s1577_s24 + $0x18] sm:$0xff] (%p1474_p12)  ;;  %906 = vst [vmem:[%s869_s16 + $0x40] sm:$0xff] (%p1474_p12), %v905_v21 }
 0x19d   : > { %910 = vst [vmem:[%s869_s16 + $0xc0] sm:$0xff] %v909_v23 }
 0x19e PF: > { %s13_s22 = sadd.s32 1, %s1357_s22   ;;  %s1680_s10 = sld [smem:[#allocation6_spill]] }
 0x19f   : > { %p10_p6 = scmp.ge.s32.totalorder %s13_s22, 146   ;;  %s1681_s0 = sld [smem:[#allocation7_spill]] }
 0x1a0   : > { %s1682_s12 = smov %s1321_s13  ;;  %s1683_s13 = smov %s1472_s9 }
 0x1a1   : > { %s1684_s14 = smov %s1329_s15  ;;  %s1685_s15 = smov %s1469_s8 }
 0x1a2   : > { %s1686_s16 = smov %s1337_s17  ;;  %s1687_s17 = smov %s1455_s30 }
 0x1a3   : > { %s1688_s18 = smov %s1349_s20  ;;  %s1689_s19 = smov %s1353_s21 }
 0x1a4   : > { %s1690_s20 = smov %s1680_s10  ;;  %12 = sbr.rel (!%p10_p6) target bundleno = 9 (0x9), region = 200 }
 0x1a5   : > { %s1691_s21 = smov %s1681_s0 }

// kernel: forward.51
= control target key start
LH: loop header
LB: loop body
LE: loop exit
PB: predicated region body
PF: predicated region fallthrough
CT: control target
= control target key end

     0   :  { %s1098_s12 = smov 0   ;;  %s1100_s13 = smov 0   ;;  %s1220_s0 = inlined_call_operand.vmem [shape: bf16[32,512], index: 0, kind: input, shape index: {}]   ;;  %s1221_s1 = inlined_call_operand.vmem [shape: bf16[512,256], index: 1, kind: input, shape index: {}]   ;;  %s1222_s2 = inlined_call_operand.vmem [shape: f32[2,256], index: 2, kind: input, shape index: {}]   ;;  %s1223_s3 = inlined_call_operand.vmem [shape: bf16[32,256], index: 3, kind: output, shape index: {}]  }
   0x1   :  { %s1102_s14 = smov 0   ;;  %s1104_s15 = smov 0  }
   0x2   :  { %s1106_s16 = smov 0  }
   0x3 LB: > { %s25_s17 = sadd.s32 1, %s1071_s15  ;;  %p48_p1 = scmp.ne.s32.totalorder %s1063_s13, %s1059_s12  ;;  %s1075_s16 = sphi %s1106_s16, %s13_s16   ;;  %s1071_s15 = sphi %s1104_s15, %s1227_s15   ;;  %s1067_s14 = sphi %s1102_s14, %s1226_s14   ;;  %s1063_s13 = sphi %s1100_s13, %s1225_s13   ;;  %s1059_s12 = sphi %s1098_s12, %s1224_s12  }
   0x4   : > { %p26_p0 = scmp.ge.s32.totalorder %s25_s17, 2  ;;  %p49_p2 = scmp.eq.s32.totalorder %s1075_s16, 0 }
   0x5   : > { %s41_s19 = sadd.s32 1, %s1063_s13  ;;  %p849_p5 = scmp.ge.s32.totalorder %s1075_s16, 2 }
   0x6   : > { %s1229_s17 = smov (%p26_p0, %s25_s17), 0  ;;  %p50_p3 = por %p49_p2, %p48_p1 }
   0x7   : > { %s37_s18 = ssub.s32 %s1071_s15, %s1229_s17  ;;  %165 = sbr.rel (%p849_p5) target bundleno = 21 (0x15), region = 20 }
   0x8   : > { %p39_p4 = scmp.eq.s32.totalorder %s37_s18, 0 }
   0xa   : > { %s1133_s20 = scalar_select %p39_p4, %s1063_s13, %s41_s19  }
   0xe   : > { %168 = sbr.rel (!%p50_p3) target bundleno = 21 (0x15), region = 24  ;;  %s170_s21 = sand.u32 (%p50_p3), 1, %s1063_s13  }
   0xf   : > { %s904_s22 = sshll.u32 (%p50_p3), %s1071_s15, 3  ;;  %s850_s23 = sshll.u32 (%p50_p3), %s170_s21, 5 }
  0x10   : > { %s178_s26 = scalar_lea.vmem (%p50_p3), %s1220_s0, %s904_s22  ;;  %s172_s27 = scalar_lea.vmem (%p50_p3), [#allocation3], %s850_s23 }
  0x11   : > { %v212_v0 = vld [vmem:[%s178_s26] sm:$0xff] (%p50_p3)  ;;  %v214_v1 = vld [vmem:[%s178_s26 + $0x10] sm:$0xff] (%p50_p3) }
  0x12   : > { %v216_v2 = vld [vmem:[%s178_s26 + $0x20] sm:$0xff] (%p50_p3)  ;;  %213 = vst [vmem:[%s172_s27] sm:$0xff] (%p50_p3), %v212_v0  ;;  %215 = vst [vmem:[%s172_s27 + $0x8] sm:$0xff] (%p50_p3), %v214_v1  ;;  %v218_v3 = vld [vmem:[%s178_s26 + $0x30] sm:$0xff] (%p50_p3) }
  0x13   : > { %217 = vst [vmem:[%s172_s27 + $0x10] sm:$0xff] (%p50_p3), %v216_v2  ;;  %219 = vst [vmem:[%s172_s27 + $0x18] sm:$0xff] (%p50_p3), %v218_v3 }
  0x15 PF: > { %p853_p6 = scmp.ge.s32.totalorder %s1075_s16, 1  ;;  %p239_p7 = scmp.lt.s32.totalorder %s1075_s16, 3 }
  0x17   : > { %p240_p8 = pnand %p853_p6, %p239_p7 }
  0x18   : > { %s246_s28 = sand.u32 (!%p240_p8), 1, %s1059_s12   ;;  %s855_s29 = sshll.u32 (!%p240_p8), %s1067_s14, 5 }
  0x19   : > { %243 = sbr.rel (%p240_p8) target bundleno = 337 (0x151), region = 66  ;;  %s854_s30 = sshll.u32 (!%p240_p8), %s246_s28, 5 }
  0x1a   : > { %p293_p9 = scmp.lt.s32.totalorder (!%p240_p8), %s855_s29, 63  ;;  %s1150_s8 = scalar_lea.vmem (!%p240_p8), [#allocation3], %s854_s30 }
  0x1b   : > { %p858_p10 = scmp.ne.s32.totalorder (!%p240_p8), %s1067_s14, 0 }
  0x20   : > { %s1231_s29 = smov (!%p293_p9, %s855_s29), 63  ;;  %324 = sbr.rel (%p858_p10) target bundleno = 39 (0x27), region = 74 }
  0x21   : > { %s905_s4 = sshll.u32 %s1231_s29, 3  ;;  %v1077_v4 = vmov (!%p858_p10), 0.0  }
  0x22   : > { %s1148_s7 = scalar_lea.vmem %s1221_s1, %s905_s4  ;;  %325 = vst [vmem:[#allocation2] sm:$0xff] (!%p858_p10), %v1077_v4  ;;  %326 = vst [vmem:[#allocation2 + $0x8] sm:$0xff] (!%p858_p10), %v1077_v4 }
  0x23   : > { %327 = vst [vmem:[#allocation2 + $0x10] sm:$0xff] (!%p858_p10), %v1077_v4  ;;  %328 = vst [vmem:[#allocation2 + $0x18] sm:$0xff] (!%p858_p10), %v1077_v4 }
  0x24   : > { %329 = vst [vmem:[#allocation2 + $0x20] sm:$0xff] (!%p858_p10), %v1077_v4  ;;  %330 = vst [vmem:[#allocation2 + $0x28] sm:$0xff] (!%p858_p10), %v1077_v4 }
  0x25   : > { %331 = vst [vmem:[#allocation2 + $0x30] sm:$0xff] (!%p858_p10), %v1077_v4  ;;  %332 = vst [vmem:[#allocation2 + $0x38] sm:$0xff] (!%p858_p10), %v1077_v4 }
  0x27 PF: > { %v983_v5 = vld [vmem:[%s1148_s7 + $0x4] ss:$8 sps:$4 sm:$0xff]   ;;  %v985_v6 = vld [vmem:[%s1148_s7] ss:$8 sps:$4 sm:$0xff]   ;;  %v986_v7 = vld [vmem:[%s1148_s7 + $0x14] ss:$8 sps:$4 sm:$0xff]  }
  0x28   : > { %557 = vmatprep.subr.bf16.mxu0 %v983_v5  ;;  %910 = vmatprep.subr.bf16.mxu1 %v983_v5  ;;  %v988_v8 = vld [vmem:[%s1148_s7 + $0x10] ss:$8 sps:$4 sm:$0xff]   ;;  %v989_v9 = vld [vmem:[%s1148_s7 + $0x24] ss:$8 sps:$4 sm:$0xff]   ;;  %v991_v10 = vld [vmem:[%s1148_s7 + $0x20] ss:$8 sps:$4 sm:$0xff]  }
  0x29   : > { %558 = vmatpush1.bf16.msra.mxu0 %v985_v6  ;;  %926 = vmatpush1.bf16.msra.mxu1 %v985_v6  ;;  %v992_v11 = vld [vmem:[%s1148_s7 + $0x34] ss:$8 sps:$4 sm:$0xff]   ;;  %v994_v12 = vld [vmem:[%s1148_s7 + $0x30] ss:$8 sps:$4 sm:$0xff]   ;;  %v995_v13 = vld [vmem:[%s1148_s7 + $0x44] ss:$8 sps:$4 sm:$0xff]  }
  0x2a   : > { %559 = vmatprep.subr.bf16.mxu0 %v986_v7  ;;  %911 = vmatprep.subr.bf16.mxu1 %v986_v7  ;;  %v997_v14 = vld [vmem:[%s1148_s7 + $0x40] ss:$8 sps:$4 sm:$0xff]   ;;  %v998_v15 = vld [vmem:[%s1148_s7 + $0x54] ss:$8 sps:$4 sm:$0xff]   ;;  %v1000_v16 = vld [vmem:[%s1148_s7 + $0x50] ss:$8 sps:$4 sm:$0xff]  }
  0x2b   : > { %v1001_v17 = vld [vmem:[%s1148_s7 + $0x64] ss:$8 sps:$4 sm:$0xff]   ;;  %v1003_v19 = vld [vmem:[%s1148_s7 + $0x60] ss:$8 sps:$4 sm:$0xff]   ;;  %v1036_v20 = vld [vmem:[%s1150_s8 + $0x14] ss:$8 sps:$4 sm:$0xff]  }
  0x2c   : > { %v1033_v18 = vld [vmem:[%s1150_s8 + $0x4] ss:$8 sps:$4 sm:$0xff]   ;;  %v1004_v21 = vld [vmem:[%s1148_s7 + $0x74] ss:$8 sps:$4 sm:$0xff]   ;;  %599 = vmatprep.mubr.bf16.mxu1 %v1036_v20  ;;  %v1006_v22 = vld [vmem:[%s1148_s7 + $0x70] ss:$8 sps:$4 sm:$0xff]  }
  0x2d   : > { %560 = vmatpush1.bf16.msra.mxu0 %v988_v8  ;;  %927 = vmatpush1.bf16.msra.mxu1 %v988_v8  ;;  %v1007_v23 = vld [vmem:[%s1148_s7 + $0x84] ss:$8 sps:$4 sm:$0xff]   ;;  %v1009_v24 = vld [vmem:[%s1148_s7 + $0x80] ss:$8 sps:$4 sm:$0xff]   ;;  %v1010_v25 = vld [vmem:[%s1148_s7 + $0x94] ss:$8 sps:$4 sm:$0xff]  }
  0x2e   : > { %561 = vmatprep.subr.bf16.mxu0 %v989_v9  ;;  %912 = vmatprep.subr.bf16.mxu1 %v989_v9  ;;  %v1012_v26 = vld [vmem:[%s1148_s7 + $0x90] ss:$8 sps:$4 sm:$0xff]   ;;  %v1013_v27 = vld [vmem:[%s1148_s7 + $0xa4] ss:$8 sps:$4 sm:$0xff]   ;;  %v1015_v28 = vld [vmem:[%s1148_s7 + $0xa0] ss:$8 sps:$4 sm:$0xff]  }
  0x2f   : > { %589 = vmatprep.mubr.bf16.mxu0 %v1033_v18  ;;  %v1016_v29 = vld [vmem:[%s1148_s7 + $0xb4] ss:$8 sps:$4 sm:$0xff]   ;;  %v1018_v30 = vld [vmem:[%s1148_s7 + $0xb0] ss:$8 sps:$4 sm:$0xff]   ;;  %v1019_v31 = vld [vmem:[%s1148_s7 + $0xc4] ss:$8 sps:$4 sm:$0xff]  }
  0x30   : > { %v1021_v32 = vld [vmem:[%s1148_s7 + $0xc0] ss:$8 sps:$4 sm:$0xff]   ;;  %v1022_v33 = vld [vmem:[%s1148_s7 + $0xd4] ss:$8 sps:$4 sm:$0xff]   ;;  %v1024_v34 = vld [vmem:[%s1148_s7 + $0xd0] ss:$8 sps:$4 sm:$0xff]  }
  0x31   : > { %562 = vmatpush1.bf16.msra.mxu0 %v991_v10  ;;  %928 = vmatpush1.bf16.msra.mxu1 %v991_v10  ;;  %v1025_v35 = vld [vmem:[%s1148_s7 + $0xe4] ss:$8 sps:$4 sm:$0xff]   ;;  %v1027_v36 = vld [vmem:[%s1148_s7 + $0xe0] ss:$8 sps:$4 sm:$0xff]   ;;  %v1028_v37 = vld [vmem:[%s1148_s7 + $0xf4] ss:$8 sps:$4 sm:$0xff]  }
  0x32   : > { %563 = vmatprep.subr.bf16.mxu0 %v992_v11  ;;  %913 = vmatprep.subr.bf16.mxu1 %v992_v11  ;;  %v1030_v38 = vld [vmem:[%s1148_s7 + $0xf0] ss:$8 sps:$4 sm:$0xff]   ;;  %v1031_v39 = vld [vmem:[%s1150_s8] ss:$8 sps:$4 sm:$0xff]   ;;  %p895_p11 = scmp.ne.s32.totalorder %s1067_s14, 1 }
  0x33   : > { %v1034_v40 = vld [vmem:[%s1150_s8 + $0x10] ss:$8 sps:$4 sm:$0xff]   ;;  %v333_v41 = vld [vmem:[#allocation2] sm:$0xff]  ;;  %v334_v43 = vld [vmem:[#allocation2 + $0x8] sm:$0xff]  ;;  %v640_v1 = vlaneseq (!%p895_p11) }
  0x34   : > { %v337_v42 = vld [vmem:[#allocation2 + $0x20] sm:$0xff]  ;;  %v338_v44 = vld [vmem:[#allocation2 + $0x28] sm:$0xff]  ;;  %v335_v47 = vld [vmem:[#allocation2 + $0x10] sm:$0xff] }
  0x35   : > { %564 = vmatpush1.bf16.msra.mxu0 %v994_v12  ;;  %929 = vmatpush1.bf16.msra.mxu1 %v994_v12  ;;  %v339_v48 = vld [vmem:[#allocation2 + $0x30] sm:$0xff]  ;;  %v336_v53 = vld [vmem:[#allocation2 + $0x18] sm:$0xff]  ;;  %v641_v2 = vshrl.u32 (!%p895_p11), %v640_v1, 7  ;;  %v630_v3 = vld [vmem:[%s1222_s2] sm:$0xf] (!%p895_p11) }
  0x36   : > { %565 = vmatprep.subr.bf16.mxu0 %v995_v13  ;;  %914 = vmatprep.subr.bf16.mxu1 %v995_v13  ;;  %v340_v54 = vld [vmem:[#allocation2 + $0x38] sm:$0xff] }
  0x37   : > { %v642_v4 = vsub.s32 (!%p895_p11), 0, %v641_v2  ;;  %v646_v5 = vsub.s32 (!%p895_p11), 2, %v641_v2  ;;  %v668_v6 = vsub.s32 (!%p895_p11), 1, %v641_v2  ;;  %v672_v7 = vsub.s32 (!%p895_p11), 3, %v641_v2 }
  0x39   : > { %566 = vmatpush1.bf16.msra.mxu0 %v997_v14  ;;  %930 = vmatpush1.bf16.msra.mxu1 %v997_v14  ;;  %v643_v10 = vrot.slane (!%p895_p11), %v630_v3, %v642_v4  ;;  %v647_v11 = vrot.slane (!%p895_p11), %v630_v3, %v646_v5  ;;  %v669_v12 = vrot.slane (!%p895_p11), %v630_v3, %v668_v6 }
  0x3a   : > { %567 = vmatprep.subr.bf16.mxu0 %v998_v15  ;;  %915 = vmatprep.subr.bf16.mxu1 %v998_v15  ;;  %v673_v13 = vrot.slane (!%p895_p11), %v630_v3, %v672_v7 }
  0x3b   : > { %v657_v18 = vrot.slane (!%p895_p11), %v647_v11, %v642_v4 }
  0x3c   : > { %v683_v20 = vrot.slane (!%p895_p11), %v673_v13, %v668_v6 }
  0x3d   : > { %568 = vmatpush1.bf16.msra.mxu0 %v1000_v16  ;;  %931 = vmatpush1.bf16.msra.mxu1 %v1000_v16 }
  0x3e   : > { %569 = vmatprep.subr.bf16.mxu0 %v1001_v17  ;;  %916 = vmatprep.subr.bf16.mxu1 %v1001_v17  ;;  %v653_v17 = vrot.slane (!%p895_p11), %v643_v10, %v642_v4 }
  0x41   : > { %570 = vmatpush1.bf16.msra.mxu0 %v1003_v19  ;;  %932 = vmatpush1.bf16.msra.mxu1 %v1003_v19  ;;  %v679_v19 = vrot.slane (!%p895_p11), %v669_v12, %v668_v6 }
  0x42   : > { %571 = vmatprep.subr.bf16.mxu0 %v1004_v21  ;;  %917 = vmatprep.subr.bf16.mxu1 %v1004_v21 }
  0x45   : > { %572 = vmatpush1.bf16.msra.mxu0 %v1006_v22  ;;  %933 = vmatpush1.bf16.msra.mxu1 %v1006_v22 }
  0x46   : > { %573 = vmatprep.subr.bf16.mxu0 %v1007_v23  ;;  %918 = vmatprep.subr.bf16.mxu1 %v1007_v23 }
  0x49   : > { %574 = vmatpush1.bf16.msra.mxu0 %v1009_v24  ;;  %934 = vmatpush1.bf16.msra.mxu1 %v1009_v24 }
  0x4a   : > { %575 = vmatprep.subr.bf16.mxu0 %v1010_v25  ;;  %919 = vmatprep.subr.bf16.mxu1 %v1010_v25 }
  0x4d   : > { %576 = vmatpush1.bf16.msra.mxu0 %v1012_v26  ;;  %935 = vmatpush1.bf16.msra.mxu1 %v1012_v26 }
  0x4e   : > { %577 = vmatprep.subr.bf16.mxu0 %v1013_v27  ;;  %920 = vmatprep.subr.bf16.mxu1 %v1013_v27 }
  0x51   : > { %578 = vmatpush1.bf16.msra.mxu0 %v1015_v28  ;;  %936 = vmatpush1.bf16.msra.mxu1 %v1015_v28 }
  0x52   : > { %579 = vmatprep.subr.bf16.mxu0 %v1016_v29  ;;  %921 = vmatprep.subr.bf16.mxu1 %v1016_v29 }
  0x55   : > { %580 = vmatpush1.bf16.msra.mxu0 %v1018_v30  ;;  %937 = vmatpush1.bf16.msra.mxu1 %v1018_v30 }
  0x56   : > { %581 = vmatprep.subr.bf16.mxu0 %v1019_v31  ;;  %922 = vmatprep.subr.bf16.mxu1 %v1019_v31 }
  0x59   : > { %582 = vmatpush1.bf16.msra.mxu0 %v1021_v32  ;;  %938 = vmatpush1.bf16.msra.mxu1 %v1021_v32 }
  0x5a   : > { %583 = vmatprep.subr.bf16.mxu0 %v1022_v33  ;;  %923 = vmatprep.subr.bf16.mxu1 %v1022_v33 }
  0x5d   : > { %584 = vmatpush1.bf16.msra.mxu0 %v1024_v34  ;;  %939 = vmatpush1.bf16.msra.mxu1 %v1024_v34 }
  0x5e   : > { %585 = vmatprep.subr.bf16.mxu0 %v1025_v35  ;;  %924 = vmatprep.subr.bf16.mxu1 %v1025_v35 }
  0x61   : > { %586 = vmatpush1.bf16.msra.mxu0 %v1027_v36  ;;  %940 = vmatpush1.bf16.msra.mxu1 %v1027_v36 }
  0x62   : > { %587 = vmatprep.subr.bf16.mxu0 %v1028_v37  ;;  %925 = vmatprep.subr.bf16.mxu1 %v1028_v37 }
  0x65   : > { %588 = vmatpush1.bf16.msra.mxu0 %v1030_v38  ;;  %941 = vmatpush1.bf16.msra.mxu1 %v1030_v38 }
  0x68   : > { %590 = vmatmul.mubr.bf16.vlgmr.msra.gmra.mrb[0].mxu0 %v1031_v39  ;;  %600 = vmatmul.mubr.bf16.vlgmr.msra.gmra.mrb[0].mxu1 %v1034_v40 }
 0x13b   : > { %v591_v45 = vpop.f32.mrb[0].mxu0  ;;  %v601_v46 = vpop.f32.mrb[0].mxu1  ;;  %629 = sbr.rel (%p895_p11) target bundleno = 337 (0x151), region = 78 }
 0x13c   : > { %v610_v49 = vadd.f32 %v591_v45, %v333_v41  ;;  %v614_v50 = vadd.f32 %v601_v46, %v337_v42  ;;  %v593_v51 = vpop.f32.mrb[1].mxu0  ;;  %v603_v52 = vpop.f32.mrb[1].mxu1 }
 0x13d   : > { %v611_v55 = vadd.f32 %v593_v51, %v334_v43  ;;  %v615_v56 = vadd.f32 %v603_v52, %v338_v44  ;;  %v595_v57 = vpop.f32.mrb[2].mxu0  ;;  %v605_v58 = vpop.f32.mrb[2].mxu1 }
 0x13e   : > { %618 = vst [vmem:[#allocation2] sm:$0xff] %v610_v49  ;;  %622 = vst [vmem:[#allocation2 + $0x20] sm:$0xff] %v614_v50  ;;  %v612_v59 = vadd.f32 %v595_v57, %v335_v47  ;;  %v616_v60 = vadd.f32 %v605_v58, %v339_v48  ;;  %v597_v61 = vpop.f32.mrb[3].mxu0  ;;  %v607_v62 = vpop.f32.mrb[3].mxu1 }
 0x13f   : > { %619 = vst [vmem:[#allocation2 + $0x8] sm:$0xff] %v611_v55  ;;  %623 = vst [vmem:[#allocation2 + $0x28] sm:$0xff] %v615_v56  ;;  %v613_v63 = vadd.f32 %v597_v61, %v336_v53  ;;  %v617_v0 = vadd.f32 %v607_v62, %v340_v54 }
 0x140   : > { %620 = vst [vmem:[#allocation2 + $0x10] sm:$0xff] %v612_v59  ;;  %624 = vst [vmem:[#allocation2 + $0x30] sm:$0xff] %v616_v60 }
 0x141   : > { %621 = vst [vmem:[#allocation2 + $0x18] sm:$0xff] %v613_v63  ;;  %625 = vst [vmem:[#allocation2 + $0x38] sm:$0xff] %v617_v0 }
 0x145   : > { %v631_v8 = vld [vmem:[#allocation2] sm:$0xff] }
 0x146   : > { %v632_v9 = vld [vmem:[#allocation2 + $0x8] sm:$0xff]  ;;  %v635_v16 = vld [vmem:[#allocation2 + $0x20] sm:$0xff]  ;;  %v658_v24 = vmul.f32 %v653_v17, %v631_v8 }
 0x147   : > { %v633_v14 = vld [vmem:[#allocation2 + $0x10] sm:$0xff]  ;;  %v636_v21 = vld [vmem:[#allocation2 + $0x28] sm:$0xff]  ;;  %v659_v25 = vmul.f32 %v657_v18, %v632_v9  ;;  %v662_v28 = vmul.f32 %v653_v17, %v635_v16 }
 0x148   : > { %v634_v15 = vld [vmem:[#allocation2 + $0x18] sm:$0xff]  ;;  %v637_v22 = vld [vmem:[#allocation2 + $0x30] sm:$0xff]  ;;  %v660_v26 = vmul.f32 %v653_v17, %v633_v14  ;;  %v663_v29 = vmul.f32 %v657_v18, %v636_v21  ;;  %v684_v32 = vadd.f32 %v679_v19, %v658_v24 }
 0x149   : > { %v638_v23 = vld [vmem:[#allocation2 + $0x38] sm:$0xff]  ;;  %v661_v27 = vmul.f32 %v657_v18, %v634_v15  ;;  %v664_v30 = vmul.f32 %v653_v17, %v637_v22  ;;  %v685_v33 = vadd.f32 %v683_v20, %v659_v25  ;;  %v688_v36 = vadd.f32 %v679_v19, %v662_v28 }
 0x14a   : > { %v665_v31 = vmul.f32 %v657_v18, %v638_v23  ;;  %v686_v34 = vadd.f32 %v679_v19, %v660_v26  ;;  %v689_v37 = vadd.f32 %v683_v20, %v663_v29 }
 0x14b   : > { %v687_v35 = vadd.f32 %v683_v20, %v661_v27  ;;  %v690_v38 = vadd.f32 %v679_v19, %v664_v30  ;;  %v906_v40 = vpack.c.bf16 %v685_v33, %v684_v32 }
 0x14c   : > { %v691_v39 = vadd.f32 %v683_v20, %v665_v31  ;;  %v908_v42 = vpack.c.bf16 %v689_v37, %v688_v36 }
 0x14d   : > { %v907_v41 = vpack.c.bf16 %v687_v35, %v686_v34  ;;  %716 = vst [vmem:[%s1223_s3] sm:$0xff] %v906_v40 }
 0x14e   : > { %v909_v43 = vpack.c.bf16 %v691_v39, %v690_v38  ;;  %718 = vst [vmem:[%s1223_s3 + $0x10] sm:$0xff] %v908_v42 }
 0x14f   : > { %717 = vst [vmem:[%s1223_s3 + $0x8] sm:$0xff] %v907_v41 }
 0x150   : > { %719 = vst [vmem:[%s1223_s3 + $0x18] sm:$0xff] %v909_v43 }
 0x151 PF: > { %s13_s16 = sadd.s32 1, %s1075_s16   ;;  %s1224_s12 = smov %s1063_s13 }
 0x152   : > { %p10_p12 = scmp.ge.s32.totalorder %s13_s16, 4   ;;  %s1225_s13 = smov %s1133_s20 }
 0x153   : > { %s1226_s14 = smov %s1071_s15  ;;  %s1227_s15 = smov %s1229_s17 }
 0x154   :  { %12 = sbr.rel (!%p10_p12) target bundleno = 3 (0x3), region = 119 }

// kernel: forward.52
= control target key start
LH: loop header
LB: loop body
LE: loop exit
PB: predicated region body
PF: predicated region fallthrough
CT: control target
= control target key end

     0   :  { %s1221_s15 = smov 0   ;;  %s1223_s16 = smov 0   ;;  %s1355_s0 = inlined_call_operand.vmem [shape: bf16[32,18432], index: 0, kind: input, shape index: {}]   ;;  %s1356_s1 = inlined_call_operand.vmem [shape: bf16[18432,256], index: 1, kind: input, shape index: {}]   ;;  %s1357_s2 = inlined_call_operand.vmem [shape: f32[2,256], index: 2, kind: input, shape index: {}]   ;;  %s1358_s3 = inlined_call_operand.vmem [shape: bf16[32,256], index: 3, kind: input, shape index: {}]   ;;  %s1359_s4 = inlined_call_operand.vmem [shape: bf16[32,256], index: 4, kind: output, shape index: {}]  }
   0x1   :  { %s1225_s17 = smov 0   ;;  %s1227_s18 = smov 0  }
   0x2   :  { %s1229_s19 = smov 0  }
   0x3 LB: > { %s26_s20 = sadd.s32 1, %s1189_s18  ;;  %p49_p1 = scmp.ne.s32.totalorder %s1181_s16, %s1177_s15  ;;  %s1193_s19 = sphi %s1229_s19, %s14_s19   ;;  %s1189_s18 = sphi %s1227_s18, %s1363_s18   ;;  %s1185_s17 = sphi %s1225_s17, %s1362_s17   ;;  %s1181_s16 = sphi %s1223_s16, %s1361_s16   ;;  %s1177_s15 = sphi %s1221_s15, %s1360_s15  }
   0x4   : > { %p27_p0 = scmp.ge.s32.totalorder %s26_s20, 72  ;;  %p50_p2 = scmp.eq.s32.totalorder %s1193_s19, 0 }
   0x5   : > { %s42_s22 = sadd.s32 1, %s1181_s16  ;;  %p967_p5 = scmp.ge.s32.totalorder %s1193_s19, 72 }
   0x6   : > { %s1365_s20 = smov (%p27_p0, %s26_s20), 0  ;;  %p51_p3 = por %p50_p2, %p49_p1 }
   0x7   : > { %s38_s21 = ssub.s32 %s1189_s18, %s1365_s20  ;;  %209 = sbr.rel (%p967_p5) target bundleno = 22 (0x16), region = 24 }
   0x8   : > { %p40_p4 = scmp.eq.s32.totalorder %s38_s21, 0 }
   0xa   : > { %s1256_s23 = scalar_select %p40_p4, %s1181_s16, %s42_s22  }
   0xe   : > { %212 = sbr.rel (!%p51_p3) target bundleno = 22 (0x16), region = 28  ;;  %s214_s24 = sand.u32 (%p51_p3), 1, %s1181_s16  }
   0xf   : > { %s1022_s25 = sshll.u32 (%p51_p3), %s1189_s18, 3  ;;  %s968_s26 = sshll.u32 (%p51_p3), %s214_s24, 5 }
  0x10   : > { %s222_s29 = scalar_lea.vmem (%p51_p3), %s1355_s0, %s1022_s25  ;;  %s216_s30 = scalar_lea.vmem (%p51_p3), [#allocation3], %s968_s26 }
  0x11   : > { %v256_v0 = vld [vmem:[%s222_s29] sm:$0xff] (%p51_p3) }
  0x12   : > { %v258_v1 = vld [vmem:[%s222_s29 + $0x240] sm:$0xff] (%p51_p3)  ;;  %257 = vst [vmem:[%s216_s30] sm:$0xff] (%p51_p3), %v256_v0 }
  0x13   : > { %v260_v2 = vld [vmem:[%s222_s29 + $0x480] sm:$0xff] (%p51_p3)  ;;  %259 = vst [vmem:[%s216_s30 + $0x8] sm:$0xff] (%p51_p3), %v258_v1 }
  0x14   : > { %261 = vst [vmem:[%s216_s30 + $0x10] sm:$0xff] (%p51_p3), %v260_v2  ;;  %v262_v3 = vld [vmem:[%s222_s29 + $0x6c0] sm:$0xff] (%p51_p3) }
  0x15   : > { %263 = vst [vmem:[%s216_s30 + $0x18] sm:$0xff] %v262_v3 }
  0x16 PF: > { %p971_p6 = scmp.ge.s32.totalorder %s1193_s19, 1  ;;  %p283_p7 = scmp.lt.s32.totalorder %s1193_s19, 73 }
  0x18   : > { %p284_p8 = pnand %p971_p6, %p283_p7 }
  0x19   : > { %s290_s5 = sand.u32 (!%p284_p8), 1, %s1177_s15   ;;  %s973_s6 = sshll.u32 (!%p284_p8), %s1185_s17, 5 }
  0x1a   : > { %287 = sbr.rel (%p284_p8) target bundleno = 342 (0x156), region = 70  ;;  %s972_s7 = sshll.u32 (!%p284_p8), %s290_s5, 5 }
  0x1b   : > { %p349_p9 = scmp.lt.s32.totalorder (!%p284_p8), %s973_s6, 2303  ;;  %s1273_s12 = scalar_lea.vmem (!%p284_p8), [#allocation3], %s972_s7 }
  0x1c   : > { %p976_p10 = scmp.ne.s32.totalorder (!%p284_p8), %s1185_s17, 0 }
  0x21   : > { %s1367_s6 = smov (!%p349_p9, %s973_s6), 2303  ;;  %392 = sbr.rel (%p976_p10) target bundleno = 40 (0x28), region = 78 }
  0x22   : > { %s1023_s8 = sshll.u32 %s1367_s6, 3  ;;  %v1195_v4 = vmov (!%p976_p10), 0.0  }
  0x23   : > { %s1271_s11 = scalar_lea.vmem %s1356_s1, %s1023_s8  ;;  %393 = vst [vmem:[#allocation2] sm:$0xff] (!%p976_p10), %v1195_v4  ;;  %394 = vst [vmem:[#allocation2 + $0x8] sm:$0xff] (!%p976_p10), %v1195_v4 }
  0x24   : > { %395 = vst [vmem:[#allocation2 + $0x10] sm:$0xff] (!%p976_p10), %v1195_v4  ;;  %396 = vst [vmem:[#allocation2 + $0x18] sm:$0xff] (!%p976_p10), %v1195_v4 }
  0x25   : > { %397 = vst [vmem:[#allocation2 + $0x20] sm:$0xff] (!%p976_p10), %v1195_v4  ;;  %398 = vst [vmem:[#allocation2 + $0x28] sm:$0xff] (!%p976_p10), %v1195_v4 }
  0x26   : > { %399 = vst [vmem:[#allocation2 + $0x30] sm:$0xff] (!%p976_p10), %v1195_v4  ;;  %400 = vst [vmem:[#allocation2 + $0x38] sm:$0xff] (!%p976_p10), %v1195_v4 }
  0x28 PF: > { %v1101_v5 = vld [vmem:[%s1271_s11 + $0x4] ss:$8 sps:$4 sm:$0xff]   ;;  %v1103_v6 = vld [vmem:[%s1271_s11] ss:$8 sps:$4 sm:$0xff]   ;;  %v1104_v7 = vld [vmem:[%s1271_s11 + $0x14] ss:$8 sps:$4 sm:$0xff]  }
  0x29   : > { %625 = vmatprep.subr.bf16.mxu0 %v1101_v5  ;;  %1028 = vmatprep.subr.bf16.mxu1 %v1101_v5  ;;  %v1106_v8 = vld [vmem:[%s1271_s11 + $0x10] ss:$8 sps:$4 sm:$0xff]   ;;  %v1107_v9 = vld [vmem:[%s1271_s11 + $0x24] ss:$8 sps:$4 sm:$0xff]   ;;  %v1109_v10 = vld [vmem:[%s1271_s11 + $0x20] ss:$8 sps:$4 sm:$0xff]  }
  0x2a   : > { %626 = vmatpush1.bf16.msra.mxu0 %v1103_v6  ;;  %1044 = vmatpush1.bf16.msra.mxu1 %v1103_v6  ;;  %v1110_v11 = vld [vmem:[%s1271_s11 + $0x34] ss:$8 sps:$4 sm:$0xff]   ;;  %v1112_v12 = vld [vmem:[%s1271_s11 + $0x30] ss:$8 sps:$4 sm:$0xff]   ;;  %v1113_v13 = vld [vmem:[%s1271_s11 + $0x44] ss:$8 sps:$4 sm:$0xff]  }
  0x2b   : > { %627 = vmatprep.subr.bf16.mxu0 %v1104_v7  ;;  %1029 = vmatprep.subr.bf16.mxu1 %v1104_v7  ;;  %v1115_v14 = vld [vmem:[%s1271_s11 + $0x40] ss:$8 sps:$4 sm:$0xff]   ;;  %v1116_v15 = vld [vmem:[%s1271_s11 + $0x54] ss:$8 sps:$4 sm:$0xff]   ;;  %v1118_v16 = vld [vmem:[%s1271_s11 + $0x50] ss:$8 sps:$4 sm:$0xff]  }
  0x2c   : > { %v1119_v17 = vld [vmem:[%s1271_s11 + $0x64] ss:$8 sps:$4 sm:$0xff]   ;;  %v1121_v19 = vld [vmem:[%s1271_s11 + $0x60] ss:$8 sps:$4 sm:$0xff]   ;;  %v1154_v20 = vld [vmem:[%s1273_s12 + $0x14] ss:$8 sps:$4 sm:$0xff]  }
  0x2d   : > { %v1151_v18 = vld [vmem:[%s1273_s12 + $0x4] ss:$8 sps:$4 sm:$0xff]   ;;  %v1122_v21 = vld [vmem:[%s1271_s11 + $0x74] ss:$8 sps:$4 sm:$0xff]   ;;  %667 = vmatprep.mubr.bf16.mxu1 %v1154_v20  ;;  %v1124_v22 = vld [vmem:[%s1271_s11 + $0x70] ss:$8 sps:$4 sm:$0xff]  }
  0x2e   : > { %628 = vmatpush1.bf16.msra.mxu0 %v1106_v8  ;;  %1045 = vmatpush1.bf16.msra.mxu1 %v1106_v8  ;;  %v1125_v23 = vld [vmem:[%s1271_s11 + $0x84] ss:$8 sps:$4 sm:$0xff]   ;;  %v1127_v24 = vld [vmem:[%s1271_s11 + $0x80] ss:$8 sps:$4 sm:$0xff]   ;;  %v1128_v25 = vld [vmem:[%s1271_s11 + $0x94] ss:$8 sps:$4 sm:$0xff]  }
  0x2f   : > { %629 = vmatprep.subr.bf16.mxu0 %v1107_v9  ;;  %1030 = vmatprep.subr.bf16.mxu1 %v1107_v9  ;;  %v1130_v26 = vld [vmem:[%s1271_s11 + $0x90] ss:$8 sps:$4 sm:$0xff]   ;;  %v1131_v27 = vld [vmem:[%s1271_s11 + $0xa4] ss:$8 sps:$4 sm:$0xff]   ;;  %v1133_v28 = vld [vmem:[%s1271_s11 + $0xa0] ss:$8 sps:$4 sm:$0xff]  }
  0x30   : > { %657 = vmatprep.mubr.bf16.mxu0 %v1151_v18  ;;  %v1134_v29 = vld [vmem:[%s1271_s11 + $0xb4] ss:$8 sps:$4 sm:$0xff]   ;;  %v1136_v30 = vld [vmem:[%s1271_s11 + $0xb0] ss:$8 sps:$4 sm:$0xff]   ;;  %v1137_v31 = vld [vmem:[%s1271_s11 + $0xc4] ss:$8 sps:$4 sm:$0xff]  }
  0x31   : > { %v1139_v32 = vld [vmem:[%s1271_s11 + $0xc0] ss:$8 sps:$4 sm:$0xff]   ;;  %v1140_v33 = vld [vmem:[%s1271_s11 + $0xd4] ss:$8 sps:$4 sm:$0xff]   ;;  %v1142_v34 = vld [vmem:[%s1271_s11 + $0xd0] ss:$8 sps:$4 sm:$0xff]  }
  0x32   : > { %630 = vmatpush1.bf16.msra.mxu0 %v1109_v10  ;;  %1046 = vmatpush1.bf16.msra.mxu1 %v1109_v10  ;;  %v1143_v35 = vld [vmem:[%s1271_s11 + $0xe4] ss:$8 sps:$4 sm:$0xff]   ;;  %v1145_v36 = vld [vmem:[%s1271_s11 + $0xe0] ss:$8 sps:$4 sm:$0xff]   ;;  %v1146_v37 = vld [vmem:[%s1271_s11 + $0xf4] ss:$8 sps:$4 sm:$0xff]  }
  0x33   : > { %631 = vmatprep.subr.bf16.mxu0 %v1110_v11  ;;  %1031 = vmatprep.subr.bf16.mxu1 %v1110_v11  ;;  %v1148_v38 = vld [vmem:[%s1271_s11 + $0xf0] ss:$8 sps:$4 sm:$0xff]   ;;  %v1149_v39 = vld [vmem:[%s1273_s12] ss:$8 sps:$4 sm:$0xff]   ;;  %p1013_p11 = scmp.ne.s32.totalorder %s1185_s17, 71 }
  0x34   : > { %v1152_v40 = vld [vmem:[%s1273_s12 + $0x10] ss:$8 sps:$4 sm:$0xff]   ;;  %v401_v41 = vld [vmem:[#allocation2] sm:$0xff]  ;;  %v402_v43 = vld [vmem:[#allocation2 + $0x8] sm:$0xff]  ;;  %v708_v1 = vlaneseq (!%p1013_p11) }
  0x35   : > { %v405_v42 = vld [vmem:[#allocation2 + $0x20] sm:$0xff]  ;;  %v406_v44 = vld [vmem:[#allocation2 + $0x28] sm:$0xff]  ;;  %v403_v47 = vld [vmem:[#allocation2 + $0x10] sm:$0xff] }
  0x36   : > { %632 = vmatpush1.bf16.msra.mxu0 %v1112_v12  ;;  %1047 = vmatpush1.bf16.msra.mxu1 %v1112_v12  ;;  %v407_v48 = vld [vmem:[#allocation2 + $0x30] sm:$0xff]  ;;  %v404_v53 = vld [vmem:[#allocation2 + $0x18] sm:$0xff]  ;;  %v709_v2 = vshrl.u32 (!%p1013_p11), %v708_v1, 7  ;;  %v698_v3 = vld [vmem:[%s1357_s2] sm:$0xf] (!%p1013_p11) }
  0x37   : > { %633 = vmatprep.subr.bf16.mxu0 %v1113_v13  ;;  %1032 = vmatprep.subr.bf16.mxu1 %v1113_v13  ;;  %v408_v54 = vld [vmem:[#allocation2 + $0x38] sm:$0xff]  ;;  %v760_v8 = vld [vmem:[%s1358_s3] sm:$0xff] (!%p1013_p11)  ;;  %v761_v9 = vld [vmem:[%s1358_s3 + $0x8] sm:$0xff] (!%p1013_p11) }
  0x38   : > { %v710_v4 = vsub.s32 (!%p1013_p11), 0, %v709_v2  ;;  %v714_v5 = vsub.s32 (!%p1013_p11), 2, %v709_v2  ;;  %v736_v6 = vsub.s32 (!%p1013_p11), 1, %v709_v2  ;;  %v740_v7 = vsub.s32 (!%p1013_p11), 3, %v709_v2 }
  0x39   : > { %v764_v18 = vunpack.c.l.bf16 (!%p1013_p11), %v760_v8 }
  0x3a   : > { %634 = vmatpush1.bf16.msra.mxu0 %v1115_v14  ;;  %1048 = vmatpush1.bf16.msra.mxu1 %v1115_v14  ;;  %v711_v12 = vrot.slane (!%p1013_p11), %v698_v3, %v710_v4  ;;  %v715_v13 = vrot.slane (!%p1013_p11), %v698_v3, %v714_v5  ;;  %v737_v14 = vrot.slane (!%p1013_p11), %v698_v3, %v736_v6 }
  0x3b   : > { %635 = vmatprep.subr.bf16.mxu0 %v1116_v15  ;;  %1033 = vmatprep.subr.bf16.mxu1 %v1116_v15  ;;  %v741_v15 = vrot.slane (!%p1013_p11), %v698_v3, %v740_v7 }
  0x3e   : > { %636 = vmatpush1.bf16.msra.mxu0 %v1118_v16  ;;  %1049 = vmatpush1.bf16.msra.mxu1 %v1118_v16  ;;  %v762_v16 = vld [vmem:[%s1358_s3 + $0x10] sm:$0xff] (!%p1013_p11) }
  0x3f   : > { %637 = vmatprep.subr.bf16.mxu0 %v1119_v17  ;;  %1034 = vmatprep.subr.bf16.mxu1 %v1119_v17  ;;  %v763_v17 = vld [vmem:[%s1358_s3 + $0x18] sm:$0xff] (!%p1013_p11) }
  0x42   : > { %638 = vmatpush1.bf16.msra.mxu0 %v1121_v19  ;;  %1050 = vmatpush1.bf16.msra.mxu1 %v1121_v19  ;;  %v765_v19 = vunpack.c.h.bf16 (!%p1013_p11), %v760_v8 }
  0x43   : > { %639 = vmatprep.subr.bf16.mxu0 %v1122_v21  ;;  %1035 = vmatprep.subr.bf16.mxu1 %v1122_v21 }
  0x46   : > { %640 = vmatpush1.bf16.msra.mxu0 %v1124_v22  ;;  %1051 = vmatpush1.bf16.msra.mxu1 %v1124_v22  ;;  %v766_v22 = vunpack.c.l.bf16 (!%p1013_p11), %v761_v9 }
  0x47   : > { %641 = vmatprep.subr.bf16.mxu0 %v1125_v23  ;;  %1036 = vmatprep.subr.bf16.mxu1 %v1125_v23  ;;  %v767_v23 = vunpack.c.h.bf16 (!%p1013_p11), %v761_v9 }
  0x4a   : > { %642 = vmatpush1.bf16.msra.mxu0 %v1127_v24  ;;  %1052 = vmatpush1.bf16.msra.mxu1 %v1127_v24 }
  0x4b   : > { %643 = vmatprep.subr.bf16.mxu0 %v1128_v25  ;;  %1037 = vmatprep.subr.bf16.mxu1 %v1128_v25  ;;  %v721_v25 = vrot.slane (!%p1013_p11), %v711_v12, %v710_v4 }
  0x4e   : > { %644 = vmatpush1.bf16.msra.mxu0 %v1130_v26  ;;  %1053 = vmatpush1.bf16.msra.mxu1 %v1130_v26  ;;  %v725_v26 = vrot.slane (!%p1013_p11), %v715_v13, %v710_v4 }
  0x4f   : > { %645 = vmatprep.subr.bf16.mxu0 %v1131_v27  ;;  %1038 = vmatprep.subr.bf16.mxu1 %v1131_v27  ;;  %v747_v27 = vrot.slane (!%p1013_p11), %v737_v14, %v736_v6 }
  0x52   : > { %646 = vmatpush1.bf16.msra.mxu0 %v1133_v28  ;;  %1054 = vmatpush1.bf16.msra.mxu1 %v1133_v28  ;;  %v751_v28 = vrot.slane (!%p1013_p11), %v741_v15, %v736_v6 }
  0x53   : > { %647 = vmatprep.subr.bf16.mxu0 %v1134_v29  ;;  %1039 = vmatprep.subr.bf16.mxu1 %v1134_v29 }
  0x56   : > { %648 = vmatpush1.bf16.msra.mxu0 %v1136_v30  ;;  %1055 = vmatpush1.bf16.msra.mxu1 %v1136_v30 }
  0x57   : > { %649 = vmatprep.subr.bf16.mxu0 %v1137_v31  ;;  %1040 = vmatprep.subr.bf16.mxu1 %v1137_v31 }
  0x5a   : > { %650 = vmatpush1.bf16.msra.mxu0 %v1139_v32  ;;  %1056 = vmatpush1.bf16.msra.mxu1 %v1139_v32  ;;  %v768_v32 = vunpack.c.l.bf16 (!%p1013_p11), %v762_v16 }
  0x5b   : > { %651 = vmatprep.subr.bf16.mxu0 %v1140_v33  ;;  %1041 = vmatprep.subr.bf16.mxu1 %v1140_v33  ;;  %v769_v33 = vunpack.c.h.bf16 (!%p1013_p11), %v762_v16 }
  0x5e   : > { %652 = vmatpush1.bf16.msra.mxu0 %v1142_v34  ;;  %1057 = vmatpush1.bf16.msra.mxu1 %v1142_v34  ;;  %v770_v34 = vunpack.c.l.bf16 (!%p1013_p11), %v763_v17 }
  0x5f   : > { %653 = vmatprep.subr.bf16.mxu0 %v1143_v35  ;;  %1042 = vmatprep.subr.bf16.mxu1 %v1143_v35  ;;  %v771_v35 = vunpack.c.h.bf16 (!%p1013_p11), %v763_v17 }
  0x62   : > { %654 = vmatpush1.bf16.msra.mxu0 %v1145_v36  ;;  %1058 = vmatpush1.bf16.msra.mxu1 %v1145_v36 }
  0x63   : > { %655 = vmatprep.subr.bf16.mxu0 %v1146_v37  ;;  %1043 = vmatprep.subr.bf16.mxu1 %v1146_v37 }
  0x66   : > { %656 = vmatpush1.bf16.msra.mxu0 %v1148_v38  ;;  %1059 = vmatpush1.bf16.msra.mxu1 %v1148_v38 }
  0x69   : > { %658 = vmatmul.mubr.bf16.vlgmr.msra.gmra.mrb[0].mxu0 %v1149_v39  ;;  %668 = vmatmul.mubr.bf16.vlgmr.msra.gmra.mrb[0].mxu1 %v1152_v40 }
 0x13c   : > { %v659_v45 = vpop.f32.mrb[0].mxu0  ;;  %v669_v46 = vpop.f32.mrb[0].mxu1  ;;  %697 = sbr.rel (%p1013_p11) target bundleno = 342 (0x156), region = 82 }
 0x13d   : > { %v678_v49 = vadd.f32 %v659_v45, %v401_v41  ;;  %v682_v50 = vadd.f32 %v669_v46, %v405_v42  ;;  %v661_v51 = vpop.f32.mrb[1].mxu0  ;;  %v671_v52 = vpop.f32.mrb[1].mxu1 }
 0x13e   : > { %v679_v55 = vadd.f32 %v661_v51, %v402_v43  ;;  %v683_v56 = vadd.f32 %v671_v52, %v406_v44  ;;  %v663_v57 = vpop.f32.mrb[2].mxu0  ;;  %v673_v58 = vpop.f32.mrb[2].mxu1 }
 0x13f   : > { %686 = vst [vmem:[#allocation2] sm:$0xff] %v678_v49  ;;  %690 = vst [vmem:[#allocation2 + $0x20] sm:$0xff] %v682_v50  ;;  %v680_v59 = vadd.f32 %v663_v57, %v403_v47  ;;  %v684_v60 = vadd.f32 %v673_v58, %v407_v48  ;;  %v665_v61 = vpop.f32.mrb[3].mxu0  ;;  %v675_v62 = vpop.f32.mrb[3].mxu1 }
 0x140   : > { %687 = vst [vmem:[#allocation2 + $0x8] sm:$0xff] %v679_v55  ;;  %691 = vst [vmem:[#allocation2 + $0x28] sm:$0xff] %v683_v56  ;;  %v681_v63 = vadd.f32 %v665_v61, %v404_v53  ;;  %v685_v0 = vadd.f32 %v675_v62, %v408_v54 }
 0x141   : > { %688 = vst [vmem:[#allocation2 + $0x10] sm:$0xff] %v680_v59  ;;  %692 = vst [vmem:[#allocation2 + $0x30] sm:$0xff] %v684_v60 }
 0x142   : > { %689 = vst [vmem:[#allocation2 + $0x18] sm:$0xff] %v681_v63  ;;  %693 = vst [vmem:[#allocation2 + $0x38] sm:$0xff] %v685_v0 }
 0x146   : > { %v699_v10 = vld [vmem:[#allocation2] sm:$0xff] }
 0x147   : > { %v700_v11 = vld [vmem:[#allocation2 + $0x8] sm:$0xff]  ;;  %v703_v24 = vld [vmem:[#allocation2 + $0x20] sm:$0xff]  ;;  %v726_v36 = vmul.f32 %v721_v25, %v699_v10 }
 0x148   : > { %v701_v20 = vld [vmem:[#allocation2 + $0x10] sm:$0xff]  ;;  %v704_v29 = vld [vmem:[#allocation2 + $0x28] sm:$0xff]  ;;  %v727_v37 = vmul.f32 %v725_v26, %v700_v11  ;;  %v730_v40 = vmul.f32 %v721_v25, %v703_v24 }
 0x149   : > { %v702_v21 = vld [vmem:[#allocation2 + $0x18] sm:$0xff]  ;;  %v705_v30 = vld [vmem:[#allocation2 + $0x30] sm:$0xff]  ;;  %v728_v38 = vmul.f32 %v721_v25, %v701_v20  ;;  %v731_v41 = vmul.f32 %v725_v26, %v704_v29  ;;  %v752_v44 = vadd.f32 %v747_v27, %v726_v36 }
 0x14a   : > { %v706_v31 = vld [vmem:[#allocation2 + $0x38] sm:$0xff]  ;;  %v729_v39 = vmul.f32 %v725_v26, %v702_v21  ;;  %v732_v42 = vmul.f32 %v721_v25, %v705_v30  ;;  %v753_v45 = vadd.f32 %v751_v28, %v727_v37  ;;  %v756_v48 = vadd.f32 %v747_v27, %v730_v40 }
 0x14b   : > { %v733_v43 = vmul.f32 %v725_v26, %v706_v31  ;;  %v754_v46 = vadd.f32 %v747_v27, %v728_v38  ;;  %v757_v49 = vadd.f32 %v751_v28, %v731_v41  ;;  %v772_v52 = vadd.f32 %v764_v18, %v752_v44 }
 0x14c   : > { %v755_v47 = vadd.f32 %v751_v28, %v729_v39  ;;  %v758_v50 = vadd.f32 %v747_v27, %v732_v42  ;;  %v773_v53 = vadd.f32 %v765_v19, %v753_v45  ;;  %v776_v56 = vadd.f32 %v768_v32, %v756_v48 }
 0x14d   : > { %v759_v51 = vadd.f32 %v751_v28, %v733_v43  ;;  %v774_v54 = vadd.f32 %v766_v22, %v754_v46  ;;  %v777_v57 = vadd.f32 %v769_v33, %v757_v49  ;;  %v780_v60 = vmax.f32 %v772_v52, 0.0 }
 0x14e   : > { %v775_v55 = vadd.f32 %v767_v23, %v755_v47  ;;  %v778_v58 = vadd.f32 %v770_v34, %v758_v50  ;;  %v781_v61 = vmax.f32 %v773_v53, 0.0  ;;  %v784_v0 = vmax.f32 %v776_v56, 0.0 }
 0x14f   : > { %v779_v59 = vadd.f32 %v771_v35, %v759_v51  ;;  %v782_v62 = vmax.f32 %v774_v54, 0.0  ;;  %v785_v1 = vmax.f32 %v777_v57, 0.0 }
 0x150   : > { %v783_v63 = vmax.f32 %v775_v55, 0.0  ;;  %v786_v2 = vmax.f32 %v778_v58, 0.0  ;;  %v1024_v4 = vpack.c.bf16 %v781_v61, %v780_v60 }
 0x151   : > { %v787_v3 = vmax.f32 %v779_v59, 0.0  ;;  %v1026_v6 = vpack.c.bf16 %v785_v1, %v784_v0 }
 0x152   : > { %v1025_v5 = vpack.c.bf16 %v783_v63, %v782_v62  ;;  %812 = vst [vmem:[%s1359_s4] sm:$0xff] %v1024_v4 }
 0x153   : > { %v1027_v7 = vpack.c.bf16 %v787_v3, %v786_v2  ;;  %814 = vst [vmem:[%s1359_s4 + $0x10] sm:$0xff] %v1026_v6 }
 0x154   : > { %813 = vst [vmem:[%s1359_s4 + $0x8] sm:$0xff] %v1025_v5 }
 0x155   : > { %815 = vst [vmem:[%s1359_s4 + $0x18] sm:$0xff] %v1027_v7 }
 0x156 PF: > { %s14_s19 = sadd.s32 1, %s1193_s19   ;;  %s1360_s15 = smov %s1181_s16 }
 0x157   : > { %p11_p12 = scmp.ge.s32.totalorder %s14_s19, 74   ;;  %s1361_s16 = smov %s1256_s23 }
 0x158   : > { %s1362_s17 = smov %s1189_s18  ;;  %s1363_s18 = smov %s1365_s20 }
 0x159   :  { %13 = sbr.rel (!%p11_p12) target bundleno = 3 (0x3), region = 126 }

// kernel: forward.53
= control target key start
LH: loop header
LB: loop body
LE: loop exit
PB: predicated region body
PF: predicated region fallthrough
CT: control target
= control target key end

     0   :  { %s913_s12 = smov 0   ;;  %s915_s13 = smov 0   ;;  %s1013_s0 = inlined_call_operand.vmem [shape: bf16[32,2304], index: 0, kind: input, shape index: {}]   ;;  %s1014_s1 = inlined_call_operand.vmem [shape: bf16[2304,128], index: 1, kind: input, shape index: {}]   ;;  %s1015_s2 = inlined_call_operand.vmem [shape: f32[2,128], index: 2, kind: input, shape index: {}]   ;;  %s1016_s3 = inlined_call_operand.vmem [shape: bf16[32,128], index: 3, kind: output, shape index: {}]  }
   0x1   :  { %s917_s14 = smov 0   ;;  %s919_s15 = smov 0  }
   0x2   :  { %s921_s16 = smov 0  }
   0x3 LB: > { %s25_s17 = sadd.s32 1, %s886_s15  ;;  %p48_p1 = scmp.ne.s32.totalorder %s878_s13, %s874_s12  ;;  %s890_s16 = sphi %s921_s16, %s13_s16   ;;  %s886_s15 = sphi %s919_s15, %s1020_s15   ;;  %s882_s14 = sphi %s917_s14, %s1019_s14   ;;  %s878_s13 = sphi %s915_s13, %s1018_s13   ;;  %s874_s12 = sphi %s913_s12, %s1017_s12  }
   0x4   : > { %p26_p0 = scmp.ge.s32.totalorder %s25_s17, 9  ;;  %p49_p2 = scmp.eq.s32.totalorder %s890_s16, 0 }
   0x5   : > { %s41_s19 = sadd.s32 1, %s878_s13  ;;  %p691_p5 = scmp.ge.s32.totalorder %s890_s16, 9 }
   0x6   : > { %s1022_s17 = smov (%p26_p0, %s25_s17), 0  ;;  %p50_p3 = por %p49_p2, %p48_p1 }
   0x7   : > { %s37_s18 = ssub.s32 %s886_s15, %s1022_s17  ;;  %163 = sbr.rel (%p691_p5) target bundleno = 21 (0x15), region = 20 }
   0x8   : > { %p39_p4 = scmp.eq.s32.totalorder %s37_s18, 0 }
   0xa   : > { %s948_s20 = scalar_select %p39_p4, %s878_s13, %s41_s19  }
   0xe   : > { %166 = sbr.rel (!%p50_p3) target bundleno = 21 (0x15), region = 24  ;;  %s168_s21 = sand.u32 (%p50_p3), 1, %s878_s13  }
   0xf   : > { %s729_s22 = sshll.u32 (%p50_p3), %s886_s15, 3  ;;  %s692_s23 = sshll.u32 (%p50_p3), %s168_s21, 5 }
  0x10   : > { %s176_s26 = scalar_lea.vmem (%p50_p3), %s1013_s0, %s729_s22  ;;  %s170_s27 = scalar_lea.vmem (%p50_p3), [#allocation3], %s692_s23 }
  0x11   : > { %v210_v0 = vld [vmem:[%s176_s26] sm:$0xff] (%p50_p3)  ;;  %v212_v1 = vld [vmem:[%s176_s26 + $0x48] sm:$0xff] (%p50_p3)  ;;  %v214_v2 = vld [vmem:[%s176_s26 + $0x90] sm:$0xff] (%p50_p3) }
  0x12   : > { %211 = vst [vmem:[%s170_s27] sm:$0xff] (%p50_p3), %v210_v0  ;;  %213 = vst [vmem:[%s170_s27 + $0x8] sm:$0xff] (%p50_p3), %v212_v1  ;;  %v216_v3 = vld [vmem:[%s176_s26 + $0xd8] sm:$0xff] (%p50_p3) }
  0x13   : > { %215 = vst [vmem:[%s170_s27 + $0x10] sm:$0xff] (%p50_p3), %v214_v2  ;;  %217 = vst [vmem:[%s170_s27 + $0x18] sm:$0xff] (%p50_p3), %v216_v3 }
  0x15 PF: > { %p695_p6 = scmp.ge.s32.totalorder %s890_s16, 1  ;;  %p234_p7 = scmp.lt.s32.totalorder %s890_s16, 10 }
  0x17   : > { %p235_p8 = pnand %p695_p6, %p234_p7 }
  0x18   : > { %s241_s28 = sand.u32 (!%p235_p8), 1, %s874_s12   ;;  %s697_s29 = sshll.u32 (!%p235_p8), %s882_s14, 5 }
  0x19   : > { %238 = sbr.rel (%p235_p8) target bundleno = 308 (0x134), region = 66  ;;  %s696_s30 = sshll.u32 (!%p235_p8), %s241_s28, 5 }
  0x1a   : > { %p282_p9 = scmp.lt.s32.totalorder (!%p235_p8), %s697_s29, 287  ;;  %s965_s8 = scalar_lea.vmem (!%p235_p8), [#allocation3], %s696_s30 }
  0x1b   : > { %p699_p10 = scmp.ne.s32.totalorder (!%p235_p8), %s882_s14, 0 }
  0x20   : > { %s1024_s29 = smov (!%p282_p9, %s697_s29), 287  ;;  %307 = sbr.rel (%p699_p10) target bundleno = 39 (0x27), region = 74 }
  0x21   : > { %s698_s4 = sshll.u32 %s1024_s29, 2  ;;  %v892_v4 = vmov (!%p699_p10), 0.0  }
  0x22   : > { %s963_s7 = scalar_lea.vmem %s1014_s1, %s698_s4  ;;  %308 = vst [vmem:[#allocation2] sm:$0xff] (!%p699_p10), %v892_v4  ;;  %309 = vst [vmem:[#allocation2 + $0x8] sm:$0xff] (!%p699_p10), %v892_v4 }
  0x23   : > { %310 = vst [vmem:[#allocation2 + $0x10] sm:$0xff] (!%p699_p10), %v892_v4  ;;  %311 = vst [vmem:[#allocation2 + $0x18] sm:$0xff] (!%p699_p10), %v892_v4 }
  0x27 PF: > { %v830_v5 = vld [vmem:[%s963_s7 + $0x40] sm:$0xff]   ;;  %v832_v7 = vld [vmem:[%s963_s7 + $0x48] sm:$0xff]   ;;  %v834_v9 = vld [vmem:[%s963_s7 + $0x50] sm:$0xff]   ;;  %p720_p11 = scmp.ne.s32.totalorder %s882_s14, 8 }
  0x28   : > { %v831_v6 = vld [vmem:[%s963_s7] sm:$0xff]   ;;  %745 = vmatprep.subr.bf16.mxu0 %v830_v5  ;;  %773 = vmatprep.subr.bf16.mxu1 %v830_v5  ;;  %v833_v8 = vld [vmem:[%s963_s7 + $0x8] sm:$0xff]   ;;  %v835_v10 = vld [vmem:[%s963_s7 + $0x10] sm:$0xff]   ;;  %v534_v45 = vlaneseq (!%p720_p11) }
  0x29   : > { %746 = vmatpush3.bf16.msra.mxu0 %v831_v6  ;;  %781 = vmatpush3.bf16.msra.mxu1 %v831_v6  ;;  %v836_v11 = vld [vmem:[%s963_s7 + $0x58] sm:$0xff]   ;;  %v838_v13 = vld [vmem:[%s963_s7 + $0x60] sm:$0xff]   ;;  %v840_v15 = vld [vmem:[%s963_s7 + $0x68] sm:$0xff]  }
  0x2a   : > { %747 = vmatprep.subr.bf16.mxu0 %v832_v7  ;;  %774 = vmatprep.subr.bf16.mxu1 %v832_v7  ;;  %v837_v12 = vld [vmem:[%s963_s7 + $0x18] sm:$0xff]   ;;  %v839_v14 = vld [vmem:[%s963_s7 + $0x20] sm:$0xff]   ;;  %v841_v18 = vld [vmem:[%s963_s7 + $0x28] sm:$0xff]   ;;  %v535_v46 = vshrl.u32 (!%p720_p11), %v534_v45, 7 }
  0x2b   : > { %v848_v16 = vld [vmem:[%s965_s8 + $0x4] ss:$8 sps:$4 sm:$0xff]   ;;  %v851_v17 = vld [vmem:[%s965_s8 + $0x14] ss:$8 sps:$4 sm:$0xff]   ;;  %v846_v23 = vld [vmem:[%s965_s8] ss:$8 sps:$4 sm:$0xff]  }
  0x2c   : > { %v842_v19 = vld [vmem:[%s963_s7 + $0x70] sm:$0xff]   ;;  %500 = vmatprep.mubr.bf16.mxu0 %v848_v16  ;;  %508 = vmatprep.mubr.bf16.mxu1 %v851_v17  ;;  %v844_v21 = vld [vmem:[%s963_s7 + $0x78] sm:$0xff]   ;;  %v312_v27 = vld [vmem:[#allocation2] sm:$0xff]  ;;  %v536_v49 = vsub.s32 (!%p720_p11), 0, %v535_v46  ;;  %v544_v50 = vsub.s32 (!%p720_p11), 1, %v535_v46 }
  0x2d   : > { %748 = vmatpush3.bf16.msra.mxu0 %v833_v8  ;;  %782 = vmatpush3.bf16.msra.mxu1 %v833_v8  ;;  %v843_v20 = vld [vmem:[%s963_s7 + $0x30] sm:$0xff]   ;;  %v845_v22 = vld [vmem:[%s963_s7 + $0x38] sm:$0xff]   ;;  %v313_v35 = vld [vmem:[#allocation2 + $0x8] sm:$0xff] }
  0x2e   : > { %749 = vmatprep.subr.bf16.mxu0 %v834_v9  ;;  %775 = vmatprep.subr.bf16.mxu1 %v834_v9  ;;  %v849_v24 = vld [vmem:[%s965_s8 + $0x10] ss:$8 sps:$4 sm:$0xff]   ;;  %v529_v47 = vld [vmem:[%s1015_s2] sm:$0x3] (!%p720_p11) }
  0x2f   : > { %v314_v29 = vld [vmem:[#allocation2 + $0x10] sm:$0xff]  ;;  %v315_v37 = vld [vmem:[#allocation2 + $0x18] sm:$0xff]  ;;  %v537_v54 = vrot.slane (!%p720_p11), %v529_v47, %v536_v49  ;;  %v545_v55 = vrot.slane (!%p720_p11), %v529_v47, %v544_v50 }
  0x31   : > { %750 = vmatpush3.bf16.msra.mxu0 %v835_v10  ;;  %783 = vmatpush3.bf16.msra.mxu1 %v835_v10 }
  0x32   : > { %751 = vmatprep.subr.bf16.mxu0 %v836_v11  ;;  %776 = vmatprep.subr.bf16.mxu1 %v836_v11 }
  0x35   : > { %752 = vmatpush3.bf16.msra.mxu0 %v837_v12  ;;  %784 = vmatpush3.bf16.msra.mxu1 %v837_v12 }
  0x36   : > { %753 = vmatprep.subr.bf16.mxu0 %v838_v13  ;;  %777 = vmatprep.subr.bf16.mxu1 %v838_v13 }
  0x39   : > { %754 = vmatpush3.bf16.msra.mxu0 %v839_v14  ;;  %785 = vmatpush3.bf16.msra.mxu1 %v839_v14 }
  0x3a   : > { %755 = vmatprep.subr.bf16.mxu0 %v840_v15  ;;  %778 = vmatprep.subr.bf16.mxu1 %v840_v15 }
  0x3d   : > { %756 = vmatpush3.bf16.msra.mxu0 %v841_v18  ;;  %786 = vmatpush3.bf16.msra.mxu1 %v841_v18 }
  0x3e   : > { %757 = vmatprep.subr.bf16.mxu0 %v842_v19  ;;  %779 = vmatprep.subr.bf16.mxu1 %v842_v19 }
  0x41   : > { %758 = vmatpush3.bf16.msra.mxu0 %v843_v20  ;;  %787 = vmatpush3.bf16.msra.mxu1 %v843_v20 }
  0x42   : > { %759 = vmatprep.subr.bf16.mxu0 %v844_v21  ;;  %780 = vmatprep.subr.bf16.mxu1 %v844_v21 }
  0x45   : > { %760 = vmatpush3.bf16.msra.mxu0 %v845_v22  ;;  %788 = vmatpush3.bf16.msra.mxu1 %v845_v22 }
  0x48   : > { %501 = vmatmul.mubr.bf16.vlgmr.msra.gmra.mrb[0].mxu0 %v846_v23  ;;  %509 = vmatmul.mubr.bf16.vlgmr.msra.gmra.mrb[0].mxu1 %v849_v24 }
 0x11b   : > { %v761_v25 = vpop.f32.mrb[0].mxu0  ;;  %v767_v26 = vpop.f32.mrb[0].mxu1 }
 0x11c   : > { %v762_v28 = vpop.f32.mrb[1].mxu0  ;;  %v768_v30 = vpop.f32.mrb[1].mxu1 }
 0x11d   : > { %v763_v31 = vadd.f32 %v762_v28, %v761_v25  ;;  %v769_v32 = vadd.f32 %v768_v30, %v767_v26  ;;  %v764_v33 = vpop.f32.mrb[2].mxu0  ;;  %v770_v34 = vpop.f32.mrb[2].mxu1  ;;  %528 = sbr.rel (%p720_p11) target bundleno = 308 (0x134), region = 78 }
 0x11e   : > { %v765_v36 = vpop.f32.mrb[3].mxu0  ;;  %v771_v38 = vpop.f32.mrb[3].mxu1 }
 0x11f   : > { %v517_v39 = vadd.f32 %v763_v31, %v312_v27  ;;  %v519_v40 = vadd.f32 %v769_v32, %v314_v29  ;;  %v766_v41 = vadd.f32 %v765_v36, %v764_v33  ;;  %v772_v42 = vadd.f32 %v771_v38, %v770_v34 }
 0x121   : > { %521 = vst [vmem:[#allocation2] sm:$0xff] %v517_v39  ;;  %523 = vst [vmem:[#allocation2 + $0x10] sm:$0xff] %v519_v40  ;;  %v518_v43 = vadd.f32 %v766_v41, %v313_v35  ;;  %v520_v44 = vadd.f32 %v772_v42, %v315_v37 }
 0x123   : > { %522 = vst [vmem:[#allocation2 + $0x8] sm:$0xff] %v518_v43  ;;  %524 = vst [vmem:[#allocation2 + $0x18] sm:$0xff] %v520_v44 }
 0x128   : > { %v530_v48 = vld [vmem:[#allocation2] sm:$0xff]  ;;  %v532_v52 = vld [vmem:[#allocation2 + $0x10] sm:$0xff] }
 0x129   : > { %v538_v56 = vmul.f32 %v537_v54, %v530_v48  ;;  %v540_v58 = vmul.f32 %v537_v54, %v532_v52 }
 0x12a   : > { %v531_v51 = vld [vmem:[#allocation2 + $0x8] sm:$0xff]  ;;  %v533_v53 = vld [vmem:[#allocation2 + $0x18] sm:$0xff] }
 0x12b   : > { %v539_v57 = vmul.f32 %v537_v54, %v531_v51  ;;  %v541_v59 = vmul.f32 %v537_v54, %v533_v53  ;;  %v546_v60 = vadd.f32 %v545_v55, %v538_v56  ;;  %v548_v62 = vadd.f32 %v545_v55, %v540_v58 }
 0x12d   : > { %v547_v61 = vadd.f32 %v545_v55, %v539_v57  ;;  %v549_v63 = vadd.f32 %v545_v55, %v541_v59  ;;  %v550_v0 = vmax.f32 %v546_v60, 0.0  ;;  %v552_v2 = vmax.f32 %v548_v62, 0.0 }
 0x12f   : > { %v551_v1 = vmax.f32 %v547_v61, 0.0  ;;  %v553_v3 = vmax.f32 %v549_v63, 0.0 }
 0x131   : > { %v737_v4 = vpack.c.bf16 %v551_v1, %v550_v0  ;;  %v742_v5 = vpack.c.bf16 %v553_v3, %v552_v2 }
 0x133   : > { %738 = vst [vmem:[%s1016_s3] sm:$0xff] %v737_v4   ;;  %744 = vst [vmem:[%s1016_s3 + $0x8] sm:$0xff] %v742_v5  }
 0x134 PF: > { %s13_s16 = sadd.s32 1, %s890_s16   ;;  %s1017_s12 = smov %s878_s13 }
 0x135   : > { %p10_p12 = scmp.ge.s32.totalorder %s13_s16, 11   ;;  %s1018_s13 = smov %s948_s20 }
 0x136   : > { %s1019_s14 = smov %s886_s15  ;;  %s1020_s15 = smov %s1022_s17 }
 0x137   :  { %12 = sbr.rel (!%p10_p12) target bundleno = 3 (0x3), region = 119 }

// kernel: forward.55
= control target key start
LH: loop header
LB: loop body
LE: loop exit
PB: predicated region body
PF: predicated region fallthrough
CT: control target
= control target key end

     0   :  { %v172_v10 = vlaneseq  ;;  %s340_s1 = inlined_call_operand.vmem [shape: bf16[128,128], index: 1, kind: input, shape index: {}]   ;;  %s341_s0 = inlined_call_operand.vmem [shape: bf16[32,128], index: 0, kind: input, shape index: {}]   ;;  %s342_s2 = inlined_call_operand.vmem [shape: f32[2,128], index: 2, kind: input, shape index: {}]   ;;  %s343_s3 = inlined_call_operand.vmem [shape: bf16[32,128], index: 3, kind: output, shape index: {}]  }
   0x1   :  { %v271_v0 = vld [vmem:[%s340_s1] sm:$0xff]   ;;  %v272_v1 = vld [vmem:[%s340_s1 + $0x8] sm:$0xff]   ;;  %v273_v2 = vld [vmem:[%s340_s1 + $0x10] sm:$0xff]  }
   0x2   :  { %251 = vmatprep.subr.bf16.mxu0 %v271_v0  ;;  %v274_v3 = vld [vmem:[%s340_s1 + $0x18] sm:$0xff]   ;;  %v279_v4 = vld [vmem:[%s341_s0] sm:$0xff]   ;;  %v276_v6 = vld [vmem:[%s340_s1 + $0x28] sm:$0xff]   ;;  %v173_v11 = vshrl.u32 %v172_v10, 7 }
   0x3   :  { %252 = vmatpush3.bf16.msra.mxu0 %v271_v0  ;;  %267 = vmatprep.mubr.bf16.mxu0 %v279_v4  ;;  %v275_v5 = vld [vmem:[%s340_s1 + $0x20] sm:$0xff]   ;;  %v277_v7 = vld [vmem:[%s340_s1 + $0x30] sm:$0xff]   ;;  %v278_v8 = vld [vmem:[%s340_s1 + $0x38] sm:$0xff]  }
   0x4   :  { %253 = vmatprep.subr.bf16.mxu0 %v272_v1  ;;  %v280_v9 = vld [vmem:[%s341_s0 + $0x8] sm:$0xff]   ;;  %v174_v12 = vsub.s32 0, %v173_v11  ;;  %v167_v13 = vld [vmem:[%s342_s2] sm:$0x3]  ;;  %v182_v15 = vsub.s32 1, %v173_v11 }
   0x6   :  { %v175_v14 = vrot.slane %v167_v13, %v174_v12  ;;  %v183_v18 = vrot.slane %v167_v13, %v182_v15 }
   0x7   :  { %254 = vmatpush3.bf16.msra.mxu0 %v272_v1 }
   0x8   :  { %255 = vmatprep.subr.bf16.mxu0 %v273_v2 }
   0xb   :  { %256 = vmatpush3.bf16.msra.mxu0 %v273_v2 }
   0xc   :  { %257 = vmatprep.subr.bf16.mxu0 %v274_v3 }
   0xf   :  { %258 = vmatpush3.bf16.msra.mxu0 %v274_v3 }
  0x10   :  { %259 = vmatprep.subr.bf16.mxu0 %v275_v5 }
  0x13   :  { %260 = vmatpush3.bf16.msra.mxu0 %v275_v5 }
  0x14   :  { %261 = vmatprep.subr.bf16.mxu0 %v276_v6 }
  0x17   :  { %262 = vmatpush3.bf16.msra.mxu0 %v276_v6 }
  0x18   :  { %263 = vmatprep.subr.bf16.mxu0 %v277_v7 }
  0x1b   :  { %264 = vmatpush3.bf16.msra.mxu0 %v277_v7 }
  0x1c   :  { %265 = vmatprep.subr.bf16.mxu0 %v278_v8 }
  0x1f   :  { %266 = vmatpush3.bf16.msra.mxu0 %v278_v8 }
  0x22   :  { %268 = vmatmul.mubr.bf16.vlgmr.msra.gmra.mrb[0].mxu0 %v280_v9 }
  0xf5   :  { %v269_v16 = vpop.f32.mrb[0].mxu0 }
  0xf6   :  { %v178_v17 = vmul.f32 %v269_v16, %v175_v14  ;;  %v141_v19 = vpop.f32.mrb[1].mxu0 }
  0xf7   :  { %v176_v20 = vmul.f32 %v175_v14, %v141_v19  ;;  %v270_v21 = vpop.f32.mrb[2].mxu0 }
  0xf8   :  { %v179_v22 = vmul.f32 %v270_v21, %v175_v14  ;;  %v144_v23 = vpop.f32.mrb[3].mxu0  ;;  %v186_v25 = vadd.f32 %v183_v18, %v178_v17 }
  0xf9   :  { %v177_v24 = vmul.f32 %v175_v14, %v144_v23  ;;  %v184_v27 = vadd.f32 %v183_v18, %v176_v20 }
  0xfa   :  { %v187_v26 = vadd.f32 %v183_v18, %v179_v22 }
  0xfb   :  { %v185_v28 = vadd.f32 %v183_v18, %v177_v24 }
  0xfc   :  { %v238_v29 = vpack.c.bf16 %v187_v26, %v186_v25 }
  0xfd   :  { %v233_v30 = vpack.c.bf16 %v185_v28, %v184_v27 }
  0xfe   :  { %240 = vst [vmem:[%s343_s3 + $0x8] sm:$0xff] %v238_v29  }
  0xff   :  { %234 = vst [vmem:[%s343_s3] sm:$0xff] %v233_v30  }

// kernel: forward.54
= control target key start
LH: loop header
LB: loop body
LE: loop exit
PB: predicated region body
PF: predicated region fallthrough
CT: control target
= control target key end

     0   :  { %s909_s12 = smov 0   ;;  %s911_s13 = smov 0   ;;  %s1009_s0 = inlined_call_operand.vmem [shape: bf16[32,1280], index: 0, kind: input, shape index: {}]   ;;  %s1010_s1 = inlined_call_operand.vmem [shape: bf16[1280,128], index: 1, kind: input, shape index: {}]   ;;  %s1011_s2 = inlined_call_operand.vmem [shape: f32[2,128], index: 2, kind: input, shape index: {}]   ;;  %s1012_s3 = inlined_call_operand.vmem [shape: bf16[32,128], index: 3, kind: output, shape index: {}]  }
   0x1   :  { %s913_s14 = smov 0   ;;  %s915_s15 = smov 0  }
   0x2   :  { %s917_s16 = smov 0  }
   0x3 LB: > { %s25_s17 = sadd.s32 1, %s882_s15  ;;  %p48_p1 = scmp.ne.s32.totalorder %s874_s13, %s870_s12  ;;  %s886_s16 = sphi %s917_s16, %s13_s16   ;;  %s882_s15 = sphi %s915_s15, %s1016_s15   ;;  %s878_s14 = sphi %s913_s14, %s1015_s14   ;;  %s874_s13 = sphi %s911_s13, %s1014_s13   ;;  %s870_s12 = sphi %s909_s12, %s1013_s12  }
   0x4   : > { %p26_p0 = scmp.ge.s32.totalorder %s25_s17, 5  ;;  %p49_p2 = scmp.eq.s32.totalorder %s886_s16, 0 }
   0x5   : > { %s41_s19 = sadd.s32 1, %s874_s13  ;;  %p687_p5 = scmp.ge.s32.totalorder %s886_s16, 5 }
   0x6   : > { %s1018_s17 = smov (%p26_p0, %s25_s17), 0  ;;  %p50_p3 = por %p49_p2, %p48_p1 }
   0x7   : > { %s37_s18 = ssub.s32 %s882_s15, %s1018_s17  ;;  %163 = sbr.rel (%p687_p5) target bundleno = 21 (0x15), region = 20 }
   0x8   : > { %p39_p4 = scmp.eq.s32.totalorder %s37_s18, 0 }
   0xa   : > { %s944_s20 = scalar_select %p39_p4, %s874_s13, %s41_s19  }
   0xe   : > { %166 = sbr.rel (!%p50_p3) target bundleno = 21 (0x15), region = 24  ;;  %s168_s21 = sand.u32 (%p50_p3), 1, %s874_s13  }
   0xf   : > { %s725_s22 = sshll.u32 (%p50_p3), %s882_s15, 3  ;;  %s688_s23 = sshll.u32 (%p50_p3), %s168_s21, 5 }
  0x10   : > { %s176_s26 = scalar_lea.vmem (%p50_p3), %s1009_s0, %s725_s22  ;;  %s170_s27 = scalar_lea.vmem (%p50_p3), [#allocation3], %s688_s23 }
  0x11   : > { %v210_v0 = vld [vmem:[%s176_s26] sm:$0xff] (%p50_p3)  ;;  %v212_v1 = vld [vmem:[%s176_s26 + $0x28] sm:$0xff] (%p50_p3)  ;;  %v214_v2 = vld [vmem:[%s176_s26 + $0x50] sm:$0xff] (%p50_p3) }
  0x12   : > { %211 = vst [vmem:[%s170_s27] sm:$0xff] (%p50_p3), %v210_v0  ;;  %213 = vst [vmem:[%s170_s27 + $0x8] sm:$0xff] (%p50_p3), %v212_v1  ;;  %v216_v3 = vld [vmem:[%s176_s26 + $0x78] sm:$0xff] (%p50_p3) }
  0x13   : > { %215 = vst [vmem:[%s170_s27 + $0x10] sm:$0xff] (%p50_p3), %v214_v2  ;;  %217 = vst [vmem:[%s170_s27 + $0x18] sm:$0xff] (%p50_p3), %v216_v3 }
  0x15 PF: > { %p691_p6 = scmp.ge.s32.totalorder %s886_s16, 1  ;;  %p234_p7 = scmp.lt.s32.totalorder %s886_s16, 6 }
  0x17   : > { %p235_p8 = pnand %p691_p6, %p234_p7 }
  0x18   : > { %s241_s28 = sand.u32 (!%p235_p8), 1, %s870_s12   ;;  %s693_s29 = sshll.u32 (!%p235_p8), %s878_s14, 5 }
  0x19   : > { %238 = sbr.rel (%p235_p8) target bundleno = 306 (0x132), region = 66  ;;  %s692_s30 = sshll.u32 (!%p235_p8), %s241_s28, 5 }
  0x1a   : > { %p282_p9 = scmp.lt.s32.totalorder (!%p235_p8), %s693_s29, 159  ;;  %s961_s8 = scalar_lea.vmem (!%p235_p8), [#allocation3], %s692_s30 }
  0x1b   : > { %p695_p10 = scmp.ne.s32.totalorder (!%p235_p8), %s878_s14, 0 }
  0x20   : > { %s1020_s29 = smov (!%p282_p9, %s693_s29), 159  ;;  %307 = sbr.rel (%p695_p10) target bundleno = 39 (0x27), region = 74 }
  0x21   : > { %s694_s4 = sshll.u32 %s1020_s29, 2  ;;  %v888_v4 = vmov (!%p695_p10), 0.0  }
  0x22   : > { %s959_s7 = scalar_lea.vmem %s1010_s1, %s694_s4  ;;  %308 = vst [vmem:[#allocation2] sm:$0xff] (!%p695_p10), %v888_v4  ;;  %309 = vst [vmem:[#allocation2 + $0x8] sm:$0xff] (!%p695_p10), %v888_v4 }
  0x23   : > { %310 = vst [vmem:[#allocation2 + $0x10] sm:$0xff] (!%p695_p10), %v888_v4  ;;  %311 = vst [vmem:[#allocation2 + $0x18] sm:$0xff] (!%p695_p10), %v888_v4 }
  0x27 PF: > { %v826_v5 = vld [vmem:[%s959_s7 + $0x40] sm:$0xff]   ;;  %v828_v7 = vld [vmem:[%s959_s7 + $0x48] sm:$0xff]   ;;  %v830_v9 = vld [vmem:[%s959_s7 + $0x50] sm:$0xff]   ;;  %p716_p11 = scmp.ne.s32.totalorder %s878_s14, 4 }
  0x28   : > { %v827_v6 = vld [vmem:[%s959_s7] sm:$0xff]   ;;  %741 = vmatprep.subr.bf16.mxu0 %v826_v5  ;;  %769 = vmatprep.subr.bf16.mxu1 %v826_v5  ;;  %v829_v8 = vld [vmem:[%s959_s7 + $0x8] sm:$0xff]   ;;  %v831_v10 = vld [vmem:[%s959_s7 + $0x10] sm:$0xff]   ;;  %v534_v45 = vlaneseq (!%p716_p11) }
  0x29   : > { %742 = vmatpush3.bf16.msra.mxu0 %v827_v6  ;;  %777 = vmatpush3.bf16.msra.mxu1 %v827_v6  ;;  %v832_v11 = vld [vmem:[%s959_s7 + $0x58] sm:$0xff]   ;;  %v834_v13 = vld [vmem:[%s959_s7 + $0x60] sm:$0xff]   ;;  %v836_v15 = vld [vmem:[%s959_s7 + $0x68] sm:$0xff]  }
  0x2a   : > { %743 = vmatprep.subr.bf16.mxu0 %v828_v7  ;;  %770 = vmatprep.subr.bf16.mxu1 %v828_v7  ;;  %v833_v12 = vld [vmem:[%s959_s7 + $0x18] sm:$0xff]   ;;  %v835_v14 = vld [vmem:[%s959_s7 + $0x20] sm:$0xff]   ;;  %v837_v18 = vld [vmem:[%s959_s7 + $0x28] sm:$0xff]   ;;  %v535_v46 = vshrl.u32 (!%p716_p11), %v534_v45, 7 }
  0x2b   : > { %v844_v16 = vld [vmem:[%s961_s8 + $0x4] ss:$8 sps:$4 sm:$0xff]   ;;  %v847_v17 = vld [vmem:[%s961_s8 + $0x14] ss:$8 sps:$4 sm:$0xff]   ;;  %v842_v23 = vld [vmem:[%s961_s8] ss:$8 sps:$4 sm:$0xff]  }
  0x2c   : > { %v838_v19 = vld [vmem:[%s959_s7 + $0x70] sm:$0xff]   ;;  %500 = vmatprep.mubr.bf16.mxu0 %v844_v16  ;;  %508 = vmatprep.mubr.bf16.mxu1 %v847_v17  ;;  %v840_v21 = vld [vmem:[%s959_s7 + $0x78] sm:$0xff]   ;;  %v312_v27 = vld [vmem:[#allocation2] sm:$0xff]  ;;  %v536_v49 = vsub.s32 (!%p716_p11), 0, %v535_v46  ;;  %v544_v50 = vsub.s32 (!%p716_p11), 1, %v535_v46 }
  0x2d   : > { %744 = vmatpush3.bf16.msra.mxu0 %v829_v8  ;;  %778 = vmatpush3.bf16.msra.mxu1 %v829_v8  ;;  %v839_v20 = vld [vmem:[%s959_s7 + $0x30] sm:$0xff]   ;;  %v841_v22 = vld [vmem:[%s959_s7 + $0x38] sm:$0xff]   ;;  %v313_v35 = vld [vmem:[#allocation2 + $0x8] sm:$0xff] }
  0x2e   : > { %745 = vmatprep.subr.bf16.mxu0 %v830_v9  ;;  %771 = vmatprep.subr.bf16.mxu1 %v830_v9  ;;  %v845_v24 = vld [vmem:[%s961_s8 + $0x10] ss:$8 sps:$4 sm:$0xff]   ;;  %v529_v47 = vld [vmem:[%s1011_s2] sm:$0x3] (!%p716_p11) }
  0x2f   : > { %v314_v29 = vld [vmem:[#allocation2 + $0x10] sm:$0xff]  ;;  %v315_v37 = vld [vmem:[#allocation2 + $0x18] sm:$0xff]  ;;  %v537_v54 = vrot.slane (!%p716_p11), %v529_v47, %v536_v49  ;;  %v545_v55 = vrot.slane (!%p716_p11), %v529_v47, %v544_v50 }
  0x31   : > { %746 = vmatpush3.bf16.msra.mxu0 %v831_v10  ;;  %779 = vmatpush3.bf16.msra.mxu1 %v831_v10 }
  0x32   : > { %747 = vmatprep.subr.bf16.mxu0 %v832_v11  ;;  %772 = vmatprep.subr.bf16.mxu1 %v832_v11 }
  0x35   : > { %748 = vmatpush3.bf16.msra.mxu0 %v833_v12  ;;  %780 = vmatpush3.bf16.msra.mxu1 %v833_v12 }
  0x36   : > { %749 = vmatprep.subr.bf16.mxu0 %v834_v13  ;;  %773 = vmatprep.subr.bf16.mxu1 %v834_v13 }
  0x39   : > { %750 = vmatpush3.bf16.msra.mxu0 %v835_v14  ;;  %781 = vmatpush3.bf16.msra.mxu1 %v835_v14 }
  0x3a   : > { %751 = vmatprep.subr.bf16.mxu0 %v836_v15  ;;  %774 = vmatprep.subr.bf16.mxu1 %v836_v15 }
  0x3d   : > { %752 = vmatpush3.bf16.msra.mxu0 %v837_v18  ;;  %782 = vmatpush3.bf16.msra.mxu1 %v837_v18 }
  0x3e   : > { %753 = vmatprep.subr.bf16.mxu0 %v838_v19  ;;  %775 = vmatprep.subr.bf16.mxu1 %v838_v19 }
  0x41   : > { %754 = vmatpush3.bf16.msra.mxu0 %v839_v20  ;;  %783 = vmatpush3.bf16.msra.mxu1 %v839_v20 }
  0x42   : > { %755 = vmatprep.subr.bf16.mxu0 %v840_v21  ;;  %776 = vmatprep.subr.bf16.mxu1 %v840_v21 }
  0x45   : > { %756 = vmatpush3.bf16.msra.mxu0 %v841_v22  ;;  %784 = vmatpush3.bf16.msra.mxu1 %v841_v22 }
  0x48   : > { %501 = vmatmul.mubr.bf16.vlgmr.msra.gmra.mrb[0].mxu0 %v842_v23  ;;  %509 = vmatmul.mubr.bf16.vlgmr.msra.gmra.mrb[0].mxu1 %v845_v24 }
 0x11b   : > { %v757_v25 = vpop.f32.mrb[0].mxu0  ;;  %v763_v26 = vpop.f32.mrb[0].mxu1 }
 0x11c   : > { %v758_v28 = vpop.f32.mrb[1].mxu0  ;;  %v764_v30 = vpop.f32.mrb[1].mxu1 }
 0x11d   : > { %v759_v31 = vadd.f32 %v758_v28, %v757_v25  ;;  %v765_v32 = vadd.f32 %v764_v30, %v763_v26  ;;  %v760_v33 = vpop.f32.mrb[2].mxu0  ;;  %v766_v34 = vpop.f32.mrb[2].mxu1  ;;  %528 = sbr.rel (%p716_p11) target bundleno = 306 (0x132), region = 78 }
 0x11e   : > { %v761_v36 = vpop.f32.mrb[3].mxu0  ;;  %v767_v38 = vpop.f32.mrb[3].mxu1 }
 0x11f   : > { %v517_v39 = vadd.f32 %v759_v31, %v312_v27  ;;  %v519_v40 = vadd.f32 %v765_v32, %v314_v29  ;;  %v762_v41 = vadd.f32 %v761_v36, %v760_v33  ;;  %v768_v42 = vadd.f32 %v767_v38, %v766_v34 }
 0x121   : > { %521 = vst [vmem:[#allocation2] sm:$0xff] %v517_v39  ;;  %523 = vst [vmem:[#allocation2 + $0x10] sm:$0xff] %v519_v40  ;;  %v518_v43 = vadd.f32 %v762_v41, %v313_v35  ;;  %v520_v44 = vadd.f32 %v768_v42, %v315_v37 }
 0x123   : > { %522 = vst [vmem:[#allocation2 + $0x8] sm:$0xff] %v518_v43  ;;  %524 = vst [vmem:[#allocation2 + $0x18] sm:$0xff] %v520_v44 }
 0x128   : > { %v530_v48 = vld [vmem:[#allocation2] sm:$0xff]  ;;  %v532_v52 = vld [vmem:[#allocation2 + $0x10] sm:$0xff] }
 0x129   : > { %v538_v56 = vmul.f32 %v537_v54, %v530_v48  ;;  %v540_v58 = vmul.f32 %v537_v54, %v532_v52 }
 0x12a   : > { %v531_v51 = vld [vmem:[#allocation2 + $0x8] sm:$0xff]  ;;  %v533_v53 = vld [vmem:[#allocation2 + $0x18] sm:$0xff] }
 0x12b   : > { %v539_v57 = vmul.f32 %v537_v54, %v531_v51  ;;  %v541_v59 = vmul.f32 %v537_v54, %v533_v53  ;;  %v546_v60 = vadd.f32 %v545_v55, %v538_v56  ;;  %v548_v62 = vadd.f32 %v545_v55, %v540_v58 }
 0x12d   : > { %v547_v61 = vadd.f32 %v545_v55, %v539_v57  ;;  %v549_v63 = vadd.f32 %v545_v55, %v541_v59 }
 0x12f   : > { %v733_v0 = vpack.c.bf16 %v547_v61, %v546_v60  ;;  %v738_v1 = vpack.c.bf16 %v549_v63, %v548_v62 }
 0x131   : > { %734 = vst [vmem:[%s1012_s3] sm:$0xff] %v733_v0   ;;  %740 = vst [vmem:[%s1012_s3 + $0x8] sm:$0xff] %v738_v1  }
 0x132 PF: > { %s13_s16 = sadd.s32 1, %s886_s16   ;;  %s1013_s12 = smov %s874_s13 }
 0x133   : > { %p10_p12 = scmp.ge.s32.totalorder %s13_s16, 7   ;;  %s1014_s13 = smov %s944_s20 }
 0x134   : > { %s1015_s14 = smov %s882_s15  ;;  %s1016_s15 = smov %s1018_s17 }
 0x135   :  { %12 = sbr.rel (!%p10_p12) target bundleno = 3 (0x3), region = 119 }

</bundles_post_ra>
